<compile_context>
chip_gen: v7x
topology: tpu7x:2x2x1
jax: 0.10.0
libtpu: 0.0.40
codegen_flags: <defaults>
</compile_context>

<pallas_src>
import functools

import jax
import jax.numpy as jnp
from jax import lax
from jax.experimental import pallas as pl
from jax.experimental.pallas import tpu as pltpu  # noqa: F401  (TPU target)

_P2, _P3, _P4 = 5, 3, 2   # max-pool extents fixed by the MNet_100 architecture


# ----------------------------- helpers ------------------------------------


def _mish(x):
    # mish(x) = x * tanh(softplus(x)) = x * (u^2 - 1)/(u^2 + 1), u = 1 + e^x
    # (1 exp on the EUP + 1 approx reciprocal on the EUP; no div on the VPU)
    u = 1.0 + jnp.exp(jnp.minimum(x, 20.0))
    t = u * u
    return x * (t - 1.0) * pl.reciprocal(t + 1.0, approx=True)


def fold_bn(w, b, gamma, beta, mean, var, eps=1e-5):
    """Fold eval-mode BatchNorm2d into the preceding conv weights/bias."""
    scale = gamma / jnp.sqrt(var + eps)
    return w * scale[:, None, None, None], (b - mean) * scale + beta


def _rb_layout(sizes):
    """Row-bias packing: every segment starts at a lane multiple of 128."""
    offs, off = [], 0
    for s in sizes:
        offs.append(off)
        off += ((s + 127) // 128) * 128
    return offs, off


# --------------------- one-time parameter preparation -----------------------


def prepare_inference_params(params, n_chs, T):
    """Fold BN, reorder weights into the fused kernel's layouts, cast to bf16."""
    W1, b1 = params["conv1_w"], params["conv1_b"]
    W2, b2 = fold_bn(params["conv2_w"], params["conv2_b"], *params["bn2"])
    W3, b3 = fold_bn(params["conv3_w"], params["conv3_b"], *params["bn3"])
    W4, b4 = fold_bn(params["conv4_w"], params["conv4_b"], *params["bn4"])

    C1, _, K1H, K1W = W1.shape          # (40, 1, 6, 4)
    assert K1H == n_chs
    K2W = W2.shape[-1]                  # 4
    W1O = T - K1W + 1                   # 97
    W2O = W1O - K2W + 1                 # 94
    W2P = W2O // _P2                    # 18 (= conv3 image width)
    C3, _, K3H, K3W = W3.shape          # (50, 1, 8, 12)
    H3 = C1 - K3H + 1                   # 33
    W3O = W2P - K3W + 1                 # 7
    W3Ou = (W3O // _P3) * _P3           # 6: the w=6 column never survives pool3
    H3P = H3 // _P3                     # 11
    K4H = W4.shape[2]                   # 3
    H4 = H3P - K4H + 1                  # 9

    f32, bf16 = jnp.float32, jnp.bfloat16

    # conv1 per-tap operands [j, o, c]; conv2 taps folded into the contraction.
    w1k = jnp.stack([W1[:, 0, :, j] for j in range(K1W)]).astype(bf16)   # (4,40,6)
    w2f = (jnp.transpose(W2[:, :, 0, :], (0, 2, 1))
           .reshape(C1, K2W * C1).astype(bf16))                          # (40,160)
    bias_c = jnp.stack([b1, b2], axis=1).astype(f32)                     # (40,2)

    # pool2 (1,5): strided column subsampling as a 0/1 selection matmul (exact in bf16)
    s5 = jnp.zeros((W2P * _P2, W2P), f32)
    s5 = s5.at[_P2 * jnp.arange(W2P), jnp.arange(W2P)].set(1.0).astype(bf16)  # (90,18)

    # conv3 (8x12) as 8 banded matmuls; dead w band removed: lanes = w*C3 + o
    w3p = jnp.transpose(W3[:, 0, :, :], (1, 2, 0))                       # (8,12,50)
    cc = jnp.arange(W2P)[:, None]
    ww = jnp.arange(W3Ou)[None, :]
    jj = cc - ww                                                         # (18,6)
    mask = (jj >= 0) & (jj < K3W)
    vals = w3p[:, jnp.clip(jj, 0, K3W - 1), :]                           # (8,18,6,50)
    e3 = (jnp.where(mask[None, :, :, None], vals, 0.0)
          .reshape(K3H, W2P, W3Ou * C3).astype(bf16))                    # (8,18,300)
    LN3 = W3Ou * C3                                                      # 300

    # pool3 (3,3): row subsampling selection matmul
    nrow3 = H3 - _P3 + 1                                                 # 31
    s3 = jnp.zeros((H3P, nrow3), f32)
    s3 = s3.at[jnp.arange(H3P), _P3 * jnp.arange(H3P)].set(1.0).astype(bf16)  # (11,31)

    w4k = jnp.stack([W4[:, :, di, 0].T for di in range(K4H)]).astype(bf16)    # (3,50,50)

    # FC heads: layer 1 concatenated and laid out so the whole layer is one
    # (9,50)@(50, 9*2*n1) matmul with a 128-aligned diagonal gather;
    # layers 2/3 block-diagonal (one matmul each for both heads).
    (wd1, bd1), (wd2, bd2), (wd3, bd3) = params["fc_diag"]
    (ws1, bs1), (ws2, bs2), (ws3, bs3) = params["fc_subj"]
    n1, n2 = wd1.shape[0], wd2.shape[0]
    ncd, ncs = wd3.shape[0], ws3.shape[0]
    assert wd1.shape[1] == C3 * H4, "flattened feature size mismatch"
    w1cat = jnp.concatenate([wd1, ws1], axis=0)                          # (2n1, 450)
    # wfc1v[o, h*2n1 + k] = w1cat[k, o*H4 + h]
    wfc1v = w1cat.T.reshape(C3, H4 * 2 * n1).astype(bf16)                # (50, 1152)
    wfc2 = jnp.zeros((2 * n1, 2 * n2), f32)
    wfc2 = wfc2.at[:n1, :n2].set(wd2.T).at[n1:, n2:].set(ws2.T).astype(bf16)  # (128,64)
    wfc3 = jnp.zeros((2 * n2, ncd + ncs), f32)
    wfc3 = wfc3.at[:n2, :ncd].set(wd3.T).at[n2:, ncd:].set(ws3.T).astype(bf16)  # (64,5)

    # packed row-biases (f32), each segment starting at a lane multiple of 128
    segs = [
        jnp.tile(b3, W3Ou),                 # conv3 bias over lanes w*C3+o (300,)
        b4,                                 # conv4 bias               (50,)
        jnp.concatenate([bd1, bs1]),        # fc layer 1 bias          (2n1,)
        jnp.concatenate([bd2, bs2]),        # fc layer 2 bias          (2n2,)
        jnp.concatenate([bd3, bs3]),        # fc layer 3 bias          (ncd+ncs,)
    ]
    offs, total = _rb_layout([int(s.shape[0]) for s in segs])
    rb = jnp.zeros((1, total), f32)
    for o, s in zip(offs, segs):
        rb = rb.at[0, o:o + s.shape[0]].set(s.astype(f32))

    return (w1k, w2f, bias_c, s5, e3, s3, w4k, rb, wfc1v, wfc2, wfc3)


# ----------------------------- fused forward --------------------------------


def mnet100_forward(prep, x, *, n_cls, n_subj):
    """Fused MNet_100 forward. x: (B, n_chs, T) f32 -> (y_diag, y_subj)."""
    (w1k, w2f, bias_c, s5, e3, s3, w4k, rb, wfc1v, wfc2, wfc3) = prep

    B, n_chs, T = x.shape
    K1W, C1, n_chs_w = w1k.shape            # 4, 40, 6
    assert n_chs_w == n_chs
    K2W = w2f.shape[1] // C1                # 4
    W1O = T - K1W + 1                       # 97
    W2O = W1O - K2W + 1                     # 94
    span2, W2P = s5.shape                   # 90, 18
    K3H, _, LN3 = e3.shape                  # 8, 18, 300
    H3 = C1 - K3H + 1                       # 33
    H3P, nrow3 = s3.shape                   # 11, 31
    K4H, _, C3 = w4k.shape                  # 3, 50, 50
    W3Ou = LN3 // C3                        # 6
    W3P = W3Ou // _P3                       # 2
    H4 = H3P - K4H + 1                      # 9
    n1c, n2c = wfc2.shape                   # 128, 64
    n_out = wfc3.shape[1]                   # n_cls + n_subj
    offs, rb_total = _rb_layout([LN3, C3, n1c, n2c, n_out])
    OFF_B3, OFF_B4, OFF_FC1, OFF_FC2, OFF_FC3 = offs

    assert span2 == W2P * _P2 and nrow3 == H3 - _P3 + 1
    assert W3P == _P4 and wfc1v.shape == (C3, H4 * n1c)
    assert rb.shape == (1, rb_total)
    assert n_out == n_cls + n_subj

    bf16 = jnp.bfloat16

    def kernel(x_ref, w1_ref, w2_ref, bc_ref, s5_ref, e3_ref, s3_ref, w4_ref,
               rb_ref, wfc1_ref, wfc2_ref, wfc3_ref, y_ref):
        # bf16 operands, f32 accumulation, single-pass MXU (default precision)
        dot = functools.partial(jnp.dot, preferred_element_type=jnp.float32)

        for b in range(B):                  # B is tiny; unrolled inside one call
            # ---- _normalize_time: (x - mean) / std (unbiased), over time lanes ----
            xc = x_ref[b]                                     # (n_chs, T) f32
            mu = jnp.mean(xc, axis=-1, keepdims=True)
            dv = xc - mu
            var = jnp.sum(dv * dv, axis=-1, keepdims=True) / (T - 1)
            xn = dv / jnp.sqrt(var)

            # ---- conv1 (n_chs x 4) + Mish; channels on sublanes, time on lanes ----
            xnb = xn.astype(bf16)
            a1 = jnp.zeros((C1, W1O), jnp.float32)
            for j in range(K1W):
                a1 = a1 + dot(w1_ref[j], xnb[:, j:j + W1O])   # (40,6)@(6,97)
            a1 = _mish(a1 + bc_ref[:, 0:1])                   # (40,97)

            # ---- conv2 (1x4, BN folded, taps folded into K) + pool(1,5) + Mish ----
            rhs2 = jnp.concatenate([a1[:, j:j + W2O] for j in range(K2W)],
                                   axis=0).astype(bf16)       # (160,94)
            y2 = dot(w2_ref[...], rhs2) + bc_ref[:, 1:2]      # (40,94)
            m2 = y2[:, 0:span2]
            for k in range(1, _P2):
                m2 = jnp.maximum(m2, y2[:, k:k + span2])
            a2 = _mish(dot(m2.astype(bf16), s5_ref[...]))     # (40,18)
            # SwapLayer is implicit: a2 is exactly the 40x18 single-channel image
            # conv3 sees (rows = image H, lanes = image W).

            # ---- conv3 (8x12, BN folded, banded matmuls) + pool(3,3) + Mish ----
            y3 = jnp.zeros((H3, LN3), jnp.float32)
            for i in range(K3H):
                y3 = y3 + dot(a2[i:i + H3, :].astype(bf16), e3_ref[i])  # (33,18)@(18,300)
            y3 = y3 + rb_ref[:, OFF_B3:OFF_B3 + LN3]          # lanes = w*50+o
            m3 = y3[0:nrow3, :]
            for di in range(1, _P3):
                m3 = jnp.maximum(m3, y3[di:di + nrow3, :])
            ph = dot(s3_ref[...], m3.astype(bf16))            # (11,300)
            a3 = []
            for wp in range(W3P):                             # pool over w (lane groups)
                base = _P3 * wp * C3
                t = ph[:, base:base + C3]
                for dj in range(1, _P3):
                    t = jnp.maximum(t, ph[:, base + dj * C3:base + (dj + 1) * C3])
                a3.append(_mish(t))                           # (11,50)

            # ---- conv4 (3x1, BN folded) + maxpool(1,2) + Mish ----
            o4 = []
            for wp in range(W3P):
                acc = jnp.zeros((H4, C3), jnp.float32)
                for di in range(K4H):
                    acc = acc + dot(a3[wp][di:di + H4, :].astype(bf16),
                                    w4_ref[di])               # (9,50)@(50,50)
                o4.append(acc + rb_ref[:, OFF_B4:OFF_B4 + C3])
            p4 = o4[0]
            for wp in range(1, W3P):
                p4 = jnp.maximum(p4, o4[wp])
            a4 = _mish(p4)                                    # (9,50): rows=h, lanes=o

            # ---- flatten + both FC heads ----
            # one matmul + 128-aligned diagonal gather for FC layer 1 (both heads)
            M = dot(a4.astype(bf16), wfc1_ref[...])           # (9, 9*n1c)
            h1 = rb_ref[:, OFF_FC1:OFF_FC1 + n1c]
            for h in range(H4):
                h1 = h1 + M[h:h + 1, h * n1c:(h + 1) * n1c]
            h1 = _mish(h1)                                    # (1,128)
            h2 = _mish(dot(h1.astype(bf16), wfc2_ref[...])
                       + rb_ref[:, OFF_FC2:OFF_FC2 + n2c])    # (1,64)
            out = (dot(h2.astype(bf16), wfc3_ref[...])
                   + rb_ref[:, OFF_FC3:OFF_FC3 + n_out])      # (1, n_cls+n_subj)

            y_ref[b:b + 1, :] = out                           # static tiny store

    weights = (w1k, w2f, bias_c, s5, e3, s3, w4k, rb, wfc1v, wfc2, wfc3)
    # No grid: one kernel invocation, every operand DMA'd whole into VMEM once
    # (total footprint ~0.3 MiB), outputs written once.
    y = pl.pallas_call(
        kernel,
        out_shape=jax.ShapeDtypeStruct((B, n_out), jnp.float32),
    )(x.astype(jnp.float32), *weights)
    return y[:, :n_cls], y[:, n_cls:]


# --------------------------- pure-JAX reference ------------------------------


def mnet100_reference(params, x):
    """XLA reference of the PyTorch module (eval mode), for correctness check."""
    prec = lax.Precision.HIGHEST

    def mish(v):
        return v * jnp.tanh(jax.nn.softplus(v))

    def conv2d(v, w, b):
        out = lax.conv_general_dilated(
            v, w, window_strides=(1, 1), padding="VALID",
            dimension_numbers=("NCHW", "OIHW", "NCHW"), precision=prec)
        return out + b[None, :, None, None]

    def bn(v, gamma, beta, mean, var, eps=1e-5):
        inv = (gamma / jnp.sqrt(var + eps))[None, :, None, None]
        return (v - mean[None, :, None, None]) * inv + beta[None, :, None, None]

    def maxpool(v, ph, pw):
        Bv, Cv, Hv, Wv = v.shape
        Ho, Wo = Hv // ph, Wv // pw
        v = v[:, :, :Ho * ph, :Wo * pw]
        return v.reshape(Bv, Cv, Ho, ph, Wo, pw).max(axis=(3, 5))

    mu = x.mean(axis=-1, keepdims=True)
    sd = jnp.sqrt(jnp.sum((x - mu) ** 2, axis=-1, keepdims=True) / (x.shape[-1] - 1))
    xv = ((x - mu) / sd)[:, None, :, :]

    xv = mish(conv2d(xv, params["conv1_w"], params["conv1_b"]))
    xv = mish(maxpool(bn(conv2d(xv, params["conv2_w"], params["conv2_b"]),
                         *params["bn2"]), 1, 5))
    xv = xv.transpose(0, 2, 1, 3)
    xv = mish(maxpool(bn(conv2d(xv, params["conv3_w"], params["conv3_b"]),
                         *params["bn3"]), 3, 3))
    xv = mish(maxpool(bn(conv2d(xv, params["conv4_w"], params["conv4_b"]),
                         *params["bn4"]), 1, 2))
    xv = xv.reshape(xv.shape[0], -1)

    def head(h, layers):
        (wa, ba), (wb, bb), (wc, bc) = layers
        h = mish(jnp.dot(h, wa.T, precision=prec) + ba)
        h = mish(jnp.dot(h, wb.T, precision=prec) + bb)
        return jnp.dot(h, wc.T, precision=prec) + bc

    return head(xv, params["fc_diag"]), head(xv, params["fc_subj"])


# ----------------------------- init & main -----------------------------------


def init_params(key, config):
    n_fc1, n_fc2 = config["n_fc1"], config["n_fc2"]
    n_cls, n_subj = len(config["class_labels"]), config["n_subjs_tra"]
    keys = iter(jax.random.split(key, 40))

    def w(shape, scale=0.05):
        return scale * jax.random.normal(next(keys), shape, jnp.float32)

    def bn(n):
        return (
            1.0 + 0.1 * jax.random.normal(next(keys), (n,), jnp.float32),   # gamma
            0.1 * jax.random.normal(next(keys), (n,), jnp.float32),          # beta
            0.1 * jax.random.normal(next(keys), (n,), jnp.float32),          # running_mean
            jax.random.uniform(next(keys), (n,), jnp.float32, 0.5, 1.5),     # running_var
        )

    return {
        "conv1_w": w((40, 1, 6, 4)), "conv1_b": w((40,)),
        "conv2_w": w((40, 40, 1, 4)), "conv2_b": w((40,)), "bn2": bn(40),
        "conv3_w": w((50, 1, 8, 12)), "conv3_b": w((50,)), "bn3": bn(50),
        "conv4_w": w((50, 50, 3, 1)), "conv4_b": w((50,)), "bn4": bn(50),
        "fc_diag": (
            (w((n_fc1, 450)), w((n_fc1,))),
            (w((n_fc2, n_fc1)), w((n_fc2,))),
            (w((n_cls, n_fc2)), w((n_cls,))),
        ),
        "fc_subj": (
            (w((n_fc1, 450)), w((n_fc1,))),
            (w((n_fc2, n_fc1)), w((n_fc2,))),
            (w((n_subj, n_fc2)), w((n_subj,))),
        ),
    }


if __name__ == "__main__":
    # n_chs=6, T=100 so the flattened feature size is 450 (hard-coded in MNet_100).
    config = {
        "montage": [f"ch{i}" for i in range(6)],
        "n_fc1": 64,
        "n_fc2": 32,
        "d_ratio1": 0.5,
        "d_ratio2": 0.5,
        "class_labels": ["NoN-Ripple", "Ripple"],
        "n_subjs_tra": 3,
    }
    key = jax.random.PRNGKey(0)
    k_params, k_x = jax.random.split(key)
    params = init_params(k_params, config)

    B, n_chs, T = 2, len(config["montage"]), 100
    x = jax.random.normal(k_x, (B, n_chs, T), jnp.float32)

    n_cls, n_subj = len(config["class_labels"]), config["n_subjs_tra"]
    prep = prepare_inference_params(params, n_chs, T)   # one-time, outside jit
    fwd = jax.jit(functools.partial(mnet100_forward, n_cls=n_cls, n_subj=n_subj))

    y_diag, y_subj = fwd(prep, x)
    jax.block_until_ready((y_diag, y_subj))

    assert y_diag.shape == (B, n_cls) and y_subj.shape == (B, n_subj)
    assert bool(jnp.all(jnp.isfinite(y_diag))) and bool(jnp.all(jnp.isfinite(y_subj)))

    # numerical check against a pure-JAX/XLA reference of the PyTorch module
    yd_ref, ys_ref = jax.jit(mnet100_reference)(params, x)
    assert bool(jnp.allclose(y_diag, yd_ref, rtol=2e-2, atol=2e-2))
    assert bool(jnp.allclose(y_subj, ys_ref, rtol=2e-2, atol=2e-2))

    print("KERNEL_OK")
</pallas_src>

<mosaic_0001>
module attributes {stable_mosaic.version = 11 : i64} {
  func.func @kernel(%arg0: memref<2x6x100xf32, #tpu.memory_space<vmem>>, %arg1: memref<4x40x6xbf16, #tpu.memory_space<vmem>>, %arg2: memref<40x160xbf16, #tpu.memory_space<vmem>>, %arg3: memref<40x2xf32, #tpu.memory_space<vmem>>, %arg4: memref<90x18xbf16, #tpu.memory_space<vmem>>, %arg5: memref<8x18x300xbf16, #tpu.memory_space<vmem>>, %arg6: memref<11x31xbf16, #tpu.memory_space<vmem>>, %arg7: memref<3x50x50xbf16, #tpu.memory_space<vmem>>, %arg8: memref<1x896xf32, #tpu.memory_space<vmem>>, %arg9: memref<50x1152xbf16, #tpu.memory_space<vmem>>, %arg10: memref<128x64xbf16, #tpu.memory_space<vmem>>, %arg11: memref<64x5xbf16, #tpu.memory_space<vmem>>, %arg12: memref<2x5xf32, #tpu.memory_space<vmem>>) attributes {dimension_semantics = [], scalar_prefetch = 0 : i64, scratch_operands = 0 : i64, tpu.core_type = #tpu.core_type<tc>} {
    %c0 = arith.constant 0 : index
    %c0_0 = arith.constant 0 : index
    %c0_1 = arith.constant 0 : index
    %0 = vector.load %arg0[%c0, %c0_0, %c0_1] : memref<2x6x100xf32, #tpu.memory_space<vmem>>, vector<1x6x100xf32>
    %1 = vector.shape_cast %0 : vector<1x6x100xf32> to vector<6x100xf32>
    %cst = arith.constant dense<0.000000e+00> : vector<6xf32>
    %2 = vector.multi_reduction <add>, %1, %cst [1] : vector<6x100xf32> to vector<6xf32>
    %3 = vector.shape_cast %2 : vector<6xf32> to vector<6x1xf32>
    %cst_2 = arith.constant 1.000000e+02 : f32
    %4 = vector.broadcast %cst_2 : f32 to vector<6x1xf32>
    %5 = arith.divf %3, %4 : vector<6x1xf32>
    %6 = vector.broadcast %5 : vector<6x1xf32> to vector<6x100xf32>
    %7 = arith.subf %1, %6 : vector<6x100xf32>
    %8 = arith.mulf %7, %7 : vector<6x100xf32>
    %cst_3 = arith.constant dense<0.000000e+00> : vector<6xf32>
    %9 = vector.multi_reduction <add>, %8, %cst_3 [1] : vector<6x100xf32> to vector<6xf32>
    %10 = vector.shape_cast %9 : vector<6xf32> to vector<6x1xf32>
    %cst_4 = arith.constant 9.900000e+01 : f32
    %11 = vector.broadcast %cst_4 : f32 to vector<6x1xf32>
    %12 = arith.divf %10, %11 : vector<6x1xf32>
    %13 = math.sqrt %12 : vector<6x1xf32>
    %14 = vector.broadcast %13 : vector<6x1xf32> to vector<6x100xf32>
    %15 = arith.divf %7, %14 : vector<6x100xf32>
    %16 = arith.truncf %15 : vector<6x100xf32> to vector<6x100xbf16>
    %cst_5 = arith.constant 0.000000e+00 : f32
    %17 = vector.broadcast %cst_5 : f32 to vector<40x97xf32>
    %c0_6 = arith.constant 0 : index
    %c0_7 = arith.constant 0 : index
    %c0_8 = arith.constant 0 : index
    %18 = vector.load %arg1[%c0_6, %c0_7, %c0_8] : memref<4x40x6xbf16, #tpu.memory_space<vmem>>, vector<1x40x6xbf16>
    %19 = vector.shape_cast %18 : vector<1x40x6xbf16> to vector<40x6xbf16>
    %20 = vector.extract_strided_slice %16 {offsets = [0, 0], sizes = [6, 97], strides = [1, 1]} : vector<6x100xbf16> to vector<6x97xbf16>
    %cst_9 = arith.constant dense<0.000000e+00> : vector<40x97xf32>
    %21 = tpu.matmul %19, %20, %cst_9 {dimension_numbers = #tpu.dot_dimension_numbers<[1], [0], [0], [1], [0, 0, 1, 1], [], []>} : vector<40x6xbf16>, vector<6x97xbf16>, vector<40x97xf32> -> vector<40x97xf32>
    %22 = arith.addf %17, %21 : vector<40x97xf32>
    %c1 = arith.constant 1 : index
    %c0_10 = arith.constant 0 : index
    %c0_11 = arith.constant 0 : index
    %23 = vector.load %arg1[%c1, %c0_10, %c0_11] : memref<4x40x6xbf16, #tpu.memory_space<vmem>>, vector<1x40x6xbf16>
    %24 = vector.shape_cast %23 : vector<1x40x6xbf16> to vector<40x6xbf16>
    %25 = vector.extract_strided_slice %16 {offsets = [0, 1], sizes = [6, 97], strides = [1, 1]} : vector<6x100xbf16> to vector<6x97xbf16>
    %cst_12 = arith.constant dense<0.000000e+00> : vector<40x97xf32>
    %26 = tpu.matmul %24, %25, %cst_12 {dimension_numbers = #tpu.dot_dimension_numbers<[1], [0], [0], [1], [0, 0, 1, 1], [], []>} : vector<40x6xbf16>, vector<6x97xbf16>, vector<40x97xf32> -> vector<40x97xf32>
    %27 = arith.addf %22, %26 : vector<40x97xf32>
    %c2 = arith.constant 2 : index
    %c0_13 = arith.constant 0 : index
    %c0_14 = arith.constant 0 : index
    %28 = vector.load %arg1[%c2, %c0_13, %c0_14] : memref<4x40x6xbf16, #tpu.memory_space<vmem>>, vector<1x40x6xbf16>
    %29 = vector.shape_cast %28 : vector<1x40x6xbf16> to vector<40x6xbf16>
    %30 = vector.extract_strided_slice %16 {offsets = [0, 2], sizes = [6, 97], strides = [1, 1]} : vector<6x100xbf16> to vector<6x97xbf16>
    %cst_15 = arith.constant dense<0.000000e+00> : vector<40x97xf32>
    %31 = tpu.matmul %29, %30, %cst_15 {dimension_numbers = #tpu.dot_dimension_numbers<[1], [0], [0], [1], [0, 0, 1, 1], [], []>} : vector<40x6xbf16>, vector<6x97xbf16>, vector<40x97xf32> -> vector<40x97xf32>
    %32 = arith.addf %27, %31 : vector<40x97xf32>
    %c3 = arith.constant 3 : index
    %c0_16 = arith.constant 0 : index
    %c0_17 = arith.constant 0 : index
    %33 = vector.load %arg1[%c3, %c0_16, %c0_17] : memref<4x40x6xbf16, #tpu.memory_space<vmem>>, vector<1x40x6xbf16>
    %34 = vector.shape_cast %33 : vector<1x40x6xbf16> to vector<40x6xbf16>
    %35 = vector.extract_strided_slice %16 {offsets = [0, 3], sizes = [6, 97], strides = [1, 1]} : vector<6x100xbf16> to vector<6x97xbf16>
    %cst_18 = arith.constant dense<0.000000e+00> : vector<40x97xf32>
    %36 = tpu.matmul %34, %35, %cst_18 {dimension_numbers = #tpu.dot_dimension_numbers<[1], [0], [0], [1], [0, 0, 1, 1], [], []>} : vector<40x6xbf16>, vector<6x97xbf16>, vector<40x97xf32> -> vector<40x97xf32>
    %37 = arith.addf %32, %36 : vector<40x97xf32>
    %c0_19 = arith.constant 0 : index
    %c0_20 = arith.constant 0 : index
    %38 = vector.load %arg3[%c0_19, %c0_20] : memref<40x2xf32, #tpu.memory_space<vmem>>, vector<40x1xf32>
    %39 = vector.broadcast %38 : vector<40x1xf32> to vector<40x97xf32>
    %40 = arith.addf %37, %39 : vector<40x97xf32>
    %cst_21 = arith.constant 2.000000e+01 : f32
    %41 = vector.broadcast %cst_21 : f32 to vector<40x97xf32>
    %42 = arith.minimumf %40, %41 : vector<40x97xf32>
    %43 = math.exp %42 : vector<40x97xf32>
    %cst_22 = arith.constant 1.000000e+00 : f32
    %44 = vector.broadcast %cst_22 : f32 to vector<40x97xf32>
    %45 = arith.addf %44, %43 : vector<40x97xf32>
    %46 = arith.mulf %45, %45 : vector<40x97xf32>
    %cst_23 = arith.constant 1.000000e+00 : f32
    %47 = vector.broadcast %cst_23 : f32 to vector<40x97xf32>
    %48 = arith.subf %46, %47 : vector<40x97xf32>
    %49 = arith.mulf %40, %48 : vector<40x97xf32>
    %cst_24 = arith.constant 1.000000e+00 : f32
    %50 = vector.broadcast %cst_24 : f32 to vector<40x97xf32>
    %51 = arith.addf %46, %50 : vector<40x97xf32>
    %52 = tpu.reciprocal %51 {approx = true} : vector<40x97xf32> -> vector<40x97xf32>
    %53 = arith.mulf %49, %52 : vector<40x97xf32>
    %54 = vector.extract_strided_slice %53 {offsets = [0, 0], sizes = [40, 94], strides = [1, 1]} : vector<40x97xf32> to vector<40x94xf32>
    %55 = vector.extract_strided_slice %53 {offsets = [0, 1], sizes = [40, 94], strides = [1, 1]} : vector<40x97xf32> to vector<40x94xf32>
    %56 = vector.extract_strided_slice %53 {offsets = [0, 2], sizes = [40, 94], strides = [1, 1]} : vector<40x97xf32> to vector<40x94xf32>
    %57 = vector.extract_strided_slice %53 {offsets = [0, 3], sizes = [40, 94], strides = [1, 1]} : vector<40x97xf32> to vector<40x94xf32>
    %58 = tpu.concatenate %54, %55, %56, %57 in 0 : vector<40x94xf32>, vector<40x94xf32>, vector<40x94xf32>, vector<40x94xf32> -> vector<160x94xf32>
    %59 = arith.truncf %58 : vector<160x94xf32> to vector<160x94xbf16>
    %c0_25 = arith.constant 0 : index
    %c0_26 = arith.constant 0 : index
    %60 = vector.load %arg2[%c0_25, %c0_26] : memref<40x160xbf16, #tpu.memory_space<vmem>>, vector<40x160xbf16>
    %cst_27 = arith.constant dense<0.000000e+00> : vector<40x94xf32>
    %61 = tpu.matmul %60, %59, %cst_27 {dimension_numbers = #tpu.dot_dimension_numbers<[1], [0], [0], [1], [0, 0, 1, 1], [], []>} : vector<40x160xbf16>, vector<160x94xbf16>, vector<40x94xf32> -> vector<40x94xf32>
    %c0_28 = arith.constant 0 : index
    %c1_29 = arith.constant 1 : index
    %62 = vector.load %arg3[%c0_28, %c1_29] : memref<40x2xf32, #tpu.memory_space<vmem>>, vector<40x1xf32>
    %63 = vector.broadcast %62 : vector<40x1xf32> to vector<40x94xf32>
    %64 = arith.addf %61, %63 : vector<40x94xf32>
    %65 = vector.extract_strided_slice %64 {offsets = [0, 0], sizes = [40, 90], strides = [1, 1]} : vector<40x94xf32> to vector<40x90xf32>
    %66 = vector.extract_strided_slice %64 {offsets = [0, 1], sizes = [40, 90], strides = [1, 1]} : vector<40x94xf32> to vector<40x90xf32>
    %67 = arith.maximumf %65, %66 : vector<40x90xf32>
    %68 = vector.extract_strided_slice %64 {offsets = [0, 2], sizes = [40, 90], strides = [1, 1]} : vector<40x94xf32> to vector<40x90xf32>
    %69 = arith.maximumf %67, %68 : vector<40x90xf32>
    %70 = vector.extract_strided_slice %64 {offsets = [0, 3], sizes = [40, 90], strides = [1, 1]} : vector<40x94xf32> to vector<40x90xf32>
    %71 = arith.maximumf %69, %70 : vector<40x90xf32>
    %72 = vector.extract_strided_slice %64 {offsets = [0, 4], sizes = [40, 90], strides = [1, 1]} : vector<40x94xf32> to vector<40x90xf32>
    %73 = arith.maximumf %71, %72 : vector<40x90xf32>
    %74 = arith.truncf %73 : vector<40x90xf32> to vector<40x90xbf16>
    %c0_30 = arith.constant 0 : index
    %c0_31 = arith.constant 0 : index
    %75 = vector.load %arg4[%c0_30, %c0_31] : memref<90x18xbf16, #tpu.memory_space<vmem>>, vector<90x18xbf16>
    %cst_32 = arith.constant dense<0.000000e+00> : vector<40x18xf32>
    %76 = tpu.matmul %74, %75, %cst_32 {dimension_numbers = #tpu.dot_dimension_numbers<[1], [0], [0], [1], [0, 0, 1, 1], [], []>} : vector<40x90xbf16>, vector<90x18xbf16>, vector<40x18xf32> -> vector<40x18xf32>
    %cst_33 = arith.constant 2.000000e+01 : f32
    %77 = vector.broadcast %cst_33 : f32 to vector<40x18xf32>
    %78 = arith.minimumf %76, %77 : vector<40x18xf32>
    %79 = math.exp %78 : vector<40x18xf32>
    %cst_34 = arith.constant 1.000000e+00 : f32
    %80 = vector.broadcast %cst_34 : f32 to vector<40x18xf32>
    %81 = arith.addf %80, %79 : vector<40x18xf32>
    %82 = arith.mulf %81, %81 : vector<40x18xf32>
    %cst_35 = arith.constant 1.000000e+00 : f32
    %83 = vector.broadcast %cst_35 : f32 to vector<40x18xf32>
    %84 = arith.subf %82, %83 : vector<40x18xf32>
    %85 = arith.mulf %76, %84 : vector<40x18xf32>
    %cst_36 = arith.constant 1.000000e+00 : f32
    %86 = vector.broadcast %cst_36 : f32 to vector<40x18xf32>
    %87 = arith.addf %82, %86 : vector<40x18xf32>
    %88 = tpu.reciprocal %87 {approx = true} : vector<40x18xf32> -> vector<40x18xf32>
    %89 = arith.mulf %85, %88 : vector<40x18xf32>
    %cst_37 = arith.constant 0.000000e+00 : f32
    %90 = vector.broadcast %cst_37 : f32 to vector<33x300xf32>
    %91 = vector.extract_strided_slice %89 {offsets = [0, 0], sizes = [33, 18], strides = [1, 1]} : vector<40x18xf32> to vector<33x18xf32>
    %92 = arith.truncf %91 : vector<33x18xf32> to vector<33x18xbf16>
    %c0_38 = arith.constant 0 : index
    %c0_39 = arith.constant 0 : index
    %c0_40 = arith.constant 0 : index
    %93 = vector.load %arg5[%c0_38, %c0_39, %c0_40] : memref<8x18x300xbf16, #tpu.memory_space<vmem>>, vector<1x18x300xbf16>
    %94 = vector.shape_cast %93 : vector<1x18x300xbf16> to vector<18x300xbf16>
    %cst_41 = arith.constant dense<0.000000e+00> : vector<33x300xf32>
    %95 = tpu.matmul %92, %94, %cst_41 {dimension_numbers = #tpu.dot_dimension_numbers<[1], [0], [0], [1], [0, 0, 1, 1], [], []>} : vector<33x18xbf16>, vector<18x300xbf16>, vector<33x300xf32> -> vector<33x300xf32>
    %96 = arith.addf %90, %95 : vector<33x300xf32>
    %97 = vector.extract_strided_slice %89 {offsets = [1, 0], sizes = [33, 18], strides = [1, 1]} : vector<40x18xf32> to vector<33x18xf32>
    %98 = arith.truncf %97 : vector<33x18xf32> to vector<33x18xbf16>
    %c1_42 = arith.constant 1 : index
    %c0_43 = arith.constant 0 : index
    %c0_44 = arith.constant 0 : index
    %99 = vector.load %arg5[%c1_42, %c0_43, %c0_44] : memref<8x18x300xbf16, #tpu.memory_space<vmem>>, vector<1x18x300xbf16>
    %100 = vector.shape_cast %99 : vector<1x18x300xbf16> to vector<18x300xbf16>
    %cst_45 = arith.constant dense<0.000000e+00> : vector<33x300xf32>
    %101 = tpu.matmul %98, %100, %cst_45 {dimension_numbers = #tpu.dot_dimension_numbers<[1], [0], [0], [1], [0, 0, 1, 1], [], []>} : vector<33x18xbf16>, vector<18x300xbf16>, vector<33x300xf32> -> vector<33x300xf32>
    %102 = arith.addf %96, %101 : vector<33x300xf32>
    %103 = vector.extract_strided_slice %89 {offsets = [2, 0], sizes = [33, 18], strides = [1, 1]} : vector<40x18xf32> to vector<33x18xf32>
    %104 = arith.truncf %103 : vector<33x18xf32> to vector<33x18xbf16>
    %c2_46 = arith.constant 2 : index
    %c0_47 = arith.constant 0 : index
    %c0_48 = arith.constant 0 : index
    %105 = vector.load %arg5[%c2_46, %c0_47, %c0_48] : memref<8x18x300xbf16, #tpu.memory_space<vmem>>, vector<1x18x300xbf16>
    %106 = vector.shape_cast %105 : vector<1x18x300xbf16> to vector<18x300xbf16>
    %cst_49 = arith.constant dense<0.000000e+00> : vector<33x300xf32>
    %107 = tpu.matmul %104, %106, %cst_49 {dimension_numbers = #tpu.dot_dimension_numbers<[1], [0], [0], [1], [0, 0, 1, 1], [], []>} : vector<33x18xbf16>, vector<18x300xbf16>, vector<33x300xf32> -> vector<33x300xf32>
    %108 = arith.addf %102, %107 : vector<33x300xf32>
    %109 = vector.extract_strided_slice %89 {offsets = [3, 0], sizes = [33, 18], strides = [1, 1]} : vector<40x18xf32> to vector<33x18xf32>
    %110 = arith.truncf %109 : vector<33x18xf32> to vector<33x18xbf16>
    %c3_50 = arith.constant 3 : index
    %c0_51 = arith.constant 0 : index
    %c0_52 = arith.constant 0 : index
    %111 = vector.load %arg5[%c3_50, %c0_51, %c0_52] : memref<8x18x300xbf16, #tpu.memory_space<vmem>>, vector<1x18x300xbf16>
    %112 = vector.shape_cast %111 : vector<1x18x300xbf16> to vector<18x300xbf16>
    %cst_53 = arith.constant dense<0.000000e+00> : vector<33x300xf32>
    %113 = tpu.matmul %110, %112, %cst_53 {dimension_numbers = #tpu.dot_dimension_numbers<[1], [0], [0], [1], [0, 0, 1, 1], [], []>} : vector<33x18xbf16>, vector<18x300xbf16>, vector<33x300xf32> -> vector<33x300xf32>
    %114 = arith.addf %108, %113 : vector<33x300xf32>
    %115 = vector.extract_strided_slice %89 {offsets = [4, 0], sizes = [33, 18], strides = [1, 1]} : vector<40x18xf32> to vector<33x18xf32>
    %116 = arith.truncf %115 : vector<33x18xf32> to vector<33x18xbf16>
    %c4 = arith.constant 4 : index
    %c0_54 = arith.constant 0 : index
    %c0_55 = arith.constant 0 : index
    %117 = vector.load %arg5[%c4, %c0_54, %c0_55] : memref<8x18x300xbf16, #tpu.memory_space<vmem>>, vector<1x18x300xbf16>
    %118 = vector.shape_cast %117 : vector<1x18x300xbf16> to vector<18x300xbf16>
    %cst_56 = arith.constant dense<0.000000e+00> : vector<33x300xf32>
    %119 = tpu.matmul %116, %118, %cst_56 {dimension_numbers = #tpu.dot_dimension_numbers<[1], [0], [0], [1], [0, 0, 1, 1], [], []>} : vector<33x18xbf16>, vector<18x300xbf16>, vector<33x300xf32> -> vector<33x300xf32>
    %120 = arith.addf %114, %119 : vector<33x300xf32>
    %121 = vector.extract_strided_slice %89 {offsets = [5, 0], sizes = [33, 18], strides = [1, 1]} : vector<40x18xf32> to vector<33x18xf32>
    %122 = arith.truncf %121 : vector<33x18xf32> to vector<33x18xbf16>
    %c5 = arith.constant 5 : index
    %c0_57 = arith.constant 0 : index
    %c0_58 = arith.constant 0 : index
    %123 = vector.load %arg5[%c5, %c0_57, %c0_58] : memref<8x18x300xbf16, #tpu.memory_space<vmem>>, vector<1x18x300xbf16>
    %124 = vector.shape_cast %123 : vector<1x18x300xbf16> to vector<18x300xbf16>
    %cst_59 = arith.constant dense<0.000000e+00> : vector<33x300xf32>
    %125 = tpu.matmul %122, %124, %cst_59 {dimension_numbers = #tpu.dot_dimension_numbers<[1], [0], [0], [1], [0, 0, 1, 1], [], []>} : vector<33x18xbf16>, vector<18x300xbf16>, vector<33x300xf32> -> vector<33x300xf32>
    %126 = arith.addf %120, %125 : vector<33x300xf32>
    %127 = vector.extract_strided_slice %89 {offsets = [6, 0], sizes = [33, 18], strides = [1, 1]} : vector<40x18xf32> to vector<33x18xf32>
    %128 = arith.truncf %127 : vector<33x18xf32> to vector<33x18xbf16>
    %c6 = arith.constant 6 : index
    %c0_60 = arith.constant 0 : index
    %c0_61 = arith.constant 0 : index
    %129 = vector.load %arg5[%c6, %c0_60, %c0_61] : memref<8x18x300xbf16, #tpu.memory_space<vmem>>, vector<1x18x300xbf16>
    %130 = vector.shape_cast %129 : vector<1x18x300xbf16> to vector<18x300xbf16>
    %cst_62 = arith.constant dense<0.000000e+00> : vector<33x300xf32>
    %131 = tpu.matmul %128, %130, %cst_62 {dimension_numbers = #tpu.dot_dimension_numbers<[1], [0], [0], [1], [0, 0, 1, 1], [], []>} : vector<33x18xbf16>, vector<18x300xbf16>, vector<33x300xf32> -> vector<33x300xf32>
    %132 = arith.addf %126, %131 : vector<33x300xf32>
    %133 = vector.extract_strided_slice %89 {offsets = [7, 0], sizes = [33, 18], strides = [1, 1]} : vector<40x18xf32> to vector<33x18xf32>
    %134 = arith.truncf %133 : vector<33x18xf32> to vector<33x18xbf16>
    %c7 = arith.constant 7 : index
    %c0_63 = arith.constant 0 : index
    %c0_64 = arith.constant 0 : index
    %135 = vector.load %arg5[%c7, %c0_63, %c0_64] : memref<8x18x300xbf16, #tpu.memory_space<vmem>>, vector<1x18x300xbf16>
    %136 = vector.shape_cast %135 : vector<1x18x300xbf16> to vector<18x300xbf16>
    %cst_65 = arith.constant dense<0.000000e+00> : vector<33x300xf32>
    %137 = tpu.matmul %134, %136, %cst_65 {dimension_numbers = #tpu.dot_dimension_numbers<[1], [0], [0], [1], [0, 0, 1, 1], [], []>} : vector<33x18xbf16>, vector<18x300xbf16>, vector<33x300xf32> -> vector<33x300xf32>
    %138 = arith.addf %132, %137 : vector<33x300xf32>
    %c0_66 = arith.constant 0 : index
    %c0_67 = arith.constant 0 : index
    %139 = vector.load %arg8[%c0_66, %c0_67] : memref<1x896xf32, #tpu.memory_space<vmem>>, vector<1x300xf32>
    %140 = vector.broadcast %139 : vector<1x300xf32> to vector<33x300xf32>
    %141 = arith.addf %138, %140 : vector<33x300xf32>
    %142 = vector.extract_strided_slice %141 {offsets = [0, 0], sizes = [31, 300], strides = [1, 1]} : vector<33x300xf32> to vector<31x300xf32>
    %143 = vector.extract_strided_slice %141 {offsets = [1, 0], sizes = [31, 300], strides = [1, 1]} : vector<33x300xf32> to vector<31x300xf32>
    %144 = arith.maximumf %142, %143 : vector<31x300xf32>
    %145 = vector.extract_strided_slice %141 {offsets = [2, 0], sizes = [31, 300], strides = [1, 1]} : vector<33x300xf32> to vector<31x300xf32>
    %146 = arith.maximumf %144, %145 : vector<31x300xf32>
    %c0_68 = arith.constant 0 : index
    %c0_69 = arith.constant 0 : index
    %147 = vector.load %arg6[%c0_68, %c0_69] : memref<11x31xbf16, #tpu.memory_space<vmem>>, vector<11x31xbf16>
    %148 = arith.truncf %146 : vector<31x300xf32> to vector<31x300xbf16>
    %cst_70 = arith.constant dense<0.000000e+00> : vector<11x300xf32>
    %149 = tpu.matmul %147, %148, %cst_70 {dimension_numbers = #tpu.dot_dimension_numbers<[1], [0], [0], [1], [0, 0, 1, 1], [], []>} : vector<11x31xbf16>, vector<31x300xbf16>, vector<11x300xf32> -> vector<11x300xf32>
    %150 = vector.extract_strided_slice %149 {offsets = [0, 0], sizes = [11, 50], strides = [1, 1]} : vector<11x300xf32> to vector<11x50xf32>
    %151 = vector.extract_strided_slice %149 {offsets = [0, 50], sizes = [11, 50], strides = [1, 1]} : vector<11x300xf32> to vector<11x50xf32>
    %152 = arith.maximumf %150, %151 : vector<11x50xf32>
    %153 = vector.extract_strided_slice %149 {offsets = [0, 100], sizes = [11, 50], strides = [1, 1]} : vector<11x300xf32> to vector<11x50xf32>
    %154 = arith.maximumf %152, %153 : vector<11x50xf32>
    %cst_71 = arith.constant 2.000000e+01 : f32
    %155 = vector.broadcast %cst_71 : f32 to vector<11x50xf32>
    %156 = arith.minimumf %154, %155 : vector<11x50xf32>
    %157 = math.exp %156 : vector<11x50xf32>
    %cst_72 = arith.constant 1.000000e+00 : f32
    %158 = vector.broadcast %cst_72 : f32 to vector<11x50xf32>
    %159 = arith.addf %158, %157 : vector<11x50xf32>
    %160 = arith.mulf %159, %159 : vector<11x50xf32>
    %cst_73 = arith.constant 1.000000e+00 : f32
    %161 = vector.broadcast %cst_73 : f32 to vector<11x50xf32>
    %162 = arith.subf %160, %161 : vector<11x50xf32>
    %163 = arith.mulf %154, %162 : vector<11x50xf32>
    %cst_74 = arith.constant 1.000000e+00 : f32
    %164 = vector.broadcast %cst_74 : f32 to vector<11x50xf32>
    %165 = arith.addf %160, %164 : vector<11x50xf32>
    %166 = tpu.reciprocal %165 {approx = true} : vector<11x50xf32> -> vector<11x50xf32>
    %167 = arith.mulf %163, %166 : vector<11x50xf32>
    %168 = vector.extract_strided_slice %149 {offsets = [0, 150], sizes = [11, 50], strides = [1, 1]} : vector<11x300xf32> to vector<11x50xf32>
    %169 = vector.extract_strided_slice %149 {offsets = [0, 200], sizes = [11, 50], strides = [1, 1]} : vector<11x300xf32> to vector<11x50xf32>
    %170 = arith.maximumf %168, %169 : vector<11x50xf32>
    %171 = vector.extract_strided_slice %149 {offsets = [0, 250], sizes = [11, 50], strides = [1, 1]} : vector<11x300xf32> to vector<11x50xf32>
    %172 = arith.maximumf %170, %171 : vector<11x50xf32>
    %cst_75 = arith.constant 2.000000e+01 : f32
    %173 = vector.broadcast %cst_75 : f32 to vector<11x50xf32>
    %174 = arith.minimumf %172, %173 : vector<11x50xf32>
    %175 = math.exp %174 : vector<11x50xf32>
    %cst_76 = arith.constant 1.000000e+00 : f32
    %176 = vector.broadcast %cst_76 : f32 to vector<11x50xf32>
    %177 = arith.addf %176, %175 : vector<11x50xf32>
    %178 = arith.mulf %177, %177 : vector<11x50xf32>
    %cst_77 = arith.constant 1.000000e+00 : f32
    %179 = vector.broadcast %cst_77 : f32 to vector<11x50xf32>
    %180 = arith.subf %178, %179 : vector<11x50xf32>
    %181 = arith.mulf %172, %180 : vector<11x50xf32>
    %cst_78 = arith.constant 1.000000e+00 : f32
    %182 = vector.broadcast %cst_78 : f32 to vector<11x50xf32>
    %183 = arith.addf %178, %182 : vector<11x50xf32>
    %184 = tpu.reciprocal %183 {approx = true} : vector<11x50xf32> -> vector<11x50xf32>
    %185 = arith.mulf %181, %184 : vector<11x50xf32>
    %cst_79 = arith.constant 0.000000e+00 : f32
    %186 = vector.broadcast %cst_79 : f32 to vector<9x50xf32>
    %187 = vector.extract_strided_slice %167 {offsets = [0, 0], sizes = [9, 50], strides = [1, 1]} : vector<11x50xf32> to vector<9x50xf32>
    %188 = arith.truncf %187 : vector<9x50xf32> to vector<9x50xbf16>
    %c0_80 = arith.constant 0 : index
    %c0_81 = arith.constant 0 : index
    %c0_82 = arith.constant 0 : index
    %189 = vector.load %arg7[%c0_80, %c0_81, %c0_82] : memref<3x50x50xbf16, #tpu.memory_space<vmem>>, vector<1x50x50xbf16>
    %190 = vector.shape_cast %189 : vector<1x50x50xbf16> to vector<50x50xbf16>
    %cst_83 = arith.constant dense<0.000000e+00> : vector<9x50xf32>
    %191 = tpu.matmul %188, %190, %cst_83 {dimension_numbers = #tpu.dot_dimension_numbers<[1], [0], [0], [1], [0, 0, 1, 1], [], []>} : vector<9x50xbf16>, vector<50x50xbf16>, vector<9x50xf32> -> vector<9x50xf32>
    %192 = arith.addf %186, %191 : vector<9x50xf32>
    %193 = vector.extract_strided_slice %167 {offsets = [1, 0], sizes = [9, 50], strides = [1, 1]} : vector<11x50xf32> to vector<9x50xf32>
    %194 = arith.truncf %193 : vector<9x50xf32> to vector<9x50xbf16>
    %c1_84 = arith.constant 1 : index
    %c0_85 = arith.constant 0 : index
    %c0_86 = arith.constant 0 : index
    %195 = vector.load %arg7[%c1_84, %c0_85, %c0_86] : memref<3x50x50xbf16, #tpu.memory_space<vmem>>, vector<1x50x50xbf16>
    %196 = vector.shape_cast %195 : vector<1x50x50xbf16> to vector<50x50xbf16>
    %cst_87 = arith.constant dense<0.000000e+00> : vector<9x50xf32>
    %197 = tpu.matmul %194, %196, %cst_87 {dimension_numbers = #tpu.dot_dimension_numbers<[1], [0], [0], [1], [0, 0, 1, 1], [], []>} : vector<9x50xbf16>, vector<50x50xbf16>, vector<9x50xf32> -> vector<9x50xf32>
    %198 = arith.addf %192, %197 : vector<9x50xf32>
    %199 = vector.extract_strided_slice %167 {offsets = [2, 0], sizes = [9, 50], strides = [1, 1]} : vector<11x50xf32> to vector<9x50xf32>
    %200 = arith.truncf %199 : vector<9x50xf32> to vector<9x50xbf16>
    %c2_88 = arith.constant 2 : index
    %c0_89 = arith.constant 0 : index
    %c0_90 = arith.constant 0 : index
    %201 = vector.load %arg7[%c2_88, %c0_89, %c0_90] : memref<3x50x50xbf16, #tpu.memory_space<vmem>>, vector<1x50x50xbf16>
    %202 = vector.shape_cast %201 : vector<1x50x50xbf16> to vector<50x50xbf16>
    %cst_91 = arith.constant dense<0.000000e+00> : vector<9x50xf32>
    %203 = tpu.matmul %200, %202, %cst_91 {dimension_numbers = #tpu.dot_dimension_numbers<[1], [0], [0], [1], [0, 0, 1, 1], [], []>} : vector<9x50xbf16>, vector<50x50xbf16>, vector<9x50xf32> -> vector<9x50xf32>
    %204 = arith.addf %198, %203 : vector<9x50xf32>
    %c0_92 = arith.constant 0 : index
    %c384 = arith.constant 384 : index
    %205 = vector.load %arg8[%c0_92, %c384] : memref<1x896xf32, #tpu.memory_space<vmem>>, vector<1x50xf32>
    %206 = vector.broadcast %205 : vector<1x50xf32> to vector<9x50xf32>
    %207 = arith.addf %204, %206 : vector<9x50xf32>
    %cst_93 = arith.constant 0.000000e+00 : f32
    %208 = vector.broadcast %cst_93 : f32 to vector<9x50xf32>
    %209 = vector.extract_strided_slice %185 {offsets = [0, 0], sizes = [9, 50], strides = [1, 1]} : vector<11x50xf32> to vector<9x50xf32>
    %210 = arith.truncf %209 : vector<9x50xf32> to vector<9x50xbf16>
    %c0_94 = arith.constant 0 : index
    %c0_95 = arith.constant 0 : index
    %c0_96 = arith.constant 0 : index
    %211 = vector.load %arg7[%c0_94, %c0_95, %c0_96] : memref<3x50x50xbf16, #tpu.memory_space<vmem>>, vector<1x50x50xbf16>
    %212 = vector.shape_cast %211 : vector<1x50x50xbf16> to vector<50x50xbf16>
    %cst_97 = arith.constant dense<0.000000e+00> : vector<9x50xf32>
    %213 = tpu.matmul %210, %212, %cst_97 {dimension_numbers = #tpu.dot_dimension_numbers<[1], [0], [0], [1], [0, 0, 1, 1], [], []>} : vector<9x50xbf16>, vector<50x50xbf16>, vector<9x50xf32> -> vector<9x50xf32>
    %214 = arith.addf %208, %213 : vector<9x50xf32>
    %215 = vector.extract_strided_slice %185 {offsets = [1, 0], sizes = [9, 50], strides = [1, 1]} : vector<11x50xf32> to vector<9x50xf32>
    %216 = arith.truncf %215 : vector<9x50xf32> to vector<9x50xbf16>
    %c1_98 = arith.constant 1 : index
    %c0_99 = arith.constant 0 : index
    %c0_100 = arith.constant 0 : index
    %217 = vector.load %arg7[%c1_98, %c0_99, %c0_100] : memref<3x50x50xbf16, #tpu.memory_space<vmem>>, vector<1x50x50xbf16>
    %218 = vector.shape_cast %217 : vector<1x50x50xbf16> to vector<50x50xbf16>
    %cst_101 = arith.constant dense<0.000000e+00> : vector<9x50xf32>
    %219 = tpu.matmul %216, %218, %cst_101 {dimension_numbers = #tpu.dot_dimension_numbers<[1], [0], [0], [1], [0, 0, 1, 1], [], []>} : vector<9x50xbf16>, vector<50x50xbf16>, vector<9x50xf32> -> vector<9x50xf32>
    %220 = arith.addf %214, %219 : vector<9x50xf32>
    %221 = vector.extract_strided_slice %185 {offsets = [2, 0], sizes = [9, 50], strides = [1, 1]} : vector<11x50xf32> to vector<9x50xf32>
    %222 = arith.truncf %221 : vector<9x50xf32> to vector<9x50xbf16>
    %c2_102 = arith.constant 2 : index
    %c0_103 = arith.constant 0 : index
    %c0_104 = arith.constant 0 : index
    %223 = vector.load %arg7[%c2_102, %c0_103, %c0_104] : memref<3x50x50xbf16, #tpu.memory_space<vmem>>, vector<1x50x50xbf16>
    %224 = vector.shape_cast %223 : vector<1x50x50xbf16> to vector<50x50xbf16>
    %cst_105 = arith.constant dense<0.000000e+00> : vector<9x50xf32>
    %225 = tpu.matmul %222, %224, %cst_105 {dimension_numbers = #tpu.dot_dimension_numbers<[1], [0], [0], [1], [0, 0, 1, 1], [], []>} : vector<9x50xbf16>, vector<50x50xbf16>, vector<9x50xf32> -> vector<9x50xf32>
    %226 = arith.addf %220, %225 : vector<9x50xf32>
    %c0_106 = arith.constant 0 : index
    %c384_107 = arith.constant 384 : index
    %227 = vector.load %arg8[%c0_106, %c384_107] : memref<1x896xf32, #tpu.memory_space<vmem>>, vector<1x50xf32>
    %228 = vector.broadcast %227 : vector<1x50xf32> to vector<9x50xf32>
    %229 = arith.addf %226, %228 : vector<9x50xf32>
    %230 = arith.maximumf %207, %229 : vector<9x50xf32>
    %cst_108 = arith.constant 2.000000e+01 : f32
    %231 = vector.broadcast %cst_108 : f32 to vector<9x50xf32>
    %232 = arith.minimumf %230, %231 : vector<9x50xf32>
    %233 = math.exp %232 : vector<9x50xf32>
    %cst_109 = arith.constant 1.000000e+00 : f32
    %234 = vector.broadcast %cst_109 : f32 to vector<9x50xf32>
    %235 = arith.addf %234, %233 : vector<9x50xf32>
    %236 = arith.mulf %235, %235 : vector<9x50xf32>
    %cst_110 = arith.constant 1.000000e+00 : f32
    %237 = vector.broadcast %cst_110 : f32 to vector<9x50xf32>
    %238 = arith.subf %236, %237 : vector<9x50xf32>
    %239 = arith.mulf %230, %238 : vector<9x50xf32>
    %cst_111 = arith.constant 1.000000e+00 : f32
    %240 = vector.broadcast %cst_111 : f32 to vector<9x50xf32>
    %241 = arith.addf %236, %240 : vector<9x50xf32>
    %242 = tpu.reciprocal %241 {approx = true} : vector<9x50xf32> -> vector<9x50xf32>
    %243 = arith.mulf %239, %242 : vector<9x50xf32>
    %244 = arith.truncf %243 : vector<9x50xf32> to vector<9x50xbf16>
    %c0_112 = arith.constant 0 : index
    %c0_113 = arith.constant 0 : index
    %245 = vector.load %arg9[%c0_112, %c0_113] : memref<50x1152xbf16, #tpu.memory_space<vmem>>, vector<50x1152xbf16>
    %cst_114 = arith.constant dense<0.000000e+00> : vector<9x1152xf32>
    %246 = tpu.matmul %244, %245, %cst_114 {dimension_numbers = #tpu.dot_dimension_numbers<[1], [0], [0], [1], [0, 0, 1, 1], [], []>} : vector<9x50xbf16>, vector<50x1152xbf16>, vector<9x1152xf32> -> vector<9x1152xf32>
    %c0_115 = arith.constant 0 : index
    %c512 = arith.constant 512 : index
    %247 = vector.load %arg8[%c0_115, %c512] : memref<1x896xf32, #tpu.memory_space<vmem>>, vector<1x128xf32>
    %248 = vector.extract_strided_slice %246 {offsets = [0, 0], sizes = [1, 128], strides = [1, 1]} : vector<9x1152xf32> to vector<1x128xf32>
    %249 = arith.addf %247, %248 : vector<1x128xf32>
    %250 = vector.extract_strided_slice %246 {offsets = [1, 128], sizes = [1, 128], strides = [1, 1]} : vector<9x1152xf32> to vector<1x128xf32>
    %251 = arith.addf %249, %250 : vector<1x128xf32>
    %252 = vector.extract_strided_slice %246 {offsets = [2, 256], sizes = [1, 128], strides = [1, 1]} : vector<9x1152xf32> to vector<1x128xf32>
    %253 = arith.addf %251, %252 : vector<1x128xf32>
    %254 = vector.extract_strided_slice %246 {offsets = [3, 384], sizes = [1, 128], strides = [1, 1]} : vector<9x1152xf32> to vector<1x128xf32>
    %255 = arith.addf %253, %254 : vector<1x128xf32>
    %256 = vector.extract_strided_slice %246 {offsets = [4, 512], sizes = [1, 128], strides = [1, 1]} : vector<9x1152xf32> to vector<1x128xf32>
    %257 = arith.addf %255, %256 : vector<1x128xf32>
    %258 = vector.extract_strided_slice %246 {offsets = [5, 640], sizes = [1, 128], strides = [1, 1]} : vector<9x1152xf32> to vector<1x128xf32>
    %259 = arith.addf %257, %258 : vector<1x128xf32>
    %260 = vector.extract_strided_slice %246 {offsets = [6, 768], sizes = [1, 128], strides = [1, 1]} : vector<9x1152xf32> to vector<1x128xf32>
    %261 = arith.addf %259, %260 : vector<1x128xf32>
    %262 = vector.extract_strided_slice %246 {offsets = [7, 896], sizes = [1, 128], strides = [1, 1]} : vector<9x1152xf32> to vector<1x128xf32>
    %263 = arith.addf %261, %262 : vector<1x128xf32>
    %264 = vector.extract_strided_slice %246 {offsets = [8, 1024], sizes = [1, 128], strides = [1, 1]} : vector<9x1152xf32> to vector<1x128xf32>
    %265 = arith.addf %263, %264 : vector<1x128xf32>
    %cst_116 = arith.constant 2.000000e+01 : f32
    %266 = vector.broadcast %cst_116 : f32 to vector<1x128xf32>
    %267 = arith.minimumf %265, %266 : vector<1x128xf32>
    %268 = math.exp %267 : vector<1x128xf32>
    %cst_117 = arith.constant 1.000000e+00 : f32
    %269 = vector.broadcast %cst_117 : f32 to vector<1x128xf32>
    %270 = arith.addf %269, %268 : vector<1x128xf32>
    %271 = arith.mulf %270, %270 : vector<1x128xf32>
    %cst_118 = arith.constant 1.000000e+00 : f32
    %272 = vector.broadcast %cst_118 : f32 to vector<1x128xf32>
    %273 = arith.subf %271, %272 : vector<1x128xf32>
    %274 = arith.mulf %265, %273 : vector<1x128xf32>
    %cst_119 = arith.constant 1.000000e+00 : f32
    %275 = vector.broadcast %cst_119 : f32 to vector<1x128xf32>
    %276 = arith.addf %271, %275 : vector<1x128xf32>
    %277 = tpu.reciprocal %276 {approx = true} : vector<1x128xf32> -> vector<1x128xf32>
    %278 = arith.mulf %274, %277 : vector<1x128xf32>
    %279 = arith.truncf %278 : vector<1x128xf32> to vector<1x128xbf16>
    %c0_120 = arith.constant 0 : index
    %c0_121 = arith.constant 0 : index
    %280 = vector.load %arg10[%c0_120, %c0_121] : memref<128x64xbf16, #tpu.memory_space<vmem>>, vector<128x64xbf16>
    %cst_122 = arith.constant dense<0.000000e+00> : vector<1x64xf32>
    %281 = tpu.matmul %279, %280, %cst_122 {dimension_numbers = #tpu.dot_dimension_numbers<[1], [0], [0], [1], [0, 0, 1, 1], [], []>} : vector<1x128xbf16>, vector<128x64xbf16>, vector<1x64xf32> -> vector<1x64xf32>
    %c0_123 = arith.constant 0 : index
    %c640 = arith.constant 640 : index
    %282 = vector.load %arg8[%c0_123, %c640] : memref<1x896xf32, #tpu.memory_space<vmem>>, vector<1x64xf32>
    %283 = arith.addf %281, %282 : vector<1x64xf32>
    %cst_124 = arith.constant 2.000000e+01 : f32
    %284 = vector.broadcast %cst_124 : f32 to vector<1x64xf32>
    %285 = arith.minimumf %283, %284 : vector<1x64xf32>
    %286 = math.exp %285 : vector<1x64xf32>
    %cst_125 = arith.constant 1.000000e+00 : f32
    %287 = vector.broadcast %cst_125 : f32 to vector<1x64xf32>
    %288 = arith.addf %287, %286 : vector<1x64xf32>
    %289 = arith.mulf %288, %288 : vector<1x64xf32>
    %cst_126 = arith.constant 1.000000e+00 : f32
    %290 = vector.broadcast %cst_126 : f32 to vector<1x64xf32>
    %291 = arith.subf %289, %290 : vector<1x64xf32>
    %292 = arith.mulf %283, %291 : vector<1x64xf32>
    %cst_127 = arith.constant 1.000000e+00 : f32
    %293 = vector.broadcast %cst_127 : f32 to vector<1x64xf32>
    %294 = arith.addf %289, %293 : vector<1x64xf32>
    %295 = tpu.reciprocal %294 {approx = true} : vector<1x64xf32> -> vector<1x64xf32>
    %296 = arith.mulf %292, %295 : vector<1x64xf32>
    %297 = arith.truncf %296 : vector<1x64xf32> to vector<1x64xbf16>
    %c0_128 = arith.constant 0 : index
    %c0_129 = arith.constant 0 : index
    %298 = vector.load %arg11[%c0_128, %c0_129] : memref<64x5xbf16, #tpu.memory_space<vmem>>, vector<64x5xbf16>
    %cst_130 = arith.constant dense<0.000000e+00> : vector<1x5xf32>
    %299 = tpu.matmul %297, %298, %cst_130 {dimension_numbers = #tpu.dot_dimension_numbers<[1], [0], [0], [1], [0, 0, 1, 1], [], []>} : vector<1x64xbf16>, vector<64x5xbf16>, vector<1x5xf32> -> vector<1x5xf32>
    %c0_131 = arith.constant 0 : index
    %c768 = arith.constant 768 : index
    %300 = vector.load %arg8[%c0_131, %c768] : memref<1x896xf32, #tpu.memory_space<vmem>>, vector<1x5xf32>
    %301 = arith.addf %299, %300 : vector<1x5xf32>
    %c0_132 = arith.constant 0 : index
    %c0_133 = arith.constant 0 : index
    %302 = vector.load %arg12[%c0_132, %c0_133] : memref<2x5xf32, #tpu.memory_space<vmem>>, vector<1x5xf32>
    tpu.vector_store %arg12[%c0_132, %c0_133], %301 {strides = array<i32>} : memref<2x5xf32, #tpu.memory_space<vmem>>, vector<1x5xf32>,
    %c1_134 = arith.constant 1 : index
    %c0_135 = arith.constant 0 : index
    %c0_136 = arith.constant 0 : index
    %303 = vector.load %arg0[%c1_134, %c0_135, %c0_136] : memref<2x6x100xf32, #tpu.memory_space<vmem>>, vector<1x6x100xf32>
    %304 = vector.shape_cast %303 : vector<1x6x100xf32> to vector<6x100xf32>
    %cst_137 = arith.constant dense<0.000000e+00> : vector<6xf32>
    %305 = vector.multi_reduction <add>, %304, %cst_137 [1] : vector<6x100xf32> to vector<6xf32>
    %306 = vector.shape_cast %305 : vector<6xf32> to vector<6x1xf32>
    %cst_138 = arith.constant 1.000000e+02 : f32
    %307 = vector.broadcast %cst_138 : f32 to vector<6x1xf32>
    %308 = arith.divf %306, %307 : vector<6x1xf32>
    %309 = vector.broadcast %308 : vector<6x1xf32> to vector<6x100xf32>
    %310 = arith.subf %304, %309 : vector<6x100xf32>
    %311 = arith.mulf %310, %310 : vector<6x100xf32>
    %cst_139 = arith.constant dense<0.000000e+00> : vector<6xf32>
    %312 = vector.multi_reduction <add>, %311, %cst_139 [1] : vector<6x100xf32> to vector<6xf32>
    %313 = vector.shape_cast %312 : vector<6xf32> to vector<6x1xf32>
    %cst_140 = arith.constant 9.900000e+01 : f32
    %314 = vector.broadcast %cst_140 : f32 to vector<6x1xf32>
    %315 = arith.divf %313, %314 : vector<6x1xf32>
    %316 = math.sqrt %315 : vector<6x1xf32>
    %317 = vector.broadcast %316 : vector<6x1xf32> to vector<6x100xf32>
    %318 = arith.divf %310, %317 : vector<6x100xf32>
    %319 = arith.truncf %318 : vector<6x100xf32> to vector<6x100xbf16>
    %cst_141 = arith.constant 0.000000e+00 : f32
    %320 = vector.broadcast %cst_141 : f32 to vector<40x97xf32>
    %c0_142 = arith.constant 0 : index
    %c0_143 = arith.constant 0 : index
    %c0_144 = arith.constant 0 : index
    %321 = vector.load %arg1[%c0_142, %c0_143, %c0_144] : memref<4x40x6xbf16, #tpu.memory_space<vmem>>, vector<1x40x6xbf16>
    %322 = vector.shape_cast %321 : vector<1x40x6xbf16> to vector<40x6xbf16>
    %323 = vector.extract_strided_slice %319 {offsets = [0, 0], sizes = [6, 97], strides = [1, 1]} : vector<6x100xbf16> to vector<6x97xbf16>
    %cst_145 = arith.constant dense<0.000000e+00> : vector<40x97xf32>
    %324 = tpu.matmul %322, %323, %cst_145 {dimension_numbers = #tpu.dot_dimension_numbers<[1], [0], [0], [1], [0, 0, 1, 1], [], []>} : vector<40x6xbf16>, vector<6x97xbf16>, vector<40x97xf32> -> vector<40x97xf32>
    %325 = arith.addf %320, %324 : vector<40x97xf32>
    %c1_146 = arith.constant 1 : index
    %c0_147 = arith.constant 0 : index
    %c0_148 = arith.constant 0 : index
    %326 = vector.load %arg1[%c1_146, %c0_147, %c0_148] : memref<4x40x6xbf16, #tpu.memory_space<vmem>>, vector<1x40x6xbf16>
    %327 = vector.shape_cast %326 : vector<1x40x6xbf16> to vector<40x6xbf16>
    %328 = vector.extract_strided_slice %319 {offsets = [0, 1], sizes = [6, 97], strides = [1, 1]} : vector<6x100xbf16> to vector<6x97xbf16>
    %cst_149 = arith.constant dense<0.000000e+00> : vector<40x97xf32>
    %329 = tpu.matmul %327, %328, %cst_149 {dimension_numbers = #tpu.dot_dimension_numbers<[1], [0], [0], [1], [0, 0, 1, 1], [], []>} : vector<40x6xbf16>, vector<6x97xbf16>, vector<40x97xf32> -> vector<40x97xf32>
    %330 = arith.addf %325, %329 : vector<40x97xf32>
    %c2_150 = arith.constant 2 : index
    %c0_151 = arith.constant 0 : index
    %c0_152 = arith.constant 0 : index
    %331 = vector.load %arg1[%c2_150, %c0_151, %c0_152] : memref<4x40x6xbf16, #tpu.memory_space<vmem>>, vector<1x40x6xbf16>
    %332 = vector.shape_cast %331 : vector<1x40x6xbf16> to vector<40x6xbf16>
    %333 = vector.extract_strided_slice %319 {offsets = [0, 2], sizes = [6, 97], strides = [1, 1]} : vector<6x100xbf16> to vector<6x97xbf16>
    %cst_153 = arith.constant dense<0.000000e+00> : vector<40x97xf32>
    %334 = tpu.matmul %332, %333, %cst_153 {dimension_numbers = #tpu.dot_dimension_numbers<[1], [0], [0], [1], [0, 0, 1, 1], [], []>} : vector<40x6xbf16>, vector<6x97xbf16>, vector<40x97xf32> -> vector<40x97xf32>
    %335 = arith.addf %330, %334 : vector<40x97xf32>
    %c3_154 = arith.constant 3 : index
    %c0_155 = arith.constant 0 : index
    %c0_156 = arith.constant 0 : index
    %336 = vector.load %arg1[%c3_154, %c0_155, %c0_156] : memref<4x40x6xbf16, #tpu.memory_space<vmem>>, vector<1x40x6xbf16>
    %337 = vector.shape_cast %336 : vector<1x40x6xbf16> to vector<40x6xbf16>
    %338 = vector.extract_strided_slice %319 {offsets = [0, 3], sizes = [6, 97], strides = [1, 1]} : vector<6x100xbf16> to vector<6x97xbf16>
    %cst_157 = arith.constant dense<0.000000e+00> : vector<40x97xf32>
    %339 = tpu.matmul %337, %338, %cst_157 {dimension_numbers = #tpu.dot_dimension_numbers<[1], [0], [0], [1], [0, 0, 1, 1], [], []>} : vector<40x6xbf16>, vector<6x97xbf16>, vector<40x97xf32> -> vector<40x97xf32>
    %340 = arith.addf %335, %339 : vector<40x97xf32>
    %c0_158 = arith.constant 0 : index
    %c0_159 = arith.constant 0 : index
    %341 = vector.load %arg3[%c0_158, %c0_159] : memref<40x2xf32, #tpu.memory_space<vmem>>, vector<40x1xf32>
    %342 = vector.broadcast %341 : vector<40x1xf32> to vector<40x97xf32>
    %343 = arith.addf %340, %342 : vector<40x97xf32>
    %cst_160 = arith.constant 2.000000e+01 : f32
    %344 = vector.broadcast %cst_160 : f32 to vector<40x97xf32>
    %345 = arith.minimumf %343, %344 : vector<40x97xf32>
    %346 = math.exp %345 : vector<40x97xf32>
    %cst_161 = arith.constant 1.000000e+00 : f32
    %347 = vector.broadcast %cst_161 : f32 to vector<40x97xf32>
    %348 = arith.addf %347, %346 : vector<40x97xf32>
    %349 = arith.mulf %348, %348 : vector<40x97xf32>
    %cst_162 = arith.constant 1.000000e+00 : f32
    %350 = vector.broadcast %cst_162 : f32 to vector<40x97xf32>
    %351 = arith.subf %349, %350 : vector<40x97xf32>
    %352 = arith.mulf %343, %351 : vector<40x97xf32>
    %cst_163 = arith.constant 1.000000e+00 : f32
    %353 = vector.broadcast %cst_163 : f32 to vector<40x97xf32>
    %354 = arith.addf %349, %353 : vector<40x97xf32>
    %355 = tpu.reciprocal %354 {approx = true} : vector<40x97xf32> -> vector<40x97xf32>
    %356 = arith.mulf %352, %355 : vector<40x97xf32>
    %357 = vector.extract_strided_slice %356 {offsets = [0, 0], sizes = [40, 94], strides = [1, 1]} : vector<40x97xf32> to vector<40x94xf32>
    %358 = vector.extract_strided_slice %356 {offsets = [0, 1], sizes = [40, 94], strides = [1, 1]} : vector<40x97xf32> to vector<40x94xf32>
    %359 = vector.extract_strided_slice %356 {offsets = [0, 2], sizes = [40, 94], strides = [1, 1]} : vector<40x97xf32> to vector<40x94xf32>
    %360 = vector.extract_strided_slice %356 {offsets = [0, 3], sizes = [40, 94], strides = [1, 1]} : vector<40x97xf32> to vector<40x94xf32>
    %361 = tpu.concatenate %357, %358, %359, %360 in 0 : vector<40x94xf32>, vector<40x94xf32>, vector<40x94xf32>, vector<40x94xf32> -> vector<160x94xf32>
    %362 = arith.truncf %361 : vector<160x94xf32> to vector<160x94xbf16>
    %c0_164 = arith.constant 0 : index
    %c0_165 = arith.constant 0 : index
    %363 = vector.load %arg2[%c0_164, %c0_165] : memref<40x160xbf16, #tpu.memory_space<vmem>>, vector<40x160xbf16>
    %cst_166 = arith.constant dense<0.000000e+00> : vector<40x94xf32>
    %364 = tpu.matmul %363, %362, %cst_166 {dimension_numbers = #tpu.dot_dimension_numbers<[1], [0], [0], [1], [0, 0, 1, 1], [], []>} : vector<40x160xbf16>, vector<160x94xbf16>, vector<40x94xf32> -> vector<40x94xf32>
    %c0_167 = arith.constant 0 : index
    %c1_168 = arith.constant 1 : index
    %365 = vector.load %arg3[%c0_167, %c1_168] : memref<40x2xf32, #tpu.memory_space<vmem>>, vector<40x1xf32>
    %366 = vector.broadcast %365 : vector<40x1xf32> to vector<40x94xf32>
    %367 = arith.addf %364, %366 : vector<40x94xf32>
    %368 = vector.extract_strided_slice %367 {offsets = [0, 0], sizes = [40, 90], strides = [1, 1]} : vector<40x94xf32> to vector<40x90xf32>
    %369 = vector.extract_strided_slice %367 {offsets = [0, 1], sizes = [40, 90], strides = [1, 1]} : vector<40x94xf32> to vector<40x90xf32>
    %370 = arith.maximumf %368, %369 : vector<40x90xf32>
    %371 = vector.extract_strided_slice %367 {offsets = [0, 2], sizes = [40, 90], strides = [1, 1]} : vector<40x94xf32> to vector<40x90xf32>
    %372 = arith.maximumf %370, %371 : vector<40x90xf32>
    %373 = vector.extract_strided_slice %367 {offsets = [0, 3], sizes = [40, 90], strides = [1, 1]} : vector<40x94xf32> to vector<40x90xf32>
    %374 = arith.maximumf %372, %373 : vector<40x90xf32>
    %375 = vector.extract_strided_slice %367 {offsets = [0, 4], sizes = [40, 90], strides = [1, 1]} : vector<40x94xf32> to vector<40x90xf32>
    %376 = arith.maximumf %374, %375 : vector<40x90xf32>
    %377 = arith.truncf %376 : vector<40x90xf32> to vector<40x90xbf16>
    %c0_169 = arith.constant 0 : index
    %c0_170 = arith.constant 0 : index
    %378 = vector.load %arg4[%c0_169, %c0_170] : memref<90x18xbf16, #tpu.memory_space<vmem>>, vector<90x18xbf16>
    %cst_171 = arith.constant dense<0.000000e+00> : vector<40x18xf32>
    %379 = tpu.matmul %377, %378, %cst_171 {dimension_numbers = #tpu.dot_dimension_numbers<[1], [0], [0], [1], [0, 0, 1, 1], [], []>} : vector<40x90xbf16>, vector<90x18xbf16>, vector<40x18xf32> -> vector<40x18xf32>
    %cst_172 = arith.constant 2.000000e+01 : f32
    %380 = vector.broadcast %cst_172 : f32 to vector<40x18xf32>
    %381 = arith.minimumf %379, %380 : vector<40x18xf32>
    %382 = math.exp %381 : vector<40x18xf32>
    %cst_173 = arith.constant 1.000000e+00 : f32
    %383 = vector.broadcast %cst_173 : f32 to vector<40x18xf32>
    %384 = arith.addf %383, %382 : vector<40x18xf32>
    %385 = arith.mulf %384, %384 : vector<40x18xf32>
    %cst_174 = arith.constant 1.000000e+00 : f32
    %386 = vector.broadcast %cst_174 : f32 to vector<40x18xf32>
    %387 = arith.subf %385, %386 : vector<40x18xf32>
    %388 = arith.mulf %379, %387 : vector<40x18xf32>
    %cst_175 = arith.constant 1.000000e+00 : f32
    %389 = vector.broadcast %cst_175 : f32 to vector<40x18xf32>
    %390 = arith.addf %385, %389 : vector<40x18xf32>
    %391 = tpu.reciprocal %390 {approx = true} : vector<40x18xf32> -> vector<40x18xf32>
    %392 = arith.mulf %388, %391 : vector<40x18xf32>
    %cst_176 = arith.constant 0.000000e+00 : f32
    %393 = vector.broadcast %cst_176 : f32 to vector<33x300xf32>
    %394 = vector.extract_strided_slice %392 {offsets = [0, 0], sizes = [33, 18], strides = [1, 1]} : vector<40x18xf32> to vector<33x18xf32>
    %395 = arith.truncf %394 : vector<33x18xf32> to vector<33x18xbf16>
    %c0_177 = arith.constant 0 : index
    %c0_178 = arith.constant 0 : index
    %c0_179 = arith.constant 0 : index
    %396 = vector.load %arg5[%c0_177, %c0_178, %c0_179] : memref<8x18x300xbf16, #tpu.memory_space<vmem>>, vector<1x18x300xbf16>
    %397 = vector.shape_cast %396 : vector<1x18x300xbf16> to vector<18x300xbf16>
    %cst_180 = arith.constant dense<0.000000e+00> : vector<33x300xf32>
    %398 = tpu.matmul %395, %397, %cst_180 {dimension_numbers = #tpu.dot_dimension_numbers<[1], [0], [0], [1], [0, 0, 1, 1], [], []>} : vector<33x18xbf16>, vector<18x300xbf16>, vector<33x300xf32> -> vector<33x300xf32>
    %399 = arith.addf %393, %398 : vector<33x300xf32>
    %400 = vector.extract_strided_slice %392 {offsets = [1, 0], sizes = [33, 18], strides = [1, 1]} : vector<40x18xf32> to vector<33x18xf32>
    %401 = arith.truncf %400 : vector<33x18xf32> to vector<33x18xbf16>
    %c1_181 = arith.constant 1 : index
    %c0_182 = arith.constant 0 : index
    %c0_183 = arith.constant 0 : index
    %402 = vector.load %arg5[%c1_181, %c0_182, %c0_183] : memref<8x18x300xbf16, #tpu.memory_space<vmem>>, vector<1x18x300xbf16>
    %403 = vector.shape_cast %402 : vector<1x18x300xbf16> to vector<18x300xbf16>
    %cst_184 = arith.constant dense<0.000000e+00> : vector<33x300xf32>
    %404 = tpu.matmul %401, %403, %cst_184 {dimension_numbers = #tpu.dot_dimension_numbers<[1], [0], [0], [1], [0, 0, 1, 1], [], []>} : vector<33x18xbf16>, vector<18x300xbf16>, vector<33x300xf32> -> vector<33x300xf32>
    %405 = arith.addf %399, %404 : vector<33x300xf32>
    %406 = vector.extract_strided_slice %392 {offsets = [2, 0], sizes = [33, 18], strides = [1, 1]} : vector<40x18xf32> to vector<33x18xf32>
    %407 = arith.truncf %406 : vector<33x18xf32> to vector<33x18xbf16>
    %c2_185 = arith.constant 2 : index
    %c0_186 = arith.constant 0 : index
    %c0_187 = arith.constant 0 : index
    %408 = vector.load %arg5[%c2_185, %c0_186, %c0_187] : memref<8x18x300xbf16, #tpu.memory_space<vmem>>, vector<1x18x300xbf16>
    %409 = vector.shape_cast %408 : vector<1x18x300xbf16> to vector<18x300xbf16>
    %cst_188 = arith.constant dense<0.000000e+00> : vector<33x300xf32>
    %410 = tpu.matmul %407, %409, %cst_188 {dimension_numbers = #tpu.dot_dimension_numbers<[1], [0], [0], [1], [0, 0, 1, 1], [], []>} : vector<33x18xbf16>, vector<18x300xbf16>, vector<33x300xf32> -> vector<33x300xf32>
    %411 = arith.addf %405, %410 : vector<33x300xf32>
    %412 = vector.extract_strided_slice %392 {offsets = [3, 0], sizes = [33, 18], strides = [1, 1]} : vector<40x18xf32> to vector<33x18xf32>
    %413 = arith.truncf %412 : vector<33x18xf32> to vector<33x18xbf16>
    %c3_189 = arith.constant 3 : index
    %c0_190 = arith.constant 0 : index
    %c0_191 = arith.constant 0 : index
    %414 = vector.load %arg5[%c3_189, %c0_190, %c0_191] : memref<8x18x300xbf16, #tpu.memory_space<vmem>>, vector<1x18x300xbf16>
    %415 = vector.shape_cast %414 : vector<1x18x300xbf16> to vector<18x300xbf16>
    %cst_192 = arith.constant dense<0.000000e+00> : vector<33x300xf32>
    %416 = tpu.matmul %413, %415, %cst_192 {dimension_numbers = #tpu.dot_dimension_numbers<[1], [0], [0], [1], [0, 0, 1, 1], [], []>} : vector<33x18xbf16>, vector<18x300xbf16>, vector<33x300xf32> -> vector<33x300xf32>
    %417 = arith.addf %411, %416 : vector<33x300xf32>
    %418 = vector.extract_strided_slice %392 {offsets = [4, 0], sizes = [33, 18], strides = [1, 1]} : vector<40x18xf32> to vector<33x18xf32>
    %419 = arith.truncf %418 : vector<33x18xf32> to vector<33x18xbf16>
    %c4_193 = arith.constant 4 : index
    %c0_194 = arith.constant 0 : index
    %c0_195 = arith.constant 0 : index
    %420 = vector.load %arg5[%c4_193, %c0_194, %c0_195] : memref<8x18x300xbf16, #tpu.memory_space<vmem>>, vector<1x18x300xbf16>
    %421 = vector.shape_cast %420 : vector<1x18x300xbf16> to vector<18x300xbf16>
    %cst_196 = arith.constant dense<0.000000e+00> : vector<33x300xf32>
    %422 = tpu.matmul %419, %421, %cst_196 {dimension_numbers = #tpu.dot_dimension_numbers<[1], [0], [0], [1], [0, 0, 1, 1], [], []>} : vector<33x18xbf16>, vector<18x300xbf16>, vector<33x300xf32> -> vector<33x300xf32>
    %423 = arith.addf %417, %422 : vector<33x300xf32>
    %424 = vector.extract_strided_slice %392 {offsets = [5, 0], sizes = [33, 18], strides = [1, 1]} : vector<40x18xf32> to vector<33x18xf32>
    %425 = arith.truncf %424 : vector<33x18xf32> to vector<33x18xbf16>
    %c5_197 = arith.constant 5 : index
    %c0_198 = arith.constant 0 : index
    %c0_199 = arith.constant 0 : index
    %426 = vector.load %arg5[%c5_197, %c0_198, %c0_199] : memref<8x18x300xbf16, #tpu.memory_space<vmem>>, vector<1x18x300xbf16>
    %427 = vector.shape_cast %426 : vector<1x18x300xbf16> to vector<18x300xbf16>
    %cst_200 = arith.constant dense<0.000000e+00> : vector<33x300xf32>
    %428 = tpu.matmul %425, %427, %cst_200 {dimension_numbers = #tpu.dot_dimension_numbers<[1], [0], [0], [1], [0, 0, 1, 1], [], []>} : vector<33x18xbf16>, vector<18x300xbf16>, vector<33x300xf32> -> vector<33x300xf32>
    %429 = arith.addf %423, %428 : vector<33x300xf32>
    %430 = vector.extract_strided_slice %392 {offsets = [6, 0], sizes = [33, 18], strides = [1, 1]} : vector<40x18xf32> to vector<33x18xf32>
    %431 = arith.truncf %430 : vector<33x18xf32> to vector<33x18xbf16>
    %c6_201 = arith.constant 6 : index
    %c0_202 = arith.constant 0 : index
    %c0_203 = arith.constant 0 : index
    %432 = vector.load %arg5[%c6_201, %c0_202, %c0_203] : memref<8x18x300xbf16, #tpu.memory_space<vmem>>, vector<1x18x300xbf16>
    %433 = vector.shape_cast %432 : vector<1x18x300xbf16> to vector<18x300xbf16>
    %cst_204 = arith.constant dense<0.000000e+00> : vector<33x300xf32>
    %434 = tpu.matmul %431, %433, %cst_204 {dimension_numbers = #tpu.dot_dimension_numbers<[1], [0], [0], [1], [0, 0, 1, 1], [], []>} : vector<33x18xbf16>, vector<18x300xbf16>, vector<33x300xf32> -> vector<33x300xf32>
    %435 = arith.addf %429, %434 : vector<33x300xf32>
    %436 = vector.extract_strided_slice %392 {offsets = [7, 0], sizes = [33, 18], strides = [1, 1]} : vector<40x18xf32> to vector<33x18xf32>
    %437 = arith.truncf %436 : vector<33x18xf32> to vector<33x18xbf16>
    %c7_205 = arith.constant 7 : index
    %c0_206 = arith.constant 0 : index
    %c0_207 = arith.constant 0 : index
    %438 = vector.load %arg5[%c7_205, %c0_206, %c0_207] : memref<8x18x300xbf16, #tpu.memory_space<vmem>>, vector<1x18x300xbf16>
    %439 = vector.shape_cast %438 : vector<1x18x300xbf16> to vector<18x300xbf16>
    %cst_208 = arith.constant dense<0.000000e+00> : vector<33x300xf32>
    %440 = tpu.matmul %437, %439, %cst_208 {dimension_numbers = #tpu.dot_dimension_numbers<[1], [0], [0], [1], [0, 0, 1, 1], [], []>} : vector<33x18xbf16>, vector<18x300xbf16>, vector<33x300xf32> -> vector<33x300xf32>
    %441 = arith.addf %435, %440 : vector<33x300xf32>
    %c0_209 = arith.constant 0 : index
    %c0_210 = arith.constant 0 : index
    %442 = vector.load %arg8[%c0_209, %c0_210] : memref<1x896xf32, #tpu.memory_space<vmem>>, vector<1x300xf32>
    %443 = vector.broadcast %442 : vector<1x300xf32> to vector<33x300xf32>
    %444 = arith.addf %441, %443 : vector<33x300xf32>
    %445 = vector.extract_strided_slice %444 {offsets = [0, 0], sizes = [31, 300], strides = [1, 1]} : vector<33x300xf32> to vector<31x300xf32>
    %446 = vector.extract_strided_slice %444 {offsets = [1, 0], sizes = [31, 300], strides = [1, 1]} : vector<33x300xf32> to vector<31x300xf32>
    %447 = arith.maximumf %445, %446 : vector<31x300xf32>
    %448 = vector.extract_strided_slice %444 {offsets = [2, 0], sizes = [31, 300], strides = [1, 1]} : vector<33x300xf32> to vector<31x300xf32>
    %449 = arith.maximumf %447, %448 : vector<31x300xf32>
    %c0_211 = arith.constant 0 : index
    %c0_212 = arith.constant 0 : index
    %450 = vector.load %arg6[%c0_211, %c0_212] : memref<11x31xbf16, #tpu.memory_space<vmem>>, vector<11x31xbf16>
    %451 = arith.truncf %449 : vector<31x300xf32> to vector<31x300xbf16>
    %cst_213 = arith.constant dense<0.000000e+00> : vector<11x300xf32>
    %452 = tpu.matmul %450, %451, %cst_213 {dimension_numbers = #tpu.dot_dimension_numbers<[1], [0], [0], [1], [0, 0, 1, 1], [], []>} : vector<11x31xbf16>, vector<31x300xbf16>, vector<11x300xf32> -> vector<11x300xf32>
    %453 = vector.extract_strided_slice %452 {offsets = [0, 0], sizes = [11, 50], strides = [1, 1]} : vector<11x300xf32> to vector<11x50xf32>
    %454 = vector.extract_strided_slice %452 {offsets = [0, 50], sizes = [11, 50], strides = [1, 1]} : vector<11x300xf32> to vector<11x50xf32>
    %455 = arith.maximumf %453, %454 : vector<11x50xf32>
    %456 = vector.extract_strided_slice %452 {offsets = [0, 100], sizes = [11, 50], strides = [1, 1]} : vector<11x300xf32> to vector<11x50xf32>
    %457 = arith.maximumf %455, %456 : vector<11x50xf32>
    %cst_214 = arith.constant 2.000000e+01 : f32
    %458 = vector.broadcast %cst_214 : f32 to vector<11x50xf32>
    %459 = arith.minimumf %457, %458 : vector<11x50xf32>
    %460 = math.exp %459 : vector<11x50xf32>
    %cst_215 = arith.constant 1.000000e+00 : f32
    %461 = vector.broadcast %cst_215 : f32 to vector<11x50xf32>
    %462 = arith.addf %461, %460 : vector<11x50xf32>
    %463 = arith.mulf %462, %462 : vector<11x50xf32>
    %cst_216 = arith.constant 1.000000e+00 : f32
    %464 = vector.broadcast %cst_216 : f32 to vector<11x50xf32>
    %465 = arith.subf %463, %464 : vector<11x50xf32>
    %466 = arith.mulf %457, %465 : vector<11x50xf32>
    %cst_217 = arith.constant 1.000000e+00 : f32
    %467 = vector.broadcast %cst_217 : f32 to vector<11x50xf32>
    %468 = arith.addf %463, %467 : vector<11x50xf32>
    %469 = tpu.reciprocal %468 {approx = true} : vector<11x50xf32> -> vector<11x50xf32>
    %470 = arith.mulf %466, %469 : vector<11x50xf32>
    %471 = vector.extract_strided_slice %452 {offsets = [0, 150], sizes = [11, 50], strides = [1, 1]} : vector<11x300xf32> to vector<11x50xf32>
    %472 = vector.extract_strided_slice %452 {offsets = [0, 200], sizes = [11, 50], strides = [1, 1]} : vector<11x300xf32> to vector<11x50xf32>
    %473 = arith.maximumf %471, %472 : vector<11x50xf32>
    %474 = vector.extract_strided_slice %452 {offsets = [0, 250], sizes = [11, 50], strides = [1, 1]} : vector<11x300xf32> to vector<11x50xf32>
    %475 = arith.maximumf %473, %474 : vector<11x50xf32>
    %cst_218 = arith.constant 2.000000e+01 : f32
    %476 = vector.broadcast %cst_218 : f32 to vector<11x50xf32>
    %477 = arith.minimumf %475, %476 : vector<11x50xf32>
    %478 = math.exp %477 : vector<11x50xf32>
    %cst_219 = arith.constant 1.000000e+00 : f32
    %479 = vector.broadcast %cst_219 : f32 to vector<11x50xf32>
    %480 = arith.addf %479, %478 : vector<11x50xf32>
    %481 = arith.mulf %480, %480 : vector<11x50xf32>
    %cst_220 = arith.constant 1.000000e+00 : f32
    %482 = vector.broadcast %cst_220 : f32 to vector<11x50xf32>
    %483 = arith.subf %481, %482 : vector<11x50xf32>
    %484 = arith.mulf %475, %483 : vector<11x50xf32>
    %cst_221 = arith.constant 1.000000e+00 : f32
    %485 = vector.broadcast %cst_221 : f32 to vector<11x50xf32>
    %486 = arith.addf %481, %485 : vector<11x50xf32>
    %487 = tpu.reciprocal %486 {approx = true} : vector<11x50xf32> -> vector<11x50xf32>
    %488 = arith.mulf %484, %487 : vector<11x50xf32>
    %cst_222 = arith.constant 0.000000e+00 : f32
    %489 = vector.broadcast %cst_222 : f32 to vector<9x50xf32>
    %490 = vector.extract_strided_slice %470 {offsets = [0, 0], sizes = [9, 50], strides = [1, 1]} : vector<11x50xf32> to vector<9x50xf32>
    %491 = arith.truncf %490 : vector<9x50xf32> to vector<9x50xbf16>
    %c0_223 = arith.constant 0 : index
    %c0_224 = arith.constant 0 : index
    %c0_225 = arith.constant 0 : index
    %492 = vector.load %arg7[%c0_223, %c0_224, %c0_225] : memref<3x50x50xbf16, #tpu.memory_space<vmem>>, vector<1x50x50xbf16>
    %493 = vector.shape_cast %492 : vector<1x50x50xbf16> to vector<50x50xbf16>
    %cst_226 = arith.constant dense<0.000000e+00> : vector<9x50xf32>
    %494 = tpu.matmul %491, %493, %cst_226 {dimension_numbers = #tpu.dot_dimension_numbers<[1], [0], [0], [1], [0, 0, 1, 1], [], []>} : vector<9x50xbf16>, vector<50x50xbf16>, vector<9x50xf32> -> vector<9x50xf32>
    %495 = arith.addf %489, %494 : vector<9x50xf32>
    %496 = vector.extract_strided_slice %470 {offsets = [1, 0], sizes = [9, 50], strides = [1, 1]} : vector<11x50xf32> to vector<9x50xf32>
    %497 = arith.truncf %496 : vector<9x50xf32> to vector<9x50xbf16>
    %c1_227 = arith.constant 1 : index
    %c0_228 = arith.constant 0 : index
    %c0_229 = arith.constant 0 : index
    %498 = vector.load %arg7[%c1_227, %c0_228, %c0_229] : memref<3x50x50xbf16, #tpu.memory_space<vmem>>, vector<1x50x50xbf16>
    %499 = vector.shape_cast %498 : vector<1x50x50xbf16> to vector<50x50xbf16>
    %cst_230 = arith.constant dense<0.000000e+00> : vector<9x50xf32>
    %500 = tpu.matmul %497, %499, %cst_230 {dimension_numbers = #tpu.dot_dimension_numbers<[1], [0], [0], [1], [0, 0, 1, 1], [], []>} : vector<9x50xbf16>, vector<50x50xbf16>, vector<9x50xf32> -> vector<9x50xf32>
    %501 = arith.addf %495, %500 : vector<9x50xf32>
    %502 = vector.extract_strided_slice %470 {offsets = [2, 0], sizes = [9, 50], strides = [1, 1]} : vector<11x50xf32> to vector<9x50xf32>
    %503 = arith.truncf %502 : vector<9x50xf32> to vector<9x50xbf16>
    %c2_231 = arith.constant 2 : index
    %c0_232 = arith.constant 0 : index
    %c0_233 = arith.constant 0 : index
    %504 = vector.load %arg7[%c2_231, %c0_232, %c0_233] : memref<3x50x50xbf16, #tpu.memory_space<vmem>>, vector<1x50x50xbf16>
    %505 = vector.shape_cast %504 : vector<1x50x50xbf16> to vector<50x50xbf16>
    %cst_234 = arith.constant dense<0.000000e+00> : vector<9x50xf32>
    %506 = tpu.matmul %503, %505, %cst_234 {dimension_numbers = #tpu.dot_dimension_numbers<[1], [0], [0], [1], [0, 0, 1, 1], [], []>} : vector<9x50xbf16>, vector<50x50xbf16>, vector<9x50xf32> -> vector<9x50xf32>
    %507 = arith.addf %501, %506 : vector<9x50xf32>
    %c0_235 = arith.constant 0 : index
    %c384_236 = arith.constant 384 : index
    %508 = vector.load %arg8[%c0_235, %c384_236] : memref<1x896xf32, #tpu.memory_space<vmem>>, vector<1x50xf32>
    %509 = vector.broadcast %508 : vector<1x50xf32> to vector<9x50xf32>
    %510 = arith.addf %507, %509 : vector<9x50xf32>
    %cst_237 = arith.constant 0.000000e+00 : f32
    %511 = vector.broadcast %cst_237 : f32 to vector<9x50xf32>
    %512 = vector.extract_strided_slice %488 {offsets = [0, 0], sizes = [9, 50], strides = [1, 1]} : vector<11x50xf32> to vector<9x50xf32>
    %513 = arith.truncf %512 : vector<9x50xf32> to vector<9x50xbf16>
    %c0_238 = arith.constant 0 : index
    %c0_239 = arith.constant 0 : index
    %c0_240 = arith.constant 0 : index
    %514 = vector.load %arg7[%c0_238, %c0_239, %c0_240] : memref<3x50x50xbf16, #tpu.memory_space<vmem>>, vector<1x50x50xbf16>
    %515 = vector.shape_cast %514 : vector<1x50x50xbf16> to vector<50x50xbf16>
    %cst_241 = arith.constant dense<0.000000e+00> : vector<9x50xf32>
    %516 = tpu.matmul %513, %515, %cst_241 {dimension_numbers = #tpu.dot_dimension_numbers<[1], [0], [0], [1], [0, 0, 1, 1], [], []>} : vector<9x50xbf16>, vector<50x50xbf16>, vector<9x50xf32> -> vector<9x50xf32>
    %517 = arith.addf %511, %516 : vector<9x50xf32>
    %518 = vector.extract_strided_slice %488 {offsets = [1, 0], sizes = [9, 50], strides = [1, 1]} : vector<11x50xf32> to vector<9x50xf32>
    %519 = arith.truncf %518 : vector<9x50xf32> to vector<9x50xbf16>
    %c1_242 = arith.constant 1 : index
    %c0_243 = arith.constant 0 : index
    %c0_244 = arith.constant 0 : index
    %520 = vector.load %arg7[%c1_242, %c0_243, %c0_244] : memref<3x50x50xbf16, #tpu.memory_space<vmem>>, vector<1x50x50xbf16>
    %521 = vector.shape_cast %520 : vector<1x50x50xbf16> to vector<50x50xbf16>
    %cst_245 = arith.constant dense<0.000000e+00> : vector<9x50xf32>
    %522 = tpu.matmul %519, %521, %cst_245 {dimension_numbers = #tpu.dot_dimension_numbers<[1], [0], [0], [1], [0, 0, 1, 1], [], []>} : vector<9x50xbf16>, vector<50x50xbf16>, vector<9x50xf32> -> vector<9x50xf32>
    %523 = arith.addf %517, %522 : vector<9x50xf32>
    %524 = vector.extract_strided_slice %488 {offsets = [2, 0], sizes = [9, 50], strides = [1, 1]} : vector<11x50xf32> to vector<9x50xf32>
    %525 = arith.truncf %524 : vector<9x50xf32> to vector<9x50xbf16>
    %c2_246 = arith.constant 2 : index
    %c0_247 = arith.constant 0 : index
    %c0_248 = arith.constant 0 : index
    %526 = vector.load %arg7[%c2_246, %c0_247, %c0_248] : memref<3x50x50xbf16, #tpu.memory_space<vmem>>, vector<1x50x50xbf16>
    %527 = vector.shape_cast %526 : vector<1x50x50xbf16> to vector<50x50xbf16>
    %cst_249 = arith.constant dense<0.000000e+00> : vector<9x50xf32>
    %528 = tpu.matmul %525, %527, %cst_249 {dimension_numbers = #tpu.dot_dimension_numbers<[1], [0], [0], [1], [0, 0, 1, 1], [], []>} : vector<9x50xbf16>, vector<50x50xbf16>, vector<9x50xf32> -> vector<9x50xf32>
    %529 = arith.addf %523, %528 : vector<9x50xf32>
    %c0_250 = arith.constant 0 : index
    %c384_251 = arith.constant 384 : index
    %530 = vector.load %arg8[%c0_250, %c384_251] : memref<1x896xf32, #tpu.memory_space<vmem>>, vector<1x50xf32>
    %531 = vector.broadcast %530 : vector<1x50xf32> to vector<9x50xf32>
    %532 = arith.addf %529, %531 : vector<9x50xf32>
    %533 = arith.maximumf %510, %532 : vector<9x50xf32>
    %cst_252 = arith.constant 2.000000e+01 : f32
    %534 = vector.broadcast %cst_252 : f32 to vector<9x50xf32>
    %535 = arith.minimumf %533, %534 : vector<9x50xf32>
    %536 = math.exp %535 : vector<9x50xf32>
    %cst_253 = arith.constant 1.000000e+00 : f32
    %537 = vector.broadcast %cst_253 : f32 to vector<9x50xf32>
    %538 = arith.addf %537, %536 : vector<9x50xf32>
    %539 = arith.mulf %538, %538 : vector<9x50xf32>
    %cst_254 = arith.constant 1.000000e+00 : f32
    %540 = vector.broadcast %cst_254 : f32 to vector<9x50xf32>
    %541 = arith.subf %539, %540 : vector<9x50xf32>
    %542 = arith.mulf %533, %541 : vector<9x50xf32>
    %cst_255 = arith.constant 1.000000e+00 : f32
    %543 = vector.broadcast %cst_255 : f32 to vector<9x50xf32>
    %544 = arith.addf %539, %543 : vector<9x50xf32>
    %545 = tpu.reciprocal %544 {approx = true} : vector<9x50xf32> -> vector<9x50xf32>
    %546 = arith.mulf %542, %545 : vector<9x50xf32>
    %547 = arith.truncf %546 : vector<9x50xf32> to vector<9x50xbf16>
    %c0_256 = arith.constant 0 : index
    %c0_257 = arith.constant 0 : index
    %548 = vector.load %arg9[%c0_256, %c0_257] : memref<50x1152xbf16, #tpu.memory_space<vmem>>, vector<50x1152xbf16>
    %cst_258 = arith.constant dense<0.000000e+00> : vector<9x1152xf32>
    %549 = tpu.matmul %547, %548, %cst_258 {dimension_numbers = #tpu.dot_dimension_numbers<[1], [0], [0], [1], [0, 0, 1, 1], [], []>} : vector<9x50xbf16>, vector<50x1152xbf16>, vector<9x1152xf32> -> vector<9x1152xf32>
    %c0_259 = arith.constant 0 : index
    %c512_260 = arith.constant 512 : index
    %550 = vector.load %arg8[%c0_259, %c512_260] : memref<1x896xf32, #tpu.memory_space<vmem>>, vector<1x128xf32>
    %551 = vector.extract_strided_slice %549 {offsets = [0, 0], sizes = [1, 128], strides = [1, 1]} : vector<9x1152xf32> to vector<1x128xf32>
    %552 = arith.addf %550, %551 : vector<1x128xf32>
    %553 = vector.extract_strided_slice %549 {offsets = [1, 128], sizes = [1, 128], strides = [1, 1]} : vector<9x1152xf32> to vector<1x128xf32>
    %554 = arith.addf %552, %553 : vector<1x128xf32>
    %555 = vector.extract_strided_slice %549 {offsets = [2, 256], sizes = [1, 128], strides = [1, 1]} : vector<9x1152xf32> to vector<1x128xf32>
    %556 = arith.addf %554, %555 : vector<1x128xf32>
    %557 = vector.extract_strided_slice %549 {offsets = [3, 384], sizes = [1, 128], strides = [1, 1]} : vector<9x1152xf32> to vector<1x128xf32>
    %558 = arith.addf %556, %557 : vector<1x128xf32>
    %559 = vector.extract_strided_slice %549 {offsets = [4, 512], sizes = [1, 128], strides = [1, 1]} : vector<9x1152xf32> to vector<1x128xf32>
    %560 = arith.addf %558, %559 : vector<1x128xf32>
    %561 = vector.extract_strided_slice %549 {offsets = [5, 640], sizes = [1, 128], strides = [1, 1]} : vector<9x1152xf32> to vector<1x128xf32>
    %562 = arith.addf %560, %561 : vector<1x128xf32>
    %563 = vector.extract_strided_slice %549 {offsets = [6, 768], sizes = [1, 128], strides = [1, 1]} : vector<9x1152xf32> to vector<1x128xf32>
    %564 = arith.addf %562, %563 : vector<1x128xf32>
    %565 = vector.extract_strided_slice %549 {offsets = [7, 896], sizes = [1, 128], strides = [1, 1]} : vector<9x1152xf32> to vector<1x128xf32>
    %566 = arith.addf %564, %565 : vector<1x128xf32>
    %567 = vector.extract_strided_slice %549 {offsets = [8, 1024], sizes = [1, 128], strides = [1, 1]} : vector<9x1152xf32> to vector<1x128xf32>
    %568 = arith.addf %566, %567 : vector<1x128xf32>
    %cst_261 = arith.constant 2.000000e+01 : f32
    %569 = vector.broadcast %cst_261 : f32 to vector<1x128xf32>
    %570 = arith.minimumf %568, %569 : vector<1x128xf32>
    %571 = math.exp %570 : vector<1x128xf32>
    %cst_262 = arith.constant 1.000000e+00 : f32
    %572 = vector.broadcast %cst_262 : f32 to vector<1x128xf32>
    %573 = arith.addf %572, %571 : vector<1x128xf32>
    %574 = arith.mulf %573, %573 : vector<1x128xf32>
    %cst_263 = arith.constant 1.000000e+00 : f32
    %575 = vector.broadcast %cst_263 : f32 to vector<1x128xf32>
    %576 = arith.subf %574, %575 : vector<1x128xf32>
    %577 = arith.mulf %568, %576 : vector<1x128xf32>
    %cst_264 = arith.constant 1.000000e+00 : f32
    %578 = vector.broadcast %cst_264 : f32 to vector<1x128xf32>
    %579 = arith.addf %574, %578 : vector<1x128xf32>
    %580 = tpu.reciprocal %579 {approx = true} : vector<1x128xf32> -> vector<1x128xf32>
    %581 = arith.mulf %577, %580 : vector<1x128xf32>
    %582 = arith.truncf %581 : vector<1x128xf32> to vector<1x128xbf16>
    %c0_265 = arith.constant 0 : index
    %c0_266 = arith.constant 0 : index
    %583 = vector.load %arg10[%c0_265, %c0_266] : memref<128x64xbf16, #tpu.memory_space<vmem>>, vector<128x64xbf16>
    %cst_267 = arith.constant dense<0.000000e+00> : vector<1x64xf32>
    %584 = tpu.matmul %582, %583, %cst_267 {dimension_numbers = #tpu.dot_dimension_numbers<[1], [0], [0], [1], [0, 0, 1, 1], [], []>} : vector<1x128xbf16>, vector<128x64xbf16>, vector<1x64xf32> -> vector<1x64xf32>
    %c0_268 = arith.constant 0 : index
    %c640_269 = arith.constant 640 : index
    %585 = vector.load %arg8[%c0_268, %c640_269] : memref<1x896xf32, #tpu.memory_space<vmem>>, vector<1x64xf32>
    %586 = arith.addf %584, %585 : vector<1x64xf32>
    %cst_270 = arith.constant 2.000000e+01 : f32
    %587 = vector.broadcast %cst_270 : f32 to vector<1x64xf32>
    %588 = arith.minimumf %586, %587 : vector<1x64xf32>
    %589 = math.exp %588 : vector<1x64xf32>
    %cst_271 = arith.constant 1.000000e+00 : f32
    %590 = vector.broadcast %cst_271 : f32 to vector<1x64xf32>
    %591 = arith.addf %590, %589 : vector<1x64xf32>
    %592 = arith.mulf %591, %591 : vector<1x64xf32>
    %cst_272 = arith.constant 1.000000e+00 : f32
    %593 = vector.broadcast %cst_272 : f32 to vector<1x64xf32>
    %594 = arith.subf %592, %593 : vector<1x64xf32>
    %595 = arith.mulf %586, %594 : vector<1x64xf32>
    %cst_273 = arith.constant 1.000000e+00 : f32
    %596 = vector.broadcast %cst_273 : f32 to vector<1x64xf32>
    %597 = arith.addf %592, %596 : vector<1x64xf32>
    %598 = tpu.reciprocal %597 {approx = true} : vector<1x64xf32> -> vector<1x64xf32>
    %599 = arith.mulf %595, %598 : vector<1x64xf32>
    %600 = arith.truncf %599 : vector<1x64xf32> to vector<1x64xbf16>
    %c0_274 = arith.constant 0 : index
    %c0_275 = arith.constant 0 : index
    %601 = vector.load %arg11[%c0_274, %c0_275] : memref<64x5xbf16, #tpu.memory_space<vmem>>, vector<64x5xbf16>
    %cst_276 = arith.constant dense<0.000000e+00> : vector<1x5xf32>
    %602 = tpu.matmul %600, %601, %cst_276 {dimension_numbers = #tpu.dot_dimension_numbers<[1], [0], [0], [1], [0, 0, 1, 1], [], []>} : vector<1x64xbf16>, vector<64x5xbf16>, vector<1x5xf32> -> vector<1x5xf32>
    %c0_277 = arith.constant 0 : index
    %c768_278 = arith.constant 768 : index
    %603 = vector.load %arg8[%c0_277, %c768_278] : memref<1x896xf32, #tpu.memory_space<vmem>>, vector<1x5xf32>
    %604 = arith.addf %602, %603 : vector<1x5xf32>
    %c1_279 = arith.constant 1 : index
    %c0_280 = arith.constant 0 : index
    %605 = vector.load %arg12[%c1_279, %c0_280] : memref<2x5xf32, #tpu.memory_space<vmem>>, vector<1x5xf32>
    tpu.vector_store %arg12[%c1_279, %c0_280], %604 {strides = array<i32>} : memref<2x5xf32, #tpu.memory_space<vmem>>, vector<1x5xf32>,
    return
  }
}

</mosaic_0001>

<bundles_post_ra>
// kernel: mnet100_forward.1
= control target key start
LH: loop header
LB: loop body
LE: loop exit
PB: predicated region body
PF: predicated region fallthrough
CT: control target
= control target key end

     0   :  { %vm43_vm0 = vcmask 816128   ;;  %v10155_v7 = vmov 0.0   ;;  %vm10156_vm3 = vmmov 0   ;;  %vm103_vm4 = vcmask 1042432   ;;  %s10157_s23 = smov 125   ;;  %s10158_s24 = smov 127   ;;  %s12475_s0 = inlined_call_operand.vmem [shape: f32[2,6,100], index: 0, kind: input, shape index: {}]   ;;  %s12476_s1 = inlined_call_operand.vmem [shape: bf16[4,40,6], index: 1, kind: input, shape index: {}]   ;;  %s12477_s3 = inlined_call_operand.vmem [shape: f32[40,2], index: 3, kind: input, shape index: {}]   ;;  %s12478_s2 = inlined_call_operand.vmem [shape: bf16[40,160], index: 2, kind: input, shape index: {}]   ;;  %s12479_s4 = inlined_call_operand.vmem [shape: bf16[90,18], index: 4, kind: input, shape index: {}]   ;;  %s12480_s5 = inlined_call_operand.vmem [shape: bf16[8,18,300], index: 5, kind: input, shape index: {}]   ;;  %s12481_s6 = inlined_call_operand.vmem [shape: bf16[11,31], index: 6, kind: input, shape index: {}]   ;;  %s12482_s8 = inlined_call_operand.vmem [shape: f32[1,896], index: 8, kind: input, shape index: {}]   ;;  %s12483_s7 = inlined_call_operand.vmem [shape: bf16[3,50,50], index: 7, kind: input, shape index: {}]   ;;  %s12484_s9 = inlined_call_operand.vmem [shape: bf16[50,1152], index: 9, kind: input, shape index: {}]   ;;  %s12485_s10 = inlined_call_operand.vmem [shape: bf16[128,64], index: 10, kind: input, shape index: {}]   ;;  %s12486_s11 = inlined_call_operand.vmem [shape: bf16[64,5], index: 11, kind: input, shape index: {}]   ;;  %s12487_s12 = inlined_call_operand.vmem [shape: f32[2,5], index: 12, kind: output, shape index: {}]  }
   0x1   :  { %v42_v0 = vld [vmem:[%s12475_s0] sm:$0x3f]  ;;  %8771 = vmatprep.subr.bf16.mxu1 %v10155_v7  ;;  %8757 = vmatprep.subr.bf16.mxu0 %v10155_v7  ;;  %vm93_vm5 = vcmask 48128   ;;  %s10159_s27 = smov 126   ;;  %v9695_v20 = vld [vmem:[%s12476_s1 + $0x8] sm:$0xff]   ;;  %v10160_v22 = vmov 0  }
   0x2   :  { %v44_v1 = vsel %vm43_vm0, %v42_v0, 0.0  ;;  %8773 = vmatprep.mubr.msk.bf16.mxu1 %vm10156_vm3, %v10155_v7  ;;  %8759 = vmatprep.mubr.msk.bf16.mxu0 %vm10156_vm3, %v10155_v7  ;;  %v9693_v19 = vld [vmem:[%s12476_s1] sm:$0xff]   ;;  %v9697_v21 = vld [vmem:[%s12476_s1 + $0x10] ss:$0 sps:$4 sm:$0xff]   ;;  %v10277_v24 = vld [vmem:[%s12477_s3 + $0x8] sm:$0xff]  ;;  %vm626_vm6 = vcmask 261120  }
   0x3   :  { %45 = vadd.xlane.f32.xlu0 %v44_v1  ;;  %9546 = vset.pattern.permute.xlu1 %v10160_v22  ;;  %v10271_v23 = vld [vmem:[%s12477_s3] sm:$0xff]  ;;  %v10283_v25 = vld [vmem:[%s12477_s3 + $0x10] sm:$0xff]  ;;  %v10289_v26 = vld [vmem:[%s12477_s3 + $0x18] sm:$0xff]  ;;  %vm837_vm7 = vcmask 1044480   ;;  %s10162_s19 = smov 124   ;;  %vm827_vm8 = vcmask 736256  }
   0x4   :  { %v10295_v27 = vld [vmem:[%s12477_s3 + $0x20] sm:$0xff]  ;;  %v9694_v32 = vld [vmem:[%s12476_s1 + $0x14] sm:$0xff]   ;;  %v9703_v39 = vld [vmem:[%s12476_s1 + $0x4c] ss:$0 sps:$4 sm:$0xff]   ;;  %vm1020_vm9 = vcmask 1040384   ;;  %vm1313_vm10 = vcmask 1046528  }
   0x5   :  { %v9699_v33 = vld [vmem:[%s12476_s1 + $0x3c] sm:$0xff]   ;;  %v9701_v37 = vld [vmem:[%s12476_s1 + $0x44] sm:$0xff]   ;;  %v9702_v41 = vld [vmem:[%s12476_s1 + $0x30] sm:$0xff]   ;;  %vm1693_vm11 = vcmask 1045504   ;;  %vm963_vm12 = vsmask.f32 7424 }
   0x6   :  { %v9696_v36 = vld [vmem:[%s12476_s1 + $0x1c] sm:$0xff]   ;;  %v9698_v38 = vld [vmem:[%s12476_s1 + $0x24] ss:$0 sps:$4 sm:$0xff]   ;;  %v9700_v40 = vld [vmem:[%s12476_s1 + $0x28] sm:$0xff]   ;;  %vm1010_vm13 = vcmask 146432   ;;  %s10164_s20 = smov 78  }
   0x7   :  { %v9704_v42 = vld [vmem:[%s12476_s1 + $0x38] ss:$0 sps:$4 sm:$0xff]   ;;  %vm1500_vm14 = vsmask.f32 6400  ;;  %vm1880_vm15 = vsmask.f32 5376 }
   0x8   :  { %s10165_s21 = smov 28   ;;  %s10166_s29 = smov 106  }
  0x90   :  { %v46_v2 = vpop.xlane.xlu0 %45 }
  0x91   :  { %v48_v3 = vmul.f32 0.01, %v46_v2 }
  0x93   :  { %v49_v4 = vsub.f32 %v42_v0, %v48_v3 }
  0x95   :  { %v50_v5 = vmul.f32 %v49_v4, %v49_v4 }
  0x97   :  { %v51_v6 = vsel %vm43_vm0, %v50_v5, 0.0 }
  0x98   :  { %52 = vadd.xlane.f32.xlu0 %v51_v6 }
 0x125   :  { %v53_v8 = vpop.xlane.xlu0 %52 }
 0x126   :  { %v55_v9 = vmul.f32 0.01010101, %v53_v8 }
 0x128   :  { %10003 = vrsqrt.f32 %v55_v9  ;;  %vm58_vm1 = vcmp.eq.f32.partialorder %v55_v9, inf  ;;  %v61_v12 = vand.u32 2147483648, %v55_v9  ;;  %vm60_vm2 = vcmp.eq.f32.partialorder %v55_v9, 0.0 }
 0x132   :  { %v10004_v10 = vpop.eup %10003 }
 0x133   :  { %v57_v11 = vmul.f32 %v10004_v10, %v55_v9 }
 0x135   :  { %v59_v13 = vsel %vm58_vm1, %v55_v9, %v57_v11  ;;  %vm12488_vm1 = vsmask.f32 4352 }
 0x136   :  { %v62_v14 = vsel %vm60_vm2, %v61_v12, %v59_v13  ;;  %vm2608_vm2 = vcmask 1047552  }
 0x137   :  { %10005 = vrcp.f32 %v62_v14 }
 0x141   :  { %v10006_v15 = vpop.eup %10005 }
 0x142   :  { %v64_v16 = vmul.f32 %v10006_v15, %v49_v4 }
 0x144   :  { %v65_v17 = vpack.c.bf16 %v64_v16, %v64_v16 }
 0x146   :  { %357 = vrot.lane.b32.xlu0 %v65_v17, %s10157_s23  ;;  %91 = vrot.lane.b32.xlu1 %v65_v17, %s10158_s24  ;;  %v186_v18 = vsel %vm103_vm4, %v65_v17, 0 }
 0x147   :  { %8772 = vmatpush3.bf16.msra.mxu1 %v186_v18 }
 0x148   :  { %8799 = vmatprep.subr.bf16.mxu1 %v10155_v7 }
 0x14a   :  { %263 = vrot.lane.b32.xlu1 %v65_v17, %s10159_s27  ;;  %8774 = vmatmul.mubr.msk.bf16.vlgmr.msra.gmra.mrb[0].mxu1 %vm93_vm5, %v9693_v19 }
 0x14b   :  { %8777 = vmatprep.mubr.msk.bf16.mxu1 %vm10156_vm3, %v10155_v7 }
 0x14e   :  { %439 = vperm.xlu1 %9546, %v10271_v23  }
 0x152   :  { %8778 = vmatmul.mubr.msk.bf16.gmra.mrb[4].mxu1 %vm93_vm5, %v9695_v20  ;;  %444 = vperm.xlu1 %9546, %v10277_v24  }
 0x153   :  { %8781 = vmatprep.mubr.msk.bf16.mxu1 %vm10156_vm3, %v10155_v7 }
 0x156   :  { %449 = vperm.xlu1 %9546, %v10283_v25  }
 0x15a   :  { %8782 = vmatmul.mubr.msk.bf16.gmra.mrb[8].mxu1 %vm93_vm5, %v9697_v21  ;;  %454 = vperm.xlu1 %9546, %v10289_v26  }
 0x15b   :  { %8801 = vmatprep.mubr.msk.bf16.mxu1 %vm10156_vm3, %v10155_v7 }
 0x15e   :  { %459 = vperm.xlu1 %9546, %v10295_v27  }
 0x1b8   :  { %v358_v28 = vpop.permute.xlu0 %357  ;;  %v92_v29 = vpop.permute.xlu1 %91 }
 0x1b9   :  { %v369_v30 = vsel %vm103_vm4, %v358_v28, 0  ;;  %v105_v31 = vsel %vm103_vm4, %v92_v29, 0 }
 0x1ba   :  { %8758 = vmatpush3.bf16.msra.mxu0 %v105_v31  ;;  %8800 = vmatpush3.bf16.msra.mxu1 %v369_v30 }
 0x1bb   :  { %8785 = vmatprep.subr.bf16.mxu0 %v10155_v7  ;;  %8813 = vmatprep.subr.bf16.mxu1 %v10155_v7 }
 0x1bc   :  { %v264_v34 = vpop.permute.xlu1 %263 }
 0x1bd   :  { %v275_v35 = vsel %vm103_vm4, %v264_v34, 0  ;;  %8760 = vmatmul.mubr.msk.bf16.vlgmr.msra.gmra.mrb[0].mxu0 %vm93_vm5, %v9694_v32  ;;  %8802 = vmatmul.mubr.msk.bf16.vlgmr.msra.gmra.mrb[12].mxu1 %vm93_vm5, %v9699_v33 }
 0x1be   :  { %8786 = vmatpush3.bf16.msra.mxu0 %v275_v35  ;;  %8763 = vmatprep.mubr.msk.bf16.mxu0 %vm10156_vm3, %v10155_v7 }
 0x1bf   :  { %8805 = vmatprep.mubr.msk.bf16.mxu1 %vm10156_vm3, %v10155_v7  ;;  %636 = vmatprep.subr.bf16.mxu0 %v10160_v22 }
 0x1c5   :  { %8764 = vmatmul.mubr.msk.bf16.gmra.mrb[4].mxu0 %vm93_vm5, %v9696_v36  ;;  %8806 = vmatmul.mubr.msk.bf16.gmra.mrb[16].mxu1 %vm93_vm5, %v9701_v37 }
 0x1c6   :  { %8767 = vmatprep.mubr.msk.bf16.mxu0 %vm10156_vm3, %v10155_v7  ;;  %8809 = vmatprep.mubr.msk.bf16.mxu1 %vm10156_vm3, %v10155_v7 }
 0x1cd   :  { %8768 = vmatmul.mubr.msk.bf16.gmra.mrb[8].mxu0 %vm93_vm5, %v9698_v38  ;;  %8810 = vmatmul.mubr.msk.bf16.gmra.mrb[20].mxu1 %vm93_vm5, %v9703_v39  ;;  %v440_v21 = vpop.permute.xlu1 %439 }
 0x1ce   :  { %8787 = vmatprep.mubr.msk.bf16.mxu0 %vm10156_vm3, %v10155_v7  ;;  %8825 = vmatprep.mubr.msk.bf16.mxu1 %vm10156_vm3, %v10155_v7 }
 0x1d1   :  { %v445_v31 = vpop.permute.xlu1 %444 }
 0x1d5   :  { %8788 = vmatmul.mubr.msk.bf16.vlgmr.msra.gmra.mrb[12].mxu0 %vm93_vm5, %v9700_v40  ;;  %v450_v40 = vpop.permute.xlu1 %449 }
 0x1d6   :  { %8791 = vmatprep.mubr.msk.bf16.mxu0 %vm10156_vm3, %v10155_v7 }
 0x1dd   :  { %8792 = vmatmul.mubr.msk.bf16.gmra.mrb[16].mxu0 %vm93_vm5, %v9702_v41 }
 0x1de   :  { %8795 = vmatprep.mubr.msk.bf16.mxu0 %vm10156_vm3, %v10155_v7 }
 0x1e5   :  { %8796 = vmatmul.mubr.msk.bf16.gmra.mrb[20].mxu0 %vm93_vm5, %v9704_v42 }
 0x21d   :  { %v222_v43 = vpop.f32.mrb[0].mxu1 }
 0x21e   :  { %v8775_v44 = vpop.f32.mrb[1].mxu1 }
 0x21f   :  { %v225_v45 = vpop.f32.mrb[2].mxu1 }
 0x220   :  { %v8776_v46 = vpop.f32.mrb[3].mxu1 }
 0x225   :  { %v230_v47 = vpop.f32.mrb[4].mxu1 }
 0x226   :  { %v8779_v48 = vpop.f32.mrb[5].mxu1 }
 0x227   :  { %v233_v49 = vpop.f32.mrb[6].mxu1 }
 0x228   :  { %v8780_v50 = vpop.f32.mrb[7].mxu1 }
 0x22d   :  { %v238_v51 = vpop.f32.mrb[8].mxu1 }
 0x22e   :  { %v8783_v52 = vpop.f32.mrb[9].mxu1 }
 0x22f   :  { %v241_v53 = vpop.f32.mrb[10].mxu1 }
 0x230   :  { %v8784_v54 = vpop.f32.mrb[11].mxu1  ;;  %v455_v53 = vpop.permute.xlu1 %454 }
 0x290   :  { %v141_v55 = vpop.f32.mrb[0].mxu0  ;;  %v405_v56 = vpop.f32.mrb[12].mxu1 }
 0x291   :  { %v223_v57 = vadd.f32 %v222_v43, %v141_v55  ;;  %v8761_v58 = vpop.f32.mrb[1].mxu0  ;;  %v8803_v59 = vpop.f32.mrb[13].mxu1 }
 0x292   :  { %v144_v60 = vpop.f32.mrb[2].mxu0  ;;  %v408_v61 = vpop.f32.mrb[14].mxu1 }
 0x293   :  { %v226_v62 = vadd.f32 %v225_v45, %v144_v60  ;;  %v8762_v63 = vpop.f32.mrb[3].mxu0  ;;  %v8804_v0 = vpop.f32.mrb[15].mxu1 }
 0x298   :  { %v149_v1 = vpop.f32.mrb[4].mxu0  ;;  %v413_v2 = vpop.f32.mrb[16].mxu1 }
 0x299   :  { %v231_v3 = vadd.f32 %v230_v47, %v149_v1  ;;  %v8765_v4 = vpop.f32.mrb[5].mxu0  ;;  %v8807_v5 = vpop.f32.mrb[17].mxu1 }
 0x29a   :  { %v152_v6 = vpop.f32.mrb[6].mxu0  ;;  %v416_v8 = vpop.f32.mrb[18].mxu1 }
 0x29b   :  { %v234_v9 = vadd.f32 %v233_v49, %v152_v6  ;;  %v8766_v10 = vpop.f32.mrb[7].mxu0  ;;  %v8808_v11 = vpop.f32.mrb[19].mxu1 }
 0x29c   :  { %v460_v1 = vpop.permute.xlu1 %459 }
 0x2a0   :  { %v157_v12 = vpop.f32.mrb[8].mxu0  ;;  %v421_v13 = vpop.f32.mrb[20].mxu1 }
 0x2a1   :  { %v239_v14 = vadd.f32 %v238_v51, %v157_v12  ;;  %v8769_v15 = vpop.f32.mrb[9].mxu0  ;;  %v8811_v16 = vpop.f32.mrb[21].mxu1 }
 0x2a2   :  { %v160_v17 = vpop.f32.mrb[10].mxu0  ;;  %v424_v18 = vpop.f32.mrb[22].mxu1 }
 0x2a3   :  { %v8770_v19 = vpop.f32.mrb[11].mxu0  ;;  %v8812_v20 = vpop.f32.mrb[23].mxu1 }
 0x2a8   :  { %v311_v28 = vpop.f32.mrb[12].mxu0 }
 0x2a9   :  { %v333_v29 = vadd.f32 %v311_v28, %v223_v57  ;;  %v8789_v30 = vpop.f32.mrb[13].mxu0 }
 0x2aa   :  { %v314_v32 = vpop.f32.mrb[14].mxu0 }
 0x2ab   :  { %v427_v33 = vadd.f32 %v405_v56, %v333_v29  ;;  %v334_v34 = vadd.f32 %v314_v32, %v226_v62  ;;  %v8790_v35 = vpop.f32.mrb[15].mxu0 }
 0x2ad   :  { %v462_v36 = vadd.f32 %v440_v21, %v427_v33  ;;  %v428_v37 = vadd.f32 %v408_v61, %v334_v34 }
 0x2af   :  { %v467_v38 = vmin.f32 %v462_v36, 20.0  ;;  %v463_v39 = vadd.f32 %v445_v31, %v428_v37 }
 0x2b0   :  { %v319_v41 = vpop.f32.mrb[16].mxu0 }
 0x2b1   :  { %v472_v42 = vmul.f32 1.442695, %v467_v38  ;;  %v468_v43 = vmin.f32 %v463_v39, 20.0  ;;  %v335_v44 = vadd.f32 %v319_v41, %v231_v3  ;;  %v8793_v45 = vpop.f32.mrb[17].mxu0 }
 0x2b2   :  { %v322_v46 = vpop.f32.mrb[18].mxu0 }
 0x2b3   :  { %10007 = vpow2.f32 %v472_v42  ;;  %v474_v47 = vmul.f32 1.442695, %v468_v43  ;;  %v429_v48 = vadd.f32 %v413_v2, %v335_v44  ;;  %v336_v49 = vadd.f32 %v322_v46, %v234_v9  ;;  %v8794_v50 = vpop.f32.mrb[19].mxu0 }
 0x2b5   :  { %10009 = vpow2.f32 %v474_v47  ;;  %v464_v51 = vadd.f32 %v450_v40, %v429_v48  ;;  %v430_v52 = vadd.f32 %v416_v8, %v336_v49 }
 0x2b7   :  { %v469_v54 = vmin.f32 %v464_v51, 20.0  ;;  %v465_v55 = vadd.f32 %v455_v53, %v430_v52 }
 0x2b8   :  { %v327_v56 = vpop.f32.mrb[20].mxu0 }
 0x2b9   :  { %v476_v57 = vmul.f32 1.442695, %v469_v54  ;;  %v470_v58 = vmin.f32 %v465_v55, 20.0  ;;  %v337_v59 = vadd.f32 %v327_v56, %v239_v14  ;;  %v8797_v60 = vpop.f32.mrb[21].mxu0 }
 0x2ba   :  { %v330_v61 = vpop.f32.mrb[22].mxu0 }
 0x2bb   :  { %10011 = vpow2.f32 %v476_v57  ;;  %v478_v62 = vmul.f32 1.442695, %v470_v58  ;;  %v431_v63 = vadd.f32 %v421_v13, %v337_v59  ;;  %v8798_v0 = vpop.f32.mrb[23].mxu0  ;;  %v10161_v59 = vmov 1  }
 0x2bc   :  { %9578 = vset.pattern.permute.xlu1 %v10161_v59  ;;  %9577 = vset.pattern.permute.xlu0 %v10161_v59 }
 0x2bd   :  { %v10008_v2 = vpop.eup %10007  ;;  %10013 = vpow2.f32 %v478_v62  ;;  %v466_v3 = vadd.f32 %v460_v1, %v431_v63 }
 0x2be   :  { %v482_v4 = vadd.f32 1.0, %v10008_v2 }
 0x2bf   :  { %v10010_v5 = vpop.eup %10009  ;;  %v471_v6 = vmin.f32 %v466_v3, 20.0 }
 0x2c0   :  { %v483_v8 = vadd.f32 1.0, %v10010_v5  ;;  %v487_v9 = vmul.f32 %v482_v4, %v482_v4 }
 0x2c1   :  { %v480_v10 = vmul.f32 1.442695, %v471_v6 }
 0x2c2   :  { %v488_v11 = vmul.f32 %v483_v8, %v483_v8  ;;  %v502_v12 = vadd.f32 1.0, %v487_v9  ;;  %v7931_v19 = vadd.f32 -1.0, %v487_v9 }
 0x2c3   :  { %10015 = vpow2.f32 %v480_v10 }
 0x2c4   :  { %v503_v14 = vadd.f32 1.0, %v488_v11  ;;  %10017 = vrcp.f32 %v502_v12  ;;  %v7932_v28 = vadd.f32 -1.0, %v488_v11  ;;  %v497_v31 = vmul.f32 %v7931_v19, %v462_v36 }
 0x2c5   :  { %v10012_v15 = vpop.eup %10011 }
 0x2c6   :  { %10019 = vrcp.f32 %v503_v14  ;;  %v484_v16 = vadd.f32 1.0, %v10012_v15  ;;  %v498_v34 = vmul.f32 %v7932_v28, %v463_v39  ;;  %v9708_v28 = vld [vmem:[%s12478_s2 + $0x14] ss:$8 sps:$4 sm:$0xff]  }
 0x2c7   :  { %v10014_v13 = vpop.eup %10013 }
 0x2c8   :  { %v489_v17 = vmul.f32 %v484_v16, %v484_v16  ;;  %v485_v18 = vadd.f32 1.0, %v10014_v13 }
 0x2ca   :  { %v504_v20 = vadd.f32 1.0, %v489_v17  ;;  %v490_v21 = vmul.f32 %v485_v18, %v485_v18  ;;  %v7933_v41 = vadd.f32 -1.0, %v489_v17 }
 0x2cc   :  { %10021 = vrcp.f32 %v504_v20  ;;  %v505_v29 = vadd.f32 1.0, %v490_v21  ;;  %v7934_v43 = vadd.f32 -1.0, %v490_v21  ;;  %v499_v46 = vmul.f32 %v7933_v41, %v464_v51  ;;  %v9705_v21 = vld [vmem:[%s12478_s2] ss:$8 sps:$4 sm:$0xff]  }
 0x2cd   :  { %v10016_v30 = vpop.eup %10015 }
 0x2ce   :  { %v10018_v32 = vpop.eup %10017  ;;  %10023 = vrcp.f32 %v505_v29  ;;  %v486_v33 = vadd.f32 1.0, %v10016_v30  ;;  %v500_v48 = vmul.f32 %v7934_v43, %v465_v55  ;;  %v9707_v55 = vld [vmem:[%s12478_s2 + $0x4] ss:$8 sps:$4 sm:$0xff]   ;;  %v9710_v30 = vld [vmem:[%s12478_s2 + $0x10] ss:$8 sps:$4 sm:$0xff]  }
 0x2cf   :  { %v512_v35 = vmul.f32 %v10018_v32, %v497_v31  ;;  %7942 = vmatprep.mubr.msk.bf16.mxu0 %vm626_vm6, %v9707_v55  ;;  %v581_v29 = vld [vmem:[%s12478_s2 + $0x20] sm:$0xff]  ;;  %v9718_v43 = vld [vmem:[%s12479_s4 + $0x28] sm:$0x1f]  }
 0x2d0   :  { %v10020_v37 = vpop.eup %10019  ;;  %v491_v38 = vmul.f32 %v486_v33, %v486_v33  ;;  %v7941_v31 = vcombine.high %v581_v29, %v581_v29  ;;  %v7940_v32 = vcombine.low %v581_v29, %v581_v29  ;;  %v9713_v33 = vld [vmem:[%s12479_s4] sm:$0xff]  }
 0x2d1   :  { %v513_v40 = vmul.f32 %v10020_v37, %v498_v34  ;;  %522 = vrot.lane.b32.xlu1 %v512_v35, %s10158_s24  ;;  %8814 = vmatpush3.bf16.msra.mxu1 %v9713_v33  ;;  %v9714_v34 = vld [vmem:[%s12479_s4 + $0x8] sm:$0xff]   ;;  %v9716_v37 = vld [vmem:[%s12479_s4 + $0x18] sm:$0xff]  }
 0x2d2   :  { %v506_v42 = vadd.f32 1.0, %v491_v38  ;;  %v7935_v52 = vadd.f32 -1.0, %v491_v38  ;;  %8815 = vmatprep.subr.bf16.mxu1 %v10155_v7  ;;  %v9717_v38 = vld [vmem:[%s12479_s4 + $0x20] sm:$0xff]  }
 0x2d3   :  { %v567_v44 = vpack.c.bf16 %v513_v40, %v512_v35  ;;  %v9557_v45 = vpack.i.bf16 %v513_v40, %v512_v35 }
 0x2d4   :  { %10025 = vrcp.f32 %v506_v42  ;;  %v501_v56 = vmul.f32 %v7935_v52, %v466_v3 }
 0x2d5   :  { %637 = vmatpush1.bf16.msra.mxu0 %v567_v44  ;;  %8816 = vmatpush3.bf16.msra.mxu1 %v9714_v34 }
 0x2d6   :  { %v10022_v47 = vpop.eup %10021  ;;  %638 = vmatprep.subr.bf16.mxu0 %v10160_v22  ;;  %8817 = vmatprep.subr.bf16.mxu1 %v10155_v7 }
 0x2d7   :  { %v514_v36 = vmul.f32 %v10022_v47, %v499_v46 }
 0x2d8   :  { %v10024_v39 = vpop.eup %10023 }
 0x2d9   :  { %v515_v49 = vmul.f32 %v10024_v39, %v500_v48  ;;  %v9547_v50 = vpack.i.bf16 %v514_v36, %v513_v40  ;;  %v839_v48 = vsel %vm837_vm7, %v9718_v43, 0 }
 0x2db   :  { %9548 = vrot.lane.b32.xlu0 %v9547_v50, %s10158_s24  ;;  %v568_v53 = vpack.c.bf16 %v515_v49, %v514_v36  ;;  %v9562_v54 = vpack.i.bf16 %v515_v49, %v514_v36 }
 0x2dd   :  { %639 = vmatpush1.bf16.msra.mxu0 %v568_v53 }
 0x2de   :  { %v10026_v57 = vpop.eup %10025  ;;  %640 = vmatprep.subr.bf16.mxu0 %v10160_v22 }
 0x2df   :  { %9558 = vrot.lane.b32.xlu0 %v9557_v45, %s10159_s27  ;;  %v516_v51 = vmul.f32 %v10026_v57, %v501_v56 }
 0x2e1   :  { %v9552_v58 = vpack.i.bf16 %v516_v51, %v515_v49 }
 0x2e3   :  { %545 = vrot.lane.b32.xlu0 %v516_v51, %s10159_s27  ;;  %9553 = vrot.lane.b32.xlu1 %v9552_v58, %s10158_s24 }
 0x2e7   :  { %9568 = vrot.lane.b32.xlu0 %v9547_v50, %s10157_s23  ;;  %9563 = vrot.lane.b32.xlu1 %v9562_v54, %s10159_s27 }
 0x2eb   :  { %552 = vrot.lane.b32.xlu1 %v512_v35, %s10157_s23  ;;  %583 = vperm.xlu0 %9577, %v10271_v23   ;;  %v9715_v35 = vld [vmem:[%s12479_s4 + $0x10] sm:$0xff]  }
 0x2ec   :  { %8818 = vmatpush3.bf16.msra.mxu1 %v9715_v35 }
 0x2ed   :  { %8819 = vmatprep.subr.bf16.mxu1 %v10155_v7 }
 0x2ef   :  { %9573 = vrot.lane.b32.xlu1 %v9552_v58, %s10157_s23  ;;  %595 = vperm.xlu0 %9577, %v10289_v26  }
 0x2f0   :  { %8820 = vmatpush3.bf16.msra.mxu1 %v9716_v37 }
 0x2f1   :  { %8821 = vmatprep.subr.bf16.mxu1 %v10155_v7 }
 0x2f3   :  { %587 = vperm.xlu1 %9578, %v10277_v24   ;;  %9619 = vset.pattern.permute.xlu0 %v10160_v22 }
 0x2f4   :  { %8822 = vmatpush3.bf16.msra.mxu1 %v9717_v38 }
 0x2f5   :  { %8823 = vmatprep.subr.bf16.mxu1 %v10155_v7 }
 0x2f7   :  { %591 = vperm.xlu1 %9578, %v10283_v25  }
 0x2f8   :  { %8824 = vmatpush3.bf16.msra.mxu1 %v839_v48 }
 0x2fb   :  { %599 = vperm.xlu1 %9578, %v10295_v27  }
 0x2ff   :  { %9620 = vset.pattern.permute.xlu1 %v10160_v22 }
 0x343   :  { %v523_v60 = vpop.permute.xlu1 %522 }
 0x344   :  { %v569_v61 = vpack.c.bf16 %v523_v60, %v516_v51 }
 0x346   :  { %641 = vmatpush1.bf16.msra.mxu0 %v569_v61 }
 0x347   :  { %642 = vmatprep.subr.bf16.mxu0 %v10160_v22 }
 0x34d   :  { %v9549_v62 = vpop.permute.xlu0 %9548 }
 0x34e   :  { %v9551_v63 = vunpack.i.h.bf16 %v9549_v62  ;;  %v9550_v24 = vunpack.i.l.bf16 %v9549_v62 }
 0x350   :  { %v570_v0 = vpack.c.bf16 %v9551_v63, %v9550_v24 }
 0x351   :  { %v9559_v23 = vpop.permute.xlu0 %9558 }
 0x352   :  { %643 = vmatpush1.bf16.msra.mxu0 %v570_v0  ;;  %v9561_v1 = vunpack.i.h.bf16 %v9559_v23  ;;  %v9560_v2 = vunpack.i.l.bf16 %v9559_v23 }
 0x353   :  { %644 = vmatprep.subr.bf16.mxu0 %v10160_v22 }
 0x354   :  { %v572_v6 = vpack.c.bf16 %v9561_v1, %v9560_v2 }
 0x355   :  { %v9554_v25 = vpop.permute.xlu1 %9553  ;;  %v546_v5 = vpop.permute.xlu0 %545 }
 0x356   :  { %v9556_v26 = vunpack.i.h.bf16 %v9554_v25  ;;  %v9555_v27 = vunpack.i.l.bf16 %v9554_v25 }
 0x358   :  { %v571_v3 = vpack.c.bf16 %v9556_v26, %v9555_v27 }
 0x359   :  { %v9564_v4 = vpop.permute.xlu1 %9563  ;;  %v9569_v12 = vpop.permute.xlu0 %9568 }
 0x35a   :  { %645 = vmatpush1.bf16.msra.mxu0 %v571_v3  ;;  %v9566_v8 = vunpack.i.h.bf16 %v9564_v4  ;;  %v9565_v9 = vunpack.i.l.bf16 %v9564_v4  ;;  %v9571_v14 = vunpack.i.h.bf16 %v9569_v12  ;;  %v9570_v15 = vunpack.i.l.bf16 %v9569_v12 }
 0x35b   :  { %646 = vmatprep.subr.bf16.mxu0 %v10160_v22 }
 0x35c   :  { %v573_v11 = vpack.c.bf16 %v9566_v8, %v9565_v9  ;;  %v575_v17 = vpack.c.bf16 %v9571_v14, %v9570_v15 }
 0x35d   :  { %v553_v10 = vpop.permute.xlu1 %552 }
 0x35e   :  { %647 = vmatpush1.bf16.msra.mxu0 %v572_v6  ;;  %v574_v16 = vpack.c.bf16 %v553_v10, %v546_v5 }
 0x35f   :  { %648 = vmatprep.subr.bf16.mxu0 %v10160_v22 }
 0x361   :  { %v9574_v13 = vpop.permute.xlu1 %9573 }
 0x362   :  { %649 = vmatpush1.bf16.msra.mxu0 %v573_v11  ;;  %v9576_v18 = vunpack.i.h.bf16 %v9574_v13  ;;  %v9575_v19 = vunpack.i.l.bf16 %v9574_v13 }
 0x363   :  { %650 = vmatprep.subr.bf16.mxu0 %v10160_v22 }
 0x364   :  { %v576_v20 = vpack.c.bf16 %v9576_v18, %v9575_v19 }
 0x366   :  { %651 = vmatpush1.bf16.msra.mxu0 %v574_v16 }
 0x367   :  { %652 = vmatprep.subr.bf16.mxu0 %v10160_v22 }
 0x36a   :  { %653 = vmatpush1.bf16.msra.mxu0 %v575_v17  ;;  %v584_v44 = vpop.permute.xlu0 %583 }
 0x36b   :  { %654 = vmatprep.subr.bf16.mxu0 %v10160_v22 }
 0x36e   :  { %655 = vmatpush1.bf16.msra.mxu0 %v576_v20  ;;  %v596_v53 = vpop.permute.xlu0 %595 }
 0x36f   :  { %8837 = vmatprep.subr.bf16.mxu0 %v10155_v7 }
 0x371   :  { %669 = vmatmul.mubr.bf16.vlgmr.msra.gmra.mrb[24].mxu0 %v9705_v21 }
 0x372   :  { %7943 = vmatprep.mubr.msk.bf16.mxu0 %vm626_vm6, %v9708_v28  ;;  %v588_v41 = vpop.permute.xlu1 %587 }
 0x376   :  { %v592_v50 = vpop.permute.xlu1 %591 }
 0x379   :  { %677 = vmatmul.mubr.bf16.gmra.mrb[28].mxu0 %v9710_v30 }
 0x37a   :  { %7944 = vmatprep.mubr.msk.bf16.mxu0 %vm626_vm6, %v7941_v31  ;;  %v600_v63 = vpop.permute.xlu1 %599 }
 0x381   :  { %685 = vmatmul.mubr.bf16.gmra.mrb[32].mxu0 %v7940_v32 }
 0x382   :  { %8841 = vmatprep.mubr.msk.bf16.mxu0 %vm10156_vm3, %v10155_v7 }
 0x444   :  { %v670_v40 = vpop.f32.mrb[24].mxu0 }
 0x445   :  { %v672_v42 = vpop.f32.mrb[25].mxu0  ;;  %v671_v46 = vadd.f32 %v670_v40, %v584_v44 }
 0x446   :  { %v673_v45 = vpop.f32.mrb[26].mxu0 }
 0x447   :  { %v674_v47 = vadd.f32 %v673_v45, %v588_v41  ;;  %v675_v36 = vpop.f32.mrb[27].mxu0 }
 0x449   :  { %v9584_v39 = vpack.i.bf16 %v674_v47, %v671_v46 }
 0x44b   :  { %9585 = vrot.lane.b32.xlu1 %v9584_v39, %s10159_s27  ;;  %9580 = vrot.lane.b32.xlu0 %v9584_v39, %s10158_s24 }
 0x44c   :  { %v678_v49 = vpop.f32.mrb[28].mxu0 }
 0x44d   :  { %v680_v52 = vpop.f32.mrb[29].mxu0  ;;  %v679_v56 = vadd.f32 %v678_v49, %v592_v50 }
 0x44e   :  { %v681_v54 = vpop.f32.mrb[30].mxu0 }
 0x44f   :  { %v682_v57 = vadd.f32 %v681_v54, %v596_v53  ;;  %v683_v51 = vpop.f32.mrb[31].mxu0  ;;  %9595 = vrot.lane.b32.xlu1 %v9584_v39, %s10162_s19  ;;  %9590 = vrot.lane.b32.xlu0 %v9584_v39, %s10157_s23 }
 0x450   :  { %v9722_v51 = vld [vmem:[%s12480_s5 + $0x2c] ss:$12 sps:$4 sm:$0xff]  }
 0x451   :  { %v9604_v58 = vpack.i.bf16 %v682_v57, %v679_v56  ;;  %8838 = vmatpush3.bf16.msra.mxu0 %v9722_v51  ;;  %v10479_v51 = vld [vmem:[%s12480_s5 + $0x18] sm:$0x11] }
 0x452   :  { %8839 = vmatprep.subr.bf16.mxu0 %v10155_v7 }
 0x453   :  { %9605 = vrot.lane.b32.xlu1 %v9604_v58, %s10159_s27  ;;  %9600 = vrot.lane.b32.xlu0 %v9604_v58, %s10158_s24 }
 0x454   :  { %v686_v55 = vpop.f32.mrb[32].mxu0 }
 0x455   :  { %v688_v60 = vpop.f32.mrb[33].mxu0  ;;  %v687_v24 = vadd.f32 %v686_v55, %v600_v63 }
 0x456   :  { %v689_v61 = vpop.f32.mrb[34].mxu0 }
 0x457   :  { %9615 = vrot.lane.b32.xlu1 %v9604_v58, %s10162_s19  ;;  %9610 = vrot.lane.b32.xlu0 %v9604_v58, %s10157_s23  ;;  %v690_v62 = vpop.f32.mrb[35].mxu0  ;;  %v7963_v58 = vld [vmem:[%s12480_s5 + $0x3c] sm:$0x11]  ;;  %v9725_v61 = vld [vmem:[%s12480_s5 + $0x44] ss:$0 sps:$4 sm:$0x11]  }
 0x458   :  { %v7969_v55 = vcombine.high %v7963_v58, %v7963_v58  ;;  %v7968_v60 = vcombine.low %v7963_v58, %v7963_v58  ;;  %v1028_v63 = vsel %vm1020_vm9, %v9725_v61, 0 }
 0x459   :  { %8840 = vmatpush3.bf16.msra.mxu0 %v1028_v63 }
 0x45a   :  { %v1022_v62 = vsel %vm1020_vm9, %v7968_v60, 0  ;;  %8853 = vmatprep.subr.bf16.mxu0 %v10155_v7 }
 0x45b   :  { %725 = vrot.lane.b32.xlu1 %v687_v24, %s10159_s27  ;;  %705 = vrot.lane.b32.xlu0 %v687_v24, %s10158_s24 }
 0x45f   :  { %765 = vrot.lane.b32.xlu1 %v687_v24, %s10162_s19  ;;  %745 = vrot.lane.b32.xlu0 %v687_v24, %s10157_s23 }
 0x4bd   :  { %v9586_v0 = vpop.permute.xlu1 %9585  ;;  %v9581_v23 = vpop.permute.xlu0 %9580 }
 0x4be   :  { %v9583_v25 = vunpack.i.h.bf16 %v9581_v23  ;;  %v9582_v26 = vunpack.i.l.bf16 %v9581_v23  ;;  %v9588_v2 = vunpack.i.h.bf16 %v9586_v0  ;;  %v9587_v3 = vunpack.i.l.bf16 %v9586_v0 }
 0x4c0   :  { %v713_v27 = vmax.f32 %v674_v47, %v9583_v25  ;;  %v712_v1 = vmax.f32 %v671_v46, %v9582_v26 }
 0x4c1   :  { %v9596_v4 = vpop.permute.xlu1 %9595  ;;  %v9591_v5 = vpop.permute.xlu0 %9590 }
 0x4c2   :  { %v9593_v6 = vunpack.i.h.bf16 %v9591_v5  ;;  %v9592_v8 = vunpack.i.l.bf16 %v9591_v5  ;;  %v732_v9 = vmax.f32 %v712_v1, %v9587_v3  ;;  %v733_v10 = vmax.f32 %v713_v27, %v9588_v2 }
 0x4c3   :  { %v9598_v11 = vunpack.i.h.bf16 %v9596_v4  ;;  %v9597_v12 = vunpack.i.l.bf16 %v9596_v4 }
 0x4c4   :  { %v752_v14 = vmax.f32 %v732_v9, %v9592_v8  ;;  %v753_v15 = vmax.f32 %v733_v10, %v9593_v6 }
 0x4c5   :  { %v9606_v16 = vpop.permute.xlu1 %9605  ;;  %v9601_v13 = vpop.permute.xlu0 %9600 }
 0x4c6   :  { %v9603_v17 = vunpack.i.h.bf16 %v9601_v13  ;;  %v9602_v18 = vunpack.i.l.bf16 %v9601_v13  ;;  %v772_v19 = vmax.f32 %v752_v14, %v9597_v12  ;;  %v773_v20 = vmax.f32 %v753_v15, %v9598_v11 }
 0x4c7   :  { %v9608_v30 = vunpack.i.h.bf16 %v9606_v16  ;;  %v9607_v31 = vunpack.i.l.bf16 %v9606_v16 }
 0x4c8   :  { %v715_v21 = vmax.f32 %v682_v57, %v9603_v17  ;;  %v714_v28 = vmax.f32 %v679_v56, %v9602_v18  ;;  %v777_v29 = vpack.c.bf16 %v773_v20, %v772_v19  ;;  %v9721_v56 = vld [vmem:[%s12480_s5 + $0x28] ss:$12 sps:$4 sm:$0xff]   ;;  %v9719_v57 = vld [vmem:[%s12480_s5 + $0x24] ss:$12 sps:$4 sm:$0xff]  }
 0x4c9   :  { %v9616_v32 = vpop.permute.xlu1 %9615  ;;  %v9611_v33 = vpop.permute.xlu0 %9610  ;;  %1030 = vmatprep.subr.bf16.mxu1 %v9721_v56 }
 0x4ca   :  { %v9613_v34 = vunpack.i.h.bf16 %v9611_v33  ;;  %v9612_v35 = vunpack.i.l.bf16 %v9611_v33  ;;  %v734_v37 = vmax.f32 %v714_v28, %v9607_v31  ;;  %v735_v38 = vmax.f32 %v715_v21, %v9608_v30  ;;  %8826 = vmatmul.mubr.msk.bf16.vlgmr.msra.gmra.mrb[24].mxu1 %vm827_vm8, %v777_v29 }
 0x4cb   :  { %8829 = vmatprep.mubr.msk.bf16.mxu1 %vm10156_vm3, %v10155_v7  ;;  %v9618_v40 = vunpack.i.h.bf16 %v9616_v32  ;;  %v9617_v41 = vunpack.i.l.bf16 %v9616_v32  ;;  %1031 = vmatpush1.bf16.msra.mxu1 %v9719_v57 }
 0x4cc   :  { %v754_v42 = vmax.f32 %v734_v37, %v9612_v35  ;;  %v755_v43 = vmax.f32 %v735_v38, %v9613_v34  ;;  %7971 = vmatprep.subr.msk.bf16.mxu1 %vm1020_vm9, %v7969_v55 }
 0x4cd   :  { %v706_v44 = vpop.permute.xlu0 %705  ;;  %v726_v45 = vpop.permute.xlu1 %725 }
 0x4ce   :  { %v716_v46 = vmax.f32 %v687_v24, %v706_v44  ;;  %v774_v47 = vmax.f32 %v754_v42, %v9617_v41  ;;  %v775_v36 = vmax.f32 %v755_v43, %v9618_v40  ;;  %v9728_v24 = vld [vmem:[%s12480_s5 + $0x4] ss:$12 sps:$4 sm:$0xff]  }
 0x4cf   :  { %1033 = vmatpush1.bf16.msra.mxu1 %v1022_v62  ;;  %v7981_v62 = vcombine.low %v10479_v51, %v10479_v51 }
 0x4d0   :  { %v736_v48 = vmax.f32 %v716_v46, %v726_v45  ;;  %v778_v49 = vpack.c.bf16 %v775_v36, %v774_v47  ;;  %1186 = vmatprep.subr.bf16.mxu1 %v9728_v24 }
 0x4d1   :  { %v746_v39 = vpop.permute.xlu0 %745  ;;  %v766_v52 = vpop.permute.xlu1 %765 }
 0x4d2   :  { %v756_v50 = vmax.f32 %v736_v48, %v746_v39  ;;  %8830 = vmatmul.mubr.msk.bf16.gmra.mrb[28].mxu1 %vm827_vm8, %v778_v49 }
 0x4d3   :  { %8833 = vmatprep.mubr.msk.bf16.mxu1 %vm10156_vm3, %v10155_v7 }
 0x4d4   :  { %v776_v53 = vmax.f32 %v756_v50, %v766_v52 }
 0x4d6   :  { %v779_v54 = vpack.c.bf16 %v776_v53, %v776_v53 }
 0x4da   :  { %8834 = vmatmul.mubr.msk.bf16.gmra.mrb[32].mxu1 %vm827_vm8, %v779_v54 }
 0x4db   :  { %1062 = vmatprep.mubr.bf16.mxu1 %v10160_v22 }
 0x59d   :  { %v875_v0 = vpop.f32.mrb[24].mxu1 }
 0x59e   :  { %v897_v23 = vmin.f32 %v875_v0, 20.0  ;;  %v8827_v25 = vpop.f32.mrb[25].mxu1 }
 0x59f   :  { %v878_v26 = vpop.f32.mrb[26].mxu1 }
 0x5a0   :  { %v902_v27 = vmul.f32 1.442695, %v897_v23  ;;  %v898_v1 = vmin.f32 %v878_v26, 20.0  ;;  %v8828_v2 = vpop.f32.mrb[27].mxu1 }
 0x5a2   :  { %10027 = vpow2.f32 %v902_v27  ;;  %v904_v3 = vmul.f32 1.442695, %v898_v1 }
 0x5a4   :  { %10029 = vpow2.f32 %v904_v3 }
 0x5a5   :  { %v883_v4 = vpop.f32.mrb[28].mxu1 }
 0x5a6   :  { %v899_v5 = vmin.f32 %v883_v4, 20.0  ;;  %v8831_v6 = vpop.f32.mrb[29].mxu1 }
 0x5a7   :  { %v886_v8 = vpop.f32.mrb[30].mxu1 }
 0x5a8   :  { %v906_v9 = vmul.f32 1.442695, %v899_v5  ;;  %v900_v10 = vmin.f32 %v886_v8, 20.0  ;;  %v8832_v11 = vpop.f32.mrb[31].mxu1 }
 0x5aa   :  { %10031 = vpow2.f32 %v906_v9  ;;  %v908_v12 = vmul.f32 1.442695, %v900_v10 }
 0x5ac   :  { %v10028_v14 = vpop.eup %10027  ;;  %10033 = vpow2.f32 %v908_v12  ;;  %v7982_v12 = vcombine.high %v10479_v51, %v10479_v51 }
 0x5ad   :  { %v912_v15 = vadd.f32 1.0, %v10028_v14  ;;  %v10471_v16 = vpop.f32.mrb[32].mxu1 }
 0x5ae   :  { %v10030_v13 = vpop.eup %10029  ;;  %v901_v17 = vmin.f32 %v10471_v16, 20.0  ;;  %v8835_v18 = vpop.f32.mrb[33].mxu1 }
 0x5af   :  { %v917_v19 = vmul.f32 %v912_v15, %v912_v15  ;;  %v913_v20 = vadd.f32 1.0, %v10030_v13  ;;  %v894_v21 = vpop.f32.mrb[34].mxu1  ;;  %v1178_v15 = vsel %vm1020_vm9, %v7981_v62, 0 }
 0x5b0   :  { %v910_v28 = vmul.f32 1.442695, %v901_v17  ;;  %v8836_v29 = vpop.f32.mrb[35].mxu1 }
 0x5b1   :  { %v932_v30 = vadd.f32 1.0, %v917_v19  ;;  %v918_v31 = vmul.f32 %v913_v20, %v913_v20  ;;  %v7954_v42 = vadd.f32 -1.0, %v917_v19 }
 0x5b2   :  { %10035 = vpow2.f32 %v910_v28 }
 0x5b3   :  { %10037 = vrcp.f32 %v932_v30  ;;  %v933_v32 = vadd.f32 1.0, %v918_v31  ;;  %v7955_v43 = vadd.f32 -1.0, %v918_v31  ;;  %v927_v36 = vmul.f32 %v7954_v42, %v875_v0  ;;  %v9732_v0 = vld [vmem:[%s12480_s5 + $0x20] ss:$0 sps:$4 sm:$0x11]  }
 0x5b4   :  { %v10032_v33 = vpop.eup %10031  ;;  %v1184_v13 = vsel %vm1020_vm9, %v9732_v0, 0 }
 0x5b5   :  { %10039 = vrcp.f32 %v933_v32  ;;  %v914_v34 = vadd.f32 1.0, %v10032_v33  ;;  %v928_v48 = vmul.f32 %v7955_v43, %v878_v26 }
 0x5b6   :  { %v10034_v35 = vpop.eup %10033 }
 0x5b7   :  { %v919_v37 = vmul.f32 %v914_v34, %v914_v34  ;;  %v915_v38 = vadd.f32 1.0, %v10034_v35  ;;  %v9726_v34 = vld [vmem:[%s12480_s5] ss:$12 sps:$4 sm:$0xff]  }
 0x5b9   :  { %v934_v40 = vadd.f32 1.0, %v919_v37  ;;  %v920_v41 = vmul.f32 %v915_v38, %v915_v38  ;;  %v7956_v53 = vadd.f32 -1.0, %v919_v37  ;;  %v9729_v38 = vld [vmem:[%s12480_s5 + $0x8] ss:$12 sps:$4 sm:$0xff]  }
 0x5bb   :  { %10041 = vrcp.f32 %v934_v40  ;;  %v935_v44 = vadd.f32 1.0, %v920_v41  ;;  %v7957_v57 = vadd.f32 -1.0, %v920_v41  ;;  %v929_v61 = vmul.f32 %v7956_v53, %v883_v4 }
 0x5bc   :  { %v10036_v45 = vpop.eup %10035 }
 0x5bd   :  { %v10038_v46 = vpop.eup %10037  ;;  %10043 = vrcp.f32 %v935_v44  ;;  %v916_v47 = vadd.f32 1.0, %v10036_v45  ;;  %v930_v63 = vmul.f32 %v7957_v57, %v886_v8 }
 0x5be   :  { %v942_v50 = vmul.f32 %v10038_v46, %v927_v36 }
 0x5bf   :  { %v10040_v39 = vpop.eup %10039  ;;  %v921_v49 = vmul.f32 %v916_v47, %v916_v47 }
 0x5c0   :  { %v943_v52 = vmul.f32 %v10040_v39, %v928_v48 }
 0x5c1   :  { %v936_v54 = vadd.f32 1.0, %v921_v49  ;;  %v7958_v24 = vadd.f32 -1.0, %v921_v49 }
 0x5c2   :  { %v10474_v56 = vpack.c.bf16 %v943_v52, %v942_v50 }
 0x5c3   :  { %10045 = vrcp.f32 %v936_v54  ;;  %v931_v14 = vmul.f32 %v7958_v24, %v10471_v16 }
 0x5c4   :  { %v965_v58 = vshrl.u32 %v10474_v56, 16  ;;  %v967_v55 = vshll.u32 %v10474_v56, 16  ;;  %v1314_v17 = vrot.slane %v10474_v56, 1  ;;  %v1694_v30 = vrot.slane %v10474_v56, 2 }
 0x5c5   :  { %v10042_v60 = vpop.eup %10041  ;;  %v2074_v16 = vrot.slane %v10474_v56, 3 }
 0x5c6   :  { %v1501_v23 = vrot.slane %v965_v58, 1  ;;  %v1502_v25 = vrot.slane %v967_v55, 2  ;;  %v1881_v27 = vrot.slane %v965_v58, 2  ;;  %v1882_v1 = vrot.slane %v967_v55, 3 }
 0x5c7   :  { %v10044_v26 = vpop.eup %10043  ;;  %v2261_v2 = vrot.slane %v965_v58, 3  ;;  %v2262_v3 = vrot.slane %v967_v55, 4  ;;  %v944_v5 = vmul.f32 %v10042_v60, %v929_v61  ;;  %v969_v9 = vrot.slane %v967_v55, 1  ;;  %v9735_v61 = vld [vmem:[%s12480_s5 + $0x4c] ss:$12 sps:$4 sm:$0xff]  }
 0x5c8   :  { %v945_v4 = vmul.f32 %v10044_v26, %v930_v63  ;;  %v1503_v6 = vor.u32 %v1502_v25, %v1501_v23  ;;  %v1883_v10 = vor.u32 %v1882_v1, %v1881_v27 }
 0x5c9   :  { %v10488_v8 = vor.u32 %v2262_v3, %v2261_v2  ;;  %v970_v29 = vor.u32 %v969_v9, %v965_v58 }
 0x5ca   :  { %v10490_v11 = vpack.c.bf16 %v945_v4, %v944_v5 }
 0x5cc   :  { %v972_v18 = vshll.u32 %v10490_v11, 16  ;;  %v976_v19 = vshrl.u32 %v10490_v11, 16  ;;  %v1315_v20 = vrot.slane %v10490_v11, 1  ;;  %v1695_v21 = vrot.slane %v10490_v11, 2 }
 0x5cd   :  { %v10046_v28 = vpop.eup %10045  ;;  %v2075_v31 = vrot.slane %v10490_v11, 3 }
 0x5ce   :  { %v946_v32 = vmul.f32 %v10046_v28, %v931_v14  ;;  %v974_v33 = vrot.slane %v972_v18, 1  ;;  %v10509_v35 = vsel %vm1313_vm10, %v1314_v17, %v1315_v20  ;;  %v1504_v37 = vrot.slane %v976_v19, 1  ;;  %v9733_v14 = vld [vmem:[%s12480_s5 + $0x48] ss:$12 sps:$4 sm:$0xff]  }
 0x5cf   :  { %v1505_v40 = vrot.slane %v972_v18, 2  ;;  %v10515_v41 = vsel %vm1693_vm11, %v1694_v30, %v1695_v21  ;;  %v1884_v42 = vrot.slane %v976_v19, 2  ;;  %v1885_v43 = vrot.slane %v972_v18, 3  ;;  %v9743_v28 = vld [vmem:[%s12480_s5 + $0x74] ss:$12 sps:$4 sm:$0xff]  }
 0x5d0   :  { %v10517_v44 = vpack.c.bf16 %v946_v32, %v946_v32  ;;  %v975_v45 = vsel %vm963_vm12, %v970_v29, %v974_v33  ;;  %v978_v46 = vor.u32 %v976_v19, %v974_v33  ;;  %v10521_v47 = vsel %vm837_vm7, %v2074_v16, %v2075_v31  ;;  %v9746_v16 = vld [vmem:[%s12480_s5 + $0x8c] ss:$0 sps:$4 sm:$0x11]   ;;  %v9749_v33 = vld [vmem:[%s12480_s5 + $0x94] ss:$12 sps:$4 sm:$0xff]  }
 0x5d1   :  { %7972 = vmatmul.mubr.msk.bf16.vlgmr.msra.gmra.mrb[36].mxu1 %vm1010_vm13, %v975_v45  ;;  %8842 = vmatmul.mubr.msk.bf16.vlgmr.msra.gmra.mrb[36].mxu0 %vm1010_vm13, %v975_v45  ;;  %v1506_v36 = vor.u32 %v1505_v40, %v1504_v37  ;;  %v1886_v48 = vor.u32 %v1885_v43, %v1884_v42  ;;  %v2264_v39 = vrot.slane %v976_v19, 3  ;;  %v2265_v49 = vrot.slane %v972_v18, 4  ;;  %v9739_v18 = vld [vmem:[%s12480_s5 + $0x68] ss:$0 sps:$4 sm:$0x11]  }
 0x5d2   :  { %1072 = vmatprep.mubr.bf16.mxu1 %v10160_v22  ;;  %8845 = vmatprep.mubr.msk.bf16.mxu0 %vm10156_vm3, %v10155_v7  ;;  %v980_v50 = vshll.u32 %v10517_v44, 16  ;;  %v984_v52 = vshrl.u32 %v10517_v44, 16  ;;  %v10531_v53 = vrot.slane %v10517_v44, 1  ;;  %v10534_v54 = vrot.slane %v10517_v44, 2  ;;  %v9750_v37 = vld [vmem:[%s12480_s5 + $0x98] ss:$12 sps:$4 sm:$0xff]  }
 0x5d3   :  { %1187 = vmatpush1.bf16.msra.mxu1 %v9726_v34  ;;  %8854 = vmatpush3.bf16.msra.mxu0 %v9729_v38  ;;  %v10537_v57 = vsel %vm1500_vm14, %v1503_v6, %v1506_v36  ;;  %v10540_v51 = vsel %vm1880_vm15, %v1883_v10, %v1886_v48  ;;  %v10543_v58 = vrot.slane %v10517_v44, 3  ;;  %v2266_v55 = vor.u32 %v2265_v49, %v2264_v39  ;;  %v8033_v34 = vld [vmem:[%s12480_s5 + $0xa8] sm:$0x11]  ;;  %v9753_v42 = vld [vmem:[%s12480_s5 + $0xb0] ss:$0 sps:$4 sm:$0x11]  }
 0x5d4   :  { %v982_v60 = vrot.slane %v980_v50, 1  ;;  %7984 = vmatprep.subr.msk.bf16.mxu1 %vm1020_vm9, %v7982_v12  ;;  %8855 = vmatprep.subr.bf16.mxu0 %v10155_v7  ;;  %v10552_v62 = vsel %vm1313_vm10, %v1315_v20, %v10531_v53  ;;  %v10554_v63 = vrot.slane %v984_v52, 1  ;;  %v1509_v24 = vrot.slane %v980_v50, 2  ;;  %v7995_v12 = vld [vmem:[%s12480_s5 + $0x60] sm:$0x11] }
 0x5d5   :  { %v10558_v0 = vsel %vm1693_vm11, %v1695_v21, %v10534_v54  ;;  %v10560_v23 = vrot.slane %v984_v52, 2  ;;  %v1889_v25 = vrot.slane %v980_v50, 3  ;;  %v10564_v26 = vsel %vm837_vm7, %v2075_v31, %v10543_v58  ;;  %v9742_v21 = vld [vmem:[%s12480_s5 + $0x70] ss:$12 sps:$4 sm:$0xff]   ;;  %v9756_v45 = vld [vmem:[%s12480_s5 + $0xb8] ss:$12 sps:$4 sm:$0xff]  }
 0x5d6   :  { %v983_v27 = vsel %vm963_vm12, %v978_v46, %v982_v60  ;;  %v1510_v1 = vor.u32 %v1509_v24, %v10554_v63  ;;  %v10570_v2 = vsel %vm12488_vm1, %v10488_v8, %v2266_v55  ;;  %v10572_v3 = vrot.slane %v984_v52, 3  ;;  %v8052_v46 = vld [vmem:[%s12480_s5 + $0xcc] sm:$0x11] }
 0x5d7   :  { %1189 = vmatpush1.bf16.msra.mxu1 %v1178_v15  ;;  %8856 = vmatpush3.bf16.msra.mxu0 %v1184_v13  ;;  %v1890_v5 = vor.u32 %v1889_v25, %v10560_v23  ;;  %v2269_v4 = vrot.slane %v980_v50, 4  ;;  %v9736_v15 = vld [vmem:[%s12480_s5 + $0x50] ss:$12 sps:$4 sm:$0xff]   ;;  %v8001_v13 = vcombine.high %v7995_v12, %v7995_v12  ;;  %v8000_v17 = vcombine.low %v7995_v12, %v7995_v12  ;;  %v9760_v50 = vld [vmem:[%s12480_s5 + $0xd4] ss:$0 sps:$4 sm:$0x11]  }
 0x5d8   :  { %1361 = vmatprep.subr.bf16.mxu1 %v9735_v61  ;;  %8869 = vmatprep.subr.bf16.mxu0 %v10155_v7  ;;  %v10577_v6 = vsel %vm1500_vm14, %v1506_v36, %v1510_v1  ;;  %v1359_v20 = vsel %vm1020_vm9, %v9739_v18, 0  ;;  %v1552_v32 = vsel %vm1020_vm9, %v9746_v16, 0  ;;  %v8039_v38 = vcombine.high %v8033_v34, %v8033_v34  ;;  %v9754_v36 = vld [vmem:[%s12480_s5 + $0xb4] ss:$12 sps:$4 sm:$0xff]   ;;  %v9768_v25 = vld [vmem:[%s12480_s5 + $0xfc] ss:$12 sps:$4 sm:$0xff]  }
 0x5d9   :  { %7973 = vmatmul.mubr.msk.bf16.gmra.mrb[40].mxu1 %vm1010_vm13, %v983_v27  ;;  %8846 = vmatmul.mubr.msk.bf16.gmra.mrb[40].mxu0 %vm1010_vm13, %v983_v27  ;;  %v10582_v9 = vsel %vm1880_vm15, %v1886_v48, %v1890_v5  ;;  %v2270_v10 = vor.u32 %v2269_v4, %v10572_v3  ;;  %v1353_v19 = vsel %vm1020_vm9, %v8000_v17, 0  ;;  %v8038_v40 = vcombine.low %v8033_v34, %v8033_v34  ;;  %v9757_v48 = vld [vmem:[%s12480_s5 + $0xbc] ss:$12 sps:$4 sm:$0xff]   ;;  %v9764_v60 = vld [vmem:[%s12480_s5 + $0xe0] ss:$12 sps:$4 sm:$0xff]  }
 0x5da   :  { %1082 = vmatprep.mubr.bf16.mxu1 %v10160_v22  ;;  %8849 = vmatprep.mubr.msk.bf16.mxu0 %vm10156_vm3, %v10155_v7  ;;  %v8058_v39 = vcombine.high %v8052_v46, %v8052_v46  ;;  %v8057_v49 = vcombine.low %v8052_v46, %v8052_v46  ;;  %v9771_v27 = vld [vmem:[%s12480_s5 + $0x104] ss:$12 sps:$4 sm:$0xff]  }
 0x5db   :  { %v10589_v8 = vsel %vm12488_vm1, %v2266_v55, %v2270_v10  ;;  %v1733_v43 = vsel %vm1020_vm9, %v8038_v40, 0  ;;  %v9761_v55 = vld [vmem:[%s12480_s5 + $0xd8] ss:$12 sps:$4 sm:$0xff]   ;;  %vm12490_vm1 = vcmask 252928  }
 0x5e1   :  { %7974 = vmatmul.mubr.msk.bf16.gmra.mrb[44].mxu1 %vm1010_vm13, %v984_v52  ;;  %8850 = vmatmul.mubr.msk.bf16.gmra.mrb[44].mxu0 %vm1010_vm13, %v984_v52  ;;  %v1926_v52 = vsel %vm1020_vm9, %v8057_v49, 0 }
 0x5e2   :  { %1218 = vmatprep.mubr.bf16.mxu1 %v10160_v22  ;;  %8857 = vmatprep.mubr.msk.bf16.mxu0 %vm10156_vm3, %v10155_v7 }
 0x5e9   :  { %7985 = vmatmul.mubr.msk.bf16.vlgmr.msra.gmra.mrb[36].mxu1 %vm1010_vm13, %v10474_v56  ;;  %8858 = vmatmul.mubr.msk.bf16.vlgmr.msra.gmra.mrb[48].mxu0 %vm1010_vm13, %v10474_v56  ;;  %v8014_v56 = vld [vmem:[%s12480_s5 + $0x84] sm:$0x11] }
 0x5ea   :  { %1228 = vmatprep.mubr.bf16.mxu1 %v10160_v22  ;;  %8861 = vmatprep.mubr.msk.bf16.mxu0 %vm10156_vm3, %v10155_v7  ;;  %v8020_v29 = vcombine.high %v8014_v56, %v8014_v56  ;;  %v8019_v30 = vcombine.low %v8014_v56, %v8014_v56 }
 0x5eb   :  { %1362 = vmatpush1.bf16.msra.mxu1 %v9733_v14  ;;  %8870 = vmatpush3.bf16.msra.mxu0 %v9736_v15 }
 0x5ec   :  { %8003 = vmatprep.subr.msk.bf16.mxu1 %vm1020_vm9, %v8001_v13  ;;  %8871 = vmatprep.subr.bf16.mxu0 %v10155_v7  ;;  %v1546_v31 = vsel %vm1020_vm9, %v8019_v30, 0 }
 0x5ef   :  { %1364 = vmatpush1.bf16.msra.mxu1 %v1353_v19  ;;  %8872 = vmatpush3.bf16.msra.mxu0 %v1359_v20 }
 0x5f0   :  { %1554 = vmatprep.subr.bf16.mxu1 %v9742_v21  ;;  %8885 = vmatprep.subr.bf16.mxu0 %v10155_v7 }
 0x5f1   :  { %7986 = vmatmul.mubr.msk.bf16.gmra.mrb[40].mxu1 %vm1010_vm13, %v10490_v11  ;;  %8862 = vmatmul.mubr.msk.bf16.gmra.mrb[52].mxu0 %vm1010_vm13, %v10490_v11  ;;  %v9740_v11 = vld [vmem:[%s12480_s5 + $0x6c] ss:$12 sps:$4 sm:$0xff]  }
 0x5f2   :  { %1238 = vmatprep.mubr.bf16.mxu1 %v10160_v22  ;;  %8865 = vmatprep.mubr.msk.bf16.mxu0 %vm10156_vm3, %v10155_v7 }
 0x5f9   :  { %7987 = vmatmul.mubr.msk.bf16.gmra.mrb[48].mxu1 %vm1010_vm13, %v10517_v44  ;;  %8866 = vmatmul.mubr.msk.bf16.gmra.mrb[56].mxu0 %vm1010_vm13, %v10517_v44  ;;  %v1739_v44 = vsel %vm1020_vm9, %v9753_v42, 0 }
 0x5fa   :  { %1393 = vmatprep.mubr.bf16.mxu1 %v10160_v22  ;;  %8873 = vmatprep.mubr.msk.bf16.mxu0 %vm10156_vm3, %v10155_v7 }
 0x601   :  { %8004 = vmatmul.mubr.msk.bf16.vlgmr.msra.gmra.mrb[36].mxu1 %vm1010_vm13, %v10509_v35  ;;  %8874 = vmatmul.mubr.msk.bf16.vlgmr.msra.gmra.mrb[60].mxu0 %vm1010_vm13, %v10509_v35  ;;  %v9747_v35 = vld [vmem:[%s12480_s5 + $0x90] ss:$12 sps:$4 sm:$0xff]  }
 0x602   :  { %1403 = vmatprep.mubr.bf16.mxu1 %v10160_v22  ;;  %8877 = vmatprep.mubr.msk.bf16.mxu0 %vm10156_vm3, %v10155_v7 }
 0x603   :  { %1555 = vmatpush1.bf16.msra.mxu1 %v9740_v11  ;;  %8886 = vmatpush3.bf16.msra.mxu0 %v9743_v28 }
 0x604   :  { %8022 = vmatprep.subr.msk.bf16.mxu1 %vm1020_vm9, %v8020_v29  ;;  %8887 = vmatprep.subr.bf16.mxu0 %v10155_v7 }
 0x607   :  { %1557 = vmatpush1.bf16.msra.mxu1 %v1546_v31  ;;  %8888 = vmatpush3.bf16.msra.mxu0 %v1552_v32 }
 0x608   :  { %1741 = vmatprep.subr.bf16.mxu1 %v9749_v33  ;;  %8901 = vmatprep.subr.bf16.mxu0 %v10155_v7 }
 0x609   :  { %8005 = vmatmul.mubr.msk.bf16.gmra.mrb[40].mxu1 %vm1010_vm13, %v10552_v62  ;;  %8878 = vmatmul.mubr.msk.bf16.gmra.mrb[64].mxu0 %vm1010_vm13, %v10552_v62 }
 0x60a   :  { %1413 = vmatprep.mubr.bf16.mxu1 %v10160_v22  ;;  %8881 = vmatprep.mubr.msk.bf16.mxu0 %vm10156_vm3, %v10155_v7 }
 0x611   :  { %8006 = vmatmul.mubr.msk.bf16.gmra.mrb[52].mxu1 %vm1010_vm13, %v10531_v53  ;;  %8882 = vmatmul.mubr.msk.bf16.gmra.mrb[68].mxu0 %vm1010_vm13, %v10531_v53  ;;  %v1932_v53 = vsel %vm1020_vm9, %v9760_v50, 0 }
 0x612   :  { %1586 = vmatprep.mubr.bf16.mxu1 %v10160_v22  ;;  %8889 = vmatprep.mubr.msk.bf16.mxu0 %vm10156_vm3, %v10155_v7 }
 0x619   :  { %8023 = vmatmul.mubr.msk.bf16.vlgmr.msra.gmra.mrb[36].mxu1 %vm1010_vm13, %v10537_v57  ;;  %8890 = vmatmul.mubr.msk.bf16.vlgmr.msra.gmra.mrb[72].mxu0 %vm1010_vm13, %v10537_v57  ;;  %v9763_v57 = vld [vmem:[%s12480_s5 + $0xdc] ss:$12 sps:$4 sm:$0xff]  }
 0x61a   :  { %1596 = vmatprep.mubr.bf16.mxu1 %v10160_v22  ;;  %8893 = vmatprep.mubr.msk.bf16.mxu0 %vm10156_vm3, %v10155_v7 }
 0x61b   :  { %1742 = vmatpush1.bf16.msra.mxu1 %v9747_v35  ;;  %8902 = vmatpush3.bf16.msra.mxu0 %v9750_v37 }
 0x61c   :  { %8041 = vmatprep.subr.msk.bf16.mxu1 %vm1020_vm9, %v8039_v38  ;;  %8903 = vmatprep.subr.bf16.mxu0 %v10155_v7 }
 0x61f   :  { %1744 = vmatpush1.bf16.msra.mxu1 %v1733_v43  ;;  %8904 = vmatpush3.bf16.msra.mxu0 %v1739_v44 }
 0x620   :  { %1934 = vmatprep.subr.bf16.mxu1 %v9756_v45  ;;  %8917 = vmatprep.subr.bf16.mxu0 %v10155_v7 }
 0x621   :  { %8024 = vmatmul.mubr.msk.bf16.gmra.mrb[40].mxu1 %vm1010_vm13, %v10577_v6  ;;  %8894 = vmatmul.mubr.msk.bf16.gmra.mrb[76].mxu0 %vm1010_vm13, %v10577_v6 }
 0x622   :  { %1606 = vmatprep.mubr.bf16.mxu1 %v10160_v22  ;;  %8897 = vmatprep.mubr.msk.bf16.mxu0 %vm10156_vm3, %v10155_v7 }
 0x629   :  { %8025 = vmatmul.mubr.msk.bf16.gmra.mrb[56].mxu1 %vm1010_vm13, %v10554_v63  ;;  %8898 = vmatmul.mubr.msk.bf16.gmra.mrb[80].mxu0 %vm1010_vm13, %v10554_v63 }
 0x62a   :  { %1773 = vmatprep.mubr.bf16.mxu1 %v10160_v22  ;;  %8905 = vmatprep.mubr.msk.bf16.mxu0 %vm10156_vm3, %v10155_v7 }
 0x631   :  { %8042 = vmatmul.mubr.msk.bf16.vlgmr.msra.gmra.mrb[36].mxu1 %vm1010_vm13, %v10515_v41  ;;  %8906 = vmatmul.mubr.msk.bf16.vlgmr.msra.gmra.mrb[84].mxu0 %vm1010_vm13, %v10515_v41  ;;  %v8071_v41 = vld [vmem:[%s12480_s5 + $0xf0] sm:$0x11] }
 0x632   :  { %1783 = vmatprep.mubr.bf16.mxu1 %v10160_v22  ;;  %8909 = vmatprep.mubr.msk.bf16.mxu0 %vm10156_vm3, %v10155_v7  ;;  %v8077_v61 = vcombine.high %v8071_v41, %v8071_v41  ;;  %v8076_v62 = vcombine.low %v8071_v41, %v8071_v41 }
 0x633   :  { %1935 = vmatpush1.bf16.msra.mxu1 %v9754_v36  ;;  %8918 = vmatpush3.bf16.msra.mxu0 %v9757_v48 }
 0x634   :  { %8060 = vmatprep.subr.msk.bf16.mxu1 %vm1020_vm9, %v8058_v39  ;;  %8919 = vmatprep.subr.bf16.mxu0 %v10155_v7  ;;  %v2113_v63 = vsel %vm1020_vm9, %v8076_v62, 0 }
 0x637   :  { %1937 = vmatpush1.bf16.msra.mxu1 %v1926_v52  ;;  %8920 = vmatpush3.bf16.msra.mxu0 %v1932_v53 }
 0x638   :  { %2121 = vmatprep.subr.bf16.mxu1 %v9763_v57  ;;  %8933 = vmatprep.subr.bf16.mxu0 %v10155_v7 }
 0x639   :  { %8043 = vmatmul.mubr.msk.bf16.gmra.mrb[40].mxu1 %vm1010_vm13, %v10558_v0  ;;  %8910 = vmatmul.mubr.msk.bf16.gmra.mrb[88].mxu0 %vm1010_vm13, %v10558_v0  ;;  %v9770_v0 = vld [vmem:[%s12480_s5 + $0x100] ss:$12 sps:$4 sm:$0xff]  }
 0x63a   :  { %1793 = vmatprep.mubr.bf16.mxu1 %v10160_v22  ;;  %8913 = vmatprep.mubr.msk.bf16.mxu0 %vm10156_vm3, %v10155_v7 }
 0x641   :  { %8044 = vmatmul.mubr.msk.bf16.gmra.mrb[60].mxu1 %vm1010_vm13, %v10534_v54  ;;  %8914 = vmatmul.mubr.msk.bf16.gmra.mrb[92].mxu0 %vm1010_vm13, %v10534_v54  ;;  %v9767_v54 = vld [vmem:[%s12480_s5 + $0xf8] ss:$0 sps:$4 sm:$0x11]  }
 0x642   :  { %1966 = vmatprep.mubr.bf16.mxu1 %v10160_v22  ;;  %8921 = vmatprep.mubr.msk.bf16.mxu0 %vm10156_vm3, %v10155_v7  ;;  %v2119_v24 = vsel %vm1020_vm9, %v9767_v54, 0 }
 0x649   :  { %8061 = vmatmul.mubr.msk.bf16.vlgmr.msra.gmra.mrb[36].mxu1 %vm1010_vm13, %v10540_v51  ;;  %8922 = vmatmul.mubr.msk.bf16.vlgmr.msra.gmra.mrb[96].mxu0 %vm1010_vm13, %v10540_v51  ;;  %v8090_v51 = vld [vmem:[%s12480_s5 + $0x114] sm:$0x11] }
 0x64a   :  { %1976 = vmatprep.mubr.bf16.mxu1 %v10160_v22  ;;  %8925 = vmatprep.mubr.msk.bf16.mxu0 %vm10156_vm3, %v10155_v7  ;;  %v8096_v1 = vcombine.high %v8090_v51, %v8090_v51  ;;  %v8095_v5 = vcombine.low %v8090_v51, %v8090_v51 }
 0x64b   :  { %2122 = vmatpush1.bf16.msra.mxu1 %v9761_v55  ;;  %8934 = vmatpush3.bf16.msra.mxu0 %v9764_v60 }
 0x64c   :  { %8079 = vmatprep.subr.msk.bf16.mxu1 %vm1020_vm9, %v8077_v61  ;;  %8935 = vmatprep.subr.bf16.mxu0 %v10155_v7  ;;  %v2306_v4 = vsel %vm1020_vm9, %v8095_v5, 0 }
 0x64f   :  { %2124 = vmatpush1.bf16.msra.mxu1 %v2113_v63  ;;  %8936 = vmatpush3.bf16.msra.mxu0 %v2119_v24 }
 0x650   :  { %2314 = vmatprep.subr.bf16.mxu1 %v9770_v0  ;;  %8949 = vmatprep.subr.bf16.mxu0 %v10155_v7 }
 0x651   :  { %8062 = vmatmul.mubr.msk.bf16.gmra.mrb[40].mxu1 %vm1010_vm13, %v10582_v9  ;;  %8926 = vmatmul.mubr.msk.bf16.gmra.mrb[100].mxu0 %vm1010_vm13, %v10582_v9 }
 0x652   :  { %1986 = vmatprep.mubr.bf16.mxu1 %v10160_v22  ;;  %8929 = vmatprep.mubr.msk.bf16.mxu0 %vm10156_vm3, %v10155_v7 }
 0x659   :  { %8063 = vmatmul.mubr.msk.bf16.gmra.mrb[64].mxu1 %vm1010_vm13, %v10560_v23  ;;  %8930 = vmatmul.mubr.msk.bf16.gmra.mrb[104].mxu0 %vm1010_vm13, %v10560_v23  ;;  %v9774_v23 = vld [vmem:[%s12480_s5 + $0x11c] ss:$0 sps:$4 sm:$0x11]  }
 0x65a   :  { %2153 = vmatprep.mubr.bf16.mxu1 %v10160_v22  ;;  %8937 = vmatprep.mubr.msk.bf16.mxu0 %vm10156_vm3, %v10155_v7  ;;  %v2312_v6 = vsel %vm1020_vm9, %v9774_v23, 0 }
 0x661   :  { %8080 = vmatmul.mubr.msk.bf16.vlgmr.msra.gmra.mrb[36].mxu1 %vm1010_vm13, %v10521_v47  ;;  %8938 = vmatmul.mubr.msk.bf16.vlgmr.msra.gmra.mrb[108].mxu0 %vm1010_vm13, %v10521_v47 }
 0x662   :  { %2163 = vmatprep.mubr.bf16.mxu1 %v10160_v22  ;;  %8941 = vmatprep.mubr.msk.bf16.mxu0 %vm10156_vm3, %v10155_v7 }
 0x663   :  { %2315 = vmatpush1.bf16.msra.mxu1 %v9768_v25  ;;  %8950 = vmatpush3.bf16.msra.mxu0 %v9771_v27 }
 0x664   :  { %8098 = vmatprep.subr.msk.bf16.mxu1 %vm1020_vm9, %v8096_v1  ;;  %8951 = vmatprep.subr.bf16.mxu0 %v10155_v7 }
 0x667   :  { %2317 = vmatpush1.bf16.msra.mxu1 %v2306_v4  ;;  %8952 = vmatpush3.bf16.msra.mxu0 %v2312_v6 }
 0x668   :  { %8973 = vmatprep.subr.bf16.mxu0 %v10155_v7 }
 0x669   :  { %8081 = vmatmul.mubr.msk.bf16.gmra.mrb[40].mxu1 %vm1010_vm13, %v10564_v26  ;;  %8942 = vmatmul.mubr.msk.bf16.gmra.mrb[112].mxu0 %vm1010_vm13, %v10564_v26 }
 0x66a   :  { %2173 = vmatprep.mubr.bf16.mxu1 %v10160_v22  ;;  %8945 = vmatprep.mubr.msk.bf16.mxu0 %vm10156_vm3, %v10155_v7 }
 0x671   :  { %8082 = vmatmul.mubr.msk.bf16.gmra.mrb[68].mxu1 %vm1010_vm13, %v10543_v58  ;;  %8946 = vmatmul.mubr.msk.bf16.gmra.mrb[116].mxu0 %vm1010_vm13, %v10543_v58 }
 0x672   :  { %2346 = vmatprep.mubr.bf16.mxu1 %v10160_v22  ;;  %8953 = vmatprep.mubr.msk.bf16.mxu0 %vm10156_vm3, %v10155_v7 }
 0x679   :  { %8099 = vmatmul.mubr.msk.bf16.vlgmr.msra.gmra.mrb[36].mxu1 %vm1010_vm13, %v10570_v2  ;;  %8954 = vmatmul.mubr.msk.bf16.vlgmr.msra.gmra.mrb[120].mxu0 %vm1010_vm13, %v10570_v2 }
 0x67a   :  { %2356 = vmatprep.mubr.bf16.mxu1 %v10160_v22  ;;  %8957 = vmatprep.mubr.msk.bf16.mxu0 %vm10156_vm3, %v10155_v7 }
 0x681   :  { %8100 = vmatmul.mubr.msk.bf16.gmra.mrb[40].mxu1 %vm1010_vm13, %v10589_v8  ;;  %8958 = vmatmul.mubr.msk.bf16.gmra.mrb[124].mxu0 %vm1010_vm13, %v10589_v8 }
 0x682   :  { %2366 = vmatprep.mubr.bf16.mxu1 %v10160_v22  ;;  %8961 = vmatprep.mubr.msk.bf16.mxu0 %vm10156_vm3, %v10155_v7 }
 0x689   :  { %8101 = vmatmul.mubr.msk.bf16.gmra.mrb[72].mxu1 %vm1010_vm13, %v10572_v3  ;;  %8962 = vmatmul.mubr.msk.bf16.gmra.mrb[128].mxu0 %vm1010_vm13, %v10572_v3 }
 0x68a   :  { %2652 = vmatprep.mubr.bf16.mxu1 %v10160_v22  ;;  %8981 = vmatprep.mubr.msk.bf16.mxu0 %vm10156_vm3, %v10155_v7 }
 0x6a4   :  { %v1125_v47 = vpop.f32.mrb[36].mxu0 }
 0x6a5   :  { %v8843_v58 = vpop.f32.mrb[37].mxu0 }
 0x6a6   :  { %v1128_v26 = vpop.f32.mrb[38].mxu0 }
 0x6a7   :  { %v8844_v2 = vpop.f32.mrb[39].mxu0 }
 0x6ac   :  { %v1133_v9 = vpop.f32.mrb[40].mxu0 }
 0x6ad   :  { %v8847_v10 = vpop.f32.mrb[41].mxu0 }
 0x6ae   :  { %v1136_v8 = vpop.f32.mrb[42].mxu0 }
 0x6af   :  { %v8848_v12 = vpop.f32.mrb[43].mxu0 }
 0x6b4   :  { %v1084_v14 = vpop.f32.mrb[44].mxu1  ;;  %v1141_v15 = vpop.f32.mrb[44].mxu0 }
 0x6b5   :  { %v1086_v13 = vpop.f32.mrb[45].mxu1  ;;  %v8851_v17 = vpop.f32.mrb[45].mxu0 }
 0x6b6   :  { %v1088_v18 = vpop.f32.mrb[46].mxu1  ;;  %v1144_v19 = vpop.f32.mrb[46].mxu0 }
 0x6b7   :  { %v1089_v3 = vpop.f32.mrb[47].mxu1  ;;  %v8852_v20 = vpop.f32.mrb[47].mxu0 }
 0x6bc   :  { %v1281_v21 = vpop.f32.mrb[48].mxu0 }
 0x6bd   :  { %v1282_v56 = vadd.f32 %v1281_v21, %v1125_v47  ;;  %v8859_v11 = vpop.f32.mrb[49].mxu0 }
 0x6be   :  { %v1284_v28 = vpop.f32.mrb[50].mxu0 }
 0x6bf   :  { %v1285_v29 = vadd.f32 %v1284_v28, %v1128_v26  ;;  %v8860_v30 = vpop.f32.mrb[51].mxu0 }
 0x6c4   :  { %v1289_v16 = vpop.f32.mrb[52].mxu0 }
 0x6c5   :  { %v8863_v31 = vpop.f32.mrb[53].mxu0  ;;  %v1290_v32 = vadd.f32 %v1289_v16, %v1133_v9 }
 0x6c6   :  { %v1292_v33 = vpop.f32.mrb[54].mxu0 }
 0x6c7   :  { %v8864_v34 = vpop.f32.mrb[55].mxu0  ;;  %v1293_v35 = vadd.f32 %v1292_v33, %v1136_v8 }
 0x6cc   :  { %v1240_v37 = vpop.f32.mrb[48].mxu1  ;;  %v1297_v38 = vpop.f32.mrb[56].mxu0 }
 0x6cd   :  { %v1241_v40 = vadd.f32 %v1240_v37, %v1084_v14  ;;  %v1242_v42 = vpop.f32.mrb[49].mxu1  ;;  %v8867_v43 = vpop.f32.mrb[57].mxu0  ;;  %v1298_v44 = vadd.f32 %v1297_v38, %v1141_v15 }
 0x6ce   :  { %v1243_v45 = vadd.f32 %v1242_v42, %v1086_v13  ;;  %v1244_v46 = vpop.f32.mrb[50].mxu1  ;;  %v1300_v36 = vpop.f32.mrb[58].mxu0 }
 0x6cf   :  { %v1245_v48 = vpop.f32.mrb[51].mxu1  ;;  %v8868_v39 = vpop.f32.mrb[59].mxu0 }
 0x6d4   :  { %v1456_v49 = vpop.f32.mrb[60].mxu0 }
 0x6d5   :  { %v8875_v50 = vpop.f32.mrb[61].mxu0  ;;  %v1480_v52 = vadd.f32 %v1456_v49, %v1282_v56 }
 0x6d6   :  { %v1459_v53 = vpop.f32.mrb[62].mxu0 }
 0x6d7   :  { %v8876_v57 = vpop.f32.mrb[63].mxu0  ;;  %v1483_v41 = vadd.f32 %v1459_v53, %v1285_v29 }
 0x6dc   :  { %v1464_v55 = vpop.f32.mrb[64].mxu0 }
 0x6dd   :  { %v1486_v60 = vadd.f32 %v1464_v55, %v1290_v32  ;;  %v8879_v61 = vpop.f32.mrb[65].mxu0 }
 0x6de   :  { %v1467_v62 = vpop.f32.mrb[66].mxu0 }
 0x6df   :  { %v1489_v54 = vadd.f32 %v1467_v62, %v1293_v35  ;;  %v8880_v63 = vpop.f32.mrb[67].mxu0 }
 0x6e4   :  { %v1415_v24 = vpop.f32.mrb[52].mxu1  ;;  %v1472_v0 = vpop.f32.mrb[68].mxu0 }
 0x6e5   :  { %v1490_v51 = vadd.f32 %v1415_v24, %v1241_v40  ;;  %v1492_v25 = vadd.f32 %v1472_v0, %v1298_v44  ;;  %v1417_v27 = vpop.f32.mrb[53].mxu1  ;;  %v8883_v1 = vpop.f32.mrb[69].mxu0 }
 0x6e6   :  { %v1491_v5 = vadd.f32 %v1417_v27, %v1243_v45  ;;  %v1419_v23 = vpop.f32.mrb[54].mxu1  ;;  %v1475_v4 = vpop.f32.mrb[70].mxu0 }
 0x6e7   :  { %v1420_v6 = vpop.f32.mrb[55].mxu1  ;;  %v8884_v47 = vpop.f32.mrb[71].mxu0 }
 0x6ec   :  { %v1649_v58 = vpop.f32.mrb[72].mxu0 }
 0x6ed   :  { %v1673_v26 = vadd.f32 %v1649_v58, %v1480_v52  ;;  %v8891_v2 = vpop.f32.mrb[73].mxu0 }
 0x6ee   :  { %v1652_v9 = vpop.f32.mrb[74].mxu0 }
 0x6ef   :  { %v1676_v10 = vadd.f32 %v1652_v9, %v1483_v41  ;;  %v8892_v8 = vpop.f32.mrb[75].mxu0 }
 0x6f4   :  { %v1657_v12 = vpop.f32.mrb[76].mxu0 }
 0x6f5   :  { %v1679_v14 = vadd.f32 %v1657_v12, %v1486_v60  ;;  %v8895_v15 = vpop.f32.mrb[77].mxu0 }
 0x6f6   :  { %v1660_v13 = vpop.f32.mrb[78].mxu0 }
 0x6f7   :  { %v1682_v17 = vadd.f32 %v1660_v13, %v1489_v54  ;;  %v8896_v18 = vpop.f32.mrb[79].mxu0 }
 0x6fc   :  { %v1608_v19 = vpop.f32.mrb[56].mxu1  ;;  %v1665_v3 = vpop.f32.mrb[80].mxu0 }
 0x6fd   :  { %v1683_v20 = vadd.f32 %v1608_v19, %v1490_v51  ;;  %v1685_v21 = vadd.f32 %v1665_v3, %v1492_v25  ;;  %v1610_v56 = vpop.f32.mrb[57].mxu1  ;;  %v8899_v11 = vpop.f32.mrb[81].mxu0 }
 0x6fe   :  { %v1684_v28 = vadd.f32 %v1610_v56, %v1491_v5  ;;  %v1612_v29 = vpop.f32.mrb[58].mxu1  ;;  %v1668_v30 = vpop.f32.mrb[82].mxu0  ;;  %v2448_v11 = vlaneseq }
 0x6ff   :  { %v1613_v16 = vpop.f32.mrb[59].mxu1  ;;  %v8900_v31 = vpop.f32.mrb[83].mxu0 }
 0x700   :  { %v10864_v16 = vshrl.u32 %v2448_v11, 7 }
 0x704   :  { %v1836_v32 = vpop.f32.mrb[84].mxu0 }
 0x705   :  { %v1860_v33 = vadd.f32 %v1836_v32, %v1673_v26  ;;  %v8907_v34 = vpop.f32.mrb[85].mxu0 }
 0x706   :  { %v1839_v35 = vpop.f32.mrb[86].mxu0 }
 0x707   :  { %v1863_v37 = vadd.f32 %v1839_v35, %v1676_v10  ;;  %v8908_v38 = vpop.f32.mrb[87].mxu0 }
 0x708   :  { %v2450_v38 = vsub.s32 0, %v10864_v16 }
 0x70c   :  { %v1844_v40 = vpop.f32.mrb[88].mxu0 }
 0x70d   :  { %v1866_v42 = vadd.f32 %v1844_v40, %v1679_v14  ;;  %v8911_v43 = vpop.f32.mrb[89].mxu0 }
 0x70e   :  { %v1847_v44 = vpop.f32.mrb[90].mxu0 }
 0x70f   :  { %v1869_v45 = vadd.f32 %v1847_v44, %v1682_v17  ;;  %v8912_v46 = vpop.f32.mrb[91].mxu0  ;;  %v2446_v44 = vld [vmem:[%s12482_s8] sm:$0x7] }
 0x714   :  { %v1795_v36 = vpop.f32.mrb[60].mxu1  ;;  %v1852_v48 = vpop.f32.mrb[92].mxu0 }
 0x715   :  { %v1870_v39 = vadd.f32 %v1795_v36, %v1683_v20  ;;  %v1872_v49 = vadd.f32 %v1852_v48, %v1685_v21  ;;  %v1797_v50 = vpop.f32.mrb[61].mxu1  ;;  %v8915_v52 = vpop.f32.mrb[93].mxu0  ;;  %v2458_v48 = vsub.s32 2, %v10864_v16 }
 0x716   :  { %v1871_v53 = vadd.f32 %v1797_v50, %v1684_v28  ;;  %v1799_v57 = vpop.f32.mrb[62].mxu1  ;;  %v1855_v41 = vpop.f32.mrb[94].mxu0 }
 0x717   :  { %v1800_v55 = vpop.f32.mrb[63].mxu1  ;;  %v8916_v60 = vpop.f32.mrb[95].mxu0  ;;  %v10888_v50 = vrot.slane %v2446_v44, %v2458_v48 }
 0x71c   :  { %v2029_v61 = vpop.f32.mrb[96].mxu0 }
 0x71d   :  { %v2053_v62 = vadd.f32 %v2029_v61, %v1860_v33  ;;  %v8923_v54 = vpop.f32.mrb[97].mxu0 }
 0x71e   :  { %v2032_v63 = vpop.f32.mrb[98].mxu0 }
 0x71f   :  { %v2056_v24 = vadd.f32 %v2032_v63, %v1863_v37  ;;  %v8924_v0 = vpop.f32.mrb[99].mxu0 }
 0x724   :  { %v2037_v51 = vpop.f32.mrb[100].mxu0 }
 0x725   :  { %v2059_v25 = vadd.f32 %v2037_v51, %v1866_v42  ;;  %v8927_v27 = vpop.f32.mrb[101].mxu0 }
 0x726   :  { %v2040_v1 = vpop.f32.mrb[102].mxu0 }
 0x727   :  { %v2062_v5 = vadd.f32 %v2040_v1, %v1869_v45  ;;  %v8928_v23 = vpop.f32.mrb[103].mxu0  ;;  %v2454_v45 = vsub.s32 1, %v10864_v16 }
 0x72c   :  { %v1988_v4 = vpop.f32.mrb[64].mxu1  ;;  %v2045_v6 = vpop.f32.mrb[104].mxu0 }
 0x72d   :  { %v2063_v47 = vadd.f32 %v1988_v4, %v1870_v39  ;;  %v2065_v58 = vadd.f32 %v2045_v6, %v1872_v49  ;;  %v1990_v26 = vpop.f32.mrb[65].mxu1  ;;  %v8931_v2 = vpop.f32.mrb[105].mxu0  ;;  %v10880_v39 = vrot.slane %v2446_v44, %v2450_v38  ;;  %v10884_v49 = vrot.slane %v2446_v44, %v2454_v45 }
 0x72e   :  { %v2064_v9 = vadd.f32 %v1990_v26, %v1871_v53  ;;  %v1992_v10 = vpop.f32.mrb[66].mxu1  ;;  %v2048_v8 = vpop.f32.mrb[106].mxu0 }
 0x72f   :  { %v1993_v12 = vpop.f32.mrb[67].mxu1  ;;  %v8932_v14 = vpop.f32.mrb[107].mxu0 }
 0x734   :  { %v2216_v15 = vpop.f32.mrb[108].mxu0 }
 0x735   :  { %v2240_v13 = vadd.f32 %v2216_v15, %v2053_v62  ;;  %v8939_v17 = vpop.f32.mrb[109].mxu0 }
 0x736   :  { %v2219_v18 = vpop.f32.mrb[110].mxu0 }
 0x737   :  { %v2243_v19 = vadd.f32 %v2219_v18, %v2056_v24  ;;  %v8940_v3 = vpop.f32.mrb[111].mxu0 }
 0x73c   :  { %v2224_v20 = vpop.f32.mrb[112].mxu0 }
 0x73d   :  { %v10860_v21 = vadd.f32 %v2224_v20, %v2059_v25  ;;  %v8943_v56 = vpop.f32.mrb[113].mxu0 }
 0x73e   :  { %v2227_v28 = vpop.f32.mrb[114].mxu0 }
 0x73f   :  { %v10862_v29 = vadd.f32 %v2227_v28, %v2062_v5  ;;  %v8944_v30 = vpop.f32.mrb[115].mxu0  ;;  %v10163_v5 = vmov 65535  }
 0x740   :  { %v10904_v23 = vsel %vm1313_vm10, 4294967295, %v10163_v5 }
 0x744   :  { %v2175_v31 = vpop.f32.mrb[68].mxu1  ;;  %v2232_v32 = vpop.f32.mrb[116].mxu0 }
 0x745   :  { %v10866_v33 = vadd.f32 %v2175_v31, %v2063_v47  ;;  %v10868_v34 = vadd.f32 %v2232_v32, %v2065_v58  ;;  %v2177_v35 = vpop.f32.mrb[69].mxu1  ;;  %v8947_v37 = vpop.f32.mrb[117].mxu0 }
 0x746   :  { %v10871_v40 = vadd.f32 %v2177_v35, %v2064_v9  ;;  %v2179_v42 = vpop.f32.mrb[70].mxu1  ;;  %v2235_v43 = vpop.f32.mrb[118].mxu0 }
 0x747   :  { %v2180_v46 = vpop.f32.mrb[71].mxu1  ;;  %v8948_v36 = vpop.f32.mrb[119].mxu0 }
 0x74c   :  { %v2348_v52 = vpop.f32.mrb[36].mxu1  ;;  %v2409_v53 = vpop.f32.mrb[120].mxu0 }
 0x74d   :  { %v2463_v57 = vadd.f32 %v10880_v39, %v2348_v52  ;;  %v2433_v41 = vadd.f32 %v2409_v53, %v2240_v13  ;;  %v2350_v55 = vpop.f32.mrb[37].mxu1  ;;  %v8955_v60 = vpop.f32.mrb[121].mxu0 }
 0x74e   :  { %v10892_v61 = vadd.f32 %v10884_v49, %v2350_v55  ;;  %v2352_v62 = vpop.f32.mrb[38].mxu1  ;;  %v2412_v54 = vpop.f32.mrb[122].mxu0 }
 0x74f   :  { %v10895_v63 = vadd.f32 %v10888_v50, %v2433_v41  ;;  %v10898_v24 = vadd.f32 %v10880_v39, %v2352_v62  ;;  %v2354_v0 = vpop.f32.mrb[39].mxu1  ;;  %v8956_v51 = vpop.f32.mrb[123].mxu0  ;;  %v2491_v25 = vrot.slane %v2463_v57, 1  ;;  %v2436_v27 = vadd.f32 %v2412_v54, %v2243_v19 }
 0x750   :  { %v10901_v1 = vadd.f32 %v10884_v49, %v2354_v0  ;;  %v2540_v4 = vrot.slane %v2463_v57, 2  ;;  %v2494_v6 = vrot.slane %v10892_v61, 1  ;;  %v2543_v26 = vrot.slane %v10892_v61, 2 }
 0x751   :  { %v2492_v47 = vrot.slane %v10898_v24, 1  ;;  %v2541_v58 = vrot.slane %v10898_v24, 2  ;;  %v10911_v2 = vadd.f32 %v10888_v50, %v2436_v27  ;;  %v2497_v8 = vrot.slane %v10895_v63, 1 }
 0x752   :  { %v2495_v9 = vrot.slane %v10901_v1, 1  ;;  %v2544_v10 = vrot.slane %v10901_v1, 2  ;;  %v2546_v12 = vrot.slane %v10895_v63, 2 }
 0x753   :  { %v2493_v14 = vsel %vm1313_vm10, %v2491_v25, %v2492_v47  ;;  %v2542_v15 = vsel %vm1693_vm11, %v2540_v4, %v2541_v58  ;;  %v2498_v17 = vrot.slane %v10911_v2, 1  ;;  %v2547_v18 = vrot.slane %v10911_v2, 2 }
 0x754   :  { %v2524_v13 = vmax.f32 %v2463_v57, %v2493_v14  ;;  %v2358_v19 = vpop.f32.mrb[40].mxu1  ;;  %v2417_v3 = vpop.f32.mrb[124].mxu0  ;;  %v10922_v20 = vsel %vm1313_vm10, %v2494_v6, %v2495_v9  ;;  %v2545_v32 = vsel %vm1693_vm11, %v2543_v26, %v2544_v10 }
 0x755   :  { %v2469_v56 = vadd.f32 %v10880_v39, %v2358_v19  ;;  %v2439_v11 = vadd.f32 %v2417_v3, %v10860_v21  ;;  %v2360_v28 = vpop.f32.mrb[41].mxu1  ;;  %v8959_v30 = vpop.f32.mrb[125].mxu0  ;;  %v2525_v31 = vmax.f32 %v10892_v61, %v10922_v20  ;;  %v10932_v35 = vsel %vm1313_vm10, %v2497_v8, %v2498_v17 }
 0x756   :  { %v10935_v37 = vadd.f32 %v10884_v49, %v2360_v28  ;;  %v2362_v42 = vpop.f32.mrb[42].mxu1  ;;  %v2420_v43 = vpop.f32.mrb[126].mxu0  ;;  %v10937_v44 = vmax.f32 %v2524_v13, %v2542_v15  ;;  %v10942_v21 = vsel %vm1693_vm11, %v2546_v12, %v2547_v18 }
 0x757   :  { %v2500_v46 = vrot.slane %v2469_v56, 1  ;;  %v2549_v36 = vrot.slane %v2469_v56, 2  ;;  %v10945_v52 = vadd.f32 %v10888_v50, %v2439_v11  ;;  %v2472_v53 = vadd.f32 %v10880_v39, %v2362_v42  ;;  %v2364_v57 = vpop.f32.mrb[43].mxu1  ;;  %v8960_v41 = vpop.f32.mrb[127].mxu0 }
 0x758   :  { %v2502_v55 = vrot.slane %v10935_v37, 1  ;;  %v2551_v60 = vrot.slane %v10935_v37, 2  ;;  %v2442_v61 = vadd.f32 %v2420_v43, %v10862_v29  ;;  %v2473_v62 = vadd.f32 %v10884_v49, %v2364_v57 }
 0x759   :  { %v2501_v54 = vsel %vm1313_vm10, %v2492_v47, %v2500_v46  ;;  %v2550_v0 = vsel %vm1693_vm11, %v2541_v58, %v2549_v36  ;;  %v2504_v51 = vrot.slane %v10945_v52, 1  ;;  %v2553_v25 = vrot.slane %v10945_v52, 2 }
 0x75a   :  { %v2527_v27 = vmax.f32 %v10898_v24, %v2501_v54  ;;  %v2506_v5 = vrot.slane %v2472_v53, 1  ;;  %v2555_v4 = vrot.slane %v2472_v53, 2  ;;  %v2474_v6 = vadd.f32 %v10888_v50, %v2442_v61 }
 0x75b   :  { %v2505_v26 = vsel %vm1313_vm10, %v2498_v17, %v2504_v51  ;;  %v2508_v8 = vrot.slane %v2473_v62, 1  ;;  %v2557_v29 = vrot.slane %v2473_v62, 2  ;;  %v2503_v12 = vsel %vm1313_vm10, %v2495_v9, %v2502_v55 }
 0x75c   :  { %v2507_v47 = vsel %vm1313_vm10, %v2500_v46, %v2506_v5  ;;  %v2533_v14 = vmax.f32 %v2472_v53, %v2506_v5  ;;  %v2556_v58 = vsel %vm1693_vm11, %v2549_v36, %v2555_v4  ;;  %v2510_v15 = vrot.slane %v2474_v6, 1  ;;  %v2368_v13 = vpop.f32.mrb[72].mxu1  ;;  %v2425_v19 = vpop.f32.mrb[128].mxu0 }
 0x75d   :  { %v2530_v24 = vmax.f32 %v2469_v56, %v2507_v47  ;;  %v2559_v3 = vrot.slane %v2474_v6, 2  ;;  %v2509_v20 = vsel %vm1313_vm10, %v2502_v55, %v2508_v8  ;;  %v2534_v11 = vmax.f32 %v2473_v62, %v2508_v8  ;;  %v2370_v28 = vpop.f32.mrb[73].mxu1  ;;  %v8963_v17 = vpop.f32.mrb[129].mxu0 }
 0x75e   :  { %v2511_v30 = vsel %vm1313_vm10, %v2504_v51, %v2510_v15  ;;  %v2535_v42 = vmax.f32 %v2474_v6, %v2510_v15  ;;  %v2443_v9 = vadd.f32 %v2368_v13, %v10866_v33  ;;  %v2445_v43 = vadd.f32 %v2425_v19, %v10868_v34  ;;  %v2372_v46 = vpop.f32.mrb[74].mxu1  ;;  %v2428_v36 = vpop.f32.mrb[130].mxu0 }
 0x75f   :  { %v2585_v53 = vmax.f32 %v2530_v24, %v2556_v58  ;;  %v2532_v57 = vmax.f32 %v10945_v52, %v2511_v30  ;;  %v2560_v56 = vsel %vm1693_vm11, %v2553_v25, %v2559_v3  ;;  %v2444_v41 = vadd.f32 %v2370_v28, %v10871_v40  ;;  %v2373_v55 = vpop.f32.mrb[75].mxu1  ;;  %v8964_v61 = vpop.f32.mrb[131].mxu0  ;;  %v11029_v30 = vld [vmem:[%s12483_s7] sm:$0xff]   ;;  %v9781_v46 = vld [vmem:[%s12483_s7 + $0x18] ss:$0 sps:$4 sm:$0x11]  }
 0x760   :  { %v2475_v62 = vadd.f32 %v10880_v39, %v2443_v9  ;;  %v2477_v54 = vadd.f32 %v10888_v50, %v2445_v43  ;;  %v2528_v51 = vmax.f32 %v10901_v1, %v2503_v12  ;;  %v2552_v33 = vsel %vm1693_vm11, %v2544_v10, %v2551_v60  ;;  %v11041_v9 = vld [vmem:[%s12483_s7 + $0x1c] sm:$0xff]   ;;  %v11047_v43 = vld [vmem:[%s12483_s7 + $0x10] sm:$0xff]   ;;  %v11057_v36 = vld [vmem:[%s12483_s7 + $0x24] sm:$0xff]  }
 0x761   :  { %v2476_v34 = vadd.f32 %v10884_v49, %v2444_v41  ;;  %v2580_v5 = vmax.f32 %v2525_v31, %v2545_v32  ;;  %v2582_v52 = vmax.f32 %v2527_v27, %v2550_v0  ;;  %v2531_v6 = vmax.f32 %v10935_v37, %v2509_v20  ;;  %8974 = vmatpush3.bf16.msra.mxu0 %v11041_v9 }
 0x762   :  { %v2561_v8 = vrot.slane %v2475_v62, 2  ;;  %v2565_v40 = vrot.slane %v2477_v54, 2  ;;  %v2583_v47 = vmax.f32 %v2528_v51, %v2552_v33  ;;  %v2558_v58 = vsel %vm1693_vm11, %v2551_v60, %v2557_v29  ;;  %8975 = vmatprep.subr.bf16.mxu0 %v10155_v7 }
 0x763   :  { %v2563_v39 = vrot.slane %v2476_v34, 2  ;;  %v2593_v50 = vpack.c.bf16 %v2582_v52, %v10937_v44  ;;  %v2586_v15 = vmax.f32 %v2531_v6, %v2558_v58  ;;  %v2526_v1 = vmax.f32 %v10895_v63, %v10932_v35 }
 0x764   :  { %v2562_v10 = vsel %vm1693_vm11, %v2555_v4, %v2561_v8  ;;  %v2566_v49 = vsel %vm1693_vm11, %v2559_v3, %v2565_v40  ;;  %v2594_v31 = vpack.c.bf16 %v2583_v47, %v2580_v5  ;;  %v2529_v32 = vmax.f32 %v10911_v2, %v2505_v26 }
 0x765   :  { %v2588_v37 = vmax.f32 %v2533_v14, %v2562_v10  ;;  %v2590_v0 = vmax.f32 %v2535_v42, %v2566_v49  ;;  %v2564_v27 = vsel %vm1693_vm11, %v2557_v29, %v2563_v39  ;;  %v2554_v60 = vsel %vm1693_vm11, %v2547_v18, %v2553_v25  ;;  %v9775_v18 = vld [vmem:[%s12481_s6] sm:$0x3f]   ;;  %v11036_v42 = vld [vmem:[%s12483_s7 + $0x8] sm:$0xff]   ;;  %8976 = vmatpush3.bf16.msra.mxu0 %v11057_v36 }
 0x766   :  { %2620 = vmatprep.subr.bf16.mxu1 %v2594_v31  ;;  %v2589_v44 = vmax.f32 %v2534_v11, %v2564_v27  ;;  %v2581_v12 = vmax.f32 %v2526_v1, %v10942_v21  ;;  %v2584_v63 = vmax.f32 %v2529_v32, %v2554_v60  ;;  %v2587_v35 = vmax.f32 %v2532_v57, %v2560_v56  ;;  %v11067_v57 = vld [vmem:[%s12483_s7 + $0x2c] sm:$0xff]   ;;  %v9783_v56 = vld [vmem:[%s12483_s7 + $0x34] ss:$0 sps:$4 sm:$0x11]  }
 0x767   :  { %2621 = vmatpush1.bf16.msra.mxu1 %v2593_v50  ;;  %v10991_v4 = vsel %vm2608_vm2, %v10904_v23, 0  ;;  %v2596_v26 = vpack.c.bf16 %v2588_v37, %v2585_v53  ;;  %v11062_v53 = vsel %vm1020_vm9, %v9781_v46, 0  ;;  %8977 = vmatprep.subr.bf16.mxu0 %v10155_v7  ;;  %v11080_v41 = vsel %vm1020_vm9, %v9783_v56, 0 }
 0x768   :  { %v2597_v14 = vpack.c.bf16 %v2589_v44, %v2586_v15  ;;  %v2595_v13 = vpack.c.bf16 %v2584_v63, %v2581_v12  ;;  %v2598_v19 = vpack.c.bf16 %v2590_v0, %v2587_v35  ;;  %vm12489_vm2 = vcmask 228352  }
 0x769   :  { %v2612_v2 = vand.u32 %v10991_v4, %v2596_v26  ;;  %8978 = vmatpush3.bf16.msra.mxu0 %v11067_v57 }
 0x76a   :  { %v2615_v29 = vand.u32 %v10991_v4, %v2597_v14  ;;  %v2618_v23 = vand.u32 %v10991_v4, %v2598_v19  ;;  %8979 = vmatprep.subr.bf16.mxu0 %v10155_v7 }
 0x76c   :  { %2622 = vmatprep.subr.bf16.mxu1 %v2615_v29 }
 0x76d   :  { %2623 = vmatpush1.bf16.msra.mxu1 %v2612_v2  ;;  %8980 = vmatpush3.bf16.msra.mxu0 %v11080_v41 }
 0x76e   :  { %8965 = vmatprep.subr.bf16.mxu1 %v10155_v7  ;;  %8997 = vmatprep.subr.bf16.mxu0 %v10155_v7 }
 0x770   :  { %8106 = vmatmul.mubr.msk.bf16.vlgmr.msra.gmra.mrb[76].mxu1 %vm12490_vm1, %v9775_v18 }
 0x771   :  { %8966 = vmatpush3.bf16.msra.mxu1 %v2595_v13  ;;  %8969 = vmatprep.mubr.msk.bf16.mxu1 %vm10156_vm3, %v10155_v7 }
 0x772   :  { %8967 = vmatprep.subr.bf16.mxu1 %v10155_v7 }
 0x775   :  { %8968 = vmatpush3.bf16.msra.mxu1 %v2618_v23 }
 0x776   :  { %8985 = vmatprep.subr.bf16.mxu1 %v10155_v7 }
 0x778   :  { %8970 = vmatmul.mubr.msk.bf16.vlgmr.msra.gmra.mrb[80].mxu1 %vm12490_vm1, %v9775_v18 }
 0x779   :  { %8993 = vmatprep.mubr.msk.bf16.mxu1 %vm10156_vm3, %v10155_v7  ;;  %8986 = vmatpush3.bf16.msra.mxu1 %v11029_v30 }
 0x77a   :  { %8987 = vmatprep.subr.bf16.mxu1 %v10155_v7 }
 0x77d   :  { %8988 = vmatpush3.bf16.msra.mxu1 %v11036_v42 }
 0x77e   :  { %8989 = vmatprep.subr.bf16.mxu1 %v10155_v7 }
 0x781   :  { %8990 = vmatpush3.bf16.msra.mxu1 %v11047_v43 }
 0x782   :  { %8991 = vmatprep.subr.bf16.mxu1 %v10155_v7 }
 0x785   :  { %8992 = vmatpush3.bf16.msra.mxu1 %v11062_v53 }
 0x786   :  { %9009 = vmatprep.subr.bf16.mxu1 %v10155_v7 }
 0x843   :  { %v11008_v21 = vpop.f32.mrb[76].mxu1 }
 0x844   :  { %v2656_v25 = vpop.f32.mrb[77].mxu1 }
 0x845   :  { %2751 = vrot.lane.b32.xlu0 %v2656_v25, %s10164_s20  ;;  %v11011_v24 = vpop.f32.mrb[78].mxu1 }
 0x846   :  { %v2660_v3 = vpop.f32.mrb[79].mxu1 }
 0x847   :  { %2753 = vrot.lane.b32.xlu1 %v2660_v3, %s10164_s20 }
 0x849   :  { %2718 = vrot.lane.b32.xlu0 %v2656_v25, %s10165_s21 }
 0x84b   :  { %2722 = vrot.lane.b32.xlu1 %v2660_v3, %s10165_s21  ;;  %v2697_v20 = vpop.f32.mrb[80].mxu1 }
 0x84c   :  { %v8971_v11 = vpop.f32.mrb[81].mxu1 }
 0x84d   :  { %2761 = vrot.lane.b32.xlu0 %v2697_v20, %s10165_s21  ;;  %v2700_v28 = vpop.f32.mrb[82].mxu1 }
 0x84e   :  { %v8972_v17 = vpop.f32.mrb[83].mxu1 }
 0x84f   :  { %2763 = vrot.lane.b32.xlu1 %v2700_v28, %s10165_s21 }
 0x851   :  { %2706 = vrot.lane.b32.xlu0 %v11008_v21, %s10164_s20 }
 0x853   :  { %2708 = vrot.lane.b32.xlu1 %v11011_v24, %s10164_s20 }
 0x855   :  { %2716 = vrot.lane.b32.xlu0 %v11008_v21, %s10165_s21 }
 0x857   :  { %2720 = vrot.lane.b32.xlu1 %v11011_v24, %s10165_s21 }
 0x8b7   :  { %v2752_v55 = vpop.permute.xlu0 %2751 }
 0x8b8   :  { %v2757_v51 = vmax.f32 %v2656_v25, %v2752_v55 }
 0x8b9   :  { %v2754_v61 = vpop.permute.xlu1 %2753 }
 0x8ba   :  { %v2758_v5 = vmax.f32 %v2660_v3, %v2754_v61 }
 0x8bb   :  { %v2719_v62 = vpop.permute.xlu0 %2718 }
 0x8bd   :  { %v2723_v54 = vpop.permute.xlu1 %2722 }
 0x8bf   :  { %v2762_v33 = vpop.permute.xlu0 %2761 }
 0x8c0   :  { %v2765_v34 = vsel %vm12489_vm2, %v2719_v62, %v2762_v33 }
 0x8c1   :  { %v2769_v52 = vmax.f32 %v2757_v51, %v2765_v34  ;;  %v2764_v6 = vpop.permute.xlu1 %2763 }
 0x8c2   :  { %v2766_v8 = vsel %vm12489_vm2, %v2723_v54, %v2764_v6 }
 0x8c3   :  { %v2771_v40 = vmin.f32 %v2769_v52, 20.0  ;;  %v2770_v47 = vmax.f32 %v2758_v5, %v2766_v8  ;;  %v2707_v58 = vpop.permute.xlu0 %2706 }
 0x8c4   :  { %v2712_v10 = vmax.f32 %v11008_v21, %v2707_v58 }
 0x8c5   :  { %v2773_v39 = vmul.f32 1.442695, %v2771_v40  ;;  %v2772_v50 = vmin.f32 %v2770_v47, 20.0  ;;  %v2709_v15 = vpop.permute.xlu1 %2708 }
 0x8c6   :  { %v2713_v32 = vmax.f32 %v11011_v24, %v2709_v15 }
 0x8c7   :  { %10047 = vpow2.f32 %v2773_v39  ;;  %v2775_v1 = vmul.f32 1.442695, %v2772_v50  ;;  %v2717_v49 = vpop.permute.xlu0 %2716 }
 0x8c8   :  { %v2725_v31 = vsel %vm12489_vm2, %v2717_v49, %v2719_v62 }
 0x8c9   :  { %10049 = vpow2.f32 %v2775_v1  ;;  %v2729_v37 = vmax.f32 %v2712_v10, %v2725_v31  ;;  %v2721_v0 = vpop.permute.xlu1 %2720 }
 0x8ca   :  { %v2726_v27 = vsel %vm12489_vm2, %v2721_v0, %v2723_v54  ;;  %vm2835_vm2 = vcmask 408576  }
 0x8cb   :  { %v2731_v60 = vmin.f32 %v2729_v37, 20.0  ;;  %v2730_v44 = vmax.f32 %v2713_v32, %v2726_v27  ;;  %v9784_v27 = vld [vmem:[%s12483_s7 + $0x38] sm:$0xff]  }
 0x8cd   :  { %v2733_v12 = vmul.f32 1.442695, %v2731_v60  ;;  %v2732_v63 = vmin.f32 %v2730_v44, 20.0 }
 0x8cf   :  { %10051 = vpow2.f32 %v2733_v12  ;;  %v2735_v35 = vmul.f32 1.442695, %v2732_v63 }
 0x8d1   :  { %v10048_v26 = vpop.eup %10047  ;;  %10053 = vpow2.f32 %v2735_v35 }
 0x8d2   :  { %v2777_v14 = vadd.f32 1.0, %v10048_v26 }
 0x8d3   :  { %v10050_v13 = vpop.eup %10049 }
 0x8d4   :  { %v2779_v19 = vmul.f32 %v2777_v14, %v2777_v14  ;;  %v2778_v29 = vadd.f32 1.0, %v10050_v13 }
 0x8d6   :  { %v2785_v2 = vadd.f32 1.0, %v2779_v19  ;;  %v2780_v18 = vmul.f32 %v2778_v29, %v2778_v29  ;;  %v8110_v17 = vadd.f32 -1.0, %v2779_v19 }
 0x8d8   :  { %10055 = vrcp.f32 %v2785_v2  ;;  %v2786_v23 = vadd.f32 1.0, %v2780_v18  ;;  %v8111_v46 = vadd.f32 -1.0, %v2780_v18  ;;  %v2783_v61 = vmul.f32 %v8110_v17, %v2769_v52  ;;  %v9788_v17 = vld [vmem:[%s12484_s9] ss:$36 sps:$4 sm:$0xff]  }
 0x8d9   :  { %v10052_v21 = vpop.eup %10051 }
 0x8da   :  { %10057 = vrcp.f32 %v2786_v23  ;;  %v2737_v25 = vadd.f32 1.0, %v10052_v21  ;;  %v2784_v62 = vmul.f32 %v8111_v46, %v2770_v47  ;;  %v9791_v46 = vld [vmem:[%s12484_s9 + $0x8] ss:$36 sps:$4 sm:$0xff]  }
 0x8db   :  { %v10054_v24 = vpop.eup %10053 }
 0x8dc   :  { %v2739_v3 = vmul.f32 %v2737_v25, %v2737_v25  ;;  %v2738_v20 = vadd.f32 1.0, %v10054_v24 }
 0x8de   :  { %v2745_v11 = vadd.f32 1.0, %v2739_v3  ;;  %v2740_v28 = vmul.f32 %v2738_v20, %v2738_v20  ;;  %v8108_v34 = vadd.f32 -1.0, %v2739_v3 }
 0x8e0   :  { %10059 = vrcp.f32 %v2745_v11  ;;  %v2746_v56 = vadd.f32 1.0, %v2740_v28  ;;  %v8109_v5 = vadd.f32 -1.0, %v2740_v28  ;;  %v2743_v58 = vmul.f32 %v8108_v34, %v2729_v37  ;;  %v9790_v28 = vld [vmem:[%s12484_s9 + $0x4] ss:$36 sps:$4 sm:$0xff]   ;;  %v9805_v34 = vld [vmem:[%s12484_s9 + $0x9c] ss:$36 sps:$4 sm:$0xff]  }
 0x8e2   :  { %v10056_v55 = vpop.eup %10055  ;;  %10061 = vrcp.f32 %v2746_v56  ;;  %v2744_v39 = vmul.f32 %v8109_v5, %v2730_v44  ;;  %v9787_v44 = vld [vmem:[%s12483_s7 + $0x50] ss:$0 sps:$4 sm:$0x11]   ;;  %v3244_v5 = vld [vmem:[%s12484_s9 + $0xd8] sm:$0x11] }
 0x8e3   :  { %v2789_v51 = vmul.f32 %v10056_v55, %v2783_v61  ;;  %v9793_v56 = vld [vmem:[%s12484_s9 + $0xc] ss:$36 sps:$4 sm:$0xff]   ;;  %v9799_v61 = vld [vmem:[%s12484_s9 + $0x54] ss:$36 sps:$4 sm:$0xff]  }
 0x8e4   :  { %v10058_v54 = vpop.eup %10057  ;;  %v9796_v55 = vld [vmem:[%s12484_s9 + $0x4c] ss:$36 sps:$4 sm:$0xff]  }
 0x8e5   :  { %v2790_v33 = vmul.f32 %v10058_v54, %v2784_v62  ;;  %v9794_v62 = vld [vmem:[%s12484_s9 + $0x48] ss:$36 sps:$4 sm:$0xff]   ;;  %v9797_v54 = vld [vmem:[%s12484_s9 + $0x50] ss:$36 sps:$4 sm:$0xff]  }
 0x8e7   :  { %v3039_v6 = vpack.c.bf16 %v2790_v33, %v2789_v51  ;;  %v9802_v51 = vld [vmem:[%s12484_s9 + $0x94] ss:$36 sps:$4 sm:$0xff]  }
 0x8e8   :  { %v9800_v33 = vld [vmem:[%s12484_s9 + $0x90] ss:$36 sps:$4 sm:$0xff]  }
 0x8e9   :  { %3094 = vrot.lane.b32.xlu1 %v3039_v6, %s10166_s29  ;;  %v3043_v8 = vshll.u32 %v3039_v6, 16  ;;  %v3041_v50 = vshrl.u32 %v3039_v6, 16  ;;  %v3140_v32 = vrot.slane %v3039_v6, 1  ;;  %v3245_v6 = vld [vmem:[%s12484_s9 + $0xe0] sm:$0x11] }
 0x8ea   :  { %v10060_v40 = vpop.eup %10059 }
 0x8eb   :  { %v3045_v15 = vrot.slane %v3043_v8, 1  ;;  %v2749_v10 = vmul.f32 %v10060_v40, %v2743_v58  ;;  %v9803_v8 = vld [vmem:[%s12484_s9 + $0x98] ss:$36 sps:$4 sm:$0xff]   ;;  %v8175_v40 = vcombine.high %v3244_v5, %v3244_v5  ;;  %v8174_v58 = vcombine.low %v3244_v5, %v3244_v5 }
 0x8ec   :  { %v10062_v1 = vpop.eup %10061 }
 0x8ed   :  { %v2750_v49 = vmul.f32 %v10062_v1, %v2744_v39  ;;  %v3046_v52 = vor.u32 %v3045_v15, %v3041_v50  ;;  %v8177_v39 = vcombine.high %v3245_v6, %v3245_v6  ;;  %v8176_v50 = vcombine.low %v3245_v6, %v3245_v6  ;;  %v9812_v1 = vld [vmem:[%s12484_s9 + $0x14] ss:$36 sps:$4 sm:$0xff]  }
 0x8ee   :  { %v3414_v15 = vsel %vm1020_vm9, %v8174_v58, 0  ;;  %v9813_v58 = vld [vmem:[%s12484_s9 + $0x18] ss:$36 sps:$4 sm:$0xff]  }
 0x8ef   :  { %v2791_v47 = vpack.c.bf16 %v2750_v49, %v2749_v10  ;;  %3047 = vrot.lane.b32.xlu0 %v3046_v52, %s10166_s29  ;;  %v3420_v10 = vsel %vm1020_vm9, %v8176_v50, 0  ;;  %v9815_v49 = vld [vmem:[%s12484_s9 + $0x1c] ss:$36 sps:$4 sm:$0xff]  }
 0x8f0   :  { %v9818_v50 = vld [vmem:[%s12484_s9 + $0x5c] ss:$36 sps:$4 sm:$0xff]  }
 0x8f1   :  { %v2810_v31 = vshll.u32 %v2791_v47, 16  ;;  %8994 = vmatmul.mubr.msk.bf16.vlgmr.msra.gmra.mrb[84].mxu1 %vm2835_vm2, %v2791_v47  ;;  %v2808_v37 = vshrl.u32 %v2791_v47, 16  ;;  %v2959_v12 = vrot.slane %v2791_v47, 1 }
 0x8f2   :  { %9010 = vmatpush3.bf16.msra.mxu1 %v11041_v9  ;;  %9017 = vmatprep.mubr.msk.bf16.mxu1 %vm10156_vm3, %v10155_v7  ;;  %v9785_v9 = vld [vmem:[%s12483_s7 + $0x40] sm:$0xff]  }
 0x8f3   :  { %v2812_v0 = vrot.slane %v2810_v31, 1  ;;  %3141 = vrot.lane.b32.xlu0 %v3140_v32, %s10166_s29  ;;  %9011 = vmatprep.subr.bf16.mxu1 %v10155_v7 }
 0x8f5   :  { %v2813_v60 = vor.u32 %v2812_v0, %v2808_v37 }
 0x8f6   :  { %9012 = vmatpush3.bf16.msra.mxu1 %v11057_v36  ;;  %v9786_v36 = vld [vmem:[%s12483_s7 + $0x48] sm:$0xff]  }
 0x8f7   :  { %8982 = vmatmul.mubr.msk.bf16.vlgmr.msra.gmra.mrb[132].mxu0 %vm2835_vm2, %v2813_v60  ;;  %9013 = vmatprep.subr.bf16.mxu1 %v10155_v7 }
 0x8f8   :  { %8998 = vmatpush3.bf16.msra.mxu0 %v9784_v27  ;;  %9005 = vmatprep.mubr.msk.bf16.mxu0 %vm10156_vm3, %v10155_v7 }
 0x8f9   :  { %8999 = vmatprep.subr.bf16.mxu0 %v10155_v7 }
 0x8fa   :  { %9014 = vmatpush3.bf16.msra.mxu1 %v11067_v57  ;;  %v2985_v57 = vsel %vm1020_vm9, %v9787_v44, 0 }
 0x8fb   :  { %9015 = vmatprep.subr.bf16.mxu1 %v10155_v7 }
 0x8fc   :  { %9000 = vmatpush3.bf16.msra.mxu0 %v9785_v9 }
 0x8fd   :  { %9001 = vmatprep.subr.bf16.mxu0 %v10155_v7 }
 0x8fe   :  { %9016 = vmatpush3.bf16.msra.mxu1 %v11080_v41 }
 0x8ff   :  { %9033 = vmatprep.subr.bf16.mxu1 %v10155_v7 }
 0x900   :  { %9002 = vmatpush3.bf16.msra.mxu0 %v9786_v36 }
 0x901   :  { %9003 = vmatprep.subr.bf16.mxu0 %v10155_v7 }
 0x904   :  { %9004 = vmatpush3.bf16.msra.mxu0 %v2985_v57 }
 0x905   :  { %9021 = vmatprep.subr.bf16.mxu0 %v10155_v7 }
 0x907   :  { %9006 = vmatmul.mubr.msk.bf16.vlgmr.msra.gmra.mrb[136].mxu0 %vm2835_vm2, %v2959_v12 }
 0x908   :  { %9022 = vmatpush3.bf16.msra.mxu0 %v11029_v30  ;;  %9029 = vmatprep.mubr.msk.bf16.mxu0 %vm10156_vm3, %v10155_v7  ;;  %v11139_v30 = vld [vmem:[%s12475_s0 + $0x8] sm:$0x3f] }
 0x909   :  { %9023 = vmatprep.subr.bf16.mxu0 %v10155_v7 }
 0x90c   :  { %9024 = vmatpush3.bf16.msra.mxu0 %v11036_v42  ;;  %v3986_v42 = vsel %vm43_vm0, %v11139_v30, 0.0 }
 0x90d   :  { %9025 = vmatprep.subr.bf16.mxu0 %v10155_v7  ;;  %3987 = vadd.xlane.f32.xlu1 %v3986_v42 }
 0x910   :  { %9026 = vmatpush3.bf16.msra.mxu0 %v11047_v43 }
 0x911   :  { %9027 = vmatprep.subr.bf16.mxu0 %v10155_v7 }
 0x914   :  { %9028 = vmatpush3.bf16.msra.mxu0 %v11062_v53 }
 0x915   :  { %3440 = vmatprep.subr.bf16.mxu0 %v9790_v28 }
 0x95b   :  { %v3095_v41 = vpop.permute.xlu1 %3094 }
 0x95c   :  { %9030 = vmatmul.mubr.msk.bf16.vlgmr.msra.gmra.mrb[140].mxu0 %vm2835_vm2, %v3095_v41 }
 0x95d   :  { %3472 = vmatprep.mubr.bf16.mxu0 %v10160_v22  ;;  %3441 = vmatpush1.bf16.msra.mxu0 %v9788_v17 }
 0x95e   :  { %3442 = vmatprep.subr.bf16.mxu0 %v9796_v55 }
 0x961   :  { %v3048_v63 = vpop.permute.xlu0 %3047  ;;  %3443 = vmatpush1.bf16.msra.mxu0 %v9794_v62 }
 0x962   :  { %9018 = vmatmul.mubr.msk.bf16.vlgmr.msra.gmra.mrb[88].mxu1 %vm2835_vm2, %v3048_v63  ;;  %3444 = vmatprep.subr.bf16.mxu0 %v9802_v51 }
 0x963   :  { %9034 = vmatpush3.bf16.msra.mxu1 %v9784_v27  ;;  %9041 = vmatprep.mubr.msk.bf16.mxu1 %vm10156_vm3, %v10155_v7 }
 0x964   :  { %9035 = vmatprep.subr.bf16.mxu1 %v10155_v7 }
 0x965   :  { %v3142_v43 = vpop.permute.xlu0 %3141  ;;  %3445 = vmatpush1.bf16.msra.mxu0 %v9800_v33 }
 0x966   :  { %8183 = vmatprep.subr.msk.bf16.mxu0 %vm1020_vm9, %v8175_v40  ;;  %v9810_v40 = vld [vmem:[%s12484_s9 + $0x10] ss:$36 sps:$4 sm:$0xff]  }
 0x967   :  { %9036 = vmatpush3.bf16.msra.mxu1 %v9785_v9 }
 0x968   :  { %9037 = vmatprep.subr.bf16.mxu1 %v10155_v7 }
 0x969   :  { %3447 = vmatpush1.bf16.msra.mxu0 %v3414_v15  ;;  %v9821_v15 = vld [vmem:[%s12484_s9 + $0x64] ss:$36 sps:$4 sm:$0xff]  }
 0x96a   :  { %3522 = vmatprep.subr.bf16.mxu0 %v9812_v1  ;;  %v9816_v1 = vld [vmem:[%s12484_s9 + $0x58] ss:$36 sps:$4 sm:$0xff]  }
 0x96b   :  { %9038 = vmatpush3.bf16.msra.mxu1 %v9786_v36 }
 0x96c   :  { %9039 = vmatprep.subr.bf16.mxu1 %v10155_v7 }
 0x96f   :  { %9040 = vmatpush3.bf16.msra.mxu1 %v2985_v57 }
 0x970   :  { %3481 = vmatprep.subr.bf16.mxu1 %v9793_v56 }
 0x972   :  { %9042 = vmatmul.mubr.msk.bf16.vlgmr.msra.gmra.mrb[92].mxu1 %vm2835_vm2, %v3142_v43 }
 0x973   :  { %3513 = vmatprep.mubr.bf16.mxu1 %v10160_v22  ;;  %3482 = vmatpush1.bf16.msra.mxu1 %v9791_v46 }
 0x974   :  { %3483 = vmatprep.subr.bf16.mxu1 %v9799_v61 }
 0x977   :  { %3484 = vmatpush1.bf16.msra.mxu1 %v9797_v54 }
 0x978   :  { %3485 = vmatprep.subr.bf16.mxu1 %v9805_v34 }
 0x97b   :  { %3486 = vmatpush1.bf16.msra.mxu1 %v9803_v8 }
 0x97c   :  { %8185 = vmatprep.subr.msk.bf16.mxu1 %vm1020_vm9, %v8177_v39 }
 0x97f   :  { %3488 = vmatpush1.bf16.msra.mxu1 %v3420_v10  ;;  %v9819_v10 = vld [vmem:[%s12484_s9 + $0x60] ss:$36 sps:$4 sm:$0xff]  }
 0x980   :  { %3563 = vmatprep.subr.bf16.mxu1 %v9815_v49  ;;  %v9824_v49 = vld [vmem:[%s12484_s9 + $0xa4] ss:$36 sps:$4 sm:$0xff]  }
 0x99a   :  { %v3988_v52 = vpop.xlane.xlu1 %3987 }
 0x99b   :  { %v3989_v47 = vmul.f32 0.01, %v3988_v52  ;;  %v9827_v52 = vld [vmem:[%s12484_s9 + $0xac] ss:$36 sps:$4 sm:$0xff]  }
 0x99d   :  { %v11208_v31 = vsub.f32 %v11139_v30, %v3989_v47  ;;  %v8141_v30 = vld [vmem:[%s12482_s8 + $0x3] ss:$0 sm:$0xff]  ;;  %v3246_v47 = vld [vmem:[%s12484_s9 + $0xe8] sm:$0x11] }
 0x99f   :  { %v3991_v32 = vmul.f32 %v11208_v31, %v11208_v31 }
 0x9a1   :  { %v3992_v37 = vsel %vm43_vm0, %v3991_v32, 0.0  ;;  %v3247_v32 = vld [vmem:[%s12484_s9 + $0xf0] sm:$0x11] }
 0x9a2   :  { %3993 = vadd.xlane.f32.xlu0 %v3992_v37  ;;  %v9822_v37 = vld [vmem:[%s12484_s9 + $0xa0] ss:$36 sps:$4 sm:$0xff]  }
 0x9c4   :  { %v2943_v53 = vpop.f32.mrb[84].mxu1 }
 0x9c5   :  { %v8995_v35 = vpop.f32.mrb[85].mxu1 }
 0x9c6   :  { %v2946_v26 = vpop.f32.mrb[86].mxu1 }
 0x9c7   :  { %v8996_v14 = vpop.f32.mrb[87].mxu1 }
 0x9ca   :  { %v2876_v13 = vpop.f32.mrb[132].mxu0 }
 0x9cb   :  { %v2944_v19 = vadd.f32 %v2943_v53, %v2876_v13  ;;  %v8983_v29 = vpop.f32.mrb[133].mxu0 }
 0x9cc   :  { %v2879_v2 = vpop.f32.mrb[134].mxu0 }
 0x9cd   :  { %v2947_v18 = vadd.f32 %v2946_v26, %v2879_v2  ;;  %v8984_v23 = vpop.f32.mrb[135].mxu0 }
 0x9da   :  { %v3021_v21 = vpop.f32.mrb[136].mxu0 }
 0x9db   :  { %v11151_v25 = vadd.f32 %v3021_v21, %v2944_v19  ;;  %v9007_v24 = vpop.f32.mrb[137].mxu0 }
 0x9dc   :  { %v3024_v3 = vpop.f32.mrb[138].mxu0 }
 0x9dd   :  { %v11153_v20 = vadd.f32 %v3024_v3, %v2947_v18  ;;  %v9008_v11 = vpop.f32.mrb[139].mxu0  ;;  %v3037_v26 = vadd.f32 %v8141_v30, %v11151_v25 }
 0x9df   :  { %v3038_v29 = vadd.f32 %v8141_v30, %v11153_v20 }
 0xa2f   :  { %v3133_v0 = vpop.f32.mrb[140].mxu0 }
 0xa30   :  { %v9031_v27 = vpop.f32.mrb[141].mxu0 }
 0xa31   :  { %v3136_v60 = vpop.f32.mrb[142].mxu0  ;;  %v8179_v27 = vcombine.high %v3246_v47, %v3246_v47 }
 0xa32   :  { %v9032_v9 = vpop.f32.mrb[143].mxu0 }
 0xa33   :  { %v8178_v9 = vcombine.low %v3246_v47, %v3246_v47 }
 0xa35   :  { %v3086_v36 = vpop.f32.mrb[88].mxu1 }
 0xa36   :  { %v3134_v44 = vadd.f32 %v3133_v0, %v3086_v36  ;;  %v9019_v57 = vpop.f32.mrb[89].mxu1  ;;  %v9825_v0 = vld [vmem:[%s12484_s9 + $0xa8] ss:$36 sps:$4 sm:$0xff]   ;;  %v8180_v36 = vcombine.low %v3247_v32, %v3247_v32 }
 0xa37   :  { %v3089_v12 = vpop.f32.mrb[90].mxu1 }
 0xa38   :  { %v3137_v41 = vadd.f32 %v3136_v60, %v3089_v12  ;;  %v9020_v42 = vpop.f32.mrb[91].mxu1  ;;  %v8181_v60 = vcombine.high %v3247_v32, %v3247_v32  ;;  %v3432_v57 = vsel %vm1020_vm9, %v8180_v36, 0  ;;  %v9832_v12 = vld [vmem:[%s12484_s9 + $0x20] ss:$36 sps:$4 sm:$0xff]  }
 0xa39   :  { %v9834_v42 = vld [vmem:[%s12484_s9 + $0xb0] ss:$36 sps:$4 sm:$0xff]  }
 0xa45   :  { %v3180_v63 = vpop.f32.mrb[92].mxu1 }
 0xa46   :  { %v3187_v43 = vadd.f32 %v3180_v63, %v3134_v44  ;;  %v9043_v53 = vpop.f32.mrb[93].mxu1  ;;  %v3426_v44 = vsel %vm1020_vm9, %v8178_v9, 0 }
 0xa47   :  { %v3183_v35 = vpop.f32.mrb[94].mxu1 }
 0xa48   :  { %v3189_v14 = vadd.f32 %v8141_v30, %v3187_v43  ;;  %v3188_v13 = vadd.f32 %v3183_v35, %v3137_v41  ;;  %v9044_v19 = vpop.f32.mrb[95].mxu1  ;;  %v9833_v41 = vld [vmem:[%s12484_s9 + $0x68] ss:$36 sps:$4 sm:$0xff]   ;;  %v3994_v43 = vpop.xlane.xlu0 %3993 }
 0xa49   :  { %v3995_v53 = vmul.f32 0.01010101, %v3994_v43 }
 0xa4a   :  { %v3191_v2 = vmax.f32 %v3037_v26, %v3189_v14  ;;  %v3190_v18 = vadd.f32 %v8141_v30, %v3188_v13  ;;  %v9835_v30 = vld [vmem:[%s12484_s9 + $0xf8] ss:$0 sps:$4 sm:$0x11]  }
 0xa4b   :  { %v3438_v63 = vsel %vm1020_vm9, %v9835_v30, 0  ;;  %vm3998_vm0 = vcmp.eq.f32.partialorder %v3995_v53, inf  ;;  %v4001_v14 = vand.u32 2147483648, %v3995_v53  ;;  %vm4000_vm1 = vcmp.eq.f32.partialorder %v3995_v53, 0.0 }
 0xa4c   :  { %v3193_v23 = vmin.f32 %v3191_v2, 20.0  ;;  %v3192_v21 = vmax.f32 %v3038_v29, %v3190_v18 }
 0xa4e   :  { %v3195_v24 = vmul.f32 1.442695, %v3193_v23  ;;  %v3194_v3 = vmin.f32 %v3192_v21, 20.0  ;;  %v9836_v23 = vld [vmem:[%s12485_s10] sm:$0xff]  }
 0xa50   :  { %10063 = vpow2.f32 %v3195_v24  ;;  %v3197_v11 = vmul.f32 1.442695, %v3194_v3  ;;  %v9839_v24 = vld [vmem:[%s12485_s10 + $0x18] sm:$0xff]   ;;  %v9840_v3 = vld [vmem:[%s12485_s10 + $0x20] sm:$0xff]  }
 0xa52   :  { %10065 = vpow2.f32 %v3197_v11  ;;  %v9841_v11 = vld [vmem:[%s12485_s10 + $0x28] sm:$0xff]  }
 0xa5a   :  { %v10064_v28 = vpop.eup %10063 }
 0xa5b   :  { %v3199_v17 = vadd.f32 1.0, %v10064_v28  ;;  %v9842_v28 = vld [vmem:[%s12485_s10 + $0x30] sm:$0xff]  }
 0xa5c   :  { %v10066_v46 = vpop.eup %10065 }
 0xa5d   :  { %v3201_v56 = vmul.f32 %v3199_v17, %v3199_v17  ;;  %v3200_v55 = vadd.f32 1.0, %v10066_v46  ;;  %v9843_v17 = vld [vmem:[%s12485_s10 + $0x38] sm:$0xff]   ;;  %v10167_v46 = vmov 1966171168  }
 0xa5f   :  { %v3207_v25 = vadd.f32 1.0, %v3201_v56  ;;  %v3202_v61 = vmul.f32 %v3200_v55, %v3200_v55  ;;  %v8145_v20 = vadd.f32 -1.0, %v3201_v56  ;;  %v3648_v56 = vunpack.c.l.s4 %v10167_v46 }
 0xa61   :  { %10067 = vrcp.f32 %v3207_v25  ;;  %v3208_v62 = vadd.f32 1.0, %v3202_v61  ;;  %v8146_v54 = vadd.f32 -1.0, %v3202_v61  ;;  %v3205_v33 = vmul.f32 %v8145_v20, %v3191_v2 }
 0xa62   :  { %v3649_v55 = vunpack.c.0.s8 %v3648_v56 }
 0xa63   :  { %10069 = vrcp.f32 %v3208_v62  ;;  %v3206_v34 = vmul.f32 %v8146_v54, %v3192_v21  ;;  %v9838_v21 = vld [vmem:[%s12485_s10 + $0x10] sm:$0xff]  }
 0xa64   :  { %10071 = vrsqrt.f32 %v3995_v53  ;;  %v11332_v25 = vsub.s32 %v3649_v55, %v10864_v16 }
 0xa6b   :  { %v10068_v51 = vpop.eup %10067 }
 0xa6c   :  { %v3211_v6 = vmul.f32 %v10068_v51, %v3205_v33 }
 0xa6d   :  { %v10070_v5 = vpop.eup %10069 }
 0xa6e   :  { %v3212_v8 = vmul.f32 %v10070_v5, %v3206_v34  ;;  %v10072_v35 = vpop.eup %10071 }
 0xa6f   :  { %v3997_v26 = vmul.f32 %v10072_v35, %v3995_v53 }
 0xa70   :  { %v3213_v39 = vpack.c.bf16 %v3212_v8, %v3211_v6  ;;  %v3644_v8 = vld [vmem:[%s12482_s8 + $0x4] sm:$0x1] }
 0xa71   :  { %v3999_v13 = vsel %vm3998_vm0, %v3995_v53, %v3997_v26 }
 0xa72   :  { %8184 = vmatmul.mubr.msk.bf16.vlgmr.msra.gmra.mrb[144].mxu0 %vm2835_vm2, %v3213_v39  ;;  %8186 = vmatmul.mubr.msk.bf16.vlgmr.msra.gmra.mrb[96].mxu1 %vm2835_vm2, %v3213_v39  ;;  %v4002_v19 = vsel %vm4000_vm1, %v4001_v14, %v3999_v13  ;;  %vm3938_vm1 = vcmask 523264  }
 0xa73   :  { %3523 = vmatpush1.bf16.msra.mxu0 %v9810_v40  ;;  %3564 = vmatpush1.bf16.msra.mxu1 %v9813_v58  ;;  %10073 = vrcp.f32 %v4002_v19 }
 0xa74   :  { %3524 = vmatprep.subr.bf16.mxu0 %v9818_v50  ;;  %3565 = vmatprep.subr.bf16.mxu1 %v9821_v15 }
 0xa75   :  { %3554 = vmatprep.mubr.bf16.mxu0 %v10160_v22  ;;  %3595 = vmatprep.mubr.bf16.mxu1 %v10160_v22 }
 0xa77   :  { %3525 = vmatpush1.bf16.msra.mxu0 %v9816_v1  ;;  %3566 = vmatpush1.bf16.msra.mxu1 %v9819_v10 }
 0xa78   :  { %3526 = vmatprep.subr.bf16.mxu0 %v9824_v49  ;;  %3567 = vmatprep.subr.bf16.mxu1 %v9827_v52 }
 0xa7b   :  { %3527 = vmatpush1.bf16.msra.mxu0 %v9822_v37  ;;  %3568 = vmatpush1.bf16.msra.mxu1 %v9825_v0 }
 0xa7c   :  { %8187 = vmatprep.subr.msk.bf16.mxu0 %vm1020_vm9, %v8179_v27  ;;  %8189 = vmatprep.subr.msk.bf16.mxu1 %vm1020_vm9, %v8181_v60 }
 0xa7d   :  { %v10074_v29 = vpop.eup %10073 }
 0xa7e   :  { %v4004_v2 = vmul.f32 %v10074_v29, %v11208_v31  ;;  %v9837_v31 = vld [vmem:[%s12485_s10 + $0x8] sm:$0xff]  }
 0xa7f   :  { %3529 = vmatpush1.bf16.msra.mxu0 %v3426_v44  ;;  %3570 = vmatpush1.bf16.msra.mxu1 %v3432_v57 }
 0xa80   :  { %9045 = vmatprep.subr.bf16.mxu0 %v10155_v7  ;;  %9057 = vmatprep.subr.bf16.mxu1 %v10155_v7  ;;  %v11291_v18 = vpack.c.bf16 %v4004_v2, %v4004_v2 }
 0xa82   :  { %8188 = vmatmul.mubr.msk.bf16.vlgmr.msra.gmra.mrb[148].mxu0 %vm2835_vm2, %v3213_v39  ;;  %8190 = vmatmul.mubr.msk.bf16.vlgmr.msra.gmra.mrb[100].mxu1 %vm2835_vm2, %v3213_v39 }
 0xa83   :  { %9046 = vmatpush3.bf16.msra.mxu0 %v9832_v12  ;;  %9053 = vmatprep.mubr.msk.bf16.mxu0 %vm10156_vm3, %v10155_v7 }
 0xa84   :  { %9047 = vmatprep.subr.bf16.mxu0 %v10155_v7  ;;  %9073 = vmatprep.mubr.msk.bf16.mxu1 %vm10156_vm3, %v10155_v7 }
 0xa85   :  { %4199 = vrot.lane.b32.xlu1 %v11291_v18, %s10159_s27  ;;  %4030 = vrot.lane.b32.xlu0 %v11291_v18, %s10158_s24 }
 0xa86   :  { %9058 = vmatpush3.bf16.msra.mxu1 %v9836_v23 }
 0xa87   :  { %9048 = vmatpush3.bf16.msra.mxu0 %v9833_v41  ;;  %9059 = vmatprep.subr.bf16.mxu1 %v10155_v7 }
 0xa88   :  { %9049 = vmatprep.subr.bf16.mxu0 %v10155_v7 }
 0xa89   :  { %4292 = vrot.lane.b32.xlu1 %v11291_v18, %s10157_s23 }
 0xa8a   :  { %9060 = vmatpush3.bf16.msra.mxu1 %v9837_v31 }
 0xa8b   :  { %9050 = vmatpush3.bf16.msra.mxu0 %v9834_v42  ;;  %9061 = vmatprep.subr.bf16.mxu1 %v10155_v7 }
 0xa8c   :  { %9051 = vmatprep.subr.bf16.mxu0 %v10155_v7 }
 0xa8e   :  { %9062 = vmatpush3.bf16.msra.mxu1 %v9838_v21 }
 0xa8f   :  { %9052 = vmatpush3.bf16.msra.mxu0 %v3438_v63  ;;  %9063 = vmatprep.subr.bf16.mxu1 %v10155_v7 }
 0xa90   :  { %9077 = vmatprep.subr.bf16.mxu0 %v10155_v7 }
 0xa92   :  { %9054 = vmatmul.mubr.msk.bf16.vlgmr.msra.gmra.mrb[152].mxu0 %vm2835_vm2, %v3213_v39  ;;  %9064 = vmatpush3.bf16.msra.mxu1 %v9839_v24 }
 0xa93   :  { %9085 = vmatprep.mubr.msk.bf16.mxu0 %vm10156_vm3, %v10155_v7  ;;  %9065 = vmatprep.subr.bf16.mxu1 %v10155_v7 }
 0xa96   :  { %9066 = vmatpush3.bf16.msra.mxu1 %v9840_v3 }
 0xa97   :  { %9067 = vmatprep.subr.bf16.mxu1 %v10155_v7 }
 0xa9a   :  { %9068 = vmatpush3.bf16.msra.mxu1 %v9841_v11 }
 0xa9b   :  { %9069 = vmatprep.subr.bf16.mxu1 %v10155_v7 }
 0xa9e   :  { %9070 = vmatpush3.bf16.msra.mxu1 %v9842_v28 }
 0xa9f   :  { %9071 = vmatprep.subr.bf16.mxu1 %v10155_v7 }
 0xaa2   :  { %9072 = vmatpush3.bf16.msra.mxu1 %v9843_v17 }
 0xaa3   :  { %9103 = vmatprep.subr.bf16.mxu1 %v10155_v7 }
 0xb45   :  { %v3474_v61 = vpop.f32.mrb[144].mxu0  ;;  %v3515_v62 = vpop.f32.mrb[96].mxu1 }
 0xb46   :  { %v3671_v20 = vrot.slane %v3515_v62, %v11332_v25  ;;  %v3476_v54 = vpop.f32.mrb[145].mxu0  ;;  %v3517_v51 = vpop.f32.mrb[97].mxu1  ;;  %v3645_v1 = vadd.f32 %v3644_v8, %v3474_v61 }
 0xb47   :  { %v3653_v33 = vrot.slane %v3476_v54, %v11332_v25  ;;  %v3689_v34 = vrot.slane %v3517_v51, %v11332_v25  ;;  %v3478_v5 = vpop.f32.mrb[146].mxu0  ;;  %v3519_v6 = vpop.f32.mrb[98].mxu1 }
 0xb48   :  { %v3479_v40 = vpop.f32.mrb[147].mxu0  ;;  %v3520_v58 = vpop.f32.mrb[99].mxu1  ;;  %v3678_v39 = vrot.slane %v3671_v20, %v11332_v25 }
 0xb49   :  { %v3654_v50 = vcombine.high %v3653_v33, %v3653_v33  ;;  %v3690_v15 = vcombine.high %v3689_v34, %v3689_v34 }
 0xb4a   :  { %v3679_v52 = vcombine.high %v3678_v39, %v3678_v39  ;;  %v11351_v39 = vpop.permute.xlu1 %4199 }
 0xb4b   :  { %v3661_v10 = vrot.slane %v3654_v50, %v11332_v25  ;;  %v3697_v49 = vrot.slane %v3690_v15, %v11332_v25  ;;  %v4123_v15 = vsel %vm103_vm4, %v11291_v18, 0  ;;  %v9845_v18 = vld [vmem:[%s12486_s11] sm:$0xff]  }
 0xb4c   :  { %9078 = vmatpush3.bf16.msra.mxu0 %v9845_v18 }
 0xb4d   :  { %v3663_v47 = vadd.f32 %v3661_v10, %v3645_v1  ;;  %v3698_v37 = vcombine.high %v3697_v49, %v3697_v49  ;;  %v9844_v10 = vld [vmem:[%s12476_s1] sm:$0xff]   ;;  %9079 = vmatprep.subr.bf16.mxu0 %v10155_v7 }
 0xb4e   :  { %v4293_v1 = vpop.permute.xlu1 %4292 }
 0xb4f   :  { %v3681_v32 = vadd.f32 %v3679_v52, %v3663_v47  ;;  %v4304_v49 = vsel %vm103_vm4, %v4293_v1, 0  ;;  %v9846_v52 = vld [vmem:[%s12486_s11 + $0x8] sm:$0xff]   ;;  %v9847_v47 = vld [vmem:[%s12486_s11 + $0x10] sm:$0xff]  }
 0xb50   :  { %9080 = vmatpush3.bf16.msra.mxu0 %v9846_v52 }
 0xb51   :  { %v3700_v0 = vadd.f32 %v3698_v37, %v3681_v32  ;;  %9081 = vmatprep.subr.bf16.mxu0 %v10155_v7  ;;  %v9848_v32 = vld [vmem:[%s12486_s11 + $0x18] sm:$0xff]   ;;  %v9850_v37 = vld [vmem:[%s12476_s1 + $0x8] sm:$0xff]  }
 0xb54   :  { %9082 = vmatpush3.bf16.msra.mxu0 %v9847_v47 }
 0xb55   :  { %v3556_v27 = vpop.f32.mrb[148].mxu0  ;;  %v3597_v60 = vpop.f32.mrb[100].mxu1  ;;  %9083 = vmatprep.subr.bf16.mxu0 %v10155_v7 }
 0xb56   :  { %v3702_v9 = vcombine.high %v3556_v27, %v3556_v27  ;;  %v3739_v36 = vcombine.high %v3597_v60, %v3597_v60  ;;  %v3558_v44 = vpop.f32.mrb[149].mxu0  ;;  %v3599_v57 = vpop.f32.mrb[101].mxu1  ;;  %v9854_v27 = vld [vmem:[%s12476_s1 + $0x3c] sm:$0xff]   ;;  %v9856_v60 = vld [vmem:[%s12476_s1 + $0x44] sm:$0xff]  }
 0xb57   :  { %v3720_v12 = vcombine.high %v3558_v44, %v3558_v44  ;;  %v3758_v41 = vcombine.high %v3599_v57, %v3599_v57  ;;  %v3560_v42 = vpop.f32.mrb[150].mxu0  ;;  %v3601_v30 = vpop.f32.mrb[102].mxu1  ;;  %v11420_v44 = vld [vmem:[%s12477_s3] sm:$0xff]  ;;  %v11427_v57 = vld [vmem:[%s12477_s3 + $0x10] sm:$0xff] }
 0xb58   :  { %v3709_v63 = vrot.slane %v3702_v9, %v11332_v25  ;;  %v3746_v43 = vrot.slane %v3739_v36, %v11332_v25  ;;  %v3561_v53 = vpop.f32.mrb[151].mxu0  ;;  %v3602_v35 = vpop.f32.mrb[103].mxu1  ;;  %9084 = vmatpush3.bf16.msra.mxu0 %v9848_v32  ;;  %v9858_v9 = vld [vmem:[%s12476_s1 + $0x4c] ss:$0 sps:$4 sm:$0xff]   ;;  %4374 = vperm.xlu0 %9619, %v11420_v44   ;;  %v3805_v42 = vld [vmem:[%s12482_s8 + $0x5] sm:$0x1] }
 0xb59   :  { %v3727_v26 = vrot.slane %v3720_v12, %v11332_v25  ;;  %v3765_v14 = vrot.slane %v3758_v41, %v11332_v25  ;;  %9089 = vmatprep.subr.bf16.mxu0 %v10155_v7  ;;  %v11415_v36 = vld [vmem:[%s12477_s3 + $0x8] sm:$0xff]  ;;  %v11432_v12 = vld [vmem:[%s12477_s3 + $0x18] sm:$0xff]  ;;  %v11439_v41 = vld [vmem:[%s12477_s3 + $0x20] sm:$0xff] }
 0xb5a   :  { %v3716_v13 = vrot.slane %v3709_v63, %v11332_v25  ;;  %v3753_v19 = vrot.slane %v3746_v43, %v11332_v25  ;;  %4379 = vperm.xlu1 %9620, %v11415_v36  }
 0xb5b   :  { %v3728_v29 = vcombine.high %v3727_v26, %v3727_v26  ;;  %v3766_v2 = vcombine.high %v3765_v14, %v3765_v14 }
 0xb5c   :  { %v3718_v23 = vadd.f32 %v3716_v13, %v3700_v0  ;;  %v3754_v24 = vcombine.high %v3753_v19, %v3753_v19  ;;  %v9852_v0 = vld [vmem:[%s12476_s1 + $0x10] ss:$0 sps:$4 sm:$0xff]   ;;  %4389 = vperm.xlu0 %9619, %v11432_v12  }
 0xb5d   :  { %v3735_v31 = vrot.slane %v3728_v29, %v11332_v25  ;;  %v3773_v21 = vrot.slane %v3766_v2, %v11332_v25 }
 0xb5e   :  { %4384 = vperm.xlu1 %9620, %v11427_v57  }
 0xb5f   :  { %v3737_v3 = vadd.f32 %v3735_v31, %v3718_v23  ;;  %v3774_v28 = vcombine.high %v3773_v21, %v3773_v21 }
 0xb60   :  { %9652 = vset.pattern.permute.xlu0 %v10161_v59 }
 0xb61   :  { %v3756_v11 = vadd.f32 %v3754_v24, %v3737_v3  ;;  %v4031_v24 = vpop.permute.xlu0 %4030 }
 0xb62   :  { %4394 = vperm.xlu1 %9620, %v11439_v41  }
 0xb63   :  { %v3776_v17 = vadd.f32 %v3774_v28, %v3756_v11  ;;  %v4042_v11 = vsel %vm103_vm4, %v4031_v24, 0  ;;  %v9849_v28 = vld [vmem:[%s12476_s1 + $0x14] sm:$0xff]  }
 0xb65   :  { %v3638_v46 = vpop.f32.mrb[152].mxu0 }
 0xb66   :  { %v9055_v56 = vpop.f32.mrb[153].mxu0  ;;  %9651 = vset.pattern.permute.xlu1 %v10161_v59  ;;  %v9851_v46 = vld [vmem:[%s12476_s1 + $0x1c] sm:$0xff]  }
 0xb67   :  { %v3640_v55 = vpop.f32.mrb[154].mxu0  ;;  %v9853_v56 = vld [vmem:[%s12476_s1 + $0x24] ss:$0 sps:$4 sm:$0xff]  }
 0xb68   :  { %v3777_v61 = vadd.f32 %v3776_v17, %v3640_v55  ;;  %v9056_v62 = vpop.f32.mrb[155].mxu0  ;;  %v4211_v17 = vsel %vm103_vm4, %v11351_v39, 0  ;;  %v9855_v55 = vld [vmem:[%s12476_s1 + $0x28] sm:$0xff]   ;;  %vm3982_vm4 = vcmask 32768  }
 0xb69   :  { %v9859_v62 = vld [vmem:[%s12476_s1 + $0x38] ss:$0 sps:$4 sm:$0xff]  }
 0xb6a   :  { %v3778_v20 = vmin.f32 %v3777_v61, 20.0 }
 0xb6c   :  { %v3779_v54 = vmul.f32 1.442695, %v3778_v20 }
 0xb6e   :  { %10075 = vpow2.f32 %v3779_v54 }
 0xb78   :  { %v10076_v51 = vpop.eup %10075 }
 0xb79   :  { %v3781_v33 = vadd.f32 1.0, %v10076_v51 }
 0xb7b   :  { %v3782_v34 = vmul.f32 %v3781_v33, %v3781_v33 }
 0xb7d   :  { %v3785_v5 = vadd.f32 1.0, %v3782_v34  ;;  %v8192_v6 = vadd.f32 -1.0, %v3782_v34 }
 0xb7f   :  { %10077 = vrcp.f32 %v3785_v5  ;;  %v3784_v8 = vmul.f32 %v8192_v6, %v3777_v61  ;;  %v9857_v61 = vld [vmem:[%s12476_s1 + $0x30] sm:$0xff]  }
 0xb89   :  { %v10078_v40 = vpop.eup %10077 }
 0xb8a   :  { %v3787_v58 = vmul.f32 %v10078_v40, %v3784_v8 }
 0xb8c   :  { %v3788_v50 = vpack.c.bf16 %v3787_v58, %v3787_v58 }
 0xb8e   :  { %9074 = vmatmul.mubr.bf16.vlgmr.msra.gmra.mrb[104].mxu1 %v3788_v50 }
 0xb8f   :  { %9104 = vmatpush3.bf16.msra.mxu1 %v4123_v15  ;;  %9105 = vmatprep.mubr.msk.bf16.mxu1 %vm10156_vm3, %v10155_v7 }
 0xb90   :  { %9131 = vmatprep.subr.bf16.mxu1 %v10155_v7 }
 0xb96   :  { %9106 = vmatmul.mubr.msk.bf16.vlgmr.msra.gmra.mrb[108].mxu1 %vm93_vm5, %v9844_v10 }
 0xb97   :  { %9132 = vmatpush3.bf16.msra.mxu1 %v4304_v49  ;;  %9109 = vmatprep.mubr.msk.bf16.mxu1 %vm10156_vm3, %v10155_v7 }
 0xb98   :  { %9145 = vmatprep.subr.bf16.mxu1 %v10155_v7 }
 0xb9e   :  { %9110 = vmatmul.mubr.msk.bf16.gmra.mrb[112].mxu1 %vm93_vm5, %v9850_v37 }
 0xb9f   :  { %9113 = vmatprep.mubr.msk.bf16.mxu1 %vm10156_vm3, %v10155_v7 }
 0xba6   :  { %9114 = vmatmul.mubr.msk.bf16.gmra.mrb[116].mxu1 %vm93_vm5, %v9852_v0 }
 0xba7   :  { %9133 = vmatprep.mubr.msk.bf16.mxu1 %vm10156_vm3, %v10155_v7 }
 0xbae   :  { %9134 = vmatmul.mubr.msk.bf16.vlgmr.msra.gmra.mrb[120].mxu1 %vm93_vm5, %v9854_v27 }
 0xbaf   :  { %9137 = vmatprep.mubr.msk.bf16.mxu1 %vm10156_vm3, %v10155_v7 }
 0xbb6   :  { %9138 = vmatmul.mubr.msk.bf16.gmra.mrb[124].mxu1 %vm93_vm5, %v9856_v60 }
 0xbb7   :  { %9141 = vmatprep.mubr.msk.bf16.mxu1 %vm10156_vm3, %v10155_v7 }
 0xbbe   :  { %9142 = vmatmul.mubr.msk.bf16.gmra.mrb[128].mxu1 %vm93_vm5, %v9858_v9  ;;  %v3913_v9 = vld [vmem:[%s12482_s8 + $0x6] sm:$0x1] }
 0xbbf   :  { %9157 = vmatprep.mubr.msk.bf16.mxu1 %vm10156_vm3, %v10155_v7 }
 0xc61   :  { %v3888_v30 = vpop.f32.mrb[104].mxu1 }
 0xc62   :  { %v3889_v63 = vadd.f32 %v3888_v30, %v3805_v42  ;;  %v9075_v43 = vpop.f32.mrb[105].mxu1 }
 0xc63   :  { %v3891_v53 = vpop.f32.mrb[106].mxu1 }
 0xc64   :  { %v3894_v35 = vmin.f32 %v3889_v63, 20.0  ;;  %v9076_v26 = vpop.f32.mrb[107].mxu1 }
 0xc66   :  { %v3895_v14 = vmul.f32 1.442695, %v3894_v35 }
 0xc68   :  { %10079 = vpow2.f32 %v3895_v14 }
 0xc69   :  { %v4159_v20 = vpop.f32.mrb[108].mxu1 }
 0xc6a   :  { %v9107_v54 = vpop.f32.mrb[109].mxu1 }
 0xc6b   :  { %v4162_v51 = vpop.f32.mrb[110].mxu1 }
 0xc6c   :  { %v9108_v33 = vpop.f32.mrb[111].mxu1 }
 0xc71   :  { %v4167_v34 = vpop.f32.mrb[112].mxu1 }
 0xc72   :  { %v10080_v13 = vpop.eup %10079  ;;  %v9111_v5 = vpop.f32.mrb[113].mxu1 }
 0xc73   :  { %v3897_v19 = vadd.f32 1.0, %v10080_v13  ;;  %v4170_v6 = vpop.f32.mrb[114].mxu1 }
 0xc74   :  { %v9112_v8 = vpop.f32.mrb[115].mxu1 }
 0xc75   :  { %v3898_v29 = vmul.f32 %v3897_v19, %v3897_v19 }
 0xc77   :  { %v3901_v2 = vadd.f32 1.0, %v3898_v29  ;;  %v8201_v23 = vadd.f32 -1.0, %v3898_v29 }
 0xc79   :  { %10081 = vrcp.f32 %v3901_v2  ;;  %v3900_v31 = vmul.f32 %v8201_v23, %v3889_v63  ;;  %v4175_v40 = vpop.f32.mrb[116].mxu1 }
 0xc7a   :  { %v9115_v58 = vpop.f32.mrb[117].mxu1 }
 0xc7b   :  { %v4178_v39 = vpop.f32.mrb[118].mxu1 }
 0xc7c   :  { %v9116_v50 = vpop.f32.mrb[119].mxu1 }
 0xc81   :  { %v4340_v15 = vpop.f32.mrb[120].mxu1 }
 0xc82   :  { %v9135_v1 = vpop.f32.mrb[121].mxu1 }
 0xc83   :  { %v10082_v59 = vpop.eup %10081  ;;  %v4343_v10 = vpop.f32.mrb[122].mxu1 }
 0xc84   :  { %v3903_v21 = vmul.f32 %v10082_v59, %v3900_v31  ;;  %v9136_v49 = vpop.f32.mrb[123].mxu1 }
 0xc86   :  { %v3904_v3 = vpack.c.bf16 %v3903_v21, %v3903_v21 }
 0xc88   :  { %9086 = vmatmul.mubr.msk.bf16.vlgmr.msra.gmra.mrb[156].mxu0 %vm3938_vm1, %v3904_v3 }
 0xc89   :  { %9090 = vmatpush3.bf16.msra.mxu0 %v4042_v11  ;;  %9091 = vmatprep.mubr.msk.bf16.mxu0 %vm10156_vm3, %v10155_v7  ;;  %v4348_v18 = vpop.f32.mrb[124].mxu1 }
 0xc8a   :  { %9117 = vmatprep.subr.bf16.mxu0 %v10155_v7  ;;  %v9139_v52 = vpop.f32.mrb[125].mxu1 }
 0xc8b   :  { %v4351_v47 = vpop.f32.mrb[126].mxu1 }
 0xc8c   :  { %v9140_v32 = vpop.f32.mrb[127].mxu1 }
 0xc90   :  { %9092 = vmatmul.mubr.msk.bf16.vlgmr.msra.gmra.mrb[160].mxu0 %vm93_vm5, %v9849_v28 }
 0xc91   :  { %9118 = vmatpush3.bf16.msra.mxu0 %v4211_v17  ;;  %9095 = vmatprep.mubr.msk.bf16.mxu0 %vm10156_vm3, %v10155_v7  ;;  %v11489_v37 = vpop.f32.mrb[128].mxu1 }
 0xc92   :  { %4570 = vmatprep.subr.bf16.mxu0 %v10160_v22  ;;  %v9143_v0 = vpop.f32.mrb[129].mxu1 }
 0xc93   :  { %v4359_v27 = vpop.f32.mrb[130].mxu1 }
 0xc94   :  { %v9144_v60 = vpop.f32.mrb[131].mxu1 }
 0xc98   :  { %9096 = vmatmul.mubr.msk.bf16.gmra.mrb[164].mxu0 %vm93_vm5, %v9851_v46 }
 0xc99   :  { %9099 = vmatprep.mubr.msk.bf16.mxu0 %vm10156_vm3, %v10155_v7 }
 0xca0   :  { %9100 = vmatmul.mubr.msk.bf16.gmra.mrb[168].mxu0 %vm93_vm5, %v9853_v56 }
 0xca1   :  { %9119 = vmatprep.mubr.msk.bf16.mxu0 %vm10156_vm3, %v10155_v7 }
 0xca8   :  { %9120 = vmatmul.mubr.msk.bf16.vlgmr.msra.gmra.mrb[172].mxu0 %vm93_vm5, %v9855_v55 }
 0xca9   :  { %9123 = vmatprep.mubr.msk.bf16.mxu0 %vm10156_vm3, %v10155_v7 }
 0xcb0   :  { %9124 = vmatmul.mubr.msk.bf16.gmra.mrb[176].mxu0 %vm93_vm5, %v9857_v61 }
 0xcb1   :  { %9127 = vmatprep.mubr.msk.bf16.mxu0 %vm10156_vm3, %v10155_v7 }
 0xcb8   :  { %9128 = vmatmul.mubr.msk.bf16.gmra.mrb[180].mxu0 %vm93_vm5, %v9859_v62  ;;  %vm12491_vm5 = vsmask.f32 4352 }
 0xd5b   :  { %v3976_v42 = vpop.f32.mrb[156].mxu0 }
 0xd5c   :  { %v3977_v30 = vadd.f32 %v3976_v42, %v3913_v9  ;;  %v9087_v63 = vpop.f32.mrb[157].mxu0 }
 0xd5d   :  { %v3979_v43 = vpop.f32.mrb[158].mxu0 }
 0xd5e   :  { %3983 = vst.msk [vmem:[%s12487_s12] sm:$0x1] %vm3982_vm4, %v3977_v30  ;;  %v9088_v53 = vpop.f32.mrb[159].mxu0 }
 0xd63   :  { %v4078_v35 = vpop.f32.mrb[160].mxu0 }
 0xd64   :  { %v4160_v26 = vadd.f32 %v4159_v20, %v4078_v35  ;;  %v9093_v14 = vpop.f32.mrb[161].mxu0  ;;  %v4375_v20 = vpop.permute.xlu0 %4374 }
 0xd65   :  { %v4081_v13 = vpop.f32.mrb[162].mxu0 }
 0xd66   :  { %v4163_v19 = vadd.f32 %v4162_v51, %v4081_v13  ;;  %v9094_v29 = vpop.f32.mrb[163].mxu0 }
 0xd68   :  { %v4390_v42 = vpop.permute.xlu0 %4389 }
 0xd6b   :  { %v4086_v2 = vpop.f32.mrb[164].mxu0 }
 0xd6c   :  { %v4168_v23 = vadd.f32 %v4167_v34, %v4086_v2  ;;  %v9097_v31 = vpop.f32.mrb[165].mxu0  ;;  %v4380_v34 = vpop.permute.xlu1 %4379 }
 0xd6d   :  { %v4089_v59 = vpop.f32.mrb[166].mxu0 }
 0xd6e   :  { %v4171_v21 = vadd.f32 %v4170_v6, %v4089_v59  ;;  %v9098_v24 = vpop.f32.mrb[167].mxu0 }
 0xd70   :  { %v4385_v9 = vpop.permute.xlu1 %4384 }
 0xd73   :  { %v4094_v3 = vpop.f32.mrb[168].mxu0 }
 0xd74   :  { %v4176_v11 = vadd.f32 %v4175_v40, %v4094_v3  ;;  %v9101_v28 = vpop.f32.mrb[169].mxu0  ;;  %v4395_v2 = vpop.permute.xlu1 %4394 }
 0xd75   :  { %v4097_v17 = vpop.f32.mrb[170].mxu0 }
 0xd76   :  { %v9102_v46 = vpop.f32.mrb[171].mxu0 }
 0xd7b   :  { %v4247_v56 = vpop.f32.mrb[172].mxu0 }
 0xd7c   :  { %v4269_v55 = vadd.f32 %v4247_v56, %v4160_v26  ;;  %v9121_v61 = vpop.f32.mrb[173].mxu0 }
 0xd7d   :  { %v4250_v62 = vpop.f32.mrb[174].mxu0 }
 0xd7e   :  { %v4270_v54 = vadd.f32 %v4250_v62, %v4163_v19  ;;  %v9122_v33 = vpop.f32.mrb[175].mxu0  ;;  %v4362_v51 = vadd.f32 %v4340_v15, %v4269_v55 }
 0xd80   :  { %v4363_v5 = vadd.f32 %v4343_v10, %v4270_v54  ;;  %v4397_v8 = vadd.f32 %v4375_v20, %v4362_v51 }
 0xd82   :  { %v4398_v58 = vadd.f32 %v4380_v34, %v4363_v5  ;;  %v4402_v39 = vmin.f32 %v4397_v8, 20.0 }
 0xd83   :  { %v4255_v6 = vpop.f32.mrb[176].mxu0 }
 0xd84   :  { %v4403_v50 = vmin.f32 %v4398_v58, 20.0  ;;  %v4407_v1 = vmul.f32 1.442695, %v4402_v39  ;;  %v4271_v40 = vadd.f32 %v4255_v6, %v4168_v23  ;;  %v9125_v49 = vpop.f32.mrb[177].mxu0 }
 0xd85   :  { %v4258_v52 = vpop.f32.mrb[178].mxu0 }
 0xd86   :  { %v4409_v32 = vmul.f32 1.442695, %v4403_v50  ;;  %10083 = vpow2.f32 %v4407_v1  ;;  %v4364_v0 = vadd.f32 %v4348_v18, %v4271_v40  ;;  %v4272_v27 = vadd.f32 %v4258_v52, %v4171_v21  ;;  %v9126_v60 = vpop.f32.mrb[179].mxu0 }
 0xd88   :  { %10085 = vpow2.f32 %v4409_v32  ;;  %v4399_v15 = vadd.f32 %v4385_v9, %v4364_v0  ;;  %v4365_v10 = vadd.f32 %v4351_v47, %v4272_v27 }
 0xd8a   :  { %v4404_v30 = vmin.f32 %v4399_v15, 20.0  ;;  %v4400_v63 = vadd.f32 %v4390_v42, %v4365_v10 }
 0xd8b   :  { %v4263_v43 = vpop.f32.mrb[180].mxu0 }
 0xd8c   :  { %v4411_v53 = vmul.f32 1.442695, %v4404_v30  ;;  %v4405_v35 = vmin.f32 %v4400_v63, 20.0  ;;  %v4273_v26 = vadd.f32 %v4263_v43, %v4176_v11  ;;  %v9129_v14 = vpop.f32.mrb[181].mxu0 }
 0xd8d   :  { %v4266_v13 = vpop.f32.mrb[182].mxu0 }
 0xd8e   :  { %10087 = vpow2.f32 %v4411_v53  ;;  %v4413_v19 = vmul.f32 1.442695, %v4405_v35  ;;  %v4366_v29 = vadd.f32 %v11489_v37, %v4273_v26  ;;  %v9130_v18 = vpop.f32.mrb[183].mxu0 }
 0xd90   :  { %v10084_v23 = vpop.eup %10083  ;;  %10089 = vpow2.f32 %v4413_v19  ;;  %v4401_v31 = vadd.f32 %v4395_v2, %v4366_v29 }
 0xd91   :  { %v4417_v59 = vadd.f32 1.0, %v10084_v23 }
 0xd92   :  { %v10086_v21 = vpop.eup %10085  ;;  %v4406_v47 = vmin.f32 %v4401_v31, 20.0 }
 0xd93   :  { %v4418_v24 = vadd.f32 1.0, %v10086_v21  ;;  %v4422_v3 = vmul.f32 %v4417_v59, %v4417_v59 }
 0xd94   :  { %v4415_v28 = vmul.f32 1.442695, %v4406_v47 }
 0xd95   :  { %v4423_v17 = vmul.f32 %v4418_v24, %v4418_v24  ;;  %v4437_v46 = vadd.f32 1.0, %v4422_v3  ;;  %v8247_v20 = vadd.f32 -1.0, %v4422_v3 }
 0xd96   :  { %10091 = vpow2.f32 %v4415_v28 }
 0xd97   :  { %v4438_v11 = vadd.f32 1.0, %v4423_v17  ;;  %10093 = vrcp.f32 %v4437_v46  ;;  %v8248_v51 = vadd.f32 -1.0, %v4423_v17  ;;  %v4432_v39 = vmul.f32 %v8247_v20, %v4397_v8 }
 0xd98   :  { %v10088_v56 = vpop.eup %10087 }
 0xd99   :  { %10095 = vrcp.f32 %v4438_v11  ;;  %v4419_v55 = vadd.f32 1.0, %v10088_v56  ;;  %v4433_v1 = vmul.f32 %v8248_v51, %v4398_v58 }
 0xd9a   :  { %v10090_v37 = vpop.eup %10089 }
 0xd9b   :  { %v4424_v61 = vmul.f32 %v4419_v55, %v4419_v55  ;;  %v4420_v62 = vadd.f32 1.0, %v10090_v37 }
 0xd9d   :  { %v4439_v54 = vadd.f32 1.0, %v4424_v61  ;;  %v4425_v33 = vmul.f32 %v4420_v62, %v4420_v62  ;;  %v8249_v0 = vadd.f32 -1.0, %v4424_v61 }
 0xd9f   :  { %10097 = vrcp.f32 %v4439_v54  ;;  %v4440_v5 = vadd.f32 1.0, %v4425_v33  ;;  %v8250_v60 = vadd.f32 -1.0, %v4425_v33  ;;  %v4434_v10 = vmul.f32 %v8249_v0, %v4399_v15  ;;  %v9869_v0 = vld [vmem:[%s12479_s4 + $0x8] sm:$0xff]  }
 0xda0   :  { %v10092_v34 = vpop.eup %10091 }
 0xda1   :  { %v10094_v6 = vpop.eup %10093  ;;  %10099 = vrcp.f32 %v4440_v5  ;;  %v4421_v50 = vadd.f32 1.0, %v10092_v34  ;;  %v4435_v43 = vmul.f32 %v8250_v60, %v4400_v63  ;;  %v9862_v63 = vld [vmem:[%s12478_s2 + $0x4] ss:$8 sps:$4 sm:$0xff]   ;;  %v9871_v60 = vld [vmem:[%s12479_s4 + $0x18] sm:$0xff]  }
 0xda2   :  { %v4447_v40 = vmul.f32 %v10094_v6, %v4432_v39  ;;  %8258 = vmatprep.mubr.msk.bf16.mxu0 %vm626_vm6, %v9862_v63  ;;  %v9860_v6 = vld [vmem:[%s12478_s2] ss:$8 sps:$4 sm:$0xff]  }
 0xda3   :  { %v10096_v49 = vpop.eup %10095  ;;  %v4426_v52 = vmul.f32 %v4421_v50, %v4421_v50  ;;  %v9863_v50 = vld [vmem:[%s12478_s2 + $0x14] ss:$8 sps:$4 sm:$0xff]  }
 0xda4   :  { %v4448_v32 = vmul.f32 %v10096_v49, %v4433_v1  ;;  %4457 = vrot.lane.b32.xlu0 %v4447_v40, %s10158_s24  ;;  %v4516_v1 = vld [vmem:[%s12478_s2 + $0x20] sm:$0xff] }
 0xda5   :  { %v4441_v27 = vadd.f32 1.0, %v4426_v52  ;;  %v8251_v35 = vadd.f32 -1.0, %v4426_v52  ;;  %v8257_v49 = vcombine.high %v4516_v1, %v4516_v1  ;;  %v8256_v52 = vcombine.low %v4516_v1, %v4516_v1 }
 0xda6   :  { %v4502_v9 = vpack.c.bf16 %v4448_v32, %v4447_v40  ;;  %v9631_v42 = vpack.i.bf16 %v4448_v32, %v4447_v40 }
 0xda7   :  { %10101 = vrcp.f32 %v4441_v27  ;;  %v4436_v19 = vmul.f32 %v8251_v35, %v4401_v31  ;;  %v9870_v27 = vld [vmem:[%s12479_s4 + $0x10] sm:$0xff]  }
 0xda8   :  { %4571 = vmatpush1.bf16.msra.mxu0 %v4502_v9 }
 0xda9   :  { %v10098_v30 = vpop.eup %10097  ;;  %4572 = vmatprep.subr.bf16.mxu0 %v10160_v22 }
 0xdaa   :  { %v4449_v8 = vmul.f32 %v10098_v30, %v4434_v10 }
 0xdab   :  { %v10100_v58 = vpop.eup %10099 }
 0xdac   :  { %v4450_v53 = vmul.f32 %v10100_v58, %v4435_v43  ;;  %v9621_v26 = vpack.i.bf16 %v4449_v8, %v4448_v32  ;;  %v9868_v32 = vld [vmem:[%s12479_s4] sm:$0xff]  }
 0xdad   :  { %9146 = vmatpush3.bf16.msra.mxu1 %v9868_v32 }
 0xdae   :  { %9622 = vrot.lane.b32.xlu1 %v9621_v26, %s10158_s24  ;;  %v4503_v14 = vpack.c.bf16 %v4450_v53, %v4449_v8  ;;  %v9636_v13 = vpack.i.bf16 %v4450_v53, %v4449_v8  ;;  %9147 = vmatprep.subr.bf16.mxu1 %v10155_v7 }
 0xdb0   :  { %4573 = vmatpush1.bf16.msra.mxu0 %v4503_v14  ;;  %v9872_v14 = vld [vmem:[%s12479_s4 + $0x20] sm:$0xff]  }
 0xdb1   :  { %v10102_v29 = vpop.eup %10101  ;;  %4574 = vmatprep.subr.bf16.mxu0 %v10160_v22  ;;  %9148 = vmatpush3.bf16.msra.mxu1 %v9869_v0 }
 0xdb2   :  { %9632 = vrot.lane.b32.xlu1 %v9631_v42, %s10159_s27  ;;  %v4451_v15 = vmul.f32 %v10102_v29, %v4436_v19  ;;  %9149 = vmatprep.subr.bf16.mxu1 %v10155_v7 }
 0xdb4   :  { %v9626_v18 = vpack.i.bf16 %v4451_v15, %v4450_v53 }
 0xdb5   :  { %9150 = vmatpush3.bf16.msra.mxu1 %v9870_v27 }
 0xdb6   :  { %4480 = vrot.lane.b32.xlu1 %v4451_v15, %s10159_s27  ;;  %9627 = vrot.lane.b32.xlu0 %v9626_v18, %s10158_s24 }
 0xdb7   :  { %9151 = vmatprep.subr.bf16.mxu1 %v10155_v7 }
 0xdb9   :  { %9152 = vmatpush3.bf16.msra.mxu1 %v9871_v60 }
 0xdba   :  { %9642 = vrot.lane.b32.xlu1 %v9621_v26, %s10157_s23  ;;  %9637 = vrot.lane.b32.xlu0 %v9636_v13, %s10159_s27  ;;  %v9873_v13 = vld [vmem:[%s12479_s4 + $0x28] sm:$0x1f]  }
 0xdbb   :  { %9153 = vmatprep.subr.bf16.mxu1 %v10155_v7 }
 0xdbd   :  { %9154 = vmatpush3.bf16.msra.mxu1 %v9872_v14 }
 0xdbe   :  { %4487 = vrot.lane.b32.xlu0 %v4447_v40, %s10157_s23  ;;  %4518 = vperm.xlu1 %9651, %v11420_v44   ;;  %v9865_v40 = vld [vmem:[%s12478_s2 + $0x10] ss:$8 sps:$4 sm:$0xff]  }
 0xdbf   :  { %9155 = vmatprep.subr.bf16.mxu1 %v10155_v7 }
 0xdc2   :  { %9647 = vrot.lane.b32.xlu0 %v9626_v18, %s10157_s23  ;;  %4526 = vperm.xlu1 %9651, %v11427_v57  }
 0xdc6   :  { %4522 = vperm.xlu0 %9652, %v11415_v36   ;;  %4530 = vperm.xlu1 %9651, %v11432_v12  }
 0xdca   :  { %4534 = vperm.xlu0 %9652, %v11439_v41  }
 0xe16   :  { %v4458_v2 = vpop.permute.xlu0 %4457 }
 0xe17   :  { %v4504_v23 = vpack.c.bf16 %v4458_v2, %v4451_v15  ;;  %v4771_v15 = vsel %vm837_vm7, %v9873_v13, 0 }
 0xe18   :  { %9156 = vmatpush3.bf16.msra.mxu1 %v4771_v15 }
 0xe19   :  { %4575 = vmatpush1.bf16.msra.mxu0 %v4504_v23 }
 0xe1a   :  { %4576 = vmatprep.subr.bf16.mxu0 %v10160_v22 }
 0xe20   :  { %v9623_v44 = vpop.permute.xlu1 %9622 }
 0xe21   :  { %v9625_v31 = vunpack.i.h.bf16 %v9623_v44  ;;  %v9624_v59 = vunpack.i.l.bf16 %v9623_v44 }
 0xe23   :  { %v4505_v21 = vpack.c.bf16 %v9625_v31, %v9624_v59 }
 0xe24   :  { %v9633_v57 = vpop.permute.xlu1 %9632 }
 0xe25   :  { %4577 = vmatpush1.bf16.msra.mxu0 %v4505_v21  ;;  %v9635_v3 = vunpack.i.h.bf16 %v9633_v57  ;;  %v9634_v12 = vunpack.i.l.bf16 %v9633_v57 }
 0xe26   :  { %4578 = vmatprep.subr.bf16.mxu0 %v10160_v22 }
 0xe27   :  { %v4507_v46 = vpack.c.bf16 %v9635_v3, %v9634_v12 }
 0xe28   :  { %v9628_v47 = vpop.permute.xlu0 %9627  ;;  %v4481_v17 = vpop.permute.xlu1 %4480 }
 0xe29   :  { %v9630_v24 = vunpack.i.h.bf16 %v9628_v47  ;;  %v9629_v36 = vunpack.i.l.bf16 %v9628_v47 }
 0xe2b   :  { %v4506_v28 = vpack.c.bf16 %v9630_v24, %v9629_v36 }
 0xe2c   :  { %v9638_v41 = vpop.permute.xlu0 %9637  ;;  %v9643_v61 = vpop.permute.xlu1 %9642 }
 0xe2d   :  { %4579 = vmatpush1.bf16.msra.mxu0 %v4506_v28  ;;  %v9640_v11 = vunpack.i.h.bf16 %v9638_v41  ;;  %v9639_v56 = vunpack.i.l.bf16 %v9638_v41  ;;  %v9645_v62 = vunpack.i.h.bf16 %v9643_v61  ;;  %v9644_v20 = vunpack.i.l.bf16 %v9643_v61 }
 0xe2e   :  { %4580 = vmatprep.subr.bf16.mxu0 %v10160_v22 }
 0xe2f   :  { %v4508_v37 = vpack.c.bf16 %v9640_v11, %v9639_v56  ;;  %v4510_v51 = vpack.c.bf16 %v9645_v62, %v9644_v20 }
 0xe30   :  { %v4488_v55 = vpop.permute.xlu0 %4487 }
 0xe31   :  { %4581 = vmatpush1.bf16.msra.mxu0 %v4507_v46  ;;  %v4509_v54 = vpack.c.bf16 %v4488_v55, %v4481_v17 }
 0xe32   :  { %4582 = vmatprep.subr.bf16.mxu0 %v10160_v22 }
 0xe34   :  { %v9648_v33 = vpop.permute.xlu0 %9647 }
 0xe35   :  { %4583 = vmatpush1.bf16.msra.mxu0 %v4508_v37  ;;  %v9650_v5 = vunpack.i.h.bf16 %v9648_v33  ;;  %v9649_v34 = vunpack.i.l.bf16 %v9648_v33 }
 0xe36   :  { %4584 = vmatprep.subr.bf16.mxu0 %v10160_v22 }
 0xe37   :  { %v4511_v39 = vpack.c.bf16 %v9650_v5, %v9649_v34 }
 0xe39   :  { %4585 = vmatpush1.bf16.msra.mxu0 %v4509_v54 }
 0xe3a   :  { %4586 = vmatprep.subr.bf16.mxu0 %v10160_v22 }
 0xe3d   :  { %4587 = vmatpush1.bf16.msra.mxu0 %v4510_v51  ;;  %v4519_v9 = vpop.permute.xlu1 %4518 }
 0xe3e   :  { %4588 = vmatprep.subr.bf16.mxu0 %v10160_v22 }
 0xe41   :  { %4589 = vmatpush1.bf16.msra.mxu0 %v4511_v39  ;;  %v4527_v35 = vpop.permute.xlu1 %4526 }
 0xe42   :  { %9169 = vmatprep.subr.bf16.mxu0 %v10155_v7 }
 0xe44   :  { %4603 = vmatmul.mubr.bf16.vlgmr.msra.gmra.mrb[184].mxu0 %v9860_v6 }
 0xe45   :  { %8259 = vmatprep.mubr.msk.bf16.mxu0 %vm626_vm6, %v9863_v50  ;;  %v4523_v30 = vpop.permute.xlu0 %4522  ;;  %v4531_v18 = vpop.permute.xlu1 %4530 }
 0xe49   :  { %v4535_v24 = vpop.permute.xlu0 %4534 }
 0xe4c   :  { %4611 = vmatmul.mubr.bf16.gmra.mrb[188].mxu0 %v9865_v40 }
 0xe4d   :  { %8260 = vmatprep.mubr.msk.bf16.mxu0 %vm626_vm6, %v8257_v49  ;;  %vm12492_vm6 = vmmov %vm12491_vm5 }
 0xe54   :  { %4619 = vmatmul.mubr.bf16.gmra.mrb[192].mxu0 %v8256_v52 }
 0xe55   :  { %9173 = vmatprep.mubr.msk.bf16.mxu0 %vm10156_vm3, %v10155_v7 }
 0xf17   :  { %v4604_v42 = vpop.f32.mrb[184].mxu0 }
 0xf18   :  { %v4606_v10 = vpop.f32.mrb[185].mxu0  ;;  %v4605_v43 = vadd.f32 %v4604_v42, %v4519_v9 }
 0xf19   :  { %v4607_v8 = vpop.f32.mrb[186].mxu0 }
 0xf1a   :  { %v4608_v58 = vadd.f32 %v4607_v8, %v4523_v30  ;;  %v4609_v53 = vpop.f32.mrb[187].mxu0 }
 0xf1c   :  { %v9658_v26 = vpack.i.bf16 %v4608_v58, %v4605_v43 }
 0xf1e   :  { %9659 = vrot.lane.b32.xlu0 %v9658_v26, %s10159_s27  ;;  %9654 = vrot.lane.b32.xlu1 %v9658_v26, %s10158_s24 }
 0xf1f   :  { %v4612_v19 = vpop.f32.mrb[188].mxu0 }
 0xf20   :  { %v4614_v29 = vpop.f32.mrb[189].mxu0  ;;  %v4613_v2 = vadd.f32 %v4612_v19, %v4527_v35 }
 0xf21   :  { %v4615_v63 = vpop.f32.mrb[190].mxu0 }
 0xf22   :  { %v4616_v23 = vadd.f32 %v4615_v63, %v4531_v18  ;;  %v4617_v44 = vpop.f32.mrb[191].mxu0  ;;  %9669 = vrot.lane.b32.xlu0 %v9658_v26, %s10162_s19  ;;  %9664 = vrot.lane.b32.xlu1 %v9658_v26, %s10157_s23 }
 0xf24   :  { %v9678_v31 = vpack.i.bf16 %v4616_v23, %v4613_v2 }
 0xf26   :  { %9679 = vrot.lane.b32.xlu0 %v9678_v31, %s10159_s27  ;;  %9674 = vrot.lane.b32.xlu1 %v9678_v31, %s10158_s24 }
 0xf27   :  { %v4620_v59 = vpop.f32.mrb[192].mxu0 }
 0xf28   :  { %v4622_v21 = vpop.f32.mrb[193].mxu0  ;;  %v4621_v36 = vadd.f32 %v4620_v59, %v4535_v24  ;;  %v8279_v24 = vld [vmem:[%s12480_s5 + $0x3c] sm:$0x11] }
 0xf29   :  { %v4623_v57 = vpop.f32.mrb[194].mxu0  ;;  %v9874_v21 = vld [vmem:[%s12480_s5 + $0x24] ss:$12 sps:$4 sm:$0xff]  }
 0xf2a   :  { %9689 = vrot.lane.b32.xlu0 %v9678_v31, %s10162_s19  ;;  %9684 = vrot.lane.b32.xlu1 %v9678_v31, %s10157_s23  ;;  %v4624_v47 = vpop.f32.mrb[195].mxu0  ;;  %v9876_v57 = vld [vmem:[%s12480_s5 + $0x28] ss:$12 sps:$4 sm:$0xff]  }
 0xf2b   :  { %v9877_v47 = vld [vmem:[%s12480_s5 + $0x2c] ss:$12 sps:$4 sm:$0xff]   ;;  %4958 = vmatprep.subr.bf16.mxu1 %v9876_v57 }
 0xf2c   :  { %9170 = vmatpush3.bf16.msra.mxu0 %v9877_v47 }
 0xf2d   :  { %9171 = vmatprep.subr.bf16.mxu0 %v10155_v7 }
 0xf2e   :  { %4659 = vrot.lane.b32.xlu0 %v4621_v36, %s10159_s27  ;;  %4639 = vrot.lane.b32.xlu1 %v4621_v36, %s10158_s24 }
 0xf32   :  { %4699 = vrot.lane.b32.xlu0 %v4621_v36, %s10162_s19  ;;  %4679 = vrot.lane.b32.xlu1 %v4621_v36, %s10157_s23 }
 0xf90   :  { %v9660_v3 = vpop.permute.xlu0 %9659  ;;  %v9655_v12 = vpop.permute.xlu1 %9654 }
 0xf91   :  { %v9657_v28 = vunpack.i.h.bf16 %v9655_v12  ;;  %v9656_v41 = vunpack.i.l.bf16 %v9655_v12  ;;  %v9662_v11 = vunpack.i.h.bf16 %v9660_v3  ;;  %v9661_v56 = vunpack.i.l.bf16 %v9660_v3 }
 0xf92   :  { %v8285_v3 = vcombine.high %v8279_v24, %v8279_v24  ;;  %v8284_v12 = vcombine.low %v8279_v24, %v8279_v24 }
 0xf93   :  { %v4647_v17 = vmax.f32 %v4608_v58, %v9657_v28  ;;  %v4646_v46 = vmax.f32 %v4605_v43, %v9656_v41 }
 0xf94   :  { %v9670_v55 = vpop.permute.xlu0 %9669  ;;  %v9665_v37 = vpop.permute.xlu1 %9664  ;;  %v4950_v41 = vsel %vm1020_vm9, %v8284_v12, 0 }
 0xf95   :  { %v9667_v61 = vunpack.i.h.bf16 %v9665_v37  ;;  %v9666_v62 = vunpack.i.l.bf16 %v9665_v37  ;;  %v4666_v20 = vmax.f32 %v4646_v46, %v9661_v56  ;;  %v4667_v54 = vmax.f32 %v4647_v17, %v9662_v11  ;;  %v9883_v17 = vld [vmem:[%s12480_s5 + $0x4] ss:$12 sps:$4 sm:$0xff]  }
 0xf96   :  { %v9672_v33 = vunpack.i.h.bf16 %v9670_v55  ;;  %v9671_v51 = vunpack.i.l.bf16 %v9670_v55 }
 0xf97   :  { %v4686_v5 = vmax.f32 %v4666_v20, %v9666_v62  ;;  %v4687_v34 = vmax.f32 %v4667_v54, %v9667_v61 }
 0xf98   :  { %v9680_v39 = vpop.permute.xlu0 %9679  ;;  %v9675_v6 = vpop.permute.xlu1 %9674 }
 0xf99   :  { %v9677_v50 = vunpack.i.h.bf16 %v9675_v6  ;;  %v9676_v1 = vunpack.i.l.bf16 %v9675_v6  ;;  %v4706_v40 = vmax.f32 %v4686_v5, %v9671_v51  ;;  %v4707_v49 = vmax.f32 %v4687_v34, %v9672_v33 }
 0xf9a   :  { %v9682_v27 = vunpack.i.h.bf16 %v9680_v39  ;;  %v9681_v60 = vunpack.i.l.bf16 %v9680_v39 }
 0xf9b   :  { %v4649_v52 = vmax.f32 %v4616_v23, %v9677_v50  ;;  %v4648_v32 = vmax.f32 %v4613_v2, %v9676_v1  ;;  %v4711_v0 = vpack.c.bf16 %v4707_v49, %v4706_v40 }
 0xf9c   :  { %v9690_v9 = vpop.permute.xlu0 %9689  ;;  %v9685_v42 = vpop.permute.xlu1 %9684 }
 0xf9d   :  { %v9687_v10 = vunpack.i.h.bf16 %v9685_v42  ;;  %v9686_v30 = vunpack.i.l.bf16 %v9685_v42  ;;  %v4668_v8 = vmax.f32 %v4648_v32, %v9681_v60  ;;  %v4669_v43 = vmax.f32 %v4649_v52, %v9682_v27  ;;  %9158 = vmatmul.mubr.msk.bf16.vlgmr.msra.gmra.mrb[132].mxu1 %vm827_vm8, %v4711_v0 }
 0xf9e   :  { %9161 = vmatprep.mubr.msk.bf16.mxu1 %vm10156_vm3, %v10155_v7  ;;  %v9692_v58 = vunpack.i.h.bf16 %v9690_v9  ;;  %v9691_v53 = vunpack.i.l.bf16 %v9690_v9  ;;  %4959 = vmatpush1.bf16.msra.mxu1 %v9874_v21 }
 0xf9f   :  { %v4688_v35 = vmax.f32 %v4668_v8, %v9686_v30  ;;  %v4689_v26 = vmax.f32 %v4669_v43, %v9687_v10  ;;  %8287 = vmatprep.subr.msk.bf16.mxu1 %vm1020_vm9, %v8285_v3 }
 0xfa0   :  { %v4640_v14 = vpop.permute.xlu1 %4639  ;;  %v4660_v13 = vpop.permute.xlu0 %4659 }
 0xfa1   :  { %v4650_v19 = vmax.f32 %v4621_v36, %v4640_v14  ;;  %v4708_v29 = vmax.f32 %v4688_v35, %v9691_v53  ;;  %v4709_v15 = vmax.f32 %v4689_v26, %v9692_v58  ;;  %v9880_v36 = vld [vmem:[%s12480_s5 + $0x44] ss:$0 sps:$4 sm:$0x11]  }
 0xfa2   :  { %v4956_v28 = vsel %vm1020_vm9, %v9880_v36, 0  ;;  %4961 = vmatpush1.bf16.msra.mxu1 %v4950_v41 }
 0xfa3   :  { %v4670_v18 = vmax.f32 %v4650_v19, %v4660_v13  ;;  %v4712_v2 = vpack.c.bf16 %v4709_v15, %v4708_v29  ;;  %9172 = vmatpush3.bf16.msra.mxu0 %v4956_v28  ;;  %5114 = vmatprep.subr.bf16.mxu1 %v9883_v17  ;;  %v11618_v28 = vld [vmem:[%s12480_s5 + $0x18] sm:$0x11] }
 0xfa4   :  { %v4680_v63 = vpop.permute.xlu1 %4679  ;;  %v4700_v44 = vpop.permute.xlu0 %4699  ;;  %9185 = vmatprep.subr.bf16.mxu0 %v10155_v7 }
 0xfa5   :  { %v4690_v23 = vmax.f32 %v4670_v18, %v4680_v63  ;;  %9162 = vmatmul.mubr.msk.bf16.gmra.mrb[136].mxu1 %vm827_vm8, %v4712_v2 }
 0xfa6   :  { %9165 = vmatprep.mubr.msk.bf16.mxu1 %vm10156_vm3, %v10155_v7 }
 0xfa7   :  { %v4710_v31 = vmax.f32 %v4690_v23, %v4700_v44 }
 0xfa9   :  { %v4713_v59 = vpack.c.bf16 %v4710_v31, %v4710_v31 }
 0xfad   :  { %9166 = vmatmul.mubr.msk.bf16.gmra.mrb[140].mxu1 %vm827_vm8, %v4713_v59 }
 0xfae   :  { %4990 = vmatprep.mubr.bf16.mxu1 %v10160_v22 }
0x1070   :  { %v4807_v46 = vpop.f32.mrb[132].mxu1 }
0x1071   :  { %v4829_v11 = vmin.f32 %v4807_v46, 20.0  ;;  %v9159_v56 = vpop.f32.mrb[133].mxu1 }
0x1072   :  { %v4810_v55 = vpop.f32.mrb[134].mxu1  ;;  %v8297_v56 = vcombine.low %v11618_v28, %v11618_v28 }
0x1073   :  { %v4834_v37 = vmul.f32 1.442695, %v4829_v11  ;;  %v4830_v61 = vmin.f32 %v4810_v55, 20.0  ;;  %v9160_v62 = vpop.f32.mrb[135].mxu1 }
0x1075   :  { %10103 = vpow2.f32 %v4834_v37  ;;  %v4836_v20 = vmul.f32 1.442695, %v4830_v61  ;;  %v9887_v61 = vld [vmem:[%s12480_s5 + $0x20] ss:$0 sps:$4 sm:$0x11]  }
0x1077   :  { %10105 = vpow2.f32 %v4836_v20 }
0x1078   :  { %v4815_v54 = vpop.f32.mrb[136].mxu1 }
0x1079   :  { %v4831_v33 = vmin.f32 %v4815_v54, 20.0  ;;  %v9163_v51 = vpop.f32.mrb[137].mxu1 }
0x107a   :  { %v4818_v5 = vpop.f32.mrb[138].mxu1 }
0x107b   :  { %v4838_v34 = vmul.f32 1.442695, %v4831_v33  ;;  %v4832_v39 = vmin.f32 %v4818_v5, 20.0  ;;  %v9164_v6 = vpop.f32.mrb[139].mxu1 }
0x107d   :  { %10107 = vpow2.f32 %v4838_v34  ;;  %v4840_v50 = vmul.f32 1.442695, %v4832_v39 }
0x107f   :  { %v10104_v1 = vpop.eup %10103  ;;  %10109 = vpow2.f32 %v4840_v50 }
0x1080   :  { %v4844_v40 = vadd.f32 1.0, %v10104_v1  ;;  %v11610_v49 = vpop.f32.mrb[140].mxu1 }
0x1081   :  { %v10106_v52 = vpop.eup %10105  ;;  %v4833_v32 = vmin.f32 %v11610_v49, 20.0  ;;  %v9167_v0 = vpop.f32.mrb[141].mxu1 }
0x1082   :  { %v4849_v27 = vmul.f32 %v4844_v40, %v4844_v40  ;;  %v4845_v60 = vadd.f32 1.0, %v10106_v52  ;;  %v4826_v9 = vpop.f32.mrb[142].mxu1 }
0x1083   :  { %v4842_v42 = vmul.f32 1.442695, %v4833_v32  ;;  %v9168_v10 = vpop.f32.mrb[143].mxu1  ;;  %v5112_v9 = vsel %vm1020_vm9, %v9887_v61, 0 }
0x1084   :  { %v4864_v30 = vadd.f32 1.0, %v4849_v27  ;;  %v4850_v8 = vmul.f32 %v4845_v60, %v4845_v60  ;;  %v8270_v29 = vadd.f32 -1.0, %v4849_v27  ;;  %v5106_v60 = vsel %vm1020_vm9, %v8297_v56, 0 }
0x1085   :  { %10111 = vpow2.f32 %v4842_v42 }
0x1086   :  { %10113 = vrcp.f32 %v4864_v30  ;;  %v4865_v43 = vadd.f32 1.0, %v4850_v8  ;;  %v8271_v15 = vadd.f32 -1.0, %v4850_v8  ;;  %v4859_v44 = vmul.f32 %v8270_v29, %v4807_v46 }
0x1087   :  { %v10108_v58 = vpop.eup %10107 }
0x1088   :  { %10115 = vrcp.f32 %v4865_v43  ;;  %v4846_v53 = vadd.f32 1.0, %v10108_v58  ;;  %v4860_v31 = vmul.f32 %v8271_v15, %v4810_v55 }
0x1089   :  { %v10110_v35 = vpop.eup %10109 }
0x108a   :  { %v4851_v26 = vmul.f32 %v4846_v53, %v4846_v53  ;;  %v4847_v14 = vadd.f32 1.0, %v10110_v35 }
0x108c   :  { %v4866_v13 = vadd.f32 1.0, %v4851_v26  ;;  %v4852_v19 = vmul.f32 %v4847_v14, %v4847_v14  ;;  %v8272_v24 = vadd.f32 -1.0, %v4851_v26 }
0x108e   :  { %10117 = vrcp.f32 %v4866_v13  ;;  %v4867_v18 = vadd.f32 1.0, %v4852_v19  ;;  %v8273_v12 = vadd.f32 -1.0, %v4852_v19  ;;  %v4861_v11 = vmul.f32 %v8272_v24, %v4815_v54  ;;  %v9881_v19 = vld [vmem:[%s12480_s5] ss:$12 sps:$4 sm:$0xff]  }
0x108f   :  { %v10112_v63 = vpop.eup %10111 }
0x1090   :  { %v10114_v2 = vpop.eup %10113  ;;  %10119 = vrcp.f32 %v4867_v18  ;;  %v4848_v23 = vadd.f32 1.0, %v10112_v63  ;;  %v4862_v55 = vmul.f32 %v8273_v12, %v4818_v5  ;;  %v8298_v5 = vcombine.high %v11618_v28, %v11618_v28  ;;  %v9884_v18 = vld [vmem:[%s12480_s5 + $0x8] ss:$12 sps:$4 sm:$0xff]  }
0x1091   :  { %v4874_v57 = vmul.f32 %v10114_v2, %v4859_v44 }
0x1092   :  { %v10116_v59 = vpop.eup %10115  ;;  %v4853_v21 = vmul.f32 %v4848_v23, %v4848_v23 }
0x1093   :  { %v4875_v47 = vmul.f32 %v10116_v59, %v4860_v31 }
0x1094   :  { %v4868_v36 = vadd.f32 1.0, %v4853_v21  ;;  %v8274_v37 = vadd.f32 -1.0, %v4853_v21 }
0x1095   :  { %v11613_v3 = vpack.c.bf16 %v4875_v47, %v4874_v57 }
0x1096   :  { %10121 = vrcp.f32 %v4868_v36  ;;  %v4863_v27 = vmul.f32 %v8274_v37, %v11610_v49 }
0x1097   :  { %v4895_v41 = vshrl.u32 %v11613_v3, 16  ;;  %v4897_v17 = vshll.u32 %v11613_v3, 16  ;;  %v5240_v42 = vrot.slane %v11613_v3, 1  ;;  %v5616_v35 = vrot.slane %v11613_v3, 2 }
0x1098   :  { %v10118_v46 = vpop.eup %10117  ;;  %v5992_v49 = vrot.slane %v11613_v3, 3 }
0x1099   :  { %v5425_v62 = vrot.slane %v4895_v41, 1  ;;  %v5426_v20 = vrot.slane %v4897_v17, 2  ;;  %v5801_v51 = vrot.slane %v4895_v41, 2  ;;  %v5802_v34 = vrot.slane %v4897_v17, 3 }
0x109a   :  { %v10120_v33 = vpop.eup %10119  ;;  %v6177_v39 = vrot.slane %v4895_v41, 3  ;;  %v6178_v6 = vrot.slane %v4897_v17, 4  ;;  %v4876_v50 = vmul.f32 %v10118_v46, %v4861_v11  ;;  %v4899_v54 = vrot.slane %v4897_v17, 1 }
0x109b   :  { %v4877_v1 = vmul.f32 %v10120_v33, %v4862_v55  ;;  %v5427_v40 = vor.u32 %v5426_v20, %v5425_v62  ;;  %v5803_v52 = vor.u32 %v5802_v34, %v5801_v51  ;;  %v9890_v62 = vld [vmem:[%s12480_s5 + $0x4c] ss:$12 sps:$4 sm:$0xff]  }
0x109c   :  { %v6179_v32 = vor.u32 %v6178_v6, %v6177_v39  ;;  %v4900_v53 = vor.u32 %v4899_v54, %v4895_v41 }
0x109d   :  { %v11627_v0 = vpack.c.bf16 %v4877_v1, %v4876_v50 }
0x109f   :  { %v4902_v10 = vshll.u32 %v11627_v0, 16  ;;  %v4906_v30 = vshrl.u32 %v11627_v0, 16  ;;  %v5241_v8 = vrot.slane %v11627_v0, 1  ;;  %v5617_v43 = vrot.slane %v11627_v0, 2 }
0x10a0   :  { %v10122_v58 = vpop.eup %10121  ;;  %v5993_v26 = vrot.slane %v11627_v0, 3 }
0x10a1   :  { %v4878_v14 = vmul.f32 %v10122_v58, %v4863_v27  ;;  %v4904_v13 = vrot.slane %v4902_v10, 1  ;;  %v11646_v29 = vsel %vm1313_vm10, %v5240_v42, %v5241_v8  ;;  %v5428_v15 = vrot.slane %v4906_v30, 1 }
0x10a2   :  { %v5429_v63 = vrot.slane %v4902_v10, 2  ;;  %v11652_v2 = vsel %vm1693_vm11, %v5616_v35, %v5617_v43  ;;  %v5804_v23 = vrot.slane %v4906_v30, 2  ;;  %v5805_v44 = vrot.slane %v4902_v10, 3 }
0x10a3   :  { %v11654_v31 = vpack.c.bf16 %v4878_v14, %v4878_v14  ;;  %v4905_v59 = vsel %vm963_vm12, %v4900_v53, %v4904_v13  ;;  %v4908_v21 = vor.u32 %v4906_v30, %v4904_v13  ;;  %v11658_v57 = vsel %vm837_vm7, %v5992_v49, %v5993_v26  ;;  %v9894_v53 = vld [vmem:[%s12480_s5 + $0x68] ss:$0 sps:$4 sm:$0x11]   ;;  %v9898_v14 = vld [vmem:[%s12480_s5 + $0x74] ss:$12 sps:$4 sm:$0xff]  }
0x10a4   :  { %8288 = vmatmul.mubr.msk.bf16.vlgmr.msra.gmra.mrb[144].mxu1 %vm1010_vm13, %v4905_v59  ;;  %9174 = vmatmul.mubr.msk.bf16.vlgmr.msra.gmra.mrb[196].mxu0 %vm1010_vm13, %v4905_v59  ;;  %v5430_v47 = vor.u32 %v5429_v63, %v5428_v15  ;;  %v5806_v24 = vor.u32 %v5805_v44, %v5804_v23  ;;  %v6180_v36 = vrot.slane %v4906_v30, 3  ;;  %v6181_v12 = vrot.slane %v4902_v10, 4  ;;  %v9888_v30 = vld [vmem:[%s12480_s5 + $0x48] ss:$12 sps:$4 sm:$0xff]   ;;  %v9902_v44 = vld [vmem:[%s12480_s5 + $0x90] ss:$12 sps:$4 sm:$0xff]  }
0x10a5   :  { %5000 = vmatprep.mubr.bf16.mxu1 %v10160_v22  ;;  %9177 = vmatprep.mubr.msk.bf16.mxu0 %vm10156_vm3, %v10155_v7  ;;  %v4910_v28 = vshll.u32 %v11654_v31, 16  ;;  %v4914_v41 = vshrl.u32 %v11654_v31, 16  ;;  %v11668_v17 = vrot.slane %v11654_v31, 1  ;;  %v11671_v46 = vrot.slane %v11654_v31, 2  ;;  %v9904_v23 = vld [vmem:[%s12480_s5 + $0x94] ss:$12 sps:$4 sm:$0xff]  }
0x10a6   :  { %5115 = vmatpush1.bf16.msra.mxu1 %v9881_v19  ;;  %9186 = vmatpush3.bf16.msra.mxu0 %v9884_v18  ;;  %v11674_v11 = vsel %vm1500_vm14, %v5427_v40, %v5430_v47  ;;  %v11677_v56 = vsel %vm1880_vm15, %v5803_v52, %v5806_v24  ;;  %v11680_v55 = vrot.slane %v11654_v31, 3  ;;  %v6182_v37 = vor.u32 %v6181_v12, %v6180_v36  ;;  %v9901_v15 = vld [vmem:[%s12480_s5 + $0x8c] ss:$0 sps:$4 sm:$0x11]   ;;  %v9911_v12 = vld [vmem:[%s12480_s5 + $0xb8] ss:$12 sps:$4 sm:$0xff]  }
0x10a7   :  { %v4912_v61 = vrot.slane %v4910_v28, 1  ;;  %8300 = vmatprep.subr.msk.bf16.mxu1 %vm1020_vm9, %v8298_v5  ;;  %9187 = vmatprep.subr.bf16.mxu0 %v10155_v7  ;;  %v11689_v20 = vsel %vm1313_vm10, %v5241_v8, %v11668_v17  ;;  %v11691_v33 = vrot.slane %v4914_v41, 1  ;;  %v5433_v51 = vrot.slane %v4910_v28, 2  ;;  %v9891_v8 = vld [vmem:[%s12480_s5 + $0x50] ss:$12 sps:$4 sm:$0xff]  }
0x10a8   :  { %v11695_v34 = vsel %vm1693_vm11, %v5617_v43, %v11671_v46  ;;  %v11697_v39 = vrot.slane %v4914_v41, 2  ;;  %v5809_v6 = vrot.slane %v4910_v28, 3  ;;  %v11701_v50 = vsel %vm837_vm7, %v5993_v26, %v11680_v55  ;;  %v9897_v26 = vld [vmem:[%s12480_s5 + $0x70] ss:$12 sps:$4 sm:$0xff]  }
0x10a9   :  { %v4913_v1 = vsel %vm963_vm12, %v4908_v21, %v4912_v61  ;;  %v5434_v40 = vor.u32 %v5433_v51, %v11691_v33  ;;  %v11706_v54 = vsel %vm12491_vm5, %v6179_v32, %v6182_v37  ;;  %v11708_v52 = vrot.slane %v4914_v41, 3  ;;  %v9915_v61 = vld [vmem:[%s12480_s5 + $0xd4] ss:$0 sps:$4 sm:$0x11]   ;;  %v9916_v51 = vld [vmem:[%s12480_s5 + $0xd8] ss:$12 sps:$4 sm:$0xff]  }
0x10aa   :  { %5117 = vmatpush1.bf16.msra.mxu1 %v5106_v60  ;;  %9188 = vmatpush3.bf16.msra.mxu0 %v5112_v9  ;;  %v5810_v5 = vor.u32 %v5809_v6, %v11697_v39  ;;  %v6185_v27 = vrot.slane %v4910_v28, 4  ;;  %v8311_v9 = vld [vmem:[%s12480_s5 + $0x60] sm:$0x11]  ;;  %v5285_v49 = vsel %vm1020_vm9, %v9894_v53, 0  ;;  %v5476_v63 = vsel %vm1020_vm9, %v9901_v15, 0 }
0x10ab   :  { %5287 = vmatprep.subr.bf16.mxu1 %v9890_v62  ;;  %9201 = vmatprep.subr.bf16.mxu0 %v10155_v7  ;;  %v11713_v42 = vsel %vm1500_vm14, %v5430_v47, %v5434_v40  ;;  %v8317_v43 = vcombine.high %v8311_v9, %v8311_v9  ;;  %v8316_v58 = vcombine.low %v8311_v9, %v8311_v9  ;;  %v9908_v47 = vld [vmem:[%s12480_s5 + $0xb0] ss:$0 sps:$4 sm:$0x11]   ;;  %vm12493_vm7 = vcmask 252928  }
0x10ac   :  { %8289 = vmatmul.mubr.msk.bf16.gmra.mrb[148].mxu1 %vm1010_vm13, %v4913_v1  ;;  %9178 = vmatmul.mubr.msk.bf16.gmra.mrb[200].mxu0 %vm1010_vm13, %v4913_v1  ;;  %v11718_v32 = vsel %vm1880_vm15, %v5806_v24, %v5810_v5  ;;  %v6186_v10 = vor.u32 %v6185_v27, %v11708_v52  ;;  %v5661_v36 = vsel %vm1020_vm9, %v9908_v47, 0  ;;  %v8368_v28 = vld [vmem:[%s12480_s5 + $0xcc] sm:$0x11]  ;;  %vm12494_vm8 = vmmov %vm12493_vm7 }
0x10ad   :  { %5010 = vmatprep.mubr.bf16.mxu1 %v10160_v22  ;;  %9181 = vmatprep.mubr.msk.bf16.mxu0 %vm10156_vm3, %v10155_v7  ;;  %v5279_v35 = vsel %vm1020_vm9, %v8316_v58, 0  ;;  %v9925_v27 = vld [vmem:[%s12480_s5 + $0x100] ss:$12 sps:$4 sm:$0xff]  }
0x10ae   :  { %v11725_v60 = vsel %vm12492_vm6, %v6182_v37, %v6186_v10  ;;  %v8373_v37 = vcombine.low %v8368_v28, %v8368_v28 }
0x10b0   :  { %v5846_v62 = vsel %vm1020_vm9, %v8373_v37, 0 }
0x10b4   :  { %8290 = vmatmul.mubr.msk.bf16.gmra.mrb[152].mxu1 %vm1010_vm13, %v4914_v41  ;;  %9182 = vmatmul.mubr.msk.bf16.gmra.mrb[204].mxu0 %vm1010_vm13, %v4914_v41  ;;  %v9909_v41 = vld [vmem:[%s12480_s5 + $0xb4] ss:$12 sps:$4 sm:$0xff]  }
0x10b5   :  { %5146 = vmatprep.mubr.bf16.mxu1 %v10160_v22  ;;  %9189 = vmatprep.mubr.msk.bf16.mxu0 %vm10156_vm3, %v10155_v7 }
0x10bc   :  { %8301 = vmatmul.mubr.msk.bf16.vlgmr.msra.gmra.mrb[144].mxu1 %vm1010_vm13, %v11613_v3  ;;  %9190 = vmatmul.mubr.msk.bf16.vlgmr.msra.gmra.mrb[208].mxu0 %vm1010_vm13, %v11613_v3  ;;  %v8330_v3 = vld [vmem:[%s12480_s5 + $0x84] sm:$0x11] }
0x10bd   :  { %5156 = vmatprep.mubr.bf16.mxu1 %v10160_v22  ;;  %9193 = vmatprep.mubr.msk.bf16.mxu0 %vm10156_vm3, %v10155_v7  ;;  %v8336_v13 = vcombine.high %v8330_v3, %v8330_v3  ;;  %v8335_v19 = vcombine.low %v8330_v3, %v8330_v3 }
0x10be   :  { %5288 = vmatpush1.bf16.msra.mxu1 %v9888_v30  ;;  %9202 = vmatpush3.bf16.msra.mxu0 %v9891_v8 }
0x10bf   :  { %8319 = vmatprep.subr.msk.bf16.mxu1 %vm1020_vm9, %v8317_v43  ;;  %9203 = vmatprep.subr.bf16.mxu0 %v10155_v7  ;;  %v5470_v18 = vsel %vm1020_vm9, %v8335_v19, 0 }
0x10c2   :  { %5290 = vmatpush1.bf16.msra.mxu1 %v5279_v35  ;;  %9204 = vmatpush3.bf16.msra.mxu0 %v5285_v49 }
0x10c3   :  { %5478 = vmatprep.subr.bf16.mxu1 %v9897_v26  ;;  %9217 = vmatprep.subr.bf16.mxu0 %v10155_v7 }
0x10c4   :  { %8302 = vmatmul.mubr.msk.bf16.gmra.mrb[148].mxu1 %vm1010_vm13, %v11627_v0  ;;  %9194 = vmatmul.mubr.msk.bf16.gmra.mrb[212].mxu0 %vm1010_vm13, %v11627_v0  ;;  %v9895_v0 = vld [vmem:[%s12480_s5 + $0x6c] ss:$12 sps:$4 sm:$0xff]  }
0x10c5   :  { %5166 = vmatprep.mubr.bf16.mxu1 %v10160_v22  ;;  %9197 = vmatprep.mubr.msk.bf16.mxu0 %vm10156_vm3, %v10155_v7 }
0x10cc   :  { %8303 = vmatmul.mubr.msk.bf16.gmra.mrb[156].mxu1 %vm1010_vm13, %v11654_v31  ;;  %9198 = vmatmul.mubr.msk.bf16.gmra.mrb[216].mxu0 %vm1010_vm13, %v11654_v31  ;;  %v9905_v31 = vld [vmem:[%s12480_s5 + $0x98] ss:$12 sps:$4 sm:$0xff]  }
0x10cd   :  { %5319 = vmatprep.mubr.bf16.mxu1 %v10160_v22  ;;  %9205 = vmatprep.mubr.msk.bf16.mxu0 %vm10156_vm3, %v10155_v7 }
0x10d4   :  { %8320 = vmatmul.mubr.msk.bf16.vlgmr.msra.gmra.mrb[144].mxu1 %vm1010_vm13, %v11646_v29  ;;  %9206 = vmatmul.mubr.msk.bf16.vlgmr.msra.gmra.mrb[220].mxu0 %vm1010_vm13, %v11646_v29  ;;  %v8349_v29 = vld [vmem:[%s12480_s5 + $0xa8] sm:$0x11] }
0x10d5   :  { %5329 = vmatprep.mubr.bf16.mxu1 %v10160_v22  ;;  %9209 = vmatprep.mubr.msk.bf16.mxu0 %vm10156_vm3, %v10155_v7  ;;  %v8355_v59 = vcombine.high %v8349_v29, %v8349_v29  ;;  %v8354_v21 = vcombine.low %v8349_v29, %v8349_v29 }
0x10d6   :  { %5479 = vmatpush1.bf16.msra.mxu1 %v9895_v0  ;;  %9218 = vmatpush3.bf16.msra.mxu0 %v9898_v14 }
0x10d7   :  { %8338 = vmatprep.subr.msk.bf16.mxu1 %vm1020_vm9, %v8336_v13  ;;  %9219 = vmatprep.subr.bf16.mxu0 %v10155_v7  ;;  %v5655_v24 = vsel %vm1020_vm9, %v8354_v21, 0 }
0x10da   :  { %5481 = vmatpush1.bf16.msra.mxu1 %v5470_v18  ;;  %9220 = vmatpush3.bf16.msra.mxu0 %v5476_v63 }
0x10db   :  { %5663 = vmatprep.subr.bf16.mxu1 %v9904_v23  ;;  %9233 = vmatprep.subr.bf16.mxu0 %v10155_v7 }
0x10dc   :  { %8321 = vmatmul.mubr.msk.bf16.gmra.mrb[148].mxu1 %vm1010_vm13, %v11689_v20  ;;  %9210 = vmatmul.mubr.msk.bf16.gmra.mrb[224].mxu0 %vm1010_vm13, %v11689_v20  ;;  %v5852_v20 = vsel %vm1020_vm9, %v9915_v61, 0 }
0x10dd   :  { %5339 = vmatprep.mubr.bf16.mxu1 %v10160_v22  ;;  %9213 = vmatprep.mubr.msk.bf16.mxu0 %vm10156_vm3, %v10155_v7 }
0x10e4   :  { %8322 = vmatmul.mubr.msk.bf16.gmra.mrb[160].mxu1 %vm1010_vm13, %v11668_v17  ;;  %9214 = vmatmul.mubr.msk.bf16.gmra.mrb[228].mxu0 %vm1010_vm13, %v11668_v17  ;;  %v9912_v17 = vld [vmem:[%s12480_s5 + $0xbc] ss:$12 sps:$4 sm:$0xff]  }
0x10e5   :  { %5510 = vmatprep.mubr.bf16.mxu1 %v10160_v22  ;;  %9221 = vmatprep.mubr.msk.bf16.mxu0 %vm10156_vm3, %v10155_v7 }
0x10ec   :  { %8339 = vmatmul.mubr.msk.bf16.vlgmr.msra.gmra.mrb[144].mxu1 %vm1010_vm13, %v11674_v11  ;;  %9222 = vmatmul.mubr.msk.bf16.vlgmr.msra.gmra.mrb[232].mxu0 %vm1010_vm13, %v11674_v11  ;;  %v8374_v11 = vcombine.high %v8368_v28, %v8368_v28 }
0x10ed   :  { %5520 = vmatprep.mubr.bf16.mxu1 %v10160_v22  ;;  %9225 = vmatprep.mubr.msk.bf16.mxu0 %vm10156_vm3, %v10155_v7 }
0x10ee   :  { %5664 = vmatpush1.bf16.msra.mxu1 %v9902_v44  ;;  %9234 = vmatpush3.bf16.msra.mxu0 %v9905_v31 }
0x10ef   :  { %8357 = vmatprep.subr.msk.bf16.mxu1 %vm1020_vm9, %v8355_v59  ;;  %9235 = vmatprep.subr.bf16.mxu0 %v10155_v7 }
0x10f2   :  { %5666 = vmatpush1.bf16.msra.mxu1 %v5655_v24  ;;  %9236 = vmatpush3.bf16.msra.mxu0 %v5661_v36 }
0x10f3   :  { %5854 = vmatprep.subr.bf16.mxu1 %v9911_v12  ;;  %9249 = vmatprep.subr.bf16.mxu0 %v10155_v7 }
0x10f4   :  { %8340 = vmatmul.mubr.msk.bf16.gmra.mrb[148].mxu1 %vm1010_vm13, %v11713_v42  ;;  %9226 = vmatmul.mubr.msk.bf16.gmra.mrb[236].mxu0 %vm1010_vm13, %v11713_v42  ;;  %v9923_v42 = vld [vmem:[%s12480_s5 + $0xfc] ss:$12 sps:$4 sm:$0xff]  }
0x10f5   :  { %5530 = vmatprep.mubr.bf16.mxu1 %v10160_v22  ;;  %9229 = vmatprep.mubr.msk.bf16.mxu0 %vm10156_vm3, %v10155_v7 }
0x10fc   :  { %8341 = vmatmul.mubr.msk.bf16.gmra.mrb[164].mxu1 %vm1010_vm13, %v11691_v33  ;;  %9230 = vmatmul.mubr.msk.bf16.gmra.mrb[240].mxu0 %vm1010_vm13, %v11691_v33  ;;  %v9918_v33 = vld [vmem:[%s12480_s5 + $0xdc] ss:$12 sps:$4 sm:$0xff]  }
0x10fd   :  { %5695 = vmatprep.mubr.bf16.mxu1 %v10160_v22  ;;  %9237 = vmatprep.mubr.msk.bf16.mxu0 %vm10156_vm3, %v10155_v7 }
0x1104   :  { %8358 = vmatmul.mubr.msk.bf16.vlgmr.msra.gmra.mrb[144].mxu1 %vm1010_vm13, %v11652_v2  ;;  %9238 = vmatmul.mubr.msk.bf16.vlgmr.msra.gmra.mrb[244].mxu0 %vm1010_vm13, %v11652_v2  ;;  %v8387_v2 = vld [vmem:[%s12480_s5 + $0xf0] sm:$0x11] }
0x1105   :  { %5705 = vmatprep.mubr.bf16.mxu1 %v10160_v22  ;;  %9241 = vmatprep.mubr.msk.bf16.mxu0 %vm10156_vm3, %v10155_v7  ;;  %v8393_v6 = vcombine.high %v8387_v2, %v8387_v2  ;;  %v8392_v1 = vcombine.low %v8387_v2, %v8387_v2 }
0x1106   :  { %5855 = vmatpush1.bf16.msra.mxu1 %v9909_v41  ;;  %9250 = vmatpush3.bf16.msra.mxu0 %v9912_v17 }
0x1107   :  { %8376 = vmatprep.subr.msk.bf16.mxu1 %vm1020_vm9, %v8374_v11  ;;  %9251 = vmatprep.subr.bf16.mxu0 %v10155_v7  ;;  %v6031_v40 = vsel %vm1020_vm9, %v8392_v1, 0 }
0x110a   :  { %5857 = vmatpush1.bf16.msra.mxu1 %v5846_v62  ;;  %9252 = vmatpush3.bf16.msra.mxu0 %v5852_v20 }
0x110b   :  { %6039 = vmatprep.subr.bf16.mxu1 %v9918_v33  ;;  %9265 = vmatprep.subr.bf16.mxu0 %v10155_v7 }
0x110c   :  { %8359 = vmatmul.mubr.msk.bf16.gmra.mrb[148].mxu1 %vm1010_vm13, %v11695_v34  ;;  %9242 = vmatmul.mubr.msk.bf16.gmra.mrb[248].mxu0 %vm1010_vm13, %v11695_v34  ;;  %v9919_v34 = vld [vmem:[%s12480_s5 + $0xe0] ss:$12 sps:$4 sm:$0xff]  }
0x110d   :  { %5715 = vmatprep.mubr.bf16.mxu1 %v10160_v22  ;;  %9245 = vmatprep.mubr.msk.bf16.mxu0 %vm10156_vm3, %v10155_v7 }
0x1114   :  { %8360 = vmatmul.mubr.msk.bf16.gmra.mrb[168].mxu1 %vm1010_vm13, %v11671_v46  ;;  %9246 = vmatmul.mubr.msk.bf16.gmra.mrb[252].mxu0 %vm1010_vm13, %v11671_v46  ;;  %v9922_v46 = vld [vmem:[%s12480_s5 + $0xf8] ss:$0 sps:$4 sm:$0x11]  }
0x1115   :  { %5886 = vmatprep.mubr.bf16.mxu1 %v10160_v22  ;;  %9253 = vmatprep.mubr.msk.bf16.mxu0 %vm10156_vm3, %v10155_v7  ;;  %v6037_v5 = vsel %vm1020_vm9, %v9922_v46, 0 }
0x111c   :  { %8377 = vmatmul.mubr.msk.bf16.vlgmr.msra.gmra.mrb[144].mxu1 %vm1010_vm13, %v11677_v56  ;;  %9254 = vmatmul.mubr.msk.bf16.vlgmr.msra.gmra.mrb[0].mxu0 %vm1010_vm13, %v11677_v56  ;;  %v8406_v56 = vld [vmem:[%s12480_s5 + $0x114] sm:$0x11] }
0x111d   :  { %5896 = vmatprep.mubr.bf16.mxu1 %v10160_v22  ;;  %9257 = vmatprep.mubr.msk.bf16.mxu0 %vm10156_vm3, %v10155_v7  ;;  %v8412_v10 = vcombine.high %v8406_v56, %v8406_v56  ;;  %v8411_v9 = vcombine.low %v8406_v56, %v8406_v56 }
0x111e   :  { %6040 = vmatpush1.bf16.msra.mxu1 %v9916_v51  ;;  %9266 = vmatpush3.bf16.msra.mxu0 %v9919_v34 }
0x111f   :  { %8395 = vmatprep.subr.msk.bf16.mxu1 %vm1020_vm9, %v8393_v6  ;;  %9267 = vmatprep.subr.bf16.mxu0 %v10155_v7  ;;  %v6222_v30 = vsel %vm1020_vm9, %v8411_v9, 0 }
0x1122   :  { %6042 = vmatpush1.bf16.msra.mxu1 %v6031_v40  ;;  %9268 = vmatpush3.bf16.msra.mxu0 %v6037_v5 }
0x1123   :  { %6230 = vmatprep.subr.bf16.mxu1 %v9925_v27  ;;  %9281 = vmatprep.subr.bf16.mxu0 %v10155_v7 }
0x1124   :  { %8378 = vmatmul.mubr.msk.bf16.gmra.mrb[148].mxu1 %vm1010_vm13, %v11718_v32  ;;  %9258 = vmatmul.mubr.msk.bf16.gmra.mrb[4].mxu0 %vm1010_vm13, %v11718_v32  ;;  %v9926_v32 = vld [vmem:[%s12480_s5 + $0x104] ss:$12 sps:$4 sm:$0xff]  }
0x1125   :  { %5906 = vmatprep.mubr.bf16.mxu1 %v10160_v22  ;;  %9261 = vmatprep.mubr.msk.bf16.mxu0 %vm10156_vm3, %v10155_v7 }
0x112c   :  { %8379 = vmatmul.mubr.msk.bf16.gmra.mrb[172].mxu1 %vm1010_vm13, %v11697_v39  ;;  %9262 = vmatmul.mubr.msk.bf16.gmra.mrb[8].mxu0 %vm1010_vm13, %v11697_v39  ;;  %v9929_v39 = vld [vmem:[%s12480_s5 + $0x11c] ss:$0 sps:$4 sm:$0x11]  }
0x112d   :  { %6071 = vmatprep.mubr.bf16.mxu1 %v10160_v22  ;;  %9269 = vmatprep.mubr.msk.bf16.mxu0 %vm10156_vm3, %v10155_v7  ;;  %v6228_v8 = vsel %vm1020_vm9, %v9929_v39, 0 }
0x1134   :  { %8396 = vmatmul.mubr.msk.bf16.vlgmr.msra.gmra.mrb[144].mxu1 %vm1010_vm13, %v11658_v57  ;;  %9270 = vmatmul.mubr.msk.bf16.vlgmr.msra.gmra.mrb[12].mxu0 %vm1010_vm13, %v11658_v57 }
0x1135   :  { %6081 = vmatprep.mubr.bf16.mxu1 %v10160_v22  ;;  %9273 = vmatprep.mubr.msk.bf16.mxu0 %vm10156_vm3, %v10155_v7 }
0x1136   :  { %6231 = vmatpush1.bf16.msra.mxu1 %v9923_v42  ;;  %9282 = vmatpush3.bf16.msra.mxu0 %v9926_v32 }
0x1137   :  { %8414 = vmatprep.subr.msk.bf16.mxu1 %vm1020_vm9, %v8412_v10  ;;  %9283 = vmatprep.subr.bf16.mxu0 %v10155_v7 }
0x113a   :  { %6233 = vmatpush1.bf16.msra.mxu1 %v6222_v30  ;;  %9284 = vmatpush3.bf16.msra.mxu0 %v6228_v8 }
0x113b   :  { %9297 = vmatprep.subr.bf16.mxu0 %v10155_v7 }
0x113c   :  { %8397 = vmatmul.mubr.msk.bf16.gmra.mrb[148].mxu1 %vm1010_vm13, %v11701_v50  ;;  %9274 = vmatmul.mubr.msk.bf16.gmra.mrb[16].mxu0 %vm1010_vm13, %v11701_v50 }
0x113d   :  { %6091 = vmatprep.mubr.bf16.mxu1 %v10160_v22  ;;  %9277 = vmatprep.mubr.msk.bf16.mxu0 %vm10156_vm3, %v10155_v7 }
0x1144   :  { %8398 = vmatmul.mubr.msk.bf16.gmra.mrb[176].mxu1 %vm1010_vm13, %v11680_v55  ;;  %9278 = vmatmul.mubr.msk.bf16.gmra.mrb[20].mxu0 %vm1010_vm13, %v11680_v55 }
0x1145   :  { %6262 = vmatprep.mubr.bf16.mxu1 %v10160_v22  ;;  %9285 = vmatprep.mubr.msk.bf16.mxu0 %vm10156_vm3, %v10155_v7 }
0x114c   :  { %8415 = vmatmul.mubr.msk.bf16.vlgmr.msra.gmra.mrb[144].mxu1 %vm1010_vm13, %v11706_v54  ;;  %9286 = vmatmul.mubr.msk.bf16.vlgmr.msra.gmra.mrb[24].mxu0 %vm1010_vm13, %v11706_v54 }
0x114d   :  { %6272 = vmatprep.mubr.bf16.mxu1 %v10160_v22  ;;  %9289 = vmatprep.mubr.msk.bf16.mxu0 %vm10156_vm3, %v10155_v7 }
0x1154   :  { %8416 = vmatmul.mubr.msk.bf16.gmra.mrb[148].mxu1 %vm1010_vm13, %v11725_v60  ;;  %9290 = vmatmul.mubr.msk.bf16.gmra.mrb[28].mxu0 %vm1010_vm13, %v11725_v60 }
0x1155   :  { %6282 = vmatprep.mubr.bf16.mxu1 %v10160_v22  ;;  %9293 = vmatprep.mubr.msk.bf16.mxu0 %vm10156_vm3, %v10155_v7 }
0x115c   :  { %8417 = vmatmul.mubr.msk.bf16.gmra.mrb[180].mxu1 %vm1010_vm13, %v11708_v52  ;;  %9294 = vmatmul.mubr.msk.bf16.gmra.mrb[32].mxu0 %vm1010_vm13, %v11708_v52 }
0x115d   :  { %6562 = vmatprep.mubr.bf16.mxu1 %v10160_v22  ;;  %9301 = vmatprep.mubr.msk.bf16.mxu0 %vm10156_vm3, %v10155_v7 }
0x1177   :  { %v5053_v57 = vpop.f32.mrb[196].mxu0 }
0x1178   :  { %v9175_v55 = vpop.f32.mrb[197].mxu0 }
0x1179   :  { %v5056_v50 = vpop.f32.mrb[198].mxu0 }
0x117a   :  { %v9176_v54 = vpop.f32.mrb[199].mxu0 }
0x117f   :  { %v5061_v60 = vpop.f32.mrb[200].mxu0 }
0x1180   :  { %v9179_v43 = vpop.f32.mrb[201].mxu0 }
0x1181   :  { %v5064_v58 = vpop.f32.mrb[202].mxu0 }
0x1182   :  { %v9180_v53 = vpop.f32.mrb[203].mxu0 }
0x1187   :  { %v5012_v35 = vpop.f32.mrb[152].mxu1  ;;  %v5069_v49 = vpop.f32.mrb[204].mxu0 }
0x1188   :  { %v5014_v26 = vpop.f32.mrb[153].mxu1  ;;  %v9183_v3 = vpop.f32.mrb[205].mxu0 }
0x1189   :  { %v5016_v0 = vpop.f32.mrb[154].mxu1  ;;  %v5072_v14 = vpop.f32.mrb[206].mxu0 }
0x118a   :  { %v5017_v52 = vpop.f32.mrb[155].mxu1  ;;  %v9184_v13 = vpop.f32.mrb[207].mxu0 }
0x118f   :  { %v5209_v19 = vpop.f32.mrb[208].mxu0 }
0x1190   :  { %v5210_v15 = vadd.f32 %v5209_v19, %v5053_v57  ;;  %v9191_v18 = vpop.f32.mrb[209].mxu0 }
0x1191   :  { %v5212_v63 = vpop.f32.mrb[210].mxu0 }
0x1192   :  { %v5213_v23 = vadd.f32 %v5212_v63, %v5056_v50  ;;  %v9192_v29 = vpop.f32.mrb[211].mxu0 }
0x1197   :  { %v5217_v44 = vpop.f32.mrb[212].mxu0 }
0x1198   :  { %v5218_v31 = vadd.f32 %v5217_v44, %v5061_v60  ;;  %v9195_v59 = vpop.f32.mrb[213].mxu0 }
0x1199   :  { %v5220_v21 = vpop.f32.mrb[214].mxu0 }
0x119a   :  { %v5221_v47 = vadd.f32 %v5220_v21, %v5064_v58  ;;  %v9196_v24 = vpop.f32.mrb[215].mxu0 }
0x119f   :  { %v5168_v36 = vpop.f32.mrb[156].mxu1  ;;  %v5225_v12 = vpop.f32.mrb[216].mxu0 }
0x11a0   :  { %v5169_v28 = vadd.f32 %v5168_v36, %v5012_v35  ;;  %v5226_v41 = vadd.f32 %v5225_v12, %v5069_v49  ;;  %v5170_v17 = vpop.f32.mrb[157].mxu1  ;;  %v9199_v11 = vpop.f32.mrb[217].mxu0 }
0x11a1   :  { %v5171_v37 = vadd.f32 %v5170_v17, %v5014_v26  ;;  %v5172_v61 = vpop.f32.mrb[158].mxu1  ;;  %v5228_v62 = vpop.f32.mrb[218].mxu0 }
0x11a2   :  { %v5173_v20 = vpop.f32.mrb[159].mxu1  ;;  %v9200_v33 = vpop.f32.mrb[219].mxu0 }
0x11a7   :  { %v5382_v2 = vpop.f32.mrb[220].mxu0 }
0x11a8   :  { %v5406_v51 = vadd.f32 %v5382_v2, %v5210_v15  ;;  %v9207_v34 = vpop.f32.mrb[221].mxu0 }
0x11a9   :  { %v5385_v6 = vpop.f32.mrb[222].mxu0 }
0x11aa   :  { %v5409_v1 = vadd.f32 %v5385_v6, %v5213_v23  ;;  %v9208_v46 = vpop.f32.mrb[223].mxu0 }
0x11af   :  { %v5390_v40 = vpop.f32.mrb[224].mxu0 }
0x11b0   :  { %v5412_v5 = vadd.f32 %v5390_v40, %v5218_v31  ;;  %v9211_v27 = vpop.f32.mrb[225].mxu0 }
0x11b1   :  { %v5393_v56 = vpop.f32.mrb[226].mxu0 }
0x11b2   :  { %v5415_v42 = vadd.f32 %v5393_v56, %v5221_v47  ;;  %v9212_v32 = vpop.f32.mrb[227].mxu0 }
0x11b7   :  { %v5341_v10 = vpop.f32.mrb[160].mxu1  ;;  %v5398_v9 = vpop.f32.mrb[228].mxu0 }
0x11b8   :  { %v5416_v39 = vadd.f32 %v5341_v10, %v5169_v28  ;;  %v5418_v30 = vadd.f32 %v5398_v9, %v5226_v41  ;;  %v5343_v8 = vpop.f32.mrb[161].mxu1  ;;  %v9215_v57 = vpop.f32.mrb[229].mxu0 }
0x11b9   :  { %v5417_v55 = vadd.f32 %v5343_v8, %v5171_v37  ;;  %v5345_v50 = vpop.f32.mrb[162].mxu1  ;;  %v5401_v54 = vpop.f32.mrb[230].mxu0 }
0x11ba   :  { %v5346_v60 = vpop.f32.mrb[163].mxu1  ;;  %v9216_v43 = vpop.f32.mrb[231].mxu0 }
0x11bf   :  { %v5573_v58 = vpop.f32.mrb[232].mxu0 }
0x11c0   :  { %v5597_v53 = vadd.f32 %v5573_v58, %v5406_v51  ;;  %v9223_v35 = vpop.f32.mrb[233].mxu0 }
0x11c1   :  { %v5576_v49 = vpop.f32.mrb[234].mxu0 }
0x11c2   :  { %v5600_v26 = vadd.f32 %v5576_v49, %v5409_v1  ;;  %v9224_v3 = vpop.f32.mrb[235].mxu0 }
0x11c7   :  { %v5581_v0 = vpop.f32.mrb[236].mxu0 }
0x11c8   :  { %v5603_v14 = vadd.f32 %v5581_v0, %v5412_v5  ;;  %v9227_v52 = vpop.f32.mrb[237].mxu0 }
0x11c9   :  { %v5584_v13 = vpop.f32.mrb[238].mxu0 }
0x11ca   :  { %v5606_v19 = vadd.f32 %v5584_v13, %v5415_v42  ;;  %v9228_v15 = vpop.f32.mrb[239].mxu0 }
0x11cf   :  { %v5532_v18 = vpop.f32.mrb[164].mxu1  ;;  %v5589_v63 = vpop.f32.mrb[240].mxu0 }
0x11d0   :  { %v5607_v23 = vadd.f32 %v5532_v18, %v5416_v39  ;;  %v5609_v29 = vadd.f32 %v5589_v63, %v5418_v30  ;;  %v5534_v44 = vpop.f32.mrb[165].mxu1  ;;  %v9231_v31 = vpop.f32.mrb[241].mxu0 }
0x11d1   :  { %v5608_v59 = vadd.f32 %v5534_v44, %v5417_v55  ;;  %v5536_v21 = vpop.f32.mrb[166].mxu1  ;;  %v5592_v47 = vpop.f32.mrb[242].mxu0 }
0x11d2   :  { %v5537_v24 = vpop.f32.mrb[167].mxu1  ;;  %v9232_v36 = vpop.f32.mrb[243].mxu0 }
0x11d7   :  { %v5758_v12 = vpop.f32.mrb[244].mxu0 }
0x11d8   :  { %v5782_v28 = vadd.f32 %v5758_v12, %v5597_v53  ;;  %v9239_v41 = vpop.f32.mrb[245].mxu0 }
0x11d9   :  { %v5761_v17 = vpop.f32.mrb[246].mxu0 }
0x11da   :  { %v5785_v11 = vadd.f32 %v5761_v17, %v5600_v26  ;;  %v9240_v37 = vpop.f32.mrb[247].mxu0 }
0x11df   :  { %v5766_v61 = vpop.f32.mrb[248].mxu0 }
0x11e0   :  { %v5788_v62 = vadd.f32 %v5766_v61, %v5603_v14  ;;  %v9243_v20 = vpop.f32.mrb[249].mxu0 }
0x11e1   :  { %v5769_v33 = vpop.f32.mrb[250].mxu0 }
0x11e2   :  { %v5791_v2 = vadd.f32 %v5769_v33, %v5606_v19  ;;  %v9244_v51 = vpop.f32.mrb[251].mxu0 }
0x11e3   :  { %v6362_v51 = vld [vmem:[%s12482_s8] sm:$0x7] }
0x11e7   :  { %v5717_v34 = vpop.f32.mrb[168].mxu1  ;;  %v5774_v6 = vpop.f32.mrb[252].mxu0 }
0x11e8   :  { %v5792_v1 = vadd.f32 %v5717_v34, %v5607_v23  ;;  %v5794_v46 = vadd.f32 %v5774_v6, %v5609_v29  ;;  %v5719_v40 = vpop.f32.mrb[169].mxu1  ;;  %v9247_v5 = vpop.f32.mrb[253].mxu0 }
0x11e9   :  { %v5793_v27 = vadd.f32 %v5719_v40, %v5608_v59  ;;  %v5721_v56 = vpop.f32.mrb[170].mxu1  ;;  %v5777_v42 = vpop.f32.mrb[254].mxu0  ;;  %v12017_v40 = vrot.slane %v6362_v51, %v2458_v48 }
0x11ea   :  { %v5722_v32 = vpop.f32.mrb[171].mxu1  ;;  %v9248_v10 = vpop.f32.mrb[255].mxu0 }
0x11ef   :  { %v5949_v9 = vpop.f32.mrb[0].mxu0 }
0x11f0   :  { %v5973_v39 = vadd.f32 %v5949_v9, %v5782_v28  ;;  %v9255_v30 = vpop.f32.mrb[1].mxu0 }
0x11f1   :  { %v5952_v8 = vpop.f32.mrb[2].mxu0 }
0x11f2   :  { %v5976_v57 = vadd.f32 %v5952_v8, %v5785_v11  ;;  %v9256_v55 = vpop.f32.mrb[3].mxu0 }
0x11f7   :  { %v5957_v50 = vpop.f32.mrb[4].mxu0 }
0x11f8   :  { %v5979_v54 = vadd.f32 %v5957_v50, %v5788_v62  ;;  %v9259_v60 = vpop.f32.mrb[5].mxu0 }
0x11f9   :  { %v5960_v43 = vpop.f32.mrb[6].mxu0 }
0x11fa   :  { %v5982_v58 = vadd.f32 %v5960_v43, %v5791_v2  ;;  %v9260_v53 = vpop.f32.mrb[7].mxu0 }
0x11ff   :  { %v5908_v35 = vpop.f32.mrb[172].mxu1  ;;  %v5965_v49 = vpop.f32.mrb[8].mxu0 }
0x1200   :  { %v5983_v26 = vadd.f32 %v5908_v35, %v5792_v1  ;;  %v5985_v3 = vadd.f32 %v5965_v49, %v5794_v46  ;;  %v5910_v0 = vpop.f32.mrb[173].mxu1  ;;  %v9263_v14 = vpop.f32.mrb[9].mxu0  ;;  %v12009_v1 = vrot.slane %v6362_v51, %v2450_v38  ;;  %v12013_v46 = vrot.slane %v6362_v51, %v2454_v45 }
0x1201   :  { %v5984_v52 = vadd.f32 %v5910_v0, %v5793_v27  ;;  %v5912_v13 = vpop.f32.mrb[174].mxu1  ;;  %v5968_v19 = vpop.f32.mrb[10].mxu0 }
0x1202   :  { %v5913_v15 = vpop.f32.mrb[175].mxu1  ;;  %v9264_v18 = vpop.f32.mrb[11].mxu0 }
0x1207   :  { %v6134_v63 = vpop.f32.mrb[12].mxu0 }
0x1208   :  { %v6158_v23 = vadd.f32 %v6134_v63, %v5973_v39  ;;  %v9271_v29 = vpop.f32.mrb[13].mxu0 }
0x1209   :  { %v6137_v44 = vpop.f32.mrb[14].mxu0 }
0x120a   :  { %v6161_v31 = vadd.f32 %v6137_v44, %v5976_v57  ;;  %v9272_v59 = vpop.f32.mrb[15].mxu0 }
0x120f   :  { %v6142_v21 = vpop.f32.mrb[16].mxu0 }
0x1210   :  { %v6164_v47 = vadd.f32 %v6142_v21, %v5979_v54  ;;  %v9275_v24 = vpop.f32.mrb[17].mxu0 }
0x1211   :  { %v6145_v36 = vpop.f32.mrb[18].mxu0 }
0x1212   :  { %v11996_v12 = vadd.f32 %v6145_v36, %v5982_v58  ;;  %v9276_v28 = vpop.f32.mrb[19].mxu0 }
0x1217   :  { %v6093_v41 = vpop.f32.mrb[176].mxu1  ;;  %v6150_v17 = vpop.f32.mrb[20].mxu0 }
0x1218   :  { %v11998_v11 = vadd.f32 %v6093_v41, %v5983_v26  ;;  %v12000_v37 = vadd.f32 %v6150_v17, %v5985_v3  ;;  %v6095_v61 = vpop.f32.mrb[177].mxu1  ;;  %v9279_v62 = vpop.f32.mrb[21].mxu0 }
0x1219   :  { %v12002_v20 = vadd.f32 %v6095_v61, %v5984_v52  ;;  %v6097_v33 = vpop.f32.mrb[178].mxu1  ;;  %v6153_v2 = vpop.f32.mrb[22].mxu0 }
0x121a   :  { %v6098_v34 = vpop.f32.mrb[179].mxu1  ;;  %v9280_v6 = vpop.f32.mrb[23].mxu0 }
0x121f   :  { %v6264_v5 = vpop.f32.mrb[144].mxu1  ;;  %v6325_v27 = vpop.f32.mrb[24].mxu0 }
0x1220   :  { %v6379_v56 = vadd.f32 %v12009_v1, %v6264_v5  ;;  %v6349_v42 = vadd.f32 %v6325_v27, %v6158_v23  ;;  %v6266_v32 = vpop.f32.mrb[145].mxu1  ;;  %v9287_v10 = vpop.f32.mrb[25].mxu0 }
0x1221   :  { %v12021_v9 = vadd.f32 %v12013_v46, %v6266_v32  ;;  %v6268_v38 = vpop.f32.mrb[146].mxu1  ;;  %v6328_v39 = vpop.f32.mrb[26].mxu0 }
0x1222   :  { %v12024_v30 = vadd.f32 %v12017_v40, %v6349_v42  ;;  %v12027_v45 = vadd.f32 %v12009_v1, %v6268_v38  ;;  %v6270_v16 = vpop.f32.mrb[147].mxu1  ;;  %v9288_v48 = vpop.f32.mrb[27].mxu0  ;;  %v6406_v8 = vrot.slane %v6379_v56, 1  ;;  %v6352_v57 = vadd.f32 %v6328_v39, %v6161_v31 }
0x1223   :  { %v12030_v55 = vadd.f32 %v12013_v46, %v6270_v16  ;;  %v6454_v50 = vrot.slane %v6379_v56, 2  ;;  %v6409_v54 = vrot.slane %v12021_v9, 1  ;;  %v6457_v58 = vrot.slane %v12021_v9, 2 }
0x1224   :  { %v6407_v60 = vrot.slane %v12027_v45, 1  ;;  %v6455_v43 = vrot.slane %v12027_v45, 2  ;;  %v12037_v53 = vadd.f32 %v12017_v40, %v6352_v57  ;;  %v6412_v26 = vrot.slane %v12024_v30, 1 }
0x1225   :  { %v6410_v35 = vrot.slane %v12030_v55, 1  ;;  %v6458_v49 = vrot.slane %v12030_v55, 2  ;;  %v6460_v3 = vrot.slane %v12024_v30, 2 }
0x1226   :  { %v6408_v0 = vsel %vm1313_vm10, %v6406_v8, %v6407_v60  ;;  %v6456_v14 = vsel %vm1693_vm11, %v6454_v50, %v6455_v43  ;;  %v6413_v13 = vrot.slane %v12037_v53, 1  ;;  %v6461_v19 = vrot.slane %v12037_v53, 2 }
0x1227   :  { %v6439_v52 = vmax.f32 %v6379_v56, %v6408_v0  ;;  %v6274_v15 = vpop.f32.mrb[148].mxu1  ;;  %v6333_v18 = vpop.f32.mrb[28].mxu0  ;;  %v12048_v63 = vsel %vm1313_vm10, %v6409_v54, %v6410_v35  ;;  %v6459_v21 = vsel %vm1693_vm11, %v6457_v58, %v6458_v49 }
0x1228   :  { %v6385_v23 = vadd.f32 %v12009_v1, %v6274_v15  ;;  %v6355_v29 = vadd.f32 %v6333_v18, %v6164_v47  ;;  %v6276_v44 = vpop.f32.mrb[149].mxu1  ;;  %v9291_v31 = vpop.f32.mrb[29].mxu0  ;;  %v6440_v59 = vmax.f32 %v12021_v9, %v12048_v63  ;;  %v12057_v24 = vsel %vm1313_vm10, %v6412_v26, %v6413_v13 }
0x1229   :  { %v12060_v36 = vadd.f32 %v12013_v46, %v6276_v44  ;;  %v6278_v28 = vpop.f32.mrb[150].mxu1  ;;  %v6336_v41 = vpop.f32.mrb[30].mxu0  ;;  %v12062_v17 = vmax.f32 %v6439_v52, %v6456_v14  ;;  %v12067_v47 = vsel %vm1693_vm11, %v6460_v3, %v6461_v19 }
0x122a   :  { %v6415_v61 = vrot.slane %v6385_v23, 1  ;;  %v6463_v62 = vrot.slane %v6385_v23, 2  ;;  %v12070_v33 = vadd.f32 %v12017_v40, %v6355_v29  ;;  %v6388_v2 = vadd.f32 %v12009_v1, %v6278_v28  ;;  %v6280_v51 = vpop.f32.mrb[151].mxu1  ;;  %v9292_v34 = vpop.f32.mrb[31].mxu0 }
0x122b   :  { %v6417_v6 = vrot.slane %v12060_v36, 1  ;;  %v6465_v5 = vrot.slane %v12060_v36, 2  ;;  %v6358_v27 = vadd.f32 %v6336_v41, %v11996_v12  ;;  %v12077_v56 = vadd.f32 %v12013_v46, %v6280_v51 }
0x122c   :  { %v6416_v42 = vsel %vm1313_vm10, %v6407_v60, %v6415_v61  ;;  %v6464_v32 = vsel %vm1693_vm11, %v6455_v43, %v6463_v62  ;;  %v6419_v10 = vrot.slane %v12070_v33, 1  ;;  %v6467_v9 = vrot.slane %v12070_v33, 2 }
0x122d   :  { %v6442_v38 = vmax.f32 %v12027_v45, %v6416_v42  ;;  %v6421_v39 = vrot.slane %v6388_v2, 1  ;;  %v6469_v16 = vrot.slane %v6388_v2, 2  ;;  %v6390_v48 = vadd.f32 %v12017_v40, %v6358_v27 }
0x122e   :  { %v6420_v8 = vsel %vm1313_vm10, %v6413_v13, %v6419_v10  ;;  %v6423_v12 = vrot.slane %v12077_v56, 1  ;;  %v6471_v57 = vrot.slane %v12077_v56, 2  ;;  %v6418_v50 = vsel %vm1313_vm10, %v6410_v35, %v6417_v6 }
0x122f   :  { %v6422_v54 = vsel %vm1313_vm10, %v6415_v61, %v6421_v39  ;;  %v6448_v60 = vmax.f32 %v6388_v2, %v6421_v39  ;;  %v6470_v43 = vsel %vm1693_vm11, %v6463_v62, %v6469_v16  ;;  %v6425_v58 = vrot.slane %v6390_v48, 1  ;;  %v6284_v26 = vpop.f32.mrb[180].mxu1  ;;  %v6341_v45 = vpop.f32.mrb[32].mxu0 }
0x1230   :  { %v6445_v3 = vmax.f32 %v6385_v23, %v6422_v54  ;;  %v6473_v0 = vrot.slane %v6390_v48, 2  ;;  %v6424_v14 = vsel %vm1313_vm10, %v6417_v6, %v6423_v12  ;;  %v6449_v52 = vmax.f32 %v12077_v56, %v6423_v12  ;;  %v6286_v13 = vpop.f32.mrb[181].mxu1  ;;  %v9295_v15 = vpop.f32.mrb[33].mxu0 }
0x1231   :  { %v6426_v18 = vsel %vm1313_vm10, %v6419_v10, %v6425_v58  ;;  %v6450_v63 = vmax.f32 %v6390_v48, %v6425_v58  ;;  %v6359_v35 = vadd.f32 %v6284_v26, %v11998_v11  ;;  %v6361_v29 = vadd.f32 %v6341_v45, %v12000_v37  ;;  %v6288_v44 = vpop.f32.mrb[182].mxu1  ;;  %v6344_v31 = vpop.f32.mrb[34].mxu0  ;;  %v12184_v15 = vld [vmem:[%s12483_s7 + $0x24] sm:$0xff]  }
0x1232   :  { %v6499_v28 = vmax.f32 %v6445_v3, %v6470_v43  ;;  %v6447_v41 = vmax.f32 %v12070_v33, %v6426_v18  ;;  %v6474_v23 = vsel %vm1693_vm11, %v6467_v9, %v6473_v0  ;;  %v6360_v61 = vadd.f32 %v6286_v13, %v12002_v20  ;;  %v6289_v62 = vpop.f32.mrb[183].mxu1  ;;  %v9296_v2 = vpop.f32.mrb[35].mxu0  ;;  %v12179_v13 = vld [vmem:[%s12483_s7 + $0x10] sm:$0xff]   ;;  %v9936_v18 = vld [vmem:[%s12483_s7 + $0x18] ss:$0 sps:$4 sm:$0x11]  }
0x1233   :  { %v6391_v51 = vadd.f32 %v12009_v1, %v6359_v35  ;;  %v6393_v34 = vadd.f32 %v12017_v40, %v6361_v29  ;;  %v6443_v6 = vmax.f32 %v12030_v55, %v6418_v50  ;;  %v6466_v11 = vsel %vm1693_vm11, %v6458_v49, %v6465_v5  ;;  %v12199_v35 = vld [vmem:[%s12483_s7 + $0x2c] sm:$0xff]   ;;  %v9938_v29 = vld [vmem:[%s12483_s7 + $0x34] ss:$0 sps:$4 sm:$0x11]  }
0x1234   :  { %v6392_v37 = vadd.f32 %v12013_v46, %v6360_v61  ;;  %v6494_v33 = vmax.f32 %v6440_v59, %v6459_v21  ;;  %v6496_v27 = vmax.f32 %v6442_v38, %v6464_v32  ;;  %v6441_v20 = vmax.f32 %v12024_v30, %v12057_v24 }
0x1235   :  { %v6475_v56 = vrot.slane %v6391_v51, 2  ;;  %v6479_v42 = vrot.slane %v6393_v34, 2  ;;  %v6497_v1 = vmax.f32 %v6443_v6, %v6466_v11  ;;  %v6444_v40 = vmax.f32 %v12037_v53, %v6420_v8 }
0x1236   :  { %v6477_v10 = vrot.slane %v6392_v37, 2  ;;  %v6507_v39 = vpack.c.bf16 %v6496_v27, %v12062_v17  ;;  %v6468_v55 = vsel %vm1693_vm11, %v6461_v19, %v6467_v9  ;;  %v6495_v49 = vmax.f32 %v6441_v20, %v12067_v47 }
0x1237   :  { %v6476_v46 = vsel %vm1693_vm11, %v6469_v16, %v6475_v56  ;;  %v6480_v59 = vsel %vm1693_vm11, %v6473_v0, %v6479_v42  ;;  %v6508_v21 = vpack.c.bf16 %v6497_v1, %v6494_v33  ;;  %v6498_v30 = vmax.f32 %v6444_v40, %v6468_v55  ;;  %v12159_v0 = vld [vmem:[%s12483_s7] sm:$0xff]  }
0x1238   :  { %v6502_v24 = vmax.f32 %v6448_v60, %v6476_v46  ;;  %v6504_v32 = vmax.f32 %v6450_v63, %v6480_v59  ;;  %v6478_v38 = vsel %vm1693_vm11, %v6471_v57, %v6477_v10  ;;  %v6501_v48 = vmax.f32 %v6447_v41, %v6474_v23 }
0x1239   :  { %6530 = vmatprep.subr.bf16.mxu1 %v6508_v21  ;;  %v6509_v8 = vpack.c.bf16 %v6498_v30, %v6495_v49  ;;  %v6446_v17 = vmax.f32 %v12060_v36, %v6424_v14  ;;  %v6472_v53 = vsel %vm1693_vm11, %v6465_v5, %v6471_v57  ;;  %v6503_v19 = vmax.f32 %v6449_v52, %v6478_v38  ;;  %v9930_v36 = vld [vmem:[%s12481_s6] sm:$0x3f]   ;;  %v12166_v14 = vld [vmem:[%s12483_s7 + $0x8] sm:$0xff]  }
0x123a   :  { %6531 = vmatpush1.bf16.msra.mxu1 %v6507_v39  ;;  %v6512_v47 = vpack.c.bf16 %v6504_v32, %v6501_v48  ;;  %v6510_v9 = vpack.c.bf16 %v6502_v24, %v6499_v28  ;;  %v12171_v52 = vld [vmem:[%s12483_s7 + $0x1c] sm:$0xff]   ;;  %v12194_v63 = vsel %vm1020_vm9, %v9936_v18, 0  ;;  %v12210_v44 = vsel %vm1020_vm9, %v9938_v29, 0 }
0x123b   :  { %9298 = vmatpush3.bf16.msra.mxu0 %v6509_v8  ;;  %v6500_v16 = vmax.f32 %v6446_v17, %v6472_v53  ;;  %vm12495_vm10 = vcmask 228352  }
0x123c   :  { %9299 = vmatprep.subr.bf16.mxu0 %v10155_v7  ;;  %v6528_v12 = vand.u32 %v6512_v47, %v10991_v4  ;;  %v6522_v60 = vand.u32 %v6510_v9, %v10991_v4  ;;  %vm12496_vm11 = vmmov %vm12495_vm10 }
0x123d   :  { %v6511_v50 = vpack.c.bf16 %v6503_v19, %v6500_v16  ;;  %vm12497_vm12 = vmmov %vm12495_vm10 }
0x123e   :  { %vm12498_vm13 = vmmov %vm12495_vm10 }
0x123f   :  { %9300 = vmatpush3.bf16.msra.mxu0 %v6528_v12  ;;  %v6525_v54 = vand.u32 %v6511_v50, %v10991_v4 }
0x1240   :  { %9317 = vmatprep.subr.bf16.mxu0 %v10155_v7 }
0x1241   :  { %6532 = vmatprep.subr.bf16.mxu1 %v6525_v54 }
0x1242   :  { %6533 = vmatpush1.bf16.msra.mxu1 %v6522_v60  ;;  %9302 = vmatmul.mubr.msk.bf16.vlgmr.msra.gmra.mrb[36].mxu0 %vm12493_vm7, %v9930_v36 }
0x1243   :  { %9305 = vmatprep.subr.bf16.mxu1 %v10155_v7  ;;  %9325 = vmatprep.mubr.msk.bf16.mxu0 %vm10156_vm3, %v10155_v7 }
0x1244   :  { %9318 = vmatpush3.bf16.msra.mxu0 %v12159_v0 }
0x1245   :  { %8422 = vmatmul.mubr.msk.bf16.vlgmr.msra.gmra.mrb[184].mxu1 %vm12494_vm8, %v9930_v36  ;;  %9319 = vmatprep.subr.bf16.mxu0 %v10155_v7 }
0x1246   :  { %9313 = vmatprep.mubr.msk.bf16.mxu1 %vm10156_vm3, %v10155_v7  ;;  %9306 = vmatpush3.bf16.msra.mxu1 %v12171_v52 }
0x1247   :  { %9307 = vmatprep.subr.bf16.mxu1 %v10155_v7 }
0x1248   :  { %9320 = vmatpush3.bf16.msra.mxu0 %v12166_v14 }
0x1249   :  { %9321 = vmatprep.subr.bf16.mxu0 %v10155_v7 }
0x124a   :  { %9308 = vmatpush3.bf16.msra.mxu1 %v12184_v15 }
0x124b   :  { %9309 = vmatprep.subr.bf16.mxu1 %v10155_v7 }
0x124c   :  { %9322 = vmatpush3.bf16.msra.mxu0 %v12179_v13 }
0x124d   :  { %9323 = vmatprep.subr.bf16.mxu0 %v10155_v7 }
0x124e   :  { %9310 = vmatpush3.bf16.msra.mxu1 %v12199_v35 }
0x124f   :  { %9311 = vmatprep.subr.bf16.mxu1 %v10155_v7 }
0x1250   :  { %9324 = vmatpush3.bf16.msra.mxu0 %v12194_v63 }
0x1251   :  { %9341 = vmatprep.subr.bf16.mxu0 %v10155_v7 }
0x1252   :  { %9312 = vmatpush3.bf16.msra.mxu1 %v12210_v44 }
0x1253   :  { %9329 = vmatprep.subr.bf16.mxu1 %v10155_v7 }
0x1315   :  { %v6607_v4 = vpop.f32.mrb[36].mxu0 }
0x1316   :  { %v9303_v5 = vpop.f32.mrb[37].mxu0 }
0x1317   :  { %v6610_v57 = vpop.f32.mrb[38].mxu0 }
0x1318   :  { %v12138_v43 = vpop.f32.mrb[184].mxu1  ;;  %v9304_v58 = vpop.f32.mrb[39].mxu0 }
0x1319   :  { %v6566_v26 = vpop.f32.mrb[185].mxu1 }
0x131a   :  { %6660 = vrot.lane.b32.xlu1 %v6566_v26, %s10164_s20  ;;  %v12141_v45 = vpop.f32.mrb[186].mxu1 }
0x131b   :  { %v6570_v3 = vpop.f32.mrb[187].mxu1 }
0x131c   :  { %6662 = vrot.lane.b32.xlu0 %v6570_v3, %s10164_s20 }
0x131e   :  { %6628 = vrot.lane.b32.xlu1 %v6566_v26, %s10165_s21 }
0x1320   :  { %6632 = vrot.lane.b32.xlu0 %v6570_v3, %s10165_s21 }
0x1322   :  { %6670 = vrot.lane.b32.xlu1 %v6607_v4, %s10165_s21 }
0x1324   :  { %6672 = vrot.lane.b32.xlu0 %v6610_v57, %s10165_s21 }
0x1326   :  { %6616 = vrot.lane.b32.xlu1 %v12138_v43, %s10164_s20 }
0x1328   :  { %6618 = vrot.lane.b32.xlu0 %v12141_v45, %s10164_s20 }
0x132a   :  { %6626 = vrot.lane.b32.xlu1 %v12138_v43, %s10165_s21 }
0x132c   :  { %6630 = vrot.lane.b32.xlu0 %v12141_v45, %s10165_s21 }
0x138c   :  { %v6661_v31 = vpop.permute.xlu1 %6660 }
0x138d   :  { %v6666_v61 = vmax.f32 %v6566_v26, %v6661_v31 }
0x138e   :  { %v6663_v28 = vpop.permute.xlu0 %6662 }
0x138f   :  { %v6667_v51 = vmax.f32 %v6570_v3, %v6663_v28 }
0x1390   :  { %v6629_v41 = vpop.permute.xlu1 %6628 }
0x1392   :  { %v6633_v23 = vpop.permute.xlu0 %6632 }
0x1394   :  { %v6671_v62 = vpop.permute.xlu1 %6670 }
0x1395   :  { %v6674_v2 = vsel %vm12495_vm10, %v6629_v41, %v6671_v62 }
0x1396   :  { %v6678_v34 = vmax.f32 %v6666_v61, %v6674_v2  ;;  %v6673_v6 = vpop.permute.xlu0 %6672 }
0x1397   :  { %v6675_v11 = vsel %vm12496_vm11, %v6633_v23, %v6673_v6 }
0x1398   :  { %v6680_v37 = vmin.f32 %v6678_v34, 20.0  ;;  %v6679_v33 = vmax.f32 %v6667_v51, %v6675_v11  ;;  %v6617_v27 = vpop.permute.xlu1 %6616 }
0x1399   :  { %v6622_v40 = vmax.f32 %v12138_v43, %v6617_v27 }
0x139a   :  { %v6682_v20 = vmul.f32 1.442695, %v6680_v37  ;;  %v6681_v56 = vmin.f32 %v6679_v33, 20.0  ;;  %v6619_v42 = vpop.permute.xlu0 %6618 }
0x139b   :  { %v6623_v55 = vmax.f32 %v12141_v45, %v6619_v42 }
0x139c   :  { %10123 = vpow2.f32 %v6682_v20  ;;  %v6684_v1 = vmul.f32 1.442695, %v6681_v56  ;;  %v6627_v10 = vpop.permute.xlu1 %6626 }
0x139d   :  { %v6634_v39 = vsel %vm12497_vm12, %v6627_v10, %v6629_v41  ;;  %v9939_v10 = vld [vmem:[%s12483_s7 + $0x38] sm:$0xff]  }
0x139e   :  { %10125 = vpow2.f32 %v6684_v1  ;;  %v6638_v49 = vmax.f32 %v6622_v40, %v6634_v39  ;;  %v6631_v46 = vpop.permute.xlu0 %6630 }
0x139f   :  { %v6635_v59 = vsel %vm12498_vm13, %v6631_v46, %v6633_v23 }
0x13a0   :  { %v6640_v21 = vmin.f32 %v6638_v49, 20.0  ;;  %v6639_v30 = vmax.f32 %v6623_v55, %v6635_v59  ;;  %v9942_v55 = vld [vmem:[%s12483_s7 + $0x50] ss:$0 sps:$4 sm:$0x11]  }
0x13a2   :  { %v6642_v24 = vmul.f32 1.442695, %v6640_v21  ;;  %v6641_v32 = vmin.f32 %v6639_v30, 20.0 }
0x13a4   :  { %10127 = vpow2.f32 %v6642_v24  ;;  %v6644_v38 = vmul.f32 1.442695, %v6641_v32 }
0x13a6   :  { %v10124_v48 = vpop.eup %10123  ;;  %10129 = vpow2.f32 %v6644_v38 }
0x13a7   :  { %v6686_v8 = vadd.f32 1.0, %v10124_v48 }
0x13a8   :  { %v10126_v17 = vpop.eup %10125 }
0x13a9   :  { %v6688_v53 = vmul.f32 %v6686_v8, %v6686_v8  ;;  %v6687_v19 = vadd.f32 1.0, %v10126_v17 }
0x13ab   :  { %v6694_v47 = vadd.f32 1.0, %v6688_v53  ;;  %v6689_v9 = vmul.f32 %v6687_v19, %v6687_v19  ;;  %v8426_v57 = vadd.f32 -1.0, %v6688_v53 }
0x13ad   :  { %10131 = vrcp.f32 %v6694_v47  ;;  %v6695_v16 = vadd.f32 1.0, %v6689_v9  ;;  %v8427_v43 = vadd.f32 -1.0, %v6689_v9  ;;  %v6692_v45 = vmul.f32 %v8426_v57, %v6678_v34  ;;  %v9957_v57 = vld [vmem:[%s12484_s9 + $0x94] ss:$36 sps:$4 sm:$0xff]  }
0x13ae   :  { %v10128_v12 = vpop.eup %10127 }
0x13af   :  { %10133 = vrcp.f32 %v6695_v16  ;;  %v6646_v50 = vadd.f32 1.0, %v10128_v12  ;;  %v6693_v3 = vmul.f32 %v8427_v43, %v6679_v33  ;;  %v9945_v16 = vld [vmem:[%s12484_s9 + $0x4] ss:$36 sps:$4 sm:$0xff]   ;;  %v9948_v12 = vld [vmem:[%s12484_s9 + $0xc] ss:$36 sps:$4 sm:$0xff]  }
0x13b0   :  { %v10130_v54 = vpop.eup %10129  ;;  %v9960_v43 = vld [vmem:[%s12484_s9 + $0x9c] ss:$36 sps:$4 sm:$0xff]  }
0x13b1   :  { %v6648_v60 = vmul.f32 %v6646_v50, %v6646_v50  ;;  %v6647_v36 = vadd.f32 1.0, %v10130_v54  ;;  %v9943_v50 = vld [vmem:[%s12484_s9] ss:$36 sps:$4 sm:$0xff]   ;;  %v9946_v54 = vld [vmem:[%s12484_s9 + $0x8] ss:$36 sps:$4 sm:$0xff]  }
0x13b3   :  { %v6654_v4 = vadd.f32 1.0, %v6648_v60  ;;  %v6649_v5 = vmul.f32 %v6647_v36, %v6647_v36  ;;  %v8424_v28 = vadd.f32 -1.0, %v6648_v60  ;;  %v9951_v60 = vld [vmem:[%s12484_s9 + $0x4c] ss:$36 sps:$4 sm:$0xff]   ;;  %v9954_v36 = vld [vmem:[%s12484_s9 + $0x54] ss:$36 sps:$4 sm:$0xff]  }
0x13b5   :  { %10135 = vrcp.f32 %v6654_v4  ;;  %v6655_v58 = vadd.f32 1.0, %v6649_v5  ;;  %v8425_v41 = vadd.f32 -1.0, %v6649_v5  ;;  %v6652_v2 = vmul.f32 %v8424_v28, %v6638_v49  ;;  %v9949_v4 = vld [vmem:[%s12484_s9 + $0x48] ss:$36 sps:$4 sm:$0xff]   ;;  %v9952_v5 = vld [vmem:[%s12484_s9 + $0x50] ss:$36 sps:$4 sm:$0xff]  }
0x13b7   :  { %v10132_v26 = vpop.eup %10131  ;;  %10137 = vrcp.f32 %v6655_v58  ;;  %v6653_v51 = vmul.f32 %v8425_v41, %v6639_v30  ;;  %v9955_v58 = vld [vmem:[%s12484_s9 + $0x90] ss:$36 sps:$4 sm:$0xff]  }
0x13b8   :  { %v6698_v29 = vmul.f32 %v10132_v26, %v6692_v45  ;;  %v9958_v26 = vld [vmem:[%s12484_s9 + $0x98] ss:$36 sps:$4 sm:$0xff]  }
0x13b9   :  { %v10134_v18 = vpop.eup %10133  ;;  %v7150_v45 = vld [vmem:[%s12484_s9 + $0xd8] sm:$0x11] }
0x13ba   :  { %v6699_v31 = vmul.f32 %v10134_v18, %v6693_v3  ;;  %v7151_v3 = vld [vmem:[%s12484_s9 + $0xe0] sm:$0x11]  ;;  %v8491_v18 = vcombine.high %v7150_v45, %v7150_v45  ;;  %v9967_v41 = vld [vmem:[%s12484_s9 + $0x14] ss:$36 sps:$4 sm:$0xff]  }
0x13bb   :  { %v8492_v28 = vcombine.low %v7151_v3, %v7151_v3 }
0x13bc   :  { %v6945_v23 = vpack.c.bf16 %v6699_v31, %v6698_v29  ;;  %v8493_v29 = vcombine.high %v7151_v3, %v7151_v3  ;;  %v8490_v31 = vcombine.low %v7150_v45, %v7150_v45  ;;  %v9982_v45 = vld [vmem:[%s12484_s9 + $0xac] ss:$36 sps:$4 sm:$0xff]  }
0x13bd   :  { %v7152_v3 = vld [vmem:[%s12484_s9 + $0xe8] sm:$0x11] }
0x13be   :  { %7000 = vrot.lane.b32.xlu0 %v6945_v23, %s10166_s29  ;;  %v6949_v61 = vshll.u32 %v6945_v23, 16  ;;  %v6947_v6 = vshrl.u32 %v6945_v23, 16  ;;  %v7046_v33 = vrot.slane %v6945_v23, 1  ;;  %v9970_v23 = vld [vmem:[%s12484_s9 + $0x1c] ss:$36 sps:$4 sm:$0xff]  }
0x13bf   :  { %v10136_v62 = vpop.eup %10135 }
0x13c0   :  { %v6951_v11 = vrot.slane %v6949_v61, 1  ;;  %v6658_v27 = vmul.f32 %v10136_v62, %v6652_v2  ;;  %v7320_v61 = vsel %vm1020_vm9, %v8490_v31, 0  ;;  %v7326_v62 = vsel %vm1020_vm9, %v8492_v28, 0  ;;  %v9980_v31 = vld [vmem:[%s12484_s9 + $0xa8] ss:$36 sps:$4 sm:$0xff]  }
0x13c1   :  { %v10138_v37 = vpop.eup %10137  ;;  %v8495_v28 = vcombine.high %v7152_v3, %v7152_v3 }
0x13c2   :  { %v6659_v20 = vmul.f32 %v10138_v37, %v6653_v51  ;;  %v6952_v56 = vor.u32 %v6951_v11, %v6947_v6 }
0x13c4   :  { %v6700_v34 = vpack.c.bf16 %v6659_v20, %v6658_v27  ;;  %6953 = vrot.lane.b32.xlu1 %v6952_v56, %s10166_s29 }
0x13c6   :  { %9326 = vmatmul.mubr.msk.bf16.vlgmr.msra.gmra.mrb[40].mxu0 %vm2835_vm2, %v6700_v34  ;;  %v6718_v42 = vshll.u32 %v6700_v34, 16  ;;  %v6716_v1 = vshrl.u32 %v6700_v34, 16  ;;  %v6865_v49 = vrot.slane %v6700_v34, 1 }
0x13c7   :  { %9342 = vmatpush3.bf16.msra.mxu0 %v12171_v52  ;;  %9349 = vmatprep.mubr.msk.bf16.mxu0 %vm10156_vm3, %v10155_v7  ;;  %v9940_v52 = vld [vmem:[%s12483_s7 + $0x40] sm:$0xff]  }
0x13c8   :  { %7047 = vrot.lane.b32.xlu1 %v7046_v33, %s10166_s29  ;;  %v6720_v40 = vrot.slane %v6718_v42, 1  ;;  %9343 = vmatprep.subr.bf16.mxu0 %v10155_v7  ;;  %v8457_v42 = vld [vmem:[%s12482_s8 + $0x3] ss:$0 sm:$0xff] }
0x13ca   :  { %v6721_v39 = vor.u32 %v6720_v40, %v6716_v1 }
0x13cb   :  { %9344 = vmatpush3.bf16.msra.mxu0 %v12184_v15  ;;  %v9941_v15 = vld [vmem:[%s12483_s7 + $0x48] sm:$0xff]  }
0x13cc   :  { %9314 = vmatmul.mubr.msk.bf16.vlgmr.msra.gmra.mrb[188].mxu1 %vm2835_vm2, %v6721_v39  ;;  %9345 = vmatprep.subr.bf16.mxu0 %v10155_v7 }
0x13cd   :  { %9330 = vmatpush3.bf16.msra.mxu1 %v9939_v10  ;;  %9337 = vmatprep.mubr.msk.bf16.mxu1 %vm10156_vm3, %v10155_v7 }
0x13ce   :  { %9331 = vmatprep.subr.bf16.mxu1 %v10155_v7 }
0x13cf   :  { %9346 = vmatpush3.bf16.msra.mxu0 %v12199_v35  ;;  %v6891_v35 = vsel %vm1020_vm9, %v9942_v55, 0 }
0x13d0   :  { %9347 = vmatprep.subr.bf16.mxu0 %v10155_v7 }
0x13d1   :  { %9332 = vmatpush3.bf16.msra.mxu1 %v9940_v52 }
0x13d2   :  { %9333 = vmatprep.subr.bf16.mxu1 %v10155_v7 }
0x13d3   :  { %9348 = vmatpush3.bf16.msra.mxu0 %v12210_v44 }
0x13d4   :  { %9365 = vmatprep.subr.bf16.mxu0 %v10155_v7 }
0x13d5   :  { %9334 = vmatpush3.bf16.msra.mxu1 %v9941_v15 }
0x13d6   :  { %9335 = vmatprep.subr.bf16.mxu1 %v10155_v7 }
0x13d9   :  { %9336 = vmatpush3.bf16.msra.mxu1 %v6891_v35 }
0x13da   :  { %9353 = vmatprep.subr.bf16.mxu1 %v10155_v7 }
0x13dc   :  { %9338 = vmatmul.mubr.msk.bf16.vlgmr.msra.gmra.mrb[192].mxu1 %vm2835_vm2, %v6865_v49 }
0x13dd   :  { %9354 = vmatpush3.bf16.msra.mxu1 %v12159_v0  ;;  %9361 = vmatprep.mubr.msk.bf16.mxu1 %vm10156_vm3, %v10155_v7 }
0x13de   :  { %9355 = vmatprep.subr.bf16.mxu1 %v10155_v7 }
0x13e1   :  { %9356 = vmatpush3.bf16.msra.mxu1 %v12166_v14 }
0x13e2   :  { %9357 = vmatprep.subr.bf16.mxu1 %v10155_v7 }
0x13e5   :  { %9358 = vmatpush3.bf16.msra.mxu1 %v12179_v13 }
0x13e6   :  { %9359 = vmatprep.subr.bf16.mxu1 %v10155_v7 }
0x13e9   :  { %9360 = vmatpush3.bf16.msra.mxu1 %v12194_v63 }
0x13ea   :  { %7346 = vmatprep.subr.bf16.mxu1 %v9945_v16 }
0x1430   :  { %v7001_v44 = vpop.permute.xlu0 %7000 }
0x1431   :  { %9362 = vmatmul.mubr.msk.bf16.vlgmr.msra.gmra.mrb[196].mxu1 %vm2835_vm2, %v7001_v44 }
0x1432   :  { %7378 = vmatprep.mubr.bf16.mxu1 %v10160_v22  ;;  %7347 = vmatpush1.bf16.msra.mxu1 %v9943_v50 }
0x1433   :  { %7348 = vmatprep.subr.bf16.mxu1 %v9951_v60  ;;  %v9965_v60 = vld [vmem:[%s12484_s9 + $0x10] ss:$36 sps:$4 sm:$0xff]  }
0x1436   :  { %v6954_v0 = vpop.permute.xlu1 %6953  ;;  %7349 = vmatpush1.bf16.msra.mxu1 %v9949_v4 }
0x1437   :  { %9350 = vmatmul.mubr.msk.bf16.vlgmr.msra.gmra.mrb[44].mxu0 %vm2835_vm2, %v6954_v0  ;;  %7350 = vmatprep.subr.bf16.mxu1 %v9957_v57  ;;  %v9976_v57 = vld [vmem:[%s12484_s9 + $0x64] ss:$36 sps:$4 sm:$0xff]  }
0x1438   :  { %9366 = vmatpush3.bf16.msra.mxu0 %v9939_v10  ;;  %9373 = vmatprep.mubr.msk.bf16.mxu0 %vm10156_vm3, %v10155_v7 }
0x1439   :  { %9367 = vmatprep.subr.bf16.mxu0 %v10155_v7 }
0x143a   :  { %v7048_v14 = vpop.permute.xlu1 %7047  ;;  %7351 = vmatpush1.bf16.msra.mxu1 %v9955_v58  ;;  %v9974_v58 = vld [vmem:[%s12484_s9 + $0x60] ss:$36 sps:$4 sm:$0xff]  }
0x143b   :  { %8499 = vmatprep.subr.msk.bf16.mxu1 %vm1020_vm9, %v8491_v18  ;;  %v7153_v18 = vld [vmem:[%s12484_s9 + $0xf0] sm:$0x11] }
0x143c   :  { %9368 = vmatpush3.bf16.msra.mxu0 %v9940_v52 }
0x143d   :  { %9369 = vmatprep.subr.bf16.mxu0 %v10155_v7 }
0x143e   :  { %7353 = vmatpush1.bf16.msra.mxu1 %v7320_v61  ;;  %v8496_v61 = vcombine.low %v7153_v18, %v7153_v18 }
0x143f   :  { %7428 = vmatprep.subr.bf16.mxu1 %v9967_v41  ;;  %v8497_v41 = vcombine.high %v7153_v18, %v7153_v18 }
0x1440   :  { %9370 = vmatpush3.bf16.msra.mxu0 %v9941_v15 }
0x1441   :  { %9371 = vmatprep.subr.bf16.mxu0 %v10155_v7 }
0x1444   :  { %9372 = vmatpush3.bf16.msra.mxu0 %v6891_v35 }
0x1445   :  { %7387 = vmatprep.subr.bf16.mxu0 %v9948_v12 }
0x1447   :  { %9374 = vmatmul.mubr.msk.bf16.vlgmr.msra.gmra.mrb[48].mxu0 %vm2835_vm2, %v7048_v14 }
0x1448   :  { %7419 = vmatprep.mubr.bf16.mxu0 %v10160_v22  ;;  %7388 = vmatpush1.bf16.msra.mxu0 %v9946_v54 }
0x1449   :  { %7389 = vmatprep.subr.bf16.mxu0 %v9954_v36  ;;  %v9968_v36 = vld [vmem:[%s12484_s9 + $0x18] ss:$36 sps:$4 sm:$0xff]  }
0x144c   :  { %7390 = vmatpush1.bf16.msra.mxu0 %v9952_v5  ;;  %v9973_v5 = vld [vmem:[%s12484_s9 + $0x5c] ss:$36 sps:$4 sm:$0xff]  }
0x144d   :  { %7391 = vmatprep.subr.bf16.mxu0 %v9960_v43  ;;  %v9971_v43 = vld [vmem:[%s12484_s9 + $0x58] ss:$36 sps:$4 sm:$0xff]  }
0x1450   :  { %7392 = vmatpush1.bf16.msra.mxu0 %v9958_v26  ;;  %v9979_v26 = vld [vmem:[%s12484_s9 + $0xa4] ss:$36 sps:$4 sm:$0xff]  }
0x1451   :  { %8501 = vmatprep.subr.msk.bf16.mxu0 %vm1020_vm9, %v8493_v29  ;;  %v9977_v29 = vld [vmem:[%s12484_s9 + $0xa0] ss:$36 sps:$4 sm:$0xff]  }
0x1454   :  { %7394 = vmatpush1.bf16.msra.mxu0 %v7326_v62  ;;  %v7338_v62 = vsel %vm1020_vm9, %v8496_v61, 0 }
0x1455   :  { %7469 = vmatprep.subr.bf16.mxu0 %v9970_v23  ;;  %v8494_v23 = vcombine.low %v7152_v3, %v7152_v3 }
0x1499   :  { %v6850_v13 = vpop.f32.mrb[40].mxu0 }
0x149a   :  { %v9327_v63 = vpop.f32.mrb[41].mxu0 }
0x149b   :  { %v6853_v46 = vpop.f32.mrb[42].mxu0 }
0x149c   :  { %v9328_v59 = vpop.f32.mrb[43].mxu0 }
0x149f   :  { %v6783_v21 = vpop.f32.mrb[188].mxu1 }
0x14a0   :  { %v6851_v30 = vadd.f32 %v6850_v13, %v6783_v21  ;;  %v9315_v24 = vpop.f32.mrb[189].mxu1 }
0x14a1   :  { %v6786_v32 = vpop.f32.mrb[190].mxu1 }
0x14a2   :  { %v6854_v38 = vadd.f32 %v6853_v46, %v6786_v32  ;;  %v9316_v48 = vpop.f32.mrb[191].mxu1 }
0x14af   :  { %v6927_v8 = vpop.f32.mrb[192].mxu1 }
0x14b0   :  { %v6934_v17 = vadd.f32 %v6927_v8, %v6851_v30  ;;  %v9339_v53 = vpop.f32.mrb[193].mxu1 }
0x14b1   :  { %v6930_v19 = vpop.f32.mrb[194].mxu1 }
0x14b2   :  { %v6935_v47 = vadd.f32 %v6930_v19, %v6854_v38  ;;  %v9340_v9 = vpop.f32.mrb[195].mxu1  ;;  %v6943_v52 = vadd.f32 %v8457_v42, %v6934_v17 }
0x14b4   :  { %v6944_v49 = vadd.f32 %v8457_v42, %v6935_v47 }
0x1504   :  { %v7039_v2 = vpop.f32.mrb[196].mxu1 }
0x1505   :  { %v9363_v51 = vpop.f32.mrb[197].mxu1 }
0x1506   :  { %v7042_v6 = vpop.f32.mrb[198].mxu1  ;;  %v9988_v51 = vld [vmem:[%s12484_s9 + $0x68] ss:$36 sps:$4 sm:$0xff]  }
0x1507   :  { %v9364_v11 = vpop.f32.mrb[199].mxu1 }
0x1508   :  { %v9990_v11 = vld [vmem:[%s12484_s9 + $0xf8] ss:$0 sps:$4 sm:$0x11]  }
0x150a   :  { %v6992_v37 = vpop.f32.mrb[44].mxu0 }
0x150b   :  { %v7040_v27 = vadd.f32 %v7039_v2, %v6992_v37  ;;  %v9351_v20 = vpop.f32.mrb[45].mxu0  ;;  %v9987_v2 = vld [vmem:[%s12484_s9 + $0x20] ss:$36 sps:$4 sm:$0xff]   ;;  %v7344_v37 = vsel %vm1020_vm9, %v9990_v11, 0 }
0x150c   :  { %v6995_v56 = vpop.f32.mrb[46].mxu0  ;;  %v9992_v20 = vld [vmem:[%s12485_s10 + $0x8] sm:$0xff]  }
0x150d   :  { %v7043_v34 = vadd.f32 %v7042_v6, %v6995_v56  ;;  %v9352_v33 = vpop.f32.mrb[47].mxu0  ;;  %v9989_v6 = vld [vmem:[%s12484_s9 + $0xb0] ss:$36 sps:$4 sm:$0xff]  }
0x150e   :  { %v9993_v56 = vld [vmem:[%s12485_s10 + $0x10] sm:$0xff]   ;;  %v9995_v33 = vld [vmem:[%s12485_s10 + $0x20] sm:$0xff]  }
0x151a   :  { %v7086_v1 = vpop.f32.mrb[48].mxu0 }
0x151b   :  { %v7093_v40 = vadd.f32 %v7086_v1, %v7040_v27  ;;  %v9375_v10 = vpop.f32.mrb[49].mxu0  ;;  %v9991_v27 = vld [vmem:[%s12485_s10] sm:$0xff]   ;;  %v9997_v1 = vld [vmem:[%s12485_s10 + $0x30] sm:$0xff]  }
0x151c   :  { %v7089_v39 = vpop.f32.mrb[50].mxu0 }
0x151d   :  { %v7095_v15 = vadd.f32 %v8457_v42, %v7093_v40  ;;  %v7094_v55 = vadd.f32 %v7089_v39, %v7043_v34  ;;  %v9376_v35 = vpop.f32.mrb[51].mxu0  ;;  %v9994_v34 = vld [vmem:[%s12485_s10 + $0x18] sm:$0xff]  }
0x151e   :  { %v9998_v40 = vld [vmem:[%s12485_s10 + $0x38] sm:$0xff]  }
0x151f   :  { %v7097_v44 = vmax.f32 %v6943_v52, %v7095_v15  ;;  %v7096_v0 = vadd.f32 %v8457_v42, %v7094_v55  ;;  %v9996_v42 = vld [vmem:[%s12485_s10 + $0x28] sm:$0xff]  }
0x1521   :  { %v7099_v14 = vmin.f32 %v7097_v44, 20.0  ;;  %v7098_v13 = vmax.f32 %v6944_v49, %v7096_v0 }
0x1523   :  { %v7101_v63 = vmul.f32 1.442695, %v7099_v14  ;;  %v7100_v46 = vmin.f32 %v7098_v13, 20.0  ;;  %v7550_v14 = vld [vmem:[%s12482_s8 + $0x4] sm:$0x1] }
0x1525   :  { %10139 = vpow2.f32 %v7101_v63  ;;  %v7103_v59 = vmul.f32 1.442695, %v7100_v46 }
0x1527   :  { %10141 = vpow2.f32 %v7103_v59 }
0x152f   :  { %v10140_v21 = vpop.eup %10139 }
0x1530   :  { %v7105_v30 = vadd.f32 1.0, %v10140_v21 }
0x1531   :  { %v10142_v24 = vpop.eup %10141 }
0x1532   :  { %v7107_v32 = vmul.f32 %v7105_v30, %v7105_v30  ;;  %v7106_v38 = vadd.f32 1.0, %v10142_v24 }
0x1534   :  { %v7113_v48 = vadd.f32 1.0, %v7107_v32  ;;  %v7108_v8 = vmul.f32 %v7106_v38, %v7106_v38  ;;  %v8461_v53 = vadd.f32 -1.0, %v7107_v32 }
0x1536   :  { %10143 = vrcp.f32 %v7113_v48  ;;  %v7114_v17 = vadd.f32 1.0, %v7108_v8  ;;  %v8462_v19 = vadd.f32 -1.0, %v7108_v8  ;;  %v7111_v9 = vmul.f32 %v8461_v53, %v7097_v44 }
0x1538   :  { %10145 = vrcp.f32 %v7114_v17  ;;  %v7112_v16 = vmul.f32 %v8462_v19, %v7098_v13 }
0x1540   :  { %v10144_v47 = vpop.eup %10143 }
0x1541   :  { %v7117_v50 = vmul.f32 %v10144_v47, %v7111_v9 }
0x1542   :  { %v10146_v12 = vpop.eup %10145 }
0x1543   :  { %v7118_v54 = vmul.f32 %v10146_v12, %v7112_v16 }
0x1545   :  { %v7119_v4 = vpack.c.bf16 %v7118_v54, %v7117_v50 }
0x1547   :  { %8500 = vmatmul.mubr.msk.bf16.vlgmr.msra.gmra.mrb[200].mxu1 %vm2835_vm2, %v7119_v4  ;;  %8502 = vmatmul.mubr.msk.bf16.vlgmr.msra.gmra.mrb[52].mxu0 %vm2835_vm2, %v7119_v4 }
0x1548   :  { %7429 = vmatpush1.bf16.msra.mxu1 %v9965_v60  ;;  %7470 = vmatpush1.bf16.msra.mxu0 %v9968_v36 }
0x1549   :  { %7430 = vmatprep.subr.bf16.mxu1 %v9973_v5  ;;  %7471 = vmatprep.subr.bf16.mxu0 %v9976_v57 }
0x154a   :  { %7460 = vmatprep.mubr.bf16.mxu1 %v10160_v22  ;;  %7501 = vmatprep.mubr.bf16.mxu0 %v10160_v22  ;;  %v7332_v22 = vsel %vm1020_vm9, %v8494_v23, 0 }
0x154c   :  { %7431 = vmatpush1.bf16.msra.mxu1 %v9971_v43  ;;  %7472 = vmatpush1.bf16.msra.mxu0 %v9974_v58 }
0x154d   :  { %7432 = vmatprep.subr.bf16.mxu1 %v9979_v26  ;;  %7473 = vmatprep.subr.bf16.mxu0 %v9982_v45 }
0x1550   :  { %7433 = vmatpush1.bf16.msra.mxu1 %v9977_v29  ;;  %7474 = vmatpush1.bf16.msra.mxu0 %v9980_v31 }
0x1551   :  { %8503 = vmatprep.subr.msk.bf16.mxu1 %vm1020_vm9, %v8495_v28  ;;  %8505 = vmatprep.subr.msk.bf16.mxu0 %vm1020_vm9, %v8497_v41 }
0x1554   :  { %7435 = vmatpush1.bf16.msra.mxu1 %v7332_v22  ;;  %7476 = vmatpush1.bf16.msra.mxu0 %v7338_v62 }
0x1555   :  { %9377 = vmatprep.subr.bf16.mxu1 %v10155_v7  ;;  %9389 = vmatprep.subr.bf16.mxu0 %v10155_v7 }
0x1557   :  { %8504 = vmatmul.mubr.msk.bf16.vlgmr.msra.gmra.mrb[204].mxu1 %vm2835_vm2, %v7119_v4  ;;  %8506 = vmatmul.mubr.msk.bf16.vlgmr.msra.gmra.mrb[56].mxu0 %vm2835_vm2, %v7119_v4 }
0x1558   :  { %9378 = vmatpush3.bf16.msra.mxu1 %v9987_v2  ;;  %9385 = vmatprep.mubr.msk.bf16.mxu1 %vm10156_vm3, %v10155_v7 }
0x1559   :  { %9379 = vmatprep.subr.bf16.mxu1 %v10155_v7  ;;  %9405 = vmatprep.mubr.msk.bf16.mxu0 %vm10156_vm3, %v10155_v7 }
0x155a   :  { %9390 = vmatpush3.bf16.msra.mxu0 %v9991_v27 }
0x155b   :  { %9391 = vmatprep.subr.bf16.mxu0 %v10155_v7 }
0x155c   :  { %9380 = vmatpush3.bf16.msra.mxu1 %v9988_v51 }
0x155d   :  { %9381 = vmatprep.subr.bf16.mxu1 %v10155_v7 }
0x155e   :  { %9392 = vmatpush3.bf16.msra.mxu0 %v9992_v20 }
0x155f   :  { %9393 = vmatprep.subr.bf16.mxu0 %v10155_v7 }
0x1560   :  { %9382 = vmatpush3.bf16.msra.mxu1 %v9989_v6 }
0x1561   :  { %9383 = vmatprep.subr.bf16.mxu1 %v10155_v7 }
0x1562   :  { %9394 = vmatpush3.bf16.msra.mxu0 %v9993_v56 }
0x1563   :  { %9395 = vmatprep.subr.bf16.mxu0 %v10155_v7 }
0x1564   :  { %9384 = vmatpush3.bf16.msra.mxu1 %v7344_v37 }
0x1565   :  { %9409 = vmatprep.subr.bf16.mxu1 %v10155_v7 }
0x1566   :  { %9396 = vmatpush3.bf16.msra.mxu0 %v9994_v34 }
0x1567   :  { %9386 = vmatmul.mubr.msk.bf16.vlgmr.msra.gmra.mrb[208].mxu1 %vm2835_vm2, %v7119_v4  ;;  %9397 = vmatprep.subr.bf16.mxu0 %v10155_v7 }
0x1568   :  { %9417 = vmatprep.mubr.msk.bf16.mxu1 %vm10156_vm3, %v10155_v7 }
0x156a   :  { %9398 = vmatpush3.bf16.msra.mxu0 %v9995_v33 }
0x156b   :  { %9399 = vmatprep.subr.bf16.mxu0 %v10155_v7 }
0x156e   :  { %9400 = vmatpush3.bf16.msra.mxu0 %v9996_v42 }
0x156f   :  { %9401 = vmatprep.subr.bf16.mxu0 %v10155_v7 }
0x1572   :  { %9402 = vmatpush3.bf16.msra.mxu0 %v9997_v1 }
0x1573   :  { %9403 = vmatprep.subr.bf16.mxu0 %v10155_v7 }
0x1576   :  { %9404 = vmatpush3.bf16.msra.mxu0 %v9998_v40 }
0x161a   :  { %v7380_v10 = vpop.f32.mrb[200].mxu1  ;;  %v7421_v39 = vpop.f32.mrb[52].mxu0 }
0x161b   :  { %v7577_v52 = vrot.slane %v7421_v39, %v11332_v25  ;;  %v7382_v15 = vpop.f32.mrb[201].mxu1  ;;  %v7423_v55 = vpop.f32.mrb[53].mxu0  ;;  %v7551_v30 = vadd.f32 %v7550_v14, %v7380_v10 }
0x161c   :  { %v7559_v35 = vrot.slane %v7382_v15, %v11332_v25  ;;  %v7595_v49 = vrot.slane %v7423_v55, %v11332_v25  ;;  %v7384_v44 = vpop.f32.mrb[202].mxu1  ;;  %v7425_v0 = vpop.f32.mrb[54].mxu0  ;;  %v9999_v55 = vld [vmem:[%s12486_s11] sm:$0xff]  }
0x161d   :  { %v7385_v13 = vpop.f32.mrb[203].mxu1  ;;  %v7426_v63 = vpop.f32.mrb[55].mxu0  ;;  %v7584_v46 = vrot.slane %v7577_v52, %v11332_v25  ;;  %9410 = vmatpush3.bf16.msra.mxu1 %v9999_v55  ;;  %v10002_v44 = vld [vmem:[%s12486_s11 + $0x18] sm:$0xff]   ;;  %v7711_v0 = vld [vmem:[%s12482_s8 + $0x5] sm:$0x1] }
0x161e   :  { %v7560_v59 = vcombine.high %v7559_v35, %v7559_v35  ;;  %v7596_v21 = vcombine.high %v7595_v49, %v7595_v49  ;;  %9411 = vmatprep.subr.bf16.mxu1 %v10155_v7  ;;  %v10000_v35 = vld [vmem:[%s12486_s11 + $0x8] sm:$0xff]   ;;  %v10001_v49 = vld [vmem:[%s12486_s11 + $0x10] sm:$0xff]  }
0x161f   :  { %v7585_v38 = vcombine.high %v7584_v46, %v7584_v46 }
0x1620   :  { %v7567_v24 = vrot.slane %v7560_v59, %v11332_v25  ;;  %v7603_v32 = vrot.slane %v7596_v21, %v11332_v25 }
0x1621   :  { %9412 = vmatpush3.bf16.msra.mxu1 %v10000_v35 }
0x1622   :  { %v7569_v48 = vadd.f32 %v7567_v24, %v7551_v30  ;;  %v7604_v17 = vcombine.high %v7603_v32, %v7603_v32  ;;  %9413 = vmatprep.subr.bf16.mxu1 %v10155_v7 }
0x1624   :  { %v7587_v8 = vadd.f32 %v7585_v38, %v7569_v48 }
0x1625   :  { %9414 = vmatpush3.bf16.msra.mxu1 %v10001_v49 }
0x1626   :  { %v7606_v53 = vadd.f32 %v7604_v17, %v7587_v8  ;;  %9415 = vmatprep.subr.bf16.mxu1 %v10155_v7 }
0x1629   :  { %9416 = vmatpush3.bf16.msra.mxu1 %v10002_v44 }
0x162a   :  { %v7462_v19 = vpop.f32.mrb[204].mxu1  ;;  %v7503_v47 = vpop.f32.mrb[56].mxu0 }
0x162b   :  { %v7608_v9 = vcombine.high %v7462_v19, %v7462_v19  ;;  %v7645_v16 = vcombine.high %v7503_v47, %v7503_v47  ;;  %v7464_v12 = vpop.f32.mrb[205].mxu1  ;;  %v7505_v50 = vpop.f32.mrb[57].mxu0  ;;  %v7819_v47 = vld [vmem:[%s12482_s8 + $0x6] sm:$0x1] }
0x162c   :  { %v7626_v54 = vcombine.high %v7464_v12, %v7464_v12  ;;  %v7664_v60 = vcombine.high %v7505_v50, %v7505_v50  ;;  %v7466_v36 = vpop.f32.mrb[206].mxu1  ;;  %v7507_v4 = vpop.f32.mrb[58].mxu0 }
0x162d   :  { %v7615_v5 = vrot.slane %v7608_v9, %v11332_v25  ;;  %v7652_v57 = vrot.slane %v7645_v16, %v11332_v25  ;;  %v7467_v43 = vpop.f32.mrb[207].mxu1  ;;  %v7508_v58 = vpop.f32.mrb[59].mxu0 }
0x162e   :  { %v7633_v26 = vrot.slane %v7626_v54, %v11332_v25  ;;  %v7671_v45 = vrot.slane %v7664_v60, %v11332_v25 }
0x162f   :  { %v7622_v3 = vrot.slane %v7615_v5, %v11332_v25  ;;  %v7659_v18 = vrot.slane %v7652_v57, %v11332_v25 }
0x1630   :  { %v7634_v29 = vcombine.high %v7633_v26, %v7633_v26  ;;  %v7672_v31 = vcombine.high %v7671_v45, %v7671_v45 }
0x1631   :  { %v7624_v28 = vadd.f32 %v7622_v3, %v7606_v53  ;;  %v7660_v61 = vcombine.high %v7659_v18, %v7659_v18 }
0x1632   :  { %v7641_v41 = vrot.slane %v7634_v29, %v11332_v25  ;;  %v7679_v23 = vrot.slane %v7672_v31, %v11332_v25 }
0x1634   :  { %v7643_v22 = vadd.f32 %v7641_v41, %v7624_v28  ;;  %v7680_v2 = vcombine.high %v7679_v23, %v7679_v23 }
0x1636   :  { %v7662_v62 = vadd.f32 %v7660_v61, %v7643_v22 }
0x1638   :  { %v7682_v51 = vadd.f32 %v7680_v2, %v7662_v62 }
0x163a   :  { %v7544_v6 = vpop.f32.mrb[208].mxu1 }
0x163b   :  { %v9387_v11 = vpop.f32.mrb[209].mxu1 }
0x163c   :  { %v7546_v37 = vpop.f32.mrb[210].mxu1 }
0x163d   :  { %v7683_v27 = vadd.f32 %v7682_v51, %v7546_v37  ;;  %v9388_v20 = vpop.f32.mrb[211].mxu1 }
0x163f   :  { %v7684_v56 = vmin.f32 %v7683_v27, 20.0 }
0x1641   :  { %v7685_v34 = vmul.f32 1.442695, %v7684_v56 }
0x1643   :  { %10147 = vpow2.f32 %v7685_v34 }
0x164d   :  { %v10148_v33 = vpop.eup %10147 }
0x164e   :  { %v7687_v42 = vadd.f32 1.0, %v10148_v33 }
0x1650   :  { %v7688_v1 = vmul.f32 %v7687_v42, %v7687_v42 }
0x1652   :  { %v7691_v40 = vadd.f32 1.0, %v7688_v1  ;;  %v8508_v10 = vadd.f32 -1.0, %v7688_v1 }
0x1654   :  { %10149 = vrcp.f32 %v7691_v40  ;;  %v7690_v25 = vmul.f32 %v8508_v10, %v7683_v27 }
0x165e   :  { %v10150_v39 = vpop.eup %10149 }
0x165f   :  { %v7693_v52 = vmul.f32 %v10150_v39, %v7690_v25 }
0x1661   :  { %v7694_v15 = vpack.c.bf16 %v7693_v52, %v7693_v52 }
0x1663   :  { %9406 = vmatmul.mubr.bf16.vlgmr.msra.gmra.mrb[60].mxu0 %v7694_v15 }
0x1736   :  { %v7794_v14 = vpop.f32.mrb[60].mxu0 }
0x1737   :  { %v7795_v13 = vadd.f32 %v7794_v14, %v7711_v0  ;;  %v9407_v63 = vpop.f32.mrb[61].mxu0 }
0x1738   :  { %v7797_v46 = vpop.f32.mrb[62].mxu0 }
0x1739   :  { %v7800_v59 = vmin.f32 %v7795_v13, 20.0  ;;  %v9408_v21 = vpop.f32.mrb[63].mxu0 }
0x173b   :  { %v7801_v30 = vmul.f32 1.442695, %v7800_v59 }
0x173d   :  { %10151 = vpow2.f32 %v7801_v30 }
0x1747   :  { %v10152_v24 = vpop.eup %10151 }
0x1748   :  { %v7803_v32 = vadd.f32 1.0, %v10152_v24 }
0x174a   :  { %v7804_v38 = vmul.f32 %v7803_v32, %v7803_v32 }
0x174c   :  { %v7807_v48 = vadd.f32 1.0, %v7804_v38  ;;  %v8517_v8 = vadd.f32 -1.0, %v7804_v38 }
0x174e   :  { %10153 = vrcp.f32 %v7807_v48  ;;  %v7806_v7 = vmul.f32 %v8517_v8, %v7795_v13 }
0x1758   :  { %v10154_v17 = vpop.eup %10153 }
0x1759   :  { %v7809_v53 = vmul.f32 %v10154_v17, %v7806_v7 }
0x175b   :  { %v7810_v19 = vpack.c.bf16 %v7809_v53, %v7809_v53 }
0x175d   :  { %9418 = vmatmul.mubr.msk.bf16.vlgmr.msra.gmra.mrb[212].mxu1 %vm3938_vm1, %v7810_v19 }
0x1830   :  { %v7881_v9 = vpop.f32.mrb[212].mxu1 }
0x1831   :  { %v7882_v16 = vadd.f32 %v7881_v9, %v7819_v47  ;;  %v9419_v12 = vpop.f32.mrb[213].mxu1 }
0x1832   :  { %v7884_v50 = vpop.f32.mrb[214].mxu1 }
0x1833   :  { %7887 = vst.msk [vmem:[%s12487_s12 + $0x1] sm:$0x1] %vm3982_vm4, %v7882_v16  ;;  %v9420_v54 = vpop.f32.mrb[215].mxu1 }

</bundles_post_ra>
